<compile_context>
chip_gen: v7x
topology: tpu7x:2x2x1
jax: 0.10.0
libtpu: 0.0.40
codegen_flags: <defaults>
</compile_context>

<pallas_src>
import functools

import jax
import jax.numpy as jnp
from jax import lax
from jax.experimental import pallas as pl
from jax.experimental.pallas import tpu as pltpu


# =============================================================================
# In-kernel helpers (channels on sublanes, flattened spatial on lanes)
# =============================================================================

def _shift_lanes(x, d):
    """result[:, p] = x[:, (p + d) % N] for a (C, N) array.

    Wrapped positions are always masked / clamped by the caller, so the
    circular semantics there are don't-cares.  (pltpu.roll could move this to
    the XLU slot; the concat form is used for guaranteed lowering.)"""
    n = x.shape[-1]
    d = d % n
    if d == 0:
        return x
    return jnp.concatenate([x[:, d:], x[:, :d]], axis=1)


def _row_col_iota(H, W):
    """Row / col index of every flattened spatial position, shape (1, H*W)."""
    # TODO(synk): support non-power-of-two widths (needs integer div/mod here).
    assert W > 0 and (W & (W - 1)) == 0, "spatial width must be a power of two"
    idx = lax.broadcasted_iota(jnp.int32, (1, H * W), 1)
    col = idx & (W - 1)
    row = idx >> (W.bit_length() - 1)
    return row, col


def _conv3x3(x, wmat, H, W):
    """'same' 3x3 conv as ONE MXU matmul.

    x    : (Cin, H*W) f32
    wmat : (Cout, 9*Cin) with wmat[o, (ky*3+kx)*Cin + c] = w_torch[o, c, ky, kx]
    out  : (Cout, H*W) f32
    """
    row, col = _row_col_iota(H, W)
    taps = []
    for dy in (-1, 0, 1):
        for dx in (-1, 0, 1):
            t = _shift_lanes(x, dy * W + dx)
            conds = []
            if dy == -1:
                conds.append(row >= 1)
            if dy == 1:
                conds.append(row < H - 1)
            if dx == -1:
                conds.append(col >= 1)
            if dx == 1:
                conds.append(col < W - 1)
            if conds:
                m = conds[0]
                for c in conds[1:]:
                    m = jnp.logical_and(m, c)
                t = jnp.where(m, t, 0.0)           # zero padding outside image
            taps.append(t)
    patches = jnp.concatenate(taps, axis=0)        # (9*Cin, H*W) im2col operand
    # bf16 MXU operands, f32 accumulation (native on v5e/v6e/v7x).
    return jnp.dot(wmat.astype(jnp.bfloat16), patches.astype(jnp.bfloat16),
                   preferred_element_type=jnp.float32)


def _resblock_math(x, w1, b1, w2, b2, alpha, H, W):
    """conv3x3 -> PReLU(alpha) -> conv3x3 -> + x, all on (C, H*W) values."""
    h = _conv3x3(x, w1, H, W) + b1
    h = jnp.where(h >= 0, h, alpha * h)            # PReLU (learnable scalar)
    return _conv3x3(h, w2, H, W) + b2 + x


# =============================================================================
# Kernels
# =============================================================================

def _resblock_kernel(x_ref, w1_ref, b1_ref, w2_ref, b2_ref, a_ref, o_ref, *, H, W):
    x = x_ref[0].astype(jnp.float32)
    y = _resblock_math(x, w1_ref[...], b1_ref[...].astype(jnp.float32),
                       w2_ref[...], b2_ref[...].astype(jnp.float32),
                       a_ref[...].astype(jnp.float32), H, W)
    o_ref[0] = y.astype(o_ref.dtype)


def _skip_resblock_kernel(up_ref, enc_ref, ws_ref, bs_ref,
                          w1_ref, b1_ref, w2_ref, b2_ref, a_ref, o_ref, *, H, W):
    # skip_attn conv + SkipUpSample's "+ y" + ResBlock, fused in one kernel.
    enc = enc_ref[0].astype(jnp.float32)
    skip = _conv3x3(enc, ws_ref[...], H, W) + bs_ref[...].astype(jnp.float32)
    x = up_ref[0].astype(jnp.float32) + skip
    y = _resblock_math(x, w1_ref[...], b1_ref[...].astype(jnp.float32),
                       w2_ref[...], b2_ref[...].astype(jnp.float32),
                       a_ref[...].astype(jnp.float32), H, W)
    o_ref[0] = y.astype(o_ref.dtype)


def _up_phases_kernel(x_ref, w_ref, o_ref, *, H, W):
    # x_ref: (1, Cs, H*W) low-res; o_ref: (1, 4, Cout, H*W) -- the 4 phases
    # (pi*2+pj) of bilinear 2x (align_corners=False) followed by the bias-free
    # 1x1 conv.  The interleave to full resolution is one reshape outside.
    x = x_ref[0].astype(jnp.float32)
    row, col = _row_col_iota(H, W)
    wm = w_ref[...].astype(jnp.bfloat16)

    x_up = jnp.where(row >= 1, _shift_lanes(x, -W), x)      # row i-1 (clamped)
    x_dn = jnp.where(row < H - 1, _shift_lanes(x, W), x)    # row i+1 (clamped)
    r_even = 0.25 * x_up + 0.75 * x                          # output rows 2i
    r_odd = 0.75 * x + 0.25 * x_dn                           # output rows 2i+1

    def col_phases(a):
        a_l = jnp.where(col >= 1, _shift_lanes(a, -1), a)    # col j-1 (clamped)
        a_r = jnp.where(col < W - 1, _shift_lanes(a, 1), a)  # col j+1 (clamped)
        return 0.25 * a_l + 0.75 * a, 0.75 * a + 0.25 * a_r

    k = 0
    for r in (r_even, r_odd):
        for p in col_phases(r):
            v = jnp.dot(wm, p.astype(jnp.bfloat16),
                        preferred_element_type=jnp.float32)
            o_ref[0, k] = v.astype(o_ref.dtype)
            k += 1


# =============================================================================
# Wrappers (pallas_call sites)
# =============================================================================

_PAR = pltpu.CompilerParams(dimension_semantics=("parallel",))


def resblock(x, p, H, W):
    # x: (B, C, H*W);  p = (w1, b1, w2, b2, alpha)
    B, C, HW = x.shape
    w1, b1, w2, b2, alpha = p
    rep = pl.BlockSpec((1, C, HW), lambda i: (i, 0, 0))
    wspec = pl.BlockSpec((C, 9 * C), lambda i: (0, 0))
    bspec = pl.BlockSpec((C, 1), lambda i: (0, 0))
    aspec = pl.BlockSpec((1, 1), lambda i: (0, 0))
    cost = pl.CostEstimate(flops=2 * 2 * 9 * C * C * HW * B, transcendentals=0,
                           bytes_accessed=4 * (2 * B * C * HW + 2 * 9 * C * C + 2 * C))
    return pl.pallas_call(
        functools.partial(_resblock_kernel, H=H, W=W),
        out_shape=jax.ShapeDtypeStruct((B, C, HW), x.dtype),
        grid=(B,),
        in_specs=[rep, wspec, bspec, wspec, bspec, aspec],
        out_specs=rep,
        compiler_params=_PAR,
        cost_estimate=cost,
    )(x, w1, b1, w2, b2, alpha)


def skip_resblock(up, enc, skip_p, res_p, H, W):
    # up, enc: (B, C, H*W);  skip_p = (ws, bs);  res_p = (w1, b1, w2, b2, alpha)
    B, C, HW = up.shape
    ws, bs = skip_p
    w1, b1, w2, b2, alpha = res_p
    rep = pl.BlockSpec((1, C, HW), lambda i: (i, 0, 0))
    wspec = pl.BlockSpec((C, 9 * C), lambda i: (0, 0))
    bspec = pl.BlockSpec((C, 1), lambda i: (0, 0))
    aspec = pl.BlockSpec((1, 1), lambda i: (0, 0))
    cost = pl.CostEstimate(flops=3 * 2 * 9 * C * C * HW * B, transcendentals=0,
                           bytes_accessed=4 * (3 * B * C * HW + 3 * 9 * C * C + 3 * C))
    return pl.pallas_call(
        functools.partial(_skip_resblock_kernel, H=H, W=W),
        out_shape=jax.ShapeDtypeStruct((B, C, HW), up.dtype),
        grid=(B,),
        in_specs=[rep, rep, wspec, bspec, wspec, bspec, wspec, bspec, aspec],
        out_specs=rep,
        compiler_params=_PAR,
        cost_estimate=cost,
    )(up, enc, ws, bs, w1, b1, w2, b2, alpha)


def skip_upsample(x, w_up, h, w):
    """bilinear 2x (align_corners=False) + bias-free 1x1 conv.

    x: (B, Cs, h*w) -> (B, Cout, (2h)*(2w)).  The '+ skip' add of SkipUpSample
    is fused into the following skip_resblock kernel."""
    B, Cs, hw = x.shape
    Cout = w_up.shape[0]
    cost = pl.CostEstimate(flops=2 * Cs * Cout * 4 * hw * B, transcendentals=0,
                           bytes_accessed=4 * (B * Cs * hw + 4 * B * Cout * hw + Cs * Cout))
    packed = pl.pallas_call(
        functools.partial(_up_phases_kernel, H=h, W=w),
        out_shape=jax.ShapeDtypeStruct((B, 4, Cout, hw), x.dtype),
        grid=(B,),
        in_specs=[pl.BlockSpec((1, Cs, hw), lambda i: (i, 0, 0)),
                  pl.BlockSpec((Cout, Cs), lambda i: (0, 0))],
        out_specs=pl.BlockSpec((1, 4, Cout, hw), lambda i: (i, 0, 0, 0)),
        compiler_params=_PAR,
        cost_estimate=cost,
    )(x, w_up)
    # Single interleave (pure layout glue): phase (pi, pj) -> pixel (2i+pi, 2j+pj).
    t = packed.reshape(B, 2, 2, Cout, h, w)
    t = jnp.transpose(t, (0, 3, 4, 1, 5, 2))       # (B, C, h, 2, w, 2)
    return t.reshape(B, Cout, 4 * hw)


# =============================================================================
# Decoder forward (NCHW in / NCHW out, matching the PyTorch module)
# =============================================================================

def decoder_forward(params, enc1, enc2, enc3):
    B, c1, H1, W1 = enc1.shape
    _, c2, H2, W2 = enc2.shape
    _, c3, H3, W3 = enc3.shape
    e1 = enc1.reshape(B, c1, H1 * W1)
    e2 = enc2.reshape(B, c2, H2 * W2)
    e3 = enc3.reshape(B, c3, H3 * W3)

    dec3 = resblock(e3, params["dec3"], H3, W3)
    up = skip_upsample(dec3, params["up32_w"], H3, W3)
    dec2 = skip_resblock(up, e2, params["sk2"], params["dec2"], H2, W2)
    up = skip_upsample(dec2, params["up21_w"], H2, W2)
    dec1 = skip_resblock(up, e1, params["sk1"], params["dec1"], H1, W1)

    return [dec1.reshape(B, c1, H1, W1),
            dec2.reshape(B, c2, H2, W2),
            dec3.reshape(B, c3, H3, W3)]


# =============================================================================
# Parameters (PyTorch layout -> kernel matmul layout)
# =============================================================================

def conv3x3_weight_to_matmul(w_pt):
    # PyTorch (Cout, Cin, 3, 3) -> (Cout, 9*Cin), tap-major (ky, kx) then Cin,
    # matching the patches layout built in _conv3x3.
    co, ci, kh, kw = w_pt.shape
    return jnp.transpose(w_pt, (0, 2, 3, 1)).reshape(co, kh * kw * ci)


def init_params(key, n_feat, scale):
    c1, c2, c3 = n_feat, n_feat + scale, n_feat + 2 * scale
    keys = iter(jax.random.split(key, 32))

    def conv_w(ci, co, s=0.1):
        return jax.random.normal(next(keys), (co, ci, 3, 3), jnp.float32) * s

    def conv_b(co, s=0.05):
        return jax.random.normal(next(keys), (co,), jnp.float32) * s

    def res_params(c):
        # (w1, b1, w2, b2, PReLU alpha); alpha = nn.PReLU()'s learnable scalar.
        return (conv3x3_weight_to_matmul(conv_w(c, c)), conv_b(c).reshape(c, 1),
                conv3x3_weight_to_matmul(conv_w(c, c)), conv_b(c).reshape(c, 1),
                jnp.full((1, 1), 0.25, jnp.float32))

    return {
        "dec1": res_params(c1),
        "dec2": res_params(c2),
        "dec3": res_params(c3),
        "sk1": (conv3x3_weight_to_matmul(conv_w(c1, c1)), conv_b(c1).reshape(c1, 1)),
        "sk2": (conv3x3_weight_to_matmul(conv_w(c2, c2)), conv_b(c2).reshape(c2, 1)),
        # SkipUpSample 1x1 convs (bias=False): PyTorch (Cout, Cin, 1, 1) -> (Cout, Cin)
        "up32_w": jax.random.normal(next(keys), (c2, c3), jnp.float32) * 0.1,
        "up21_w": jax.random.normal(next(keys), (c1, c2), jnp.float32) * 0.1,
    }


if __name__ == "__main__":
    n_feat, scale_unetfeats = 8, 4
    B, H, W = 2, 32, 32
    c1, c2, c3 = n_feat, n_feat + scale_unetfeats, n_feat + 2 * scale_unetfeats

    key = jax.random.PRNGKey(0)
    k1, k2, k3, kp = jax.random.split(key, 4)

    # PyTorch-style NCHW encoder features (the Decoder's `outs` list).
    enc1 = jax.random.normal(k1, (B, c1, H, W), jnp.float32)
    enc2 = jax.random.normal(k2, (B, c2, H // 2, W // 2), jnp.float32)
    enc3 = jax.random.normal(k3, (B, c3, H // 4, W // 4), jnp.float32)

    params = init_params(kp, n_feat, scale_unetfeats)

    fwd = jax.jit(decoder_forward)
    dec1, dec2, dec3 = fwd(params, enc1, enc2, enc3)
    jax.block_until_ready((dec1, dec2, dec3))

    assert dec1.shape == (B, c1, H, W)
    assert dec2.shape == (B, c2, H // 2, W // 2)
    assert dec3.shape == (B, c3, H // 4, W // 4)
    assert all(bool(jnp.isfinite(d).all()) for d in (dec1, dec2, dec3))
    print("KERNEL_OK")
</pallas_src>

<mosaic_0001>
module attributes {stable_mosaic.version = 11 : i64} {
  func.func @_resblock_kernel(%arg0: i32, %arg1: memref<1x16x64xf32, #tpu.memory_space<vmem>>, %arg2: memref<16x144xf32, #tpu.memory_space<vmem>>, %arg3: memref<16x1xf32, #tpu.memory_space<vmem>>, %arg4: memref<16x144xf32, #tpu.memory_space<vmem>>, %arg5: memref<16x1xf32, #tpu.memory_space<vmem>>, %arg6: memref<1x1xf32, #tpu.memory_space<vmem>>, %arg7: memref<1x16x64xf32, #tpu.memory_space<vmem>>) attributes {dimension_semantics = [#tpu.dimension_semantics<parallel>], iteration_bounds = array<i64: 2>, scalar_prefetch = 0 : i64, scratch_operands = 0 : i64, tpu.core_type = #tpu.core_type<tc>, window_params = [{transform_indices = @transform_0, window_bounds = array<i64: 1, 16, 64>}, {pipeline_mode = #tpu.pipeline_mode<synchronous>, transform_indices = @transform_1, window_bounds = array<i64: 16, 144>}, {pipeline_mode = #tpu.pipeline_mode<synchronous>, transform_indices = @transform_2, window_bounds = array<i64: 16, 1>}, {pipeline_mode = #tpu.pipeline_mode<synchronous>, transform_indices = @transform_3, window_bounds = array<i64: 16, 144>}, {pipeline_mode = #tpu.pipeline_mode<synchronous>, transform_indices = @transform_4, window_bounds = array<i64: 16, 1>}, {pipeline_mode = #tpu.pipeline_mode<synchronous>, transform_indices = @transform_5, window_bounds = array<i64: 1, 1>}, {transform_indices = @transform_6, window_bounds = array<i64: 1, 16, 64>}]} {
    %c0 = arith.constant 0 : index
    %c0_0 = arith.constant 0 : index
    %c0_1 = arith.constant 0 : index
    %0 = vector.load %arg1[%c0, %c0_0, %c0_1] : memref<1x16x64xf32, #tpu.memory_space<vmem>>, vector<1x16x64xf32>
    %1 = vector.shape_cast %0 : vector<1x16x64xf32> to vector<16x64xf32>
    %c0_2 = arith.constant 0 : index
    %c0_3 = arith.constant 0 : index
    %2 = vector.load %arg2[%c0_2, %c0_3] : memref<16x144xf32, #tpu.memory_space<vmem>>, vector<16x144xf32>
    %c0_4 = arith.constant 0 : index
    %c0_5 = arith.constant 0 : index
    %3 = vector.load %arg3[%c0_4, %c0_5] : memref<16x1xf32, #tpu.memory_space<vmem>>, vector<16x1xf32>
    %c0_6 = arith.constant 0 : index
    %c0_7 = arith.constant 0 : index
    %4 = vector.load %arg4[%c0_6, %c0_7] : memref<16x144xf32, #tpu.memory_space<vmem>>, vector<16x144xf32>
    %c0_8 = arith.constant 0 : index
    %c0_9 = arith.constant 0 : index
    %5 = vector.load %arg5[%c0_8, %c0_9] : memref<16x1xf32, #tpu.memory_space<vmem>>, vector<16x1xf32>
    %c0_10 = arith.constant 0 : index
    %c0_11 = arith.constant 0 : index
    %6 = vector.load %arg6[%c0_10, %c0_11] : memref<1x1xf32, #tpu.memory_space<vmem>>, vector<1x1xf32>
    %7 = tpu.iota {dimensions = array<i32: 1>} : vector<1x64xi32>
    %c7_i32 = arith.constant 7 : i32
    %8 = vector.broadcast %c7_i32 : i32 to vector<1x64xi32>
    %9 = arith.andi %7, %8 : vector<1x64xi32>
    %c3_i32 = arith.constant 3 : i32
    %10 = vector.broadcast %c3_i32 : i32 to vector<1x64xi32>
    %11 = arith.shrsi %7, %10 : vector<1x64xi32>
    %12 = vector.extract_strided_slice %1 {offsets = [0, 55], sizes = [16, 9], strides = [1, 1]} : vector<16x64xf32> to vector<16x9xf32>
    %13 = vector.extract_strided_slice %1 {offsets = [0, 0], sizes = [16, 55], strides = [1, 1]} : vector<16x64xf32> to vector<16x55xf32>
    %14 = tpu.concatenate %12, %13 in 1 : vector<16x9xf32>, vector<16x55xf32> -> vector<16x64xf32>
    %c1_i32 = arith.constant 1 : i32
    %15 = vector.broadcast %c1_i32 : i32 to vector<1x64xi32>
    %16 = arith.cmpi sge, %11, %15 : vector<1x64xi32>
    %c1_i32_12 = arith.constant 1 : i32
    %17 = vector.broadcast %c1_i32_12 : i32 to vector<1x64xi32>
    %18 = arith.cmpi sge, %9, %17 : vector<1x64xi32>
    %19 = arith.andi %16, %18 : vector<1x64xi1>
    %cst = arith.constant 0.000000e+00 : f32
    %20 = vector.shape_cast %19 : vector<1x64xi1> to vector<1x64xi1>
    %21 = vector.broadcast %20 : vector<1x64xi1> to vector<16x64xi1>
    %22 = vector.broadcast %cst : f32 to vector<16x64xf32>
    %23 = arith.select %21, %14, %22 : vector<16x64xi1>, vector<16x64xf32>
    %24 = vector.extract_strided_slice %1 {offsets = [0, 56], sizes = [16, 8], strides = [1, 1]} : vector<16x64xf32> to vector<16x8xf32>
    %25 = vector.extract_strided_slice %1 {offsets = [0, 0], sizes = [16, 56], strides = [1, 1]} : vector<16x64xf32> to vector<16x56xf32>
    %26 = tpu.concatenate %24, %25 in 1 : vector<16x8xf32>, vector<16x56xf32> -> vector<16x64xf32>
    %c1_i32_13 = arith.constant 1 : i32
    %27 = vector.broadcast %c1_i32_13 : i32 to vector<1x64xi32>
    %28 = arith.cmpi sge, %11, %27 : vector<1x64xi32>
    %cst_14 = arith.constant 0.000000e+00 : f32
    %29 = vector.shape_cast %28 : vector<1x64xi1> to vector<1x64xi1>
    %30 = vector.broadcast %29 : vector<1x64xi1> to vector<16x64xi1>
    %31 = vector.broadcast %cst_14 : f32 to vector<16x64xf32>
    %32 = arith.select %30, %26, %31 : vector<16x64xi1>, vector<16x64xf32>
    %33 = vector.extract_strided_slice %1 {offsets = [0, 57], sizes = [16, 7], strides = [1, 1]} : vector<16x64xf32> to vector<16x7xf32>
    %34 = vector.extract_strided_slice %1 {offsets = [0, 0], sizes = [16, 57], strides = [1, 1]} : vector<16x64xf32> to vector<16x57xf32>
    %35 = tpu.concatenate %33, %34 in 1 : vector<16x7xf32>, vector<16x57xf32> -> vector<16x64xf32>
    %c1_i32_15 = arith.constant 1 : i32
    %36 = vector.broadcast %c1_i32_15 : i32 to vector<1x64xi32>
    %37 = arith.cmpi sge, %11, %36 : vector<1x64xi32>
    %c7_i32_16 = arith.constant 7 : i32
    %38 = vector.broadcast %c7_i32_16 : i32 to vector<1x64xi32>
    %39 = arith.cmpi slt, %9, %38 : vector<1x64xi32>
    %40 = arith.andi %37, %39 : vector<1x64xi1>
    %cst_17 = arith.constant 0.000000e+00 : f32
    %41 = vector.shape_cast %40 : vector<1x64xi1> to vector<1x64xi1>
    %42 = vector.broadcast %41 : vector<1x64xi1> to vector<16x64xi1>
    %43 = vector.broadcast %cst_17 : f32 to vector<16x64xf32>
    %44 = arith.select %42, %35, %43 : vector<16x64xi1>, vector<16x64xf32>
    %45 = vector.extract_strided_slice %1 {offsets = [0, 63], sizes = [16, 1], strides = [1, 1]} : vector<16x64xf32> to vector<16x1xf32>
    %46 = vector.extract_strided_slice %1 {offsets = [0, 0], sizes = [16, 63], strides = [1, 1]} : vector<16x64xf32> to vector<16x63xf32>
    %47 = tpu.concatenate %45, %46 in 1 : vector<16x1xf32>, vector<16x63xf32> -> vector<16x64xf32>
    %c1_i32_18 = arith.constant 1 : i32
    %48 = vector.broadcast %c1_i32_18 : i32 to vector<1x64xi32>
    %49 = arith.cmpi sge, %9, %48 : vector<1x64xi32>
    %cst_19 = arith.constant 0.000000e+00 : f32
    %50 = vector.shape_cast %49 : vector<1x64xi1> to vector<1x64xi1>
    %51 = vector.broadcast %50 : vector<1x64xi1> to vector<16x64xi1>
    %52 = vector.broadcast %cst_19 : f32 to vector<16x64xf32>
    %53 = arith.select %51, %47, %52 : vector<16x64xi1>, vector<16x64xf32>
    %54 = vector.extract_strided_slice %1 {offsets = [0, 1], sizes = [16, 63], strides = [1, 1]} : vector<16x64xf32> to vector<16x63xf32>
    %55 = vector.extract_strided_slice %1 {offsets = [0, 0], sizes = [16, 1], strides = [1, 1]} : vector<16x64xf32> to vector<16x1xf32>
    %56 = tpu.concatenate %54, %55 in 1 : vector<16x63xf32>, vector<16x1xf32> -> vector<16x64xf32>
    %c7_i32_20 = arith.constant 7 : i32
    %57 = vector.broadcast %c7_i32_20 : i32 to vector<1x64xi32>
    %58 = arith.cmpi slt, %9, %57 : vector<1x64xi32>
    %cst_21 = arith.constant 0.000000e+00 : f32
    %59 = vector.shape_cast %58 : vector<1x64xi1> to vector<1x64xi1>
    %60 = vector.broadcast %59 : vector<1x64xi1> to vector<16x64xi1>
    %61 = vector.broadcast %cst_21 : f32 to vector<16x64xf32>
    %62 = arith.select %60, %56, %61 : vector<16x64xi1>, vector<16x64xf32>
    %63 = vector.extract_strided_slice %1 {offsets = [0, 7], sizes = [16, 57], strides = [1, 1]} : vector<16x64xf32> to vector<16x57xf32>
    %64 = vector.extract_strided_slice %1 {offsets = [0, 0], sizes = [16, 7], strides = [1, 1]} : vector<16x64xf32> to vector<16x7xf32>
    %65 = tpu.concatenate %63, %64 in 1 : vector<16x57xf32>, vector<16x7xf32> -> vector<16x64xf32>
    %c7_i32_22 = arith.constant 7 : i32
    %66 = vector.broadcast %c7_i32_22 : i32 to vector<1x64xi32>
    %67 = arith.cmpi slt, %11, %66 : vector<1x64xi32>
    %c1_i32_23 = arith.constant 1 : i32
    %68 = vector.broadcast %c1_i32_23 : i32 to vector<1x64xi32>
    %69 = arith.cmpi sge, %9, %68 : vector<1x64xi32>
    %70 = arith.andi %67, %69 : vector<1x64xi1>
    %cst_24 = arith.constant 0.000000e+00 : f32
    %71 = vector.shape_cast %70 : vector<1x64xi1> to vector<1x64xi1>
    %72 = vector.broadcast %71 : vector<1x64xi1> to vector<16x64xi1>
    %73 = vector.broadcast %cst_24 : f32 to vector<16x64xf32>
    %74 = arith.select %72, %65, %73 : vector<16x64xi1>, vector<16x64xf32>
    %75 = vector.extract_strided_slice %1 {offsets = [0, 8], sizes = [16, 56], strides = [1, 1]} : vector<16x64xf32> to vector<16x56xf32>
    %76 = vector.extract_strided_slice %1 {offsets = [0, 0], sizes = [16, 8], strides = [1, 1]} : vector<16x64xf32> to vector<16x8xf32>
    %77 = tpu.concatenate %75, %76 in 1 : vector<16x56xf32>, vector<16x8xf32> -> vector<16x64xf32>
    %c7_i32_25 = arith.constant 7 : i32
    %78 = vector.broadcast %c7_i32_25 : i32 to vector<1x64xi32>
    %79 = arith.cmpi slt, %11, %78 : vector<1x64xi32>
    %cst_26 = arith.constant 0.000000e+00 : f32
    %80 = vector.shape_cast %79 : vector<1x64xi1> to vector<1x64xi1>
    %81 = vector.broadcast %80 : vector<1x64xi1> to vector<16x64xi1>
    %82 = vector.broadcast %cst_26 : f32 to vector<16x64xf32>
    %83 = arith.select %81, %77, %82 : vector<16x64xi1>, vector<16x64xf32>
    %84 = vector.extract_strided_slice %1 {offsets = [0, 9], sizes = [16, 55], strides = [1, 1]} : vector<16x64xf32> to vector<16x55xf32>
    %85 = vector.extract_strided_slice %1 {offsets = [0, 0], sizes = [16, 9], strides = [1, 1]} : vector<16x64xf32> to vector<16x9xf32>
    %86 = tpu.concatenate %84, %85 in 1 : vector<16x55xf32>, vector<16x9xf32> -> vector<16x64xf32>
    %c7_i32_27 = arith.constant 7 : i32
    %87 = vector.broadcast %c7_i32_27 : i32 to vector<1x64xi32>
    %88 = arith.cmpi slt, %11, %87 : vector<1x64xi32>
    %c7_i32_28 = arith.constant 7 : i32
    %89 = vector.broadcast %c7_i32_28 : i32 to vector<1x64xi32>
    %90 = arith.cmpi slt, %9, %89 : vector<1x64xi32>
    %91 = arith.andi %88, %90 : vector<1x64xi1>
    %cst_29 = arith.constant 0.000000e+00 : f32
    %92 = vector.shape_cast %91 : vector<1x64xi1> to vector<1x64xi1>
    %93 = vector.broadcast %92 : vector<1x64xi1> to vector<16x64xi1>
    %94 = vector.broadcast %cst_29 : f32 to vector<16x64xf32>
    %95 = arith.select %93, %86, %94 : vector<16x64xi1>, vector<16x64xf32>
    %96 = tpu.concatenate %23, %32, %44, %53, %1, %62, %74, %83, %95 in 0 : vector<16x64xf32>, vector<16x64xf32>, vector<16x64xf32>, vector<16x64xf32>, vector<16x64xf32>, vector<16x64xf32>, vector<16x64xf32>, vector<16x64xf32>, vector<16x64xf32> -> vector<144x64xf32>
    %97 = arith.truncf %2 : vector<16x144xf32> to vector<16x144xbf16>
    %98 = arith.truncf %96 : vector<144x64xf32> to vector<144x64xbf16>
    %cst_30 = arith.constant dense<0.000000e+00> : vector<16x64xf32>
    %99 = tpu.matmul %97, %98, %cst_30 {dimension_numbers = #tpu.dot_dimension_numbers<[1], [0], [0], [1], [0, 0, 1, 1], [], []>} : vector<16x144xbf16>, vector<144x64xbf16>, vector<16x64xf32> -> vector<16x64xf32>
    %100 = vector.broadcast %3 : vector<16x1xf32> to vector<16x64xf32>
    %101 = arith.addf %99, %100 : vector<16x64xf32>
    %cst_31 = arith.constant 0.000000e+00 : f32
    %102 = vector.broadcast %cst_31 : f32 to vector<16x64xf32>
    %103 = arith.cmpf oge, %101, %102 : vector<16x64xf32>
    %104 = vector.broadcast %6 : vector<1x1xf32> to vector<16x64xf32>
    %105 = arith.mulf %104, %101 : vector<16x64xf32>
    %106 = arith.select %103, %101, %105 : vector<16x64xi1>, vector<16x64xf32>
    %107 = tpu.iota {dimensions = array<i32: 1>} : vector<1x64xi32>
    %c7_i32_32 = arith.constant 7 : i32
    %108 = vector.broadcast %c7_i32_32 : i32 to vector<1x64xi32>
    %109 = arith.andi %107, %108 : vector<1x64xi32>
    %c3_i32_33 = arith.constant 3 : i32
    %110 = vector.broadcast %c3_i32_33 : i32 to vector<1x64xi32>
    %111 = arith.shrsi %107, %110 : vector<1x64xi32>
    %112 = vector.extract_strided_slice %106 {offsets = [0, 55], sizes = [16, 9], strides = [1, 1]} : vector<16x64xf32> to vector<16x9xf32>
    %113 = vector.extract_strided_slice %106 {offsets = [0, 0], sizes = [16, 55], strides = [1, 1]} : vector<16x64xf32> to vector<16x55xf32>
    %114 = tpu.concatenate %112, %113 in 1 : vector<16x9xf32>, vector<16x55xf32> -> vector<16x64xf32>
    %c1_i32_34 = arith.constant 1 : i32
    %115 = vector.broadcast %c1_i32_34 : i32 to vector<1x64xi32>
    %116 = arith.cmpi sge, %111, %115 : vector<1x64xi32>
    %c1_i32_35 = arith.constant 1 : i32
    %117 = vector.broadcast %c1_i32_35 : i32 to vector<1x64xi32>
    %118 = arith.cmpi sge, %109, %117 : vector<1x64xi32>
    %119 = arith.andi %116, %118 : vector<1x64xi1>
    %cst_36 = arith.constant 0.000000e+00 : f32
    %120 = vector.shape_cast %119 : vector<1x64xi1> to vector<1x64xi1>
    %121 = vector.broadcast %120 : vector<1x64xi1> to vector<16x64xi1>
    %122 = vector.broadcast %cst_36 : f32 to vector<16x64xf32>
    %123 = arith.select %121, %114, %122 : vector<16x64xi1>, vector<16x64xf32>
    %124 = vector.extract_strided_slice %106 {offsets = [0, 56], sizes = [16, 8], strides = [1, 1]} : vector<16x64xf32> to vector<16x8xf32>
    %125 = vector.extract_strided_slice %106 {offsets = [0, 0], sizes = [16, 56], strides = [1, 1]} : vector<16x64xf32> to vector<16x56xf32>
    %126 = tpu.concatenate %124, %125 in 1 : vector<16x8xf32>, vector<16x56xf32> -> vector<16x64xf32>
    %c1_i32_37 = arith.constant 1 : i32
    %127 = vector.broadcast %c1_i32_37 : i32 to vector<1x64xi32>
    %128 = arith.cmpi sge, %111, %127 : vector<1x64xi32>
    %cst_38 = arith.constant 0.000000e+00 : f32
    %129 = vector.shape_cast %128 : vector<1x64xi1> to vector<1x64xi1>
    %130 = vector.broadcast %129 : vector<1x64xi1> to vector<16x64xi1>
    %131 = vector.broadcast %cst_38 : f32 to vector<16x64xf32>
    %132 = arith.select %130, %126, %131 : vector<16x64xi1>, vector<16x64xf32>
    %133 = vector.extract_strided_slice %106 {offsets = [0, 57], sizes = [16, 7], strides = [1, 1]} : vector<16x64xf32> to vector<16x7xf32>
    %134 = vector.extract_strided_slice %106 {offsets = [0, 0], sizes = [16, 57], strides = [1, 1]} : vector<16x64xf32> to vector<16x57xf32>
    %135 = tpu.concatenate %133, %134 in 1 : vector<16x7xf32>, vector<16x57xf32> -> vector<16x64xf32>
    %c1_i32_39 = arith.constant 1 : i32
    %136 = vector.broadcast %c1_i32_39 : i32 to vector<1x64xi32>
    %137 = arith.cmpi sge, %111, %136 : vector<1x64xi32>
    %c7_i32_40 = arith.constant 7 : i32
    %138 = vector.broadcast %c7_i32_40 : i32 to vector<1x64xi32>
    %139 = arith.cmpi slt, %109, %138 : vector<1x64xi32>
    %140 = arith.andi %137, %139 : vector<1x64xi1>
    %cst_41 = arith.constant 0.000000e+00 : f32
    %141 = vector.shape_cast %140 : vector<1x64xi1> to vector<1x64xi1>
    %142 = vector.broadcast %141 : vector<1x64xi1> to vector<16x64xi1>
    %143 = vector.broadcast %cst_41 : f32 to vector<16x64xf32>
    %144 = arith.select %142, %135, %143 : vector<16x64xi1>, vector<16x64xf32>
    %145 = vector.extract_strided_slice %106 {offsets = [0, 63], sizes = [16, 1], strides = [1, 1]} : vector<16x64xf32> to vector<16x1xf32>
    %146 = vector.extract_strided_slice %106 {offsets = [0, 0], sizes = [16, 63], strides = [1, 1]} : vector<16x64xf32> to vector<16x63xf32>
    %147 = tpu.concatenate %145, %146 in 1 : vector<16x1xf32>, vector<16x63xf32> -> vector<16x64xf32>
    %c1_i32_42 = arith.constant 1 : i32
    %148 = vector.broadcast %c1_i32_42 : i32 to vector<1x64xi32>
    %149 = arith.cmpi sge, %109, %148 : vector<1x64xi32>
    %cst_43 = arith.constant 0.000000e+00 : f32
    %150 = vector.shape_cast %149 : vector<1x64xi1> to vector<1x64xi1>
    %151 = vector.broadcast %150 : vector<1x64xi1> to vector<16x64xi1>
    %152 = vector.broadcast %cst_43 : f32 to vector<16x64xf32>
    %153 = arith.select %151, %147, %152 : vector<16x64xi1>, vector<16x64xf32>
    %154 = vector.extract_strided_slice %106 {offsets = [0, 1], sizes = [16, 63], strides = [1, 1]} : vector<16x64xf32> to vector<16x63xf32>
    %155 = vector.extract_strided_slice %106 {offsets = [0, 0], sizes = [16, 1], strides = [1, 1]} : vector<16x64xf32> to vector<16x1xf32>
    %156 = tpu.concatenate %154, %155 in 1 : vector<16x63xf32>, vector<16x1xf32> -> vector<16x64xf32>
    %c7_i32_44 = arith.constant 7 : i32
    %157 = vector.broadcast %c7_i32_44 : i32 to vector<1x64xi32>
    %158 = arith.cmpi slt, %109, %157 : vector<1x64xi32>
    %cst_45 = arith.constant 0.000000e+00 : f32
    %159 = vector.shape_cast %158 : vector<1x64xi1> to vector<1x64xi1>
    %160 = vector.broadcast %159 : vector<1x64xi1> to vector<16x64xi1>
    %161 = vector.broadcast %cst_45 : f32 to vector<16x64xf32>
    %162 = arith.select %160, %156, %161 : vector<16x64xi1>, vector<16x64xf32>
    %163 = vector.extract_strided_slice %106 {offsets = [0, 7], sizes = [16, 57], strides = [1, 1]} : vector<16x64xf32> to vector<16x57xf32>
    %164 = vector.extract_strided_slice %106 {offsets = [0, 0], sizes = [16, 7], strides = [1, 1]} : vector<16x64xf32> to vector<16x7xf32>
    %165 = tpu.concatenate %163, %164 in 1 : vector<16x57xf32>, vector<16x7xf32> -> vector<16x64xf32>
    %c7_i32_46 = arith.constant 7 : i32
    %166 = vector.broadcast %c7_i32_46 : i32 to vector<1x64xi32>
    %167 = arith.cmpi slt, %111, %166 : vector<1x64xi32>
    %c1_i32_47 = arith.constant 1 : i32
    %168 = vector.broadcast %c1_i32_47 : i32 to vector<1x64xi32>
    %169 = arith.cmpi sge, %109, %168 : vector<1x64xi32>
    %170 = arith.andi %167, %169 : vector<1x64xi1>
    %cst_48 = arith.constant 0.000000e+00 : f32
    %171 = vector.shape_cast %170 : vector<1x64xi1> to vector<1x64xi1>
    %172 = vector.broadcast %171 : vector<1x64xi1> to vector<16x64xi1>
    %173 = vector.broadcast %cst_48 : f32 to vector<16x64xf32>
    %174 = arith.select %172, %165, %173 : vector<16x64xi1>, vector<16x64xf32>
    %175 = vector.extract_strided_slice %106 {offsets = [0, 8], sizes = [16, 56], strides = [1, 1]} : vector<16x64xf32> to vector<16x56xf32>
    %176 = vector.extract_strided_slice %106 {offsets = [0, 0], sizes = [16, 8], strides = [1, 1]} : vector<16x64xf32> to vector<16x8xf32>
    %177 = tpu.concatenate %175, %176 in 1 : vector<16x56xf32>, vector<16x8xf32> -> vector<16x64xf32>
    %c7_i32_49 = arith.constant 7 : i32
    %178 = vector.broadcast %c7_i32_49 : i32 to vector<1x64xi32>
    %179 = arith.cmpi slt, %111, %178 : vector<1x64xi32>
    %cst_50 = arith.constant 0.000000e+00 : f32
    %180 = vector.shape_cast %179 : vector<1x64xi1> to vector<1x64xi1>
    %181 = vector.broadcast %180 : vector<1x64xi1> to vector<16x64xi1>
    %182 = vector.broadcast %cst_50 : f32 to vector<16x64xf32>
    %183 = arith.select %181, %177, %182 : vector<16x64xi1>, vector<16x64xf32>
    %184 = vector.extract_strided_slice %106 {offsets = [0, 9], sizes = [16, 55], strides = [1, 1]} : vector<16x64xf32> to vector<16x55xf32>
    %185 = vector.extract_strided_slice %106 {offsets = [0, 0], sizes = [16, 9], strides = [1, 1]} : vector<16x64xf32> to vector<16x9xf32>
    %186 = tpu.concatenate %184, %185 in 1 : vector<16x55xf32>, vector<16x9xf32> -> vector<16x64xf32>
    %c7_i32_51 = arith.constant 7 : i32
    %187 = vector.broadcast %c7_i32_51 : i32 to vector<1x64xi32>
    %188 = arith.cmpi slt, %111, %187 : vector<1x64xi32>
    %c7_i32_52 = arith.constant 7 : i32
    %189 = vector.broadcast %c7_i32_52 : i32 to vector<1x64xi32>
    %190 = arith.cmpi slt, %109, %189 : vector<1x64xi32>
    %191 = arith.andi %188, %190 : vector<1x64xi1>
    %cst_53 = arith.constant 0.000000e+00 : f32
    %192 = vector.shape_cast %191 : vector<1x64xi1> to vector<1x64xi1>
    %193 = vector.broadcast %192 : vector<1x64xi1> to vector<16x64xi1>
    %194 = vector.broadcast %cst_53 : f32 to vector<16x64xf32>
    %195 = arith.select %193, %186, %194 : vector<16x64xi1>, vector<16x64xf32>
    %196 = tpu.concatenate %123, %132, %144, %153, %106, %162, %174, %183, %195 in 0 : vector<16x64xf32>, vector<16x64xf32>, vector<16x64xf32>, vector<16x64xf32>, vector<16x64xf32>, vector<16x64xf32>, vector<16x64xf32>, vector<16x64xf32>, vector<16x64xf32> -> vector<144x64xf32>
    %197 = arith.truncf %4 : vector<16x144xf32> to vector<16x144xbf16>
    %198 = arith.truncf %196 : vector<144x64xf32> to vector<144x64xbf16>
    %cst_54 = arith.constant dense<0.000000e+00> : vector<16x64xf32>
    %199 = tpu.matmul %197, %198, %cst_54 {dimension_numbers = #tpu.dot_dimension_numbers<[1], [0], [0], [1], [0, 0, 1, 1], [], []>} : vector<16x144xbf16>, vector<144x64xbf16>, vector<16x64xf32> -> vector<16x64xf32>
    %200 = vector.broadcast %5 : vector<16x1xf32> to vector<16x64xf32>
    %201 = arith.addf %199, %200 : vector<16x64xf32>
    %202 = arith.addf %201, %1 : vector<16x64xf32>
    %c0_55 = arith.constant 0 : index
    %c0_56 = arith.constant 0 : index
    %c0_57 = arith.constant 0 : index
    %203 = vector.load %arg7[%c0_55, %c0_56, %c0_57] : memref<1x16x64xf32, #tpu.memory_space<vmem>>, vector<1x16x64xf32>
    %204 = vector.shape_cast %203 : vector<1x16x64xf32> to vector<16x64xf32>
    %205 = vector.shape_cast %202 : vector<16x64xf32> to vector<1x16x64xf32>
    tpu.vector_store %arg7[%c0_55, %c0_56, %c0_57], %205 {strides = array<i32>} : memref<1x16x64xf32, #tpu.memory_space<vmem>>, vector<1x16x64xf32>,
    return
  }
  func.func @transform_0(%arg0: i32) -> (i32, i32, i32) {
    %c0_i32 = arith.constant 0 : i32
    %c0_i32_0 = arith.constant 0 : i32
    %c0_i32_1 = arith.constant 0 : i32
    return %arg0, %c0_i32, %c0_i32_0 : i32, i32, i32
  }
  func.func @transform_1(%arg0: i32) -> (i32, i32) {
    %c0_i32 = arith.constant 0 : i32
    %c0_i32_0 = arith.constant 0 : i32
    %c0_i32_1 = arith.constant 0 : i32
    return %c0_i32, %c0_i32_0 : i32, i32
  }
  func.func @transform_2(%arg0: i32) -> (i32, i32) {
    %c0_i32 = arith.constant 0 : i32
    %c0_i32_0 = arith.constant 0 : i32
    %c0_i32_1 = arith.constant 0 : i32
    return %c0_i32, %c0_i32_0 : i32, i32
  }
  func.func @transform_3(%arg0: i32) -> (i32, i32) {
    %c0_i32 = arith.constant 0 : i32
    %c0_i32_0 = arith.constant 0 : i32
    %c0_i32_1 = arith.constant 0 : i32
    return %c0_i32, %c0_i32_0 : i32, i32
  }
  func.func @transform_4(%arg0: i32) -> (i32, i32) {
    %c0_i32 = arith.constant 0 : i32
    %c0_i32_0 = arith.constant 0 : i32
    %c0_i32_1 = arith.constant 0 : i32
    return %c0_i32, %c0_i32_0 : i32, i32
  }
  func.func @transform_5(%arg0: i32) -> (i32, i32) {
    %c0_i32 = arith.constant 0 : i32
    %c0_i32_0 = arith.constant 0 : i32
    %c0_i32_1 = arith.constant 0 : i32
    return %c0_i32, %c0_i32_0 : i32, i32
  }
  func.func @transform_6(%arg0: i32) -> (i32, i32, i32) {
    %c0_i32 = arith.constant 0 : i32
    %c0_i32_0 = arith.constant 0 : i32
    %c0_i32_1 = arith.constant 0 : i32
    return %arg0, %c0_i32, %c0_i32_0 : i32, i32, i32
  }
}

module attributes {stable_mosaic.version = 11 : i64} {
  func.func @_up_phases_kernel(%arg0: i32, %arg1: memref<1x16x64xf32, #tpu.memory_space<vmem>>, %arg2: memref<12x16xf32, #tpu.memory_space<vmem>>, %arg3: memref<1x4x12x64xf32, #tpu.memory_space<vmem>>) attributes {dimension_semantics = [#tpu.dimension_semantics<parallel>], iteration_bounds = array<i64: 2>, scalar_prefetch = 0 : i64, scratch_operands = 0 : i64, tpu.core_type = #tpu.core_type<tc>, window_params = [{transform_indices = @transform_0, window_bounds = array<i64: 1, 16, 64>}, {pipeline_mode = #tpu.pipeline_mode<synchronous>, transform_indices = @transform_1, window_bounds = array<i64: 12, 16>}, {transform_indices = @transform_2, window_bounds = array<i64: 1, 4, 12, 64>}]} {
    %c0 = arith.constant 0 : index
    %c0_0 = arith.constant 0 : index
    %c0_1 = arith.constant 0 : index
    %0 = vector.load %arg1[%c0, %c0_0, %c0_1] : memref<1x16x64xf32, #tpu.memory_space<vmem>>, vector<1x16x64xf32>
    %1 = vector.shape_cast %0 : vector<1x16x64xf32> to vector<16x64xf32>
    %2 = tpu.iota {dimensions = array<i32: 1>} : vector<1x64xi32>
    %c7_i32 = arith.constant 7 : i32
    %3 = vector.broadcast %c7_i32 : i32 to vector<1x64xi32>
    %4 = arith.andi %2, %3 : vector<1x64xi32>
    %c3_i32 = arith.constant 3 : i32
    %5 = vector.broadcast %c3_i32 : i32 to vector<1x64xi32>
    %6 = arith.shrsi %2, %5 : vector<1x64xi32>
    %c0_2 = arith.constant 0 : index
    %c0_3 = arith.constant 0 : index
    %7 = vector.load %arg2[%c0_2, %c0_3] : memref<12x16xf32, #tpu.memory_space<vmem>>, vector<12x16xf32>
    %8 = arith.truncf %7 : vector<12x16xf32> to vector<12x16xbf16>
    %c1_i32 = arith.constant 1 : i32
    %9 = vector.broadcast %c1_i32 : i32 to vector<1x64xi32>
    %10 = arith.cmpi sge, %6, %9 : vector<1x64xi32>
    %11 = vector.extract_strided_slice %1 {offsets = [0, 56], sizes = [16, 8], strides = [1, 1]} : vector<16x64xf32> to vector<16x8xf32>
    %12 = vector.extract_strided_slice %1 {offsets = [0, 0], sizes = [16, 56], strides = [1, 1]} : vector<16x64xf32> to vector<16x56xf32>
    %13 = tpu.concatenate %11, %12 in 1 : vector<16x8xf32>, vector<16x56xf32> -> vector<16x64xf32>
    %14 = vector.shape_cast %10 : vector<1x64xi1> to vector<1x64xi1>
    %15 = vector.broadcast %14 : vector<1x64xi1> to vector<16x64xi1>
    %16 = arith.select %15, %13, %1 : vector<16x64xi1>, vector<16x64xf32>
    %c7_i32_4 = arith.constant 7 : i32
    %17 = vector.broadcast %c7_i32_4 : i32 to vector<1x64xi32>
    %18 = arith.cmpi slt, %6, %17 : vector<1x64xi32>
    %19 = vector.extract_strided_slice %1 {offsets = [0, 8], sizes = [16, 56], strides = [1, 1]} : vector<16x64xf32> to vector<16x56xf32>
    %20 = vector.extract_strided_slice %1 {offsets = [0, 0], sizes = [16, 8], strides = [1, 1]} : vector<16x64xf32> to vector<16x8xf32>
    %21 = tpu.concatenate %19, %20 in 1 : vector<16x56xf32>, vector<16x8xf32> -> vector<16x64xf32>
    %22 = vector.shape_cast %18 : vector<1x64xi1> to vector<1x64xi1>
    %23 = vector.broadcast %22 : vector<1x64xi1> to vector<16x64xi1>
    %24 = arith.select %23, %21, %1 : vector<16x64xi1>, vector<16x64xf32>
    %cst = arith.constant 2.500000e-01 : f32
    %25 = vector.broadcast %cst : f32 to vector<16x64xf32>
    %26 = arith.mulf %25, %16 : vector<16x64xf32>
    %cst_5 = arith.constant 7.500000e-01 : f32
    %27 = vector.broadcast %cst_5 : f32 to vector<16x64xf32>
    %28 = arith.mulf %27, %1 : vector<16x64xf32>
    %29 = arith.addf %26, %28 : vector<16x64xf32>
    %cst_6 = arith.constant 7.500000e-01 : f32
    %30 = vector.broadcast %cst_6 : f32 to vector<16x64xf32>
    %31 = arith.mulf %30, %1 : vector<16x64xf32>
    %cst_7 = arith.constant 2.500000e-01 : f32
    %32 = vector.broadcast %cst_7 : f32 to vector<16x64xf32>
    %33 = arith.mulf %32, %24 : vector<16x64xf32>
    %34 = arith.addf %31, %33 : vector<16x64xf32>
    %c1_i32_8 = arith.constant 1 : i32
    %35 = vector.broadcast %c1_i32_8 : i32 to vector<1x64xi32>
    %36 = arith.cmpi sge, %4, %35 : vector<1x64xi32>
    %37 = vector.extract_strided_slice %29 {offsets = [0, 63], sizes = [16, 1], strides = [1, 1]} : vector<16x64xf32> to vector<16x1xf32>
    %38 = vector.extract_strided_slice %29 {offsets = [0, 0], sizes = [16, 63], strides = [1, 1]} : vector<16x64xf32> to vector<16x63xf32>
    %39 = tpu.concatenate %37, %38 in 1 : vector<16x1xf32>, vector<16x63xf32> -> vector<16x64xf32>
    %40 = vector.shape_cast %36 : vector<1x64xi1> to vector<1x64xi1>
    %41 = vector.broadcast %40 : vector<1x64xi1> to vector<16x64xi1>
    %42 = arith.select %41, %39, %29 : vector<16x64xi1>, vector<16x64xf32>
    %c7_i32_9 = arith.constant 7 : i32
    %43 = vector.broadcast %c7_i32_9 : i32 to vector<1x64xi32>
    %44 = arith.cmpi slt, %4, %43 : vector<1x64xi32>
    %45 = vector.extract_strided_slice %29 {offsets = [0, 1], sizes = [16, 63], strides = [1, 1]} : vector<16x64xf32> to vector<16x63xf32>
    %46 = vector.extract_strided_slice %29 {offsets = [0, 0], sizes = [16, 1], strides = [1, 1]} : vector<16x64xf32> to vector<16x1xf32>
    %47 = tpu.concatenate %45, %46 in 1 : vector<16x63xf32>, vector<16x1xf32> -> vector<16x64xf32>
    %48 = vector.shape_cast %44 : vector<1x64xi1> to vector<1x64xi1>
    %49 = vector.broadcast %48 : vector<1x64xi1> to vector<16x64xi1>
    %50 = arith.select %49, %47, %29 : vector<16x64xi1>, vector<16x64xf32>
    %cst_10 = arith.constant 2.500000e-01 : f32
    %51 = vector.broadcast %cst_10 : f32 to vector<16x64xf32>
    %52 = arith.mulf %51, %42 : vector<16x64xf32>
    %cst_11 = arith.constant 7.500000e-01 : f32
    %53 = vector.broadcast %cst_11 : f32 to vector<16x64xf32>
    %54 = arith.mulf %53, %29 : vector<16x64xf32>
    %55 = arith.addf %52, %54 : vector<16x64xf32>
    %cst_12 = arith.constant 7.500000e-01 : f32
    %56 = vector.broadcast %cst_12 : f32 to vector<16x64xf32>
    %57 = arith.mulf %56, %29 : vector<16x64xf32>
    %cst_13 = arith.constant 2.500000e-01 : f32
    %58 = vector.broadcast %cst_13 : f32 to vector<16x64xf32>
    %59 = arith.mulf %58, %50 : vector<16x64xf32>
    %60 = arith.addf %57, %59 : vector<16x64xf32>
    %61 = arith.truncf %55 : vector<16x64xf32> to vector<16x64xbf16>
    %cst_14 = arith.constant dense<0.000000e+00> : vector<12x64xf32>
    %62 = tpu.matmul %8, %61, %cst_14 {dimension_numbers = #tpu.dot_dimension_numbers<[1], [0], [0], [1], [0, 0, 1, 1], [], []>} : vector<12x16xbf16>, vector<16x64xbf16>, vector<12x64xf32> -> vector<12x64xf32>
    %c0_15 = arith.constant 0 : index
    %c0_16 = arith.constant 0 : index
    %c0_17 = arith.constant 0 : index
    %c0_18 = arith.constant 0 : index
    %63 = vector.load %arg3[%c0_15, %c0_16, %c0_17, %c0_18] : memref<1x4x12x64xf32, #tpu.memory_space<vmem>>, vector<1x1x12x64xf32>
    %64 = vector.shape_cast %63 : vector<1x1x12x64xf32> to vector<12x64xf32>
    %65 = vector.shape_cast %62 : vector<12x64xf32> to vector<1x1x12x64xf32>
    tpu.vector_store %arg3[%c0_15, %c0_16, %c0_17, %c0_18], %65 {strides = array<i32>} : memref<1x4x12x64xf32, #tpu.memory_space<vmem>>, vector<1x1x12x64xf32>,
    %66 = arith.truncf %60 : vector<16x64xf32> to vector<16x64xbf16>
    %cst_19 = arith.constant dense<0.000000e+00> : vector<12x64xf32>
    %67 = tpu.matmul %8, %66, %cst_19 {dimension_numbers = #tpu.dot_dimension_numbers<[1], [0], [0], [1], [0, 0, 1, 1], [], []>} : vector<12x16xbf16>, vector<16x64xbf16>, vector<12x64xf32> -> vector<12x64xf32>
    %c0_20 = arith.constant 0 : index
    %c1 = arith.constant 1 : index
    %c0_21 = arith.constant 0 : index
    %c0_22 = arith.constant 0 : index
    %68 = vector.load %arg3[%c0_20, %c1, %c0_21, %c0_22] : memref<1x4x12x64xf32, #tpu.memory_space<vmem>>, vector<1x1x12x64xf32>
    %69 = vector.shape_cast %68 : vector<1x1x12x64xf32> to vector<12x64xf32>
    %70 = vector.shape_cast %67 : vector<12x64xf32> to vector<1x1x12x64xf32>
    tpu.vector_store %arg3[%c0_20, %c1, %c0_21, %c0_22], %70 {strides = array<i32>} : memref<1x4x12x64xf32, #tpu.memory_space<vmem>>, vector<1x1x12x64xf32>,
    %c1_i32_23 = arith.constant 1 : i32
    %71 = vector.broadcast %c1_i32_23 : i32 to vector<1x64xi32>
    %72 = arith.cmpi sge, %4, %71 : vector<1x64xi32>
    %73 = vector.extract_strided_slice %34 {offsets = [0, 63], sizes = [16, 1], strides = [1, 1]} : vector<16x64xf32> to vector<16x1xf32>
    %74 = vector.extract_strided_slice %34 {offsets = [0, 0], sizes = [16, 63], strides = [1, 1]} : vector<16x64xf32> to vector<16x63xf32>
    %75 = tpu.concatenate %73, %74 in 1 : vector<16x1xf32>, vector<16x63xf32> -> vector<16x64xf32>
    %76 = vector.shape_cast %72 : vector<1x64xi1> to vector<1x64xi1>
    %77 = vector.broadcast %76 : vector<1x64xi1> to vector<16x64xi1>
    %78 = arith.select %77, %75, %34 : vector<16x64xi1>, vector<16x64xf32>
    %c7_i32_24 = arith.constant 7 : i32
    %79 = vector.broadcast %c7_i32_24 : i32 to vector<1x64xi32>
    %80 = arith.cmpi slt, %4, %79 : vector<1x64xi32>
    %81 = vector.extract_strided_slice %34 {offsets = [0, 1], sizes = [16, 63], strides = [1, 1]} : vector<16x64xf32> to vector<16x63xf32>
    %82 = vector.extract_strided_slice %34 {offsets = [0, 0], sizes = [16, 1], strides = [1, 1]} : vector<16x64xf32> to vector<16x1xf32>
    %83 = tpu.concatenate %81, %82 in 1 : vector<16x63xf32>, vector<16x1xf32> -> vector<16x64xf32>
    %84 = vector.shape_cast %80 : vector<1x64xi1> to vector<1x64xi1>
    %85 = vector.broadcast %84 : vector<1x64xi1> to vector<16x64xi1>
    %86 = arith.select %85, %83, %34 : vector<16x64xi1>, vector<16x64xf32>
    %cst_25 = arith.constant 2.500000e-01 : f32
    %87 = vector.broadcast %cst_25 : f32 to vector<16x64xf32>
    %88 = arith.mulf %87, %78 : vector<16x64xf32>
    %cst_26 = arith.constant 7.500000e-01 : f32
    %89 = vector.broadcast %cst_26 : f32 to vector<16x64xf32>
    %90 = arith.mulf %89, %34 : vector<16x64xf32>
    %91 = arith.addf %88, %90 : vector<16x64xf32>
    %cst_27 = arith.constant 7.500000e-01 : f32
    %92 = vector.broadcast %cst_27 : f32 to vector<16x64xf32>
    %93 = arith.mulf %92, %34 : vector<16x64xf32>
    %cst_28 = arith.constant 2.500000e-01 : f32
    %94 = vector.broadcast %cst_28 : f32 to vector<16x64xf32>
    %95 = arith.mulf %94, %86 : vector<16x64xf32>
    %96 = arith.addf %93, %95 : vector<16x64xf32>
    %97 = arith.truncf %91 : vector<16x64xf32> to vector<16x64xbf16>
    %cst_29 = arith.constant dense<0.000000e+00> : vector<12x64xf32>
    %98 = tpu.matmul %8, %97, %cst_29 {dimension_numbers = #tpu.dot_dimension_numbers<[1], [0], [0], [1], [0, 0, 1, 1], [], []>} : vector<12x16xbf16>, vector<16x64xbf16>, vector<12x64xf32> -> vector<12x64xf32>
    %c0_30 = arith.constant 0 : index
    %c2 = arith.constant 2 : index
    %c0_31 = arith.constant 0 : index
    %c0_32 = arith.constant 0 : index
    %99 = vector.load %arg3[%c0_30, %c2, %c0_31, %c0_32] : memref<1x4x12x64xf32, #tpu.memory_space<vmem>>, vector<1x1x12x64xf32>
    %100 = vector.shape_cast %99 : vector<1x1x12x64xf32> to vector<12x64xf32>
    %101 = vector.shape_cast %98 : vector<12x64xf32> to vector<1x1x12x64xf32>
    tpu.vector_store %arg3[%c0_30, %c2, %c0_31, %c0_32], %101 {strides = array<i32>} : memref<1x4x12x64xf32, #tpu.memory_space<vmem>>, vector<1x1x12x64xf32>,
    %102 = arith.truncf %96 : vector<16x64xf32> to vector<16x64xbf16>
    %cst_33 = arith.constant dense<0.000000e+00> : vector<12x64xf32>
    %103 = tpu.matmul %8, %102, %cst_33 {dimension_numbers = #tpu.dot_dimension_numbers<[1], [0], [0], [1], [0, 0, 1, 1], [], []>} : vector<12x16xbf16>, vector<16x64xbf16>, vector<12x64xf32> -> vector<12x64xf32>
    %c0_34 = arith.constant 0 : index
    %c3 = arith.constant 3 : index
    %c0_35 = arith.constant 0 : index
    %c0_36 = arith.constant 0 : index
    %104 = vector.load %arg3[%c0_34, %c3, %c0_35, %c0_36] : memref<1x4x12x64xf32, #tpu.memory_space<vmem>>, vector<1x1x12x64xf32>
    %105 = vector.shape_cast %104 : vector<1x1x12x64xf32> to vector<12x64xf32>
    %106 = vector.shape_cast %103 : vector<12x64xf32> to vector<1x1x12x64xf32>
    tpu.vector_store %arg3[%c0_34, %c3, %c0_35, %c0_36], %106 {strides = array<i32>} : memref<1x4x12x64xf32, #tpu.memory_space<vmem>>, vector<1x1x12x64xf32>,
    return
  }
  func.func @transform_0(%arg0: i32) -> (i32, i32, i32) {
    %c0_i32 = arith.constant 0 : i32
    %c0_i32_0 = arith.constant 0 : i32
    %c0_i32_1 = arith.constant 0 : i32
    return %arg0, %c0_i32, %c0_i32_0 : i32, i32, i32
  }
  func.func @transform_1(%arg0: i32) -> (i32, i32) {
    %c0_i32 = arith.constant 0 : i32
    %c0_i32_0 = arith.constant 0 : i32
    %c0_i32_1 = arith.constant 0 : i32
    return %c0_i32, %c0_i32_0 : i32, i32
  }
  func.func @transform_2(%arg0: i32) -> (i32, i32, i32, i32) {
    %c0_i32 = arith.constant 0 : i32
    %c0_i32_0 = arith.constant 0 : i32
    %c0_i32_1 = arith.constant 0 : i32
    %c0_i32_2 = arith.constant 0 : i32
    return %arg0, %c0_i32, %c0_i32_0, %c0_i32_1 : i32, i32, i32, i32
  }
}

module attributes {stable_mosaic.version = 11 : i64} {
  func.func @_up_phases_kernel(%arg0: i32, %arg1: memref<1x12x256xf32, #tpu.memory_space<vmem>>, %arg2: memref<8x12xf32, #tpu.memory_space<vmem>>, %arg3: memref<1x4x8x256xf32, #tpu.memory_space<vmem>>) attributes {dimension_semantics = [#tpu.dimension_semantics<parallel>], iteration_bounds = array<i64: 2>, scalar_prefetch = 0 : i64, scratch_operands = 0 : i64, tpu.core_type = #tpu.core_type<tc>, window_params = [{transform_indices = @transform_0, window_bounds = array<i64: 1, 12, 256>}, {pipeline_mode = #tpu.pipeline_mode<synchronous>, transform_indices = @transform_1, window_bounds = array<i64: 8, 12>}, {transform_indices = @transform_2, window_bounds = array<i64: 1, 4, 8, 256>}]} {
    %c0 = arith.constant 0 : index
    %c0_0 = arith.constant 0 : index
    %c0_1 = arith.constant 0 : index
    %0 = vector.load %arg1[%c0, %c0_0, %c0_1] : memref<1x12x256xf32, #tpu.memory_space<vmem>>, vector<1x12x256xf32>
    %1 = vector.shape_cast %0 : vector<1x12x256xf32> to vector<12x256xf32>
    %2 = tpu.iota {dimensions = array<i32: 1>} : vector<1x256xi32>
    %c15_i32 = arith.constant 15 : i32
    %3 = vector.broadcast %c15_i32 : i32 to vector<1x256xi32>
    %4 = arith.andi %2, %3 : vector<1x256xi32>
    %c4_i32 = arith.constant 4 : i32
    %5 = vector.broadcast %c4_i32 : i32 to vector<1x256xi32>
    %6 = arith.shrsi %2, %5 : vector<1x256xi32>
    %c0_2 = arith.constant 0 : index
    %c0_3 = arith.constant 0 : index
    %7 = vector.load %arg2[%c0_2, %c0_3] : memref<8x12xf32, #tpu.memory_space<vmem>>, vector<8x12xf32>
    %8 = arith.truncf %7 : vector<8x12xf32> to vector<8x12xbf16>
    %c1_i32 = arith.constant 1 : i32
    %9 = vector.broadcast %c1_i32 : i32 to vector<1x256xi32>
    %10 = arith.cmpi sge, %6, %9 : vector<1x256xi32>
    %11 = vector.extract_strided_slice %1 {offsets = [0, 240], sizes = [12, 16], strides = [1, 1]} : vector<12x256xf32> to vector<12x16xf32>
    %12 = vector.extract_strided_slice %1 {offsets = [0, 0], sizes = [12, 240], strides = [1, 1]} : vector<12x256xf32> to vector<12x240xf32>
    %13 = tpu.concatenate %11, %12 in 1 : vector<12x16xf32>, vector<12x240xf32> -> vector<12x256xf32>
    %14 = vector.shape_cast %10 : vector<1x256xi1> to vector<1x256xi1>
    %15 = vector.broadcast %14 : vector<1x256xi1> to vector<12x256xi1>
    %16 = arith.select %15, %13, %1 : vector<12x256xi1>, vector<12x256xf32>
    %c15_i32_4 = arith.constant 15 : i32
    %17 = vector.broadcast %c15_i32_4 : i32 to vector<1x256xi32>
    %18 = arith.cmpi slt, %6, %17 : vector<1x256xi32>
    %19 = vector.extract_strided_slice %1 {offsets = [0, 16], sizes = [12, 240], strides = [1, 1]} : vector<12x256xf32> to vector<12x240xf32>
    %20 = vector.extract_strided_slice %1 {offsets = [0, 0], sizes = [12, 16], strides = [1, 1]} : vector<12x256xf32> to vector<12x16xf32>
    %21 = tpu.concatenate %19, %20 in 1 : vector<12x240xf32>, vector<12x16xf32> -> vector<12x256xf32>
    %22 = vector.shape_cast %18 : vector<1x256xi1> to vector<1x256xi1>
    %23 = vector.broadcast %22 : vector<1x256xi1> to vector<12x256xi1>
    %24 = arith.select %23, %21, %1 : vector<12x256xi1>, vector<12x256xf32>
    %cst = arith.constant 2.500000e-01 : f32
    %25 = vector.broadcast %cst : f32 to vector<12x256xf32>
    %26 = arith.mulf %25, %16 : vector<12x256xf32>
    %cst_5 = arith.constant 7.500000e-01 : f32
    %27 = vector.broadcast %cst_5 : f32 to vector<12x256xf32>
    %28 = arith.mulf %27, %1 : vector<12x256xf32>
    %29 = arith.addf %26, %28 : vector<12x256xf32>
    %cst_6 = arith.constant 7.500000e-01 : f32
    %30 = vector.broadcast %cst_6 : f32 to vector<12x256xf32>
    %31 = arith.mulf %30, %1 : vector<12x256xf32>
    %cst_7 = arith.constant 2.500000e-01 : f32
    %32 = vector.broadcast %cst_7 : f32 to vector<12x256xf32>
    %33 = arith.mulf %32, %24 : vector<12x256xf32>
    %34 = arith.addf %31, %33 : vector<12x256xf32>
    %c1_i32_8 = arith.constant 1 : i32
    %35 = vector.broadcast %c1_i32_8 : i32 to vector<1x256xi32>
    %36 = arith.cmpi sge, %4, %35 : vector<1x256xi32>
    %37 = vector.extract_strided_slice %29 {offsets = [0, 255], sizes = [12, 1], strides = [1, 1]} : vector<12x256xf32> to vector<12x1xf32>
    %38 = vector.extract_strided_slice %29 {offsets = [0, 0], sizes = [12, 255], strides = [1, 1]} : vector<12x256xf32> to vector<12x255xf32>
    %39 = tpu.concatenate %37, %38 in 1 : vector<12x1xf32>, vector<12x255xf32> -> vector<12x256xf32>
    %40 = vector.shape_cast %36 : vector<1x256xi1> to vector<1x256xi1>
    %41 = vector.broadcast %40 : vector<1x256xi1> to vector<12x256xi1>
    %42 = arith.select %41, %39, %29 : vector<12x256xi1>, vector<12x256xf32>
    %c15_i32_9 = arith.constant 15 : i32
    %43 = vector.broadcast %c15_i32_9 : i32 to vector<1x256xi32>
    %44 = arith.cmpi slt, %4, %43 : vector<1x256xi32>
    %45 = vector.extract_strided_slice %29 {offsets = [0, 1], sizes = [12, 255], strides = [1, 1]} : vector<12x256xf32> to vector<12x255xf32>
    %46 = vector.extract_strided_slice %29 {offsets = [0, 0], sizes = [12, 1], strides = [1, 1]} : vector<12x256xf32> to vector<12x1xf32>
    %47 = tpu.concatenate %45, %46 in 1 : vector<12x255xf32>, vector<12x1xf32> -> vector<12x256xf32>
    %48 = vector.shape_cast %44 : vector<1x256xi1> to vector<1x256xi1>
    %49 = vector.broadcast %48 : vector<1x256xi1> to vector<12x256xi1>
    %50 = arith.select %49, %47, %29 : vector<12x256xi1>, vector<12x256xf32>
    %cst_10 = arith.constant 2.500000e-01 : f32
    %51 = vector.broadcast %cst_10 : f32 to vector<12x256xf32>
    %52 = arith.mulf %51, %42 : vector<12x256xf32>
    %cst_11 = arith.constant 7.500000e-01 : f32
    %53 = vector.broadcast %cst_11 : f32 to vector<12x256xf32>
    %54 = arith.mulf %53, %29 : vector<12x256xf32>
    %55 = arith.addf %52, %54 : vector<12x256xf32>
    %cst_12 = arith.constant 7.500000e-01 : f32
    %56 = vector.broadcast %cst_12 : f32 to vector<12x256xf32>
    %57 = arith.mulf %56, %29 : vector<12x256xf32>
    %cst_13 = arith.constant 2.500000e-01 : f32
    %58 = vector.broadcast %cst_13 : f32 to vector<12x256xf32>
    %59 = arith.mulf %58, %50 : vector<12x256xf32>
    %60 = arith.addf %57, %59 : vector<12x256xf32>
    %61 = arith.truncf %55 : vector<12x256xf32> to vector<12x256xbf16>
    %cst_14 = arith.constant dense<0.000000e+00> : vector<8x256xf32>
    %62 = tpu.matmul %8, %61, %cst_14 {dimension_numbers = #tpu.dot_dimension_numbers<[1], [0], [0], [1], [0, 0, 1, 1], [], []>} : vector<8x12xbf16>, vector<12x256xbf16>, vector<8x256xf32> -> vector<8x256xf32>
    %c0_15 = arith.constant 0 : index
    %c0_16 = arith.constant 0 : index
    %c0_17 = arith.constant 0 : index
    %c0_18 = arith.constant 0 : index
    %63 = vector.load %arg3[%c0_15, %c0_16, %c0_17, %c0_18] : memref<1x4x8x256xf32, #tpu.memory_space<vmem>>, vector<1x1x8x256xf32>
    %64 = vector.shape_cast %63 : vector<1x1x8x256xf32> to vector<8x256xf32>
    %65 = vector.shape_cast %62 : vector<8x256xf32> to vector<1x1x8x256xf32>
    tpu.vector_store %arg3[%c0_15, %c0_16, %c0_17, %c0_18], %65 {strides = array<i32>} : memref<1x4x8x256xf32, #tpu.memory_space<vmem>>, vector<1x1x8x256xf32>,
    %66 = arith.truncf %60 : vector<12x256xf32> to vector<12x256xbf16>
    %cst_19 = arith.constant dense<0.000000e+00> : vector<8x256xf32>
    %67 = tpu.matmul %8, %66, %cst_19 {dimension_numbers = #tpu.dot_dimension_numbers<[1], [0], [0], [1], [0, 0, 1, 1], [], []>} : vector<8x12xbf16>, vector<12x256xbf16>, vector<8x256xf32> -> vector<8x256xf32>
    %c0_20 = arith.constant 0 : index
    %c1 = arith.constant 1 : index
    %c0_21 = arith.constant 0 : index
    %c0_22 = arith.constant 0 : index
    %68 = vector.load %arg3[%c0_20, %c1, %c0_21, %c0_22] : memref<1x4x8x256xf32, #tpu.memory_space<vmem>>, vector<1x1x8x256xf32>
    %69 = vector.shape_cast %68 : vector<1x1x8x256xf32> to vector<8x256xf32>
    %70 = vector.shape_cast %67 : vector<8x256xf32> to vector<1x1x8x256xf32>
    tpu.vector_store %arg3[%c0_20, %c1, %c0_21, %c0_22], %70 {strides = array<i32>} : memref<1x4x8x256xf32, #tpu.memory_space<vmem>>, vector<1x1x8x256xf32>,
    %c1_i32_23 = arith.constant 1 : i32
    %71 = vector.broadcast %c1_i32_23 : i32 to vector<1x256xi32>
    %72 = arith.cmpi sge, %4, %71 : vector<1x256xi32>
    %73 = vector.extract_strided_slice %34 {offsets = [0, 255], sizes = [12, 1], strides = [1, 1]} : vector<12x256xf32> to vector<12x1xf32>
    %74 = vector.extract_strided_slice %34 {offsets = [0, 0], sizes = [12, 255], strides = [1, 1]} : vector<12x256xf32> to vector<12x255xf32>
    %75 = tpu.concatenate %73, %74 in 1 : vector<12x1xf32>, vector<12x255xf32> -> vector<12x256xf32>
    %76 = vector.shape_cast %72 : vector<1x256xi1> to vector<1x256xi1>
    %77 = vector.broadcast %76 : vector<1x256xi1> to vector<12x256xi1>
    %78 = arith.select %77, %75, %34 : vector<12x256xi1>, vector<12x256xf32>
    %c15_i32_24 = arith.constant 15 : i32
    %79 = vector.broadcast %c15_i32_24 : i32 to vector<1x256xi32>
    %80 = arith.cmpi slt, %4, %79 : vector<1x256xi32>
    %81 = vector.extract_strided_slice %34 {offsets = [0, 1], sizes = [12, 255], strides = [1, 1]} : vector<12x256xf32> to vector<12x255xf32>
    %82 = vector.extract_strided_slice %34 {offsets = [0, 0], sizes = [12, 1], strides = [1, 1]} : vector<12x256xf32> to vector<12x1xf32>
    %83 = tpu.concatenate %81, %82 in 1 : vector<12x255xf32>, vector<12x1xf32> -> vector<12x256xf32>
    %84 = vector.shape_cast %80 : vector<1x256xi1> to vector<1x256xi1>
    %85 = vector.broadcast %84 : vector<1x256xi1> to vector<12x256xi1>
    %86 = arith.select %85, %83, %34 : vector<12x256xi1>, vector<12x256xf32>
    %cst_25 = arith.constant 2.500000e-01 : f32
    %87 = vector.broadcast %cst_25 : f32 to vector<12x256xf32>
    %88 = arith.mulf %87, %78 : vector<12x256xf32>
    %cst_26 = arith.constant 7.500000e-01 : f32
    %89 = vector.broadcast %cst_26 : f32 to vector<12x256xf32>
    %90 = arith.mulf %89, %34 : vector<12x256xf32>
    %91 = arith.addf %88, %90 : vector<12x256xf32>
    %cst_27 = arith.constant 7.500000e-01 : f32
    %92 = vector.broadcast %cst_27 : f32 to vector<12x256xf32>
    %93 = arith.mulf %92, %34 : vector<12x256xf32>
    %cst_28 = arith.constant 2.500000e-01 : f32
    %94 = vector.broadcast %cst_28 : f32 to vector<12x256xf32>
    %95 = arith.mulf %94, %86 : vector<12x256xf32>
    %96 = arith.addf %93, %95 : vector<12x256xf32>
    %97 = arith.truncf %91 : vector<12x256xf32> to vector<12x256xbf16>
    %cst_29 = arith.constant dense<0.000000e+00> : vector<8x256xf32>
    %98 = tpu.matmul %8, %97, %cst_29 {dimension_numbers = #tpu.dot_dimension_numbers<[1], [0], [0], [1], [0, 0, 1, 1], [], []>} : vector<8x12xbf16>, vector<12x256xbf16>, vector<8x256xf32> -> vector<8x256xf32>
    %c0_30 = arith.constant 0 : index
    %c2 = arith.constant 2 : index
    %c0_31 = arith.constant 0 : index
    %c0_32 = arith.constant 0 : index
    %99 = vector.load %arg3[%c0_30, %c2, %c0_31, %c0_32] : memref<1x4x8x256xf32, #tpu.memory_space<vmem>>, vector<1x1x8x256xf32>
    %100 = vector.shape_cast %99 : vector<1x1x8x256xf32> to vector<8x256xf32>
    %101 = vector.shape_cast %98 : vector<8x256xf32> to vector<1x1x8x256xf32>
    tpu.vector_store %arg3[%c0_30, %c2, %c0_31, %c0_32], %101 {strides = array<i32>} : memref<1x4x8x256xf32, #tpu.memory_space<vmem>>, vector<1x1x8x256xf32>,
    %102 = arith.truncf %96 : vector<12x256xf32> to vector<12x256xbf16>
    %cst_33 = arith.constant dense<0.000000e+00> : vector<8x256xf32>
    %103 = tpu.matmul %8, %102, %cst_33 {dimension_numbers = #tpu.dot_dimension_numbers<[1], [0], [0], [1], [0, 0, 1, 1], [], []>} : vector<8x12xbf16>, vector<12x256xbf16>, vector<8x256xf32> -> vector<8x256xf32>
    %c0_34 = arith.constant 0 : index
    %c3 = arith.constant 3 : index
    %c0_35 = arith.constant 0 : index
    %c0_36 = arith.constant 0 : index
    %104 = vector.load %arg3[%c0_34, %c3, %c0_35, %c0_36] : memref<1x4x8x256xf32, #tpu.memory_space<vmem>>, vector<1x1x8x256xf32>
    %105 = vector.shape_cast %104 : vector<1x1x8x256xf32> to vector<8x256xf32>
    %106 = vector.shape_cast %103 : vector<8x256xf32> to vector<1x1x8x256xf32>
    tpu.vector_store %arg3[%c0_34, %c3, %c0_35, %c0_36], %106 {strides = array<i32>} : memref<1x4x8x256xf32, #tpu.memory_space<vmem>>, vector<1x1x8x256xf32>,
    return
  }
  func.func @transform_0(%arg0: i32) -> (i32, i32, i32) {
    %c0_i32 = arith.constant 0 : i32
    %c0_i32_0 = arith.constant 0 : i32
    %c0_i32_1 = arith.constant 0 : i32
    return %arg0, %c0_i32, %c0_i32_0 : i32, i32, i32
  }
  func.func @transform_1(%arg0: i32) -> (i32, i32) {
    %c0_i32 = arith.constant 0 : i32
    %c0_i32_0 = arith.constant 0 : i32
    %c0_i32_1 = arith.constant 0 : i32
    return %c0_i32, %c0_i32_0 : i32, i32
  }
  func.func @transform_2(%arg0: i32) -> (i32, i32, i32, i32) {
    %c0_i32 = arith.constant 0 : i32
    %c0_i32_0 = arith.constant 0 : i32
    %c0_i32_1 = arith.constant 0 : i32
    %c0_i32_2 = arith.constant 0 : i32
    return %arg0, %c0_i32, %c0_i32_0, %c0_i32_1 : i32, i32, i32, i32
  }
}

module attributes {stable_mosaic.version = 11 : i64} {
  func.func @_skip_resblock_kernel(%arg0: i32, %arg1: memref<1x12x256xf32, #tpu.memory_space<vmem>>, %arg2: memref<1x12x256xf32, #tpu.memory_space<vmem>>, %arg3: memref<12x108xf32, #tpu.memory_space<vmem>>, %arg4: memref<12x1xf32, #tpu.memory_space<vmem>>, %arg5: memref<12x108xf32, #tpu.memory_space<vmem>>, %arg6: memref<12x1xf32, #tpu.memory_space<vmem>>, %arg7: memref<12x108xf32, #tpu.memory_space<vmem>>, %arg8: memref<12x1xf32, #tpu.memory_space<vmem>>, %arg9: memref<1x1xf32, #tpu.memory_space<vmem>>, %arg10: memref<1x12x256xf32, #tpu.memory_space<vmem>>) attributes {dimension_semantics = [#tpu.dimension_semantics<parallel>], iteration_bounds = array<i64: 2>, scalar_prefetch = 0 : i64, scratch_operands = 0 : i64, tpu.core_type = #tpu.core_type<tc>, window_params = [{transform_indices = @transform_0, window_bounds = array<i64: 1, 12, 256>}, {transform_indices = @transform_1, window_bounds = array<i64: 1, 12, 256>}, {pipeline_mode = #tpu.pipeline_mode<synchronous>, transform_indices = @transform_2, window_bounds = array<i64: 12, 108>}, {pipeline_mode = #tpu.pipeline_mode<synchronous>, transform_indices = @transform_3, window_bounds = array<i64: 12, 1>}, {pipeline_mode = #tpu.pipeline_mode<synchronous>, transform_indices = @transform_4, window_bounds = array<i64: 12, 108>}, {pipeline_mode = #tpu.pipeline_mode<synchronous>, transform_indices = @transform_5, window_bounds = array<i64: 12, 1>}, {pipeline_mode = #tpu.pipeline_mode<synchronous>, transform_indices = @transform_6, window_bounds = array<i64: 12, 108>}, {pipeline_mode = #tpu.pipeline_mode<synchronous>, transform_indices = @transform_7, window_bounds = array<i64: 12, 1>}, {pipeline_mode = #tpu.pipeline_mode<synchronous>, transform_indices = @transform_8, window_bounds = array<i64: 1, 1>}, {transform_indices = @transform_9, window_bounds = array<i64: 1, 12, 256>}]} {
    %c0 = arith.constant 0 : index
    %c0_0 = arith.constant 0 : index
    %c0_1 = arith.constant 0 : index
    %0 = vector.load %arg2[%c0, %c0_0, %c0_1] : memref<1x12x256xf32, #tpu.memory_space<vmem>>, vector<1x12x256xf32>
    %1 = vector.shape_cast %0 : vector<1x12x256xf32> to vector<12x256xf32>
    %c0_2 = arith.constant 0 : index
    %c0_3 = arith.constant 0 : index
    %2 = vector.load %arg3[%c0_2, %c0_3] : memref<12x108xf32, #tpu.memory_space<vmem>>, vector<12x108xf32>
    %3 = tpu.iota {dimensions = array<i32: 1>} : vector<1x256xi32>
    %c15_i32 = arith.constant 15 : i32
    %4 = vector.broadcast %c15_i32 : i32 to vector<1x256xi32>
    %5 = arith.andi %3, %4 : vector<1x256xi32>
    %c4_i32 = arith.constant 4 : i32
    %6 = vector.broadcast %c4_i32 : i32 to vector<1x256xi32>
    %7 = arith.shrsi %3, %6 : vector<1x256xi32>
    %8 = vector.extract_strided_slice %1 {offsets = [0, 239], sizes = [12, 17], strides = [1, 1]} : vector<12x256xf32> to vector<12x17xf32>
    %9 = vector.extract_strided_slice %1 {offsets = [0, 0], sizes = [12, 239], strides = [1, 1]} : vector<12x256xf32> to vector<12x239xf32>
    %10 = tpu.concatenate %8, %9 in 1 : vector<12x17xf32>, vector<12x239xf32> -> vector<12x256xf32>
    %c1_i32 = arith.constant 1 : i32
    %11 = vector.broadcast %c1_i32 : i32 to vector<1x256xi32>
    %12 = arith.cmpi sge, %7, %11 : vector<1x256xi32>
    %c1_i32_4 = arith.constant 1 : i32
    %13 = vector.broadcast %c1_i32_4 : i32 to vector<1x256xi32>
    %14 = arith.cmpi sge, %5, %13 : vector<1x256xi32>
    %15 = arith.andi %12, %14 : vector<1x256xi1>
    %cst = arith.constant 0.000000e+00 : f32
    %16 = vector.shape_cast %15 : vector<1x256xi1> to vector<1x256xi1>
    %17 = vector.broadcast %16 : vector<1x256xi1> to vector<12x256xi1>
    %18 = vector.broadcast %cst : f32 to vector<12x256xf32>
    %19 = arith.select %17, %10, %18 : vector<12x256xi1>, vector<12x256xf32>
    %20 = vector.extract_strided_slice %1 {offsets = [0, 240], sizes = [12, 16], strides = [1, 1]} : vector<12x256xf32> to vector<12x16xf32>
    %21 = vector.extract_strided_slice %1 {offsets = [0, 0], sizes = [12, 240], strides = [1, 1]} : vector<12x256xf32> to vector<12x240xf32>
    %22 = tpu.concatenate %20, %21 in 1 : vector<12x16xf32>, vector<12x240xf32> -> vector<12x256xf32>
    %c1_i32_5 = arith.constant 1 : i32
    %23 = vector.broadcast %c1_i32_5 : i32 to vector<1x256xi32>
    %24 = arith.cmpi sge, %7, %23 : vector<1x256xi32>
    %cst_6 = arith.constant 0.000000e+00 : f32
    %25 = vector.shape_cast %24 : vector<1x256xi1> to vector<1x256xi1>
    %26 = vector.broadcast %25 : vector<1x256xi1> to vector<12x256xi1>
    %27 = vector.broadcast %cst_6 : f32 to vector<12x256xf32>
    %28 = arith.select %26, %22, %27 : vector<12x256xi1>, vector<12x256xf32>
    %29 = vector.extract_strided_slice %1 {offsets = [0, 241], sizes = [12, 15], strides = [1, 1]} : vector<12x256xf32> to vector<12x15xf32>
    %30 = vector.extract_strided_slice %1 {offsets = [0, 0], sizes = [12, 241], strides = [1, 1]} : vector<12x256xf32> to vector<12x241xf32>
    %31 = tpu.concatenate %29, %30 in 1 : vector<12x15xf32>, vector<12x241xf32> -> vector<12x256xf32>
    %c1_i32_7 = arith.constant 1 : i32
    %32 = vector.broadcast %c1_i32_7 : i32 to vector<1x256xi32>
    %33 = arith.cmpi sge, %7, %32 : vector<1x256xi32>
    %c15_i32_8 = arith.constant 15 : i32
    %34 = vector.broadcast %c15_i32_8 : i32 to vector<1x256xi32>
    %35 = arith.cmpi slt, %5, %34 : vector<1x256xi32>
    %36 = arith.andi %33, %35 : vector<1x256xi1>
    %cst_9 = arith.constant 0.000000e+00 : f32
    %37 = vector.shape_cast %36 : vector<1x256xi1> to vector<1x256xi1>
    %38 = vector.broadcast %37 : vector<1x256xi1> to vector<12x256xi1>
    %39 = vector.broadcast %cst_9 : f32 to vector<12x256xf32>
    %40 = arith.select %38, %31, %39 : vector<12x256xi1>, vector<12x256xf32>
    %41 = vector.extract_strided_slice %1 {offsets = [0, 255], sizes = [12, 1], strides = [1, 1]} : vector<12x256xf32> to vector<12x1xf32>
    %42 = vector.extract_strided_slice %1 {offsets = [0, 0], sizes = [12, 255], strides = [1, 1]} : vector<12x256xf32> to vector<12x255xf32>
    %43 = tpu.concatenate %41, %42 in 1 : vector<12x1xf32>, vector<12x255xf32> -> vector<12x256xf32>
    %c1_i32_10 = arith.constant 1 : i32
    %44 = vector.broadcast %c1_i32_10 : i32 to vector<1x256xi32>
    %45 = arith.cmpi sge, %5, %44 : vector<1x256xi32>
    %cst_11 = arith.constant 0.000000e+00 : f32
    %46 = vector.shape_cast %45 : vector<1x256xi1> to vector<1x256xi1>
    %47 = vector.broadcast %46 : vector<1x256xi1> to vector<12x256xi1>
    %48 = vector.broadcast %cst_11 : f32 to vector<12x256xf32>
    %49 = arith.select %47, %43, %48 : vector<12x256xi1>, vector<12x256xf32>
    %50 = vector.extract_strided_slice %1 {offsets = [0, 1], sizes = [12, 255], strides = [1, 1]} : vector<12x256xf32> to vector<12x255xf32>
    %51 = vector.extract_strided_slice %1 {offsets = [0, 0], sizes = [12, 1], strides = [1, 1]} : vector<12x256xf32> to vector<12x1xf32>
    %52 = tpu.concatenate %50, %51 in 1 : vector<12x255xf32>, vector<12x1xf32> -> vector<12x256xf32>
    %c15_i32_12 = arith.constant 15 : i32
    %53 = vector.broadcast %c15_i32_12 : i32 to vector<1x256xi32>
    %54 = arith.cmpi slt, %5, %53 : vector<1x256xi32>
    %cst_13 = arith.constant 0.000000e+00 : f32
    %55 = vector.shape_cast %54 : vector<1x256xi1> to vector<1x256xi1>
    %56 = vector.broadcast %55 : vector<1x256xi1> to vector<12x256xi1>
    %57 = vector.broadcast %cst_13 : f32 to vector<12x256xf32>
    %58 = arith.select %56, %52, %57 : vector<12x256xi1>, vector<12x256xf32>
    %59 = vector.extract_strided_slice %1 {offsets = [0, 15], sizes = [12, 241], strides = [1, 1]} : vector<12x256xf32> to vector<12x241xf32>
    %60 = vector.extract_strided_slice %1 {offsets = [0, 0], sizes = [12, 15], strides = [1, 1]} : vector<12x256xf32> to vector<12x15xf32>
    %61 = tpu.concatenate %59, %60 in 1 : vector<12x241xf32>, vector<12x15xf32> -> vector<12x256xf32>
    %c15_i32_14 = arith.constant 15 : i32
    %62 = vector.broadcast %c15_i32_14 : i32 to vector<1x256xi32>
    %63 = arith.cmpi slt, %7, %62 : vector<1x256xi32>
    %c1_i32_15 = arith.constant 1 : i32
    %64 = vector.broadcast %c1_i32_15 : i32 to vector<1x256xi32>
    %65 = arith.cmpi sge, %5, %64 : vector<1x256xi32>
    %66 = arith.andi %63, %65 : vector<1x256xi1>
    %cst_16 = arith.constant 0.000000e+00 : f32
    %67 = vector.shape_cast %66 : vector<1x256xi1> to vector<1x256xi1>
    %68 = vector.broadcast %67 : vector<1x256xi1> to vector<12x256xi1>
    %69 = vector.broadcast %cst_16 : f32 to vector<12x256xf32>
    %70 = arith.select %68, %61, %69 : vector<12x256xi1>, vector<12x256xf32>
    %71 = vector.extract_strided_slice %1 {offsets = [0, 16], sizes = [12, 240], strides = [1, 1]} : vector<12x256xf32> to vector<12x240xf32>
    %72 = vector.extract_strided_slice %1 {offsets = [0, 0], sizes = [12, 16], strides = [1, 1]} : vector<12x256xf32> to vector<12x16xf32>
    %73 = tpu.concatenate %71, %72 in 1 : vector<12x240xf32>, vector<12x16xf32> -> vector<12x256xf32>
    %c15_i32_17 = arith.constant 15 : i32
    %74 = vector.broadcast %c15_i32_17 : i32 to vector<1x256xi32>
    %75 = arith.cmpi slt, %7, %74 : vector<1x256xi32>
    %cst_18 = arith.constant 0.000000e+00 : f32
    %76 = vector.shape_cast %75 : vector<1x256xi1> to vector<1x256xi1>
    %77 = vector.broadcast %76 : vector<1x256xi1> to vector<12x256xi1>
    %78 = vector.broadcast %cst_18 : f32 to vector<12x256xf32>
    %79 = arith.select %77, %73, %78 : vector<12x256xi1>, vector<12x256xf32>
    %80 = vector.extract_strided_slice %1 {offsets = [0, 17], sizes = [12, 239], strides = [1, 1]} : vector<12x256xf32> to vector<12x239xf32>
    %81 = vector.extract_strided_slice %1 {offsets = [0, 0], sizes = [12, 17], strides = [1, 1]} : vector<12x256xf32> to vector<12x17xf32>
    %82 = tpu.concatenate %80, %81 in 1 : vector<12x239xf32>, vector<12x17xf32> -> vector<12x256xf32>
    %c15_i32_19 = arith.constant 15 : i32
    %83 = vector.broadcast %c15_i32_19 : i32 to vector<1x256xi32>
    %84 = arith.cmpi slt, %7, %83 : vector<1x256xi32>
    %c15_i32_20 = arith.constant 15 : i32
    %85 = vector.broadcast %c15_i32_20 : i32 to vector<1x256xi32>
    %86 = arith.cmpi slt, %5, %85 : vector<1x256xi32>
    %87 = arith.andi %84, %86 : vector<1x256xi1>
    %cst_21 = arith.constant 0.000000e+00 : f32
    %88 = vector.shape_cast %87 : vector<1x256xi1> to vector<1x256xi1>
    %89 = vector.broadcast %88 : vector<1x256xi1> to vector<12x256xi1>
    %90 = vector.broadcast %cst_21 : f32 to vector<12x256xf32>
    %91 = arith.select %89, %82, %90 : vector<12x256xi1>, vector<12x256xf32>
    %92 = tpu.concatenate %19, %28, %40, %49, %1, %58, %70, %79, %91 in 0 : vector<12x256xf32>, vector<12x256xf32>, vector<12x256xf32>, vector<12x256xf32>, vector<12x256xf32>, vector<12x256xf32>, vector<12x256xf32>, vector<12x256xf32>, vector<12x256xf32> -> vector<108x256xf32>
    %93 = arith.truncf %2 : vector<12x108xf32> to vector<12x108xbf16>
    %94 = arith.truncf %92 : vector<108x256xf32> to vector<108x256xbf16>
    %cst_22 = arith.constant dense<0.000000e+00> : vector<12x256xf32>
    %95 = tpu.matmul %93, %94, %cst_22 {dimension_numbers = #tpu.dot_dimension_numbers<[1], [0], [0], [1], [0, 0, 1, 1], [], []>} : vector<12x108xbf16>, vector<108x256xbf16>, vector<12x256xf32> -> vector<12x256xf32>
    %c0_23 = arith.constant 0 : index
    %c0_24 = arith.constant 0 : index
    %96 = vector.load %arg4[%c0_23, %c0_24] : memref<12x1xf32, #tpu.memory_space<vmem>>, vector<12x1xf32>
    %97 = vector.broadcast %96 : vector<12x1xf32> to vector<12x256xf32>
    %98 = arith.addf %95, %97 : vector<12x256xf32>
    %c0_25 = arith.constant 0 : index
    %c0_26 = arith.constant 0 : index
    %c0_27 = arith.constant 0 : index
    %99 = vector.load %arg1[%c0_25, %c0_26, %c0_27] : memref<1x12x256xf32, #tpu.memory_space<vmem>>, vector<1x12x256xf32>
    %100 = vector.shape_cast %99 : vector<1x12x256xf32> to vector<12x256xf32>
    %101 = arith.addf %100, %98 : vector<12x256xf32>
    %c0_28 = arith.constant 0 : index
    %c0_29 = arith.constant 0 : index
    %102 = vector.load %arg5[%c0_28, %c0_29] : memref<12x108xf32, #tpu.memory_space<vmem>>, vector<12x108xf32>
    %c0_30 = arith.constant 0 : index
    %c0_31 = arith.constant 0 : index
    %103 = vector.load %arg6[%c0_30, %c0_31] : memref<12x1xf32, #tpu.memory_space<vmem>>, vector<12x1xf32>
    %c0_32 = arith.constant 0 : index
    %c0_33 = arith.constant 0 : index
    %104 = vector.load %arg7[%c0_32, %c0_33] : memref<12x108xf32, #tpu.memory_space<vmem>>, vector<12x108xf32>
    %c0_34 = arith.constant 0 : index
    %c0_35 = arith.constant 0 : index
    %105 = vector.load %arg8[%c0_34, %c0_35] : memref<12x1xf32, #tpu.memory_space<vmem>>, vector<12x1xf32>
    %c0_36 = arith.constant 0 : index
    %c0_37 = arith.constant 0 : index
    %106 = vector.load %arg9[%c0_36, %c0_37] : memref<1x1xf32, #tpu.memory_space<vmem>>, vector<1x1xf32>
    %107 = tpu.iota {dimensions = array<i32: 1>} : vector<1x256xi32>
    %c15_i32_38 = arith.constant 15 : i32
    %108 = vector.broadcast %c15_i32_38 : i32 to vector<1x256xi32>
    %109 = arith.andi %107, %108 : vector<1x256xi32>
    %c4_i32_39 = arith.constant 4 : i32
    %110 = vector.broadcast %c4_i32_39 : i32 to vector<1x256xi32>
    %111 = arith.shrsi %107, %110 : vector<1x256xi32>
    %112 = vector.extract_strided_slice %101 {offsets = [0, 239], sizes = [12, 17], strides = [1, 1]} : vector<12x256xf32> to vector<12x17xf32>
    %113 = vector.extract_strided_slice %101 {offsets = [0, 0], sizes = [12, 239], strides = [1, 1]} : vector<12x256xf32> to vector<12x239xf32>
    %114 = tpu.concatenate %112, %113 in 1 : vector<12x17xf32>, vector<12x239xf32> -> vector<12x256xf32>
    %c1_i32_40 = arith.constant 1 : i32
    %115 = vector.broadcast %c1_i32_40 : i32 to vector<1x256xi32>
    %116 = arith.cmpi sge, %111, %115 : vector<1x256xi32>
    %c1_i32_41 = arith.constant 1 : i32
    %117 = vector.broadcast %c1_i32_41 : i32 to vector<1x256xi32>
    %118 = arith.cmpi sge, %109, %117 : vector<1x256xi32>
    %119 = arith.andi %116, %118 : vector<1x256xi1>
    %cst_42 = arith.constant 0.000000e+00 : f32
    %120 = vector.shape_cast %119 : vector<1x256xi1> to vector<1x256xi1>
    %121 = vector.broadcast %120 : vector<1x256xi1> to vector<12x256xi1>
    %122 = vector.broadcast %cst_42 : f32 to vector<12x256xf32>
    %123 = arith.select %121, %114, %122 : vector<12x256xi1>, vector<12x256xf32>
    %124 = vector.extract_strided_slice %101 {offsets = [0, 240], sizes = [12, 16], strides = [1, 1]} : vector<12x256xf32> to vector<12x16xf32>
    %125 = vector.extract_strided_slice %101 {offsets = [0, 0], sizes = [12, 240], strides = [1, 1]} : vector<12x256xf32> to vector<12x240xf32>
    %126 = tpu.concatenate %124, %125 in 1 : vector<12x16xf32>, vector<12x240xf32> -> vector<12x256xf32>
    %c1_i32_43 = arith.constant 1 : i32
    %127 = vector.broadcast %c1_i32_43 : i32 to vector<1x256xi32>
    %128 = arith.cmpi sge, %111, %127 : vector<1x256xi32>
    %cst_44 = arith.constant 0.000000e+00 : f32
    %129 = vector.shape_cast %128 : vector<1x256xi1> to vector<1x256xi1>
    %130 = vector.broadcast %129 : vector<1x256xi1> to vector<12x256xi1>
    %131 = vector.broadcast %cst_44 : f32 to vector<12x256xf32>
    %132 = arith.select %130, %126, %131 : vector<12x256xi1>, vector<12x256xf32>
    %133 = vector.extract_strided_slice %101 {offsets = [0, 241], sizes = [12, 15], strides = [1, 1]} : vector<12x256xf32> to vector<12x15xf32>
    %134 = vector.extract_strided_slice %101 {offsets = [0, 0], sizes = [12, 241], strides = [1, 1]} : vector<12x256xf32> to vector<12x241xf32>
    %135 = tpu.concatenate %133, %134 in 1 : vector<12x15xf32>, vector<12x241xf32> -> vector<12x256xf32>
    %c1_i32_45 = arith.constant 1 : i32
    %136 = vector.broadcast %c1_i32_45 : i32 to vector<1x256xi32>
    %137 = arith.cmpi sge, %111, %136 : vector<1x256xi32>
    %c15_i32_46 = arith.constant 15 : i32
    %138 = vector.broadcast %c15_i32_46 : i32 to vector<1x256xi32>
    %139 = arith.cmpi slt, %109, %138 : vector<1x256xi32>
    %140 = arith.andi %137, %139 : vector<1x256xi1>
    %cst_47 = arith.constant 0.000000e+00 : f32
    %141 = vector.shape_cast %140 : vector<1x256xi1> to vector<1x256xi1>
    %142 = vector.broadcast %141 : vector<1x256xi1> to vector<12x256xi1>
    %143 = vector.broadcast %cst_47 : f32 to vector<12x256xf32>
    %144 = arith.select %142, %135, %143 : vector<12x256xi1>, vector<12x256xf32>
    %145 = vector.extract_strided_slice %101 {offsets = [0, 255], sizes = [12, 1], strides = [1, 1]} : vector<12x256xf32> to vector<12x1xf32>
    %146 = vector.extract_strided_slice %101 {offsets = [0, 0], sizes = [12, 255], strides = [1, 1]} : vector<12x256xf32> to vector<12x255xf32>
    %147 = tpu.concatenate %145, %146 in 1 : vector<12x1xf32>, vector<12x255xf32> -> vector<12x256xf32>
    %c1_i32_48 = arith.constant 1 : i32
    %148 = vector.broadcast %c1_i32_48 : i32 to vector<1x256xi32>
    %149 = arith.cmpi sge, %109, %148 : vector<1x256xi32>
    %cst_49 = arith.constant 0.000000e+00 : f32
    %150 = vector.shape_cast %149 : vector<1x256xi1> to vector<1x256xi1>
    %151 = vector.broadcast %150 : vector<1x256xi1> to vector<12x256xi1>
    %152 = vector.broadcast %cst_49 : f32 to vector<12x256xf32>
    %153 = arith.select %151, %147, %152 : vector<12x256xi1>, vector<12x256xf32>
    %154 = vector.extract_strided_slice %101 {offsets = [0, 1], sizes = [12, 255], strides = [1, 1]} : vector<12x256xf32> to vector<12x255xf32>
    %155 = vector.extract_strided_slice %101 {offsets = [0, 0], sizes = [12, 1], strides = [1, 1]} : vector<12x256xf32> to vector<12x1xf32>
    %156 = tpu.concatenate %154, %155 in 1 : vector<12x255xf32>, vector<12x1xf32> -> vector<12x256xf32>
    %c15_i32_50 = arith.constant 15 : i32
    %157 = vector.broadcast %c15_i32_50 : i32 to vector<1x256xi32>
    %158 = arith.cmpi slt, %109, %157 : vector<1x256xi32>
    %cst_51 = arith.constant 0.000000e+00 : f32
    %159 = vector.shape_cast %158 : vector<1x256xi1> to vector<1x256xi1>
    %160 = vector.broadcast %159 : vector<1x256xi1> to vector<12x256xi1>
    %161 = vector.broadcast %cst_51 : f32 to vector<12x256xf32>
    %162 = arith.select %160, %156, %161 : vector<12x256xi1>, vector<12x256xf32>
    %163 = vector.extract_strided_slice %101 {offsets = [0, 15], sizes = [12, 241], strides = [1, 1]} : vector<12x256xf32> to vector<12x241xf32>
    %164 = vector.extract_strided_slice %101 {offsets = [0, 0], sizes = [12, 15], strides = [1, 1]} : vector<12x256xf32> to vector<12x15xf32>
    %165 = tpu.concatenate %163, %164 in 1 : vector<12x241xf32>, vector<12x15xf32> -> vector<12x256xf32>
    %c15_i32_52 = arith.constant 15 : i32
    %166 = vector.broadcast %c15_i32_52 : i32 to vector<1x256xi32>
    %167 = arith.cmpi slt, %111, %166 : vector<1x256xi32>
    %c1_i32_53 = arith.constant 1 : i32
    %168 = vector.broadcast %c1_i32_53 : i32 to vector<1x256xi32>
    %169 = arith.cmpi sge, %109, %168 : vector<1x256xi32>
    %170 = arith.andi %167, %169 : vector<1x256xi1>
    %cst_54 = arith.constant 0.000000e+00 : f32
    %171 = vector.shape_cast %170 : vector<1x256xi1> to vector<1x256xi1>
    %172 = vector.broadcast %171 : vector<1x256xi1> to vector<12x256xi1>
    %173 = vector.broadcast %cst_54 : f32 to vector<12x256xf32>
    %174 = arith.select %172, %165, %173 : vector<12x256xi1>, vector<12x256xf32>
    %175 = vector.extract_strided_slice %101 {offsets = [0, 16], sizes = [12, 240], strides = [1, 1]} : vector<12x256xf32> to vector<12x240xf32>
    %176 = vector.extract_strided_slice %101 {offsets = [0, 0], sizes = [12, 16], strides = [1, 1]} : vector<12x256xf32> to vector<12x16xf32>
    %177 = tpu.concatenate %175, %176 in 1 : vector<12x240xf32>, vector<12x16xf32> -> vector<12x256xf32>
    %c15_i32_55 = arith.constant 15 : i32
    %178 = vector.broadcast %c15_i32_55 : i32 to vector<1x256xi32>
    %179 = arith.cmpi slt, %111, %178 : vector<1x256xi32>
    %cst_56 = arith.constant 0.000000e+00 : f32
    %180 = vector.shape_cast %179 : vector<1x256xi1> to vector<1x256xi1>
    %181 = vector.broadcast %180 : vector<1x256xi1> to vector<12x256xi1>
    %182 = vector.broadcast %cst_56 : f32 to vector<12x256xf32>
    %183 = arith.select %181, %177, %182 : vector<12x256xi1>, vector<12x256xf32>
    %184 = vector.extract_strided_slice %101 {offsets = [0, 17], sizes = [12, 239], strides = [1, 1]} : vector<12x256xf32> to vector<12x239xf32>
    %185 = vector.extract_strided_slice %101 {offsets = [0, 0], sizes = [12, 17], strides = [1, 1]} : vector<12x256xf32> to vector<12x17xf32>
    %186 = tpu.concatenate %184, %185 in 1 : vector<12x239xf32>, vector<12x17xf32> -> vector<12x256xf32>
    %c15_i32_57 = arith.constant 15 : i32
    %187 = vector.broadcast %c15_i32_57 : i32 to vector<1x256xi32>
    %188 = arith.cmpi slt, %111, %187 : vector<1x256xi32>
    %c15_i32_58 = arith.constant 15 : i32
    %189 = vector.broadcast %c15_i32_58 : i32 to vector<1x256xi32>
    %190 = arith.cmpi slt, %109, %189 : vector<1x256xi32>
    %191 = arith.andi %188, %190 : vector<1x256xi1>
    %cst_59 = arith.constant 0.000000e+00 : f32
    %192 = vector.shape_cast %191 : vector<1x256xi1> to vector<1x256xi1>
    %193 = vector.broadcast %192 : vector<1x256xi1> to vector<12x256xi1>
    %194 = vector.broadcast %cst_59 : f32 to vector<12x256xf32>
    %195 = arith.select %193, %186, %194 : vector<12x256xi1>, vector<12x256xf32>
    %196 = tpu.concatenate %123, %132, %144, %153, %101, %162, %174, %183, %195 in 0 : vector<12x256xf32>, vector<12x256xf32>, vector<12x256xf32>, vector<12x256xf32>, vector<12x256xf32>, vector<12x256xf32>, vector<12x256xf32>, vector<12x256xf32>, vector<12x256xf32> -> vector<108x256xf32>
    %197 = arith.truncf %102 : vector<12x108xf32> to vector<12x108xbf16>
    %198 = arith.truncf %196 : vector<108x256xf32> to vector<108x256xbf16>
    %cst_60 = arith.constant dense<0.000000e+00> : vector<12x256xf32>
    %199 = tpu.matmul %197, %198, %cst_60 {dimension_numbers = #tpu.dot_dimension_numbers<[1], [0], [0], [1], [0, 0, 1, 1], [], []>} : vector<12x108xbf16>, vector<108x256xbf16>, vector<12x256xf32> -> vector<12x256xf32>
    %200 = vector.broadcast %103 : vector<12x1xf32> to vector<12x256xf32>
    %201 = arith.addf %199, %200 : vector<12x256xf32>
    %cst_61 = arith.constant 0.000000e+00 : f32
    %202 = vector.broadcast %cst_61 : f32 to vector<12x256xf32>
    %203 = arith.cmpf oge, %201, %202 : vector<12x256xf32>
    %204 = vector.broadcast %106 : vector<1x1xf32> to vector<12x256xf32>
    %205 = arith.mulf %204, %201 : vector<12x256xf32>
    %206 = arith.select %203, %201, %205 : vector<12x256xi1>, vector<12x256xf32>
    %207 = tpu.iota {dimensions = array<i32: 1>} : vector<1x256xi32>
    %c15_i32_62 = arith.constant 15 : i32
    %208 = vector.broadcast %c15_i32_62 : i32 to vector<1x256xi32>
    %209 = arith.andi %207, %208 : vector<1x256xi32>
    %c4_i32_63 = arith.constant 4 : i32
    %210 = vector.broadcast %c4_i32_63 : i32 to vector<1x256xi32>
    %211 = arith.shrsi %207, %210 : vector<1x256xi32>
    %212 = vector.extract_strided_slice %206 {offsets = [0, 239], sizes = [12, 17], strides = [1, 1]} : vector<12x256xf32> to vector<12x17xf32>
    %213 = vector.extract_strided_slice %206 {offsets = [0, 0], sizes = [12, 239], strides = [1, 1]} : vector<12x256xf32> to vector<12x239xf32>
    %214 = tpu.concatenate %212, %213 in 1 : vector<12x17xf32>, vector<12x239xf32> -> vector<12x256xf32>
    %c1_i32_64 = arith.constant 1 : i32
    %215 = vector.broadcast %c1_i32_64 : i32 to vector<1x256xi32>
    %216 = arith.cmpi sge, %211, %215 : vector<1x256xi32>
    %c1_i32_65 = arith.constant 1 : i32
    %217 = vector.broadcast %c1_i32_65 : i32 to vector<1x256xi32>
    %218 = arith.cmpi sge, %209, %217 : vector<1x256xi32>
    %219 = arith.andi %216, %218 : vector<1x256xi1>
    %cst_66 = arith.constant 0.000000e+00 : f32
    %220 = vector.shape_cast %219 : vector<1x256xi1> to vector<1x256xi1>
    %221 = vector.broadcast %220 : vector<1x256xi1> to vector<12x256xi1>
    %222 = vector.broadcast %cst_66 : f32 to vector<12x256xf32>
    %223 = arith.select %221, %214, %222 : vector<12x256xi1>, vector<12x256xf32>
    %224 = vector.extract_strided_slice %206 {offsets = [0, 240], sizes = [12, 16], strides = [1, 1]} : vector<12x256xf32> to vector<12x16xf32>
    %225 = vector.extract_strided_slice %206 {offsets = [0, 0], sizes = [12, 240], strides = [1, 1]} : vector<12x256xf32> to vector<12x240xf32>
    %226 = tpu.concatenate %224, %225 in 1 : vector<12x16xf32>, vector<12x240xf32> -> vector<12x256xf32>
    %c1_i32_67 = arith.constant 1 : i32
    %227 = vector.broadcast %c1_i32_67 : i32 to vector<1x256xi32>
    %228 = arith.cmpi sge, %211, %227 : vector<1x256xi32>
    %cst_68 = arith.constant 0.000000e+00 : f32
    %229 = vector.shape_cast %228 : vector<1x256xi1> to vector<1x256xi1>
    %230 = vector.broadcast %229 : vector<1x256xi1> to vector<12x256xi1>
    %231 = vector.broadcast %cst_68 : f32 to vector<12x256xf32>
    %232 = arith.select %230, %226, %231 : vector<12x256xi1>, vector<12x256xf32>
    %233 = vector.extract_strided_slice %206 {offsets = [0, 241], sizes = [12, 15], strides = [1, 1]} : vector<12x256xf32> to vector<12x15xf32>
    %234 = vector.extract_strided_slice %206 {offsets = [0, 0], sizes = [12, 241], strides = [1, 1]} : vector<12x256xf32> to vector<12x241xf32>
    %235 = tpu.concatenate %233, %234 in 1 : vector<12x15xf32>, vector<12x241xf32> -> vector<12x256xf32>
    %c1_i32_69 = arith.constant 1 : i32
    %236 = vector.broadcast %c1_i32_69 : i32 to vector<1x256xi32>
    %237 = arith.cmpi sge, %211, %236 : vector<1x256xi32>
    %c15_i32_70 = arith.constant 15 : i32
    %238 = vector.broadcast %c15_i32_70 : i32 to vector<1x256xi32>
    %239 = arith.cmpi slt, %209, %238 : vector<1x256xi32>
    %240 = arith.andi %237, %239 : vector<1x256xi1>
    %cst_71 = arith.constant 0.000000e+00 : f32
    %241 = vector.shape_cast %240 : vector<1x256xi1> to vector<1x256xi1>
    %242 = vector.broadcast %241 : vector<1x256xi1> to vector<12x256xi1>
    %243 = vector.broadcast %cst_71 : f32 to vector<12x256xf32>
    %244 = arith.select %242, %235, %243 : vector<12x256xi1>, vector<12x256xf32>
    %245 = vector.extract_strided_slice %206 {offsets = [0, 255], sizes = [12, 1], strides = [1, 1]} : vector<12x256xf32> to vector<12x1xf32>
    %246 = vector.extract_strided_slice %206 {offsets = [0, 0], sizes = [12, 255], strides = [1, 1]} : vector<12x256xf32> to vector<12x255xf32>
    %247 = tpu.concatenate %245, %246 in 1 : vector<12x1xf32>, vector<12x255xf32> -> vector<12x256xf32>
    %c1_i32_72 = arith.constant 1 : i32
    %248 = vector.broadcast %c1_i32_72 : i32 to vector<1x256xi32>
    %249 = arith.cmpi sge, %209, %248 : vector<1x256xi32>
    %cst_73 = arith.constant 0.000000e+00 : f32
    %250 = vector.shape_cast %249 : vector<1x256xi1> to vector<1x256xi1>
    %251 = vector.broadcast %250 : vector<1x256xi1> to vector<12x256xi1>
    %252 = vector.broadcast %cst_73 : f32 to vector<12x256xf32>
    %253 = arith.select %251, %247, %252 : vector<12x256xi1>, vector<12x256xf32>
    %254 = vector.extract_strided_slice %206 {offsets = [0, 1], sizes = [12, 255], strides = [1, 1]} : vector<12x256xf32> to vector<12x255xf32>
    %255 = vector.extract_strided_slice %206 {offsets = [0, 0], sizes = [12, 1], strides = [1, 1]} : vector<12x256xf32> to vector<12x1xf32>
    %256 = tpu.concatenate %254, %255 in 1 : vector<12x255xf32>, vector<12x1xf32> -> vector<12x256xf32>
    %c15_i32_74 = arith.constant 15 : i32
    %257 = vector.broadcast %c15_i32_74 : i32 to vector<1x256xi32>
    %258 = arith.cmpi slt, %209, %257 : vector<1x256xi32>
    %cst_75 = arith.constant 0.000000e+00 : f32
    %259 = vector.shape_cast %258 : vector<1x256xi1> to vector<1x256xi1>
    %260 = vector.broadcast %259 : vector<1x256xi1> to vector<12x256xi1>
    %261 = vector.broadcast %cst_75 : f32 to vector<12x256xf32>
    %262 = arith.select %260, %256, %261 : vector<12x256xi1>, vector<12x256xf32>
    %263 = vector.extract_strided_slice %206 {offsets = [0, 15], sizes = [12, 241], strides = [1, 1]} : vector<12x256xf32> to vector<12x241xf32>
    %264 = vector.extract_strided_slice %206 {offsets = [0, 0], sizes = [12, 15], strides = [1, 1]} : vector<12x256xf32> to vector<12x15xf32>
    %265 = tpu.concatenate %263, %264 in 1 : vector<12x241xf32>, vector<12x15xf32> -> vector<12x256xf32>
    %c15_i32_76 = arith.constant 15 : i32
    %266 = vector.broadcast %c15_i32_76 : i32 to vector<1x256xi32>
    %267 = arith.cmpi slt, %211, %266 : vector<1x256xi32>
    %c1_i32_77 = arith.constant 1 : i32
    %268 = vector.broadcast %c1_i32_77 : i32 to vector<1x256xi32>
    %269 = arith.cmpi sge, %209, %268 : vector<1x256xi32>
    %270 = arith.andi %267, %269 : vector<1x256xi1>
    %cst_78 = arith.constant 0.000000e+00 : f32
    %271 = vector.shape_cast %270 : vector<1x256xi1> to vector<1x256xi1>
    %272 = vector.broadcast %271 : vector<1x256xi1> to vector<12x256xi1>
    %273 = vector.broadcast %cst_78 : f32 to vector<12x256xf32>
    %274 = arith.select %272, %265, %273 : vector<12x256xi1>, vector<12x256xf32>
    %275 = vector.extract_strided_slice %206 {offsets = [0, 16], sizes = [12, 240], strides = [1, 1]} : vector<12x256xf32> to vector<12x240xf32>
    %276 = vector.extract_strided_slice %206 {offsets = [0, 0], sizes = [12, 16], strides = [1, 1]} : vector<12x256xf32> to vector<12x16xf32>
    %277 = tpu.concatenate %275, %276 in 1 : vector<12x240xf32>, vector<12x16xf32> -> vector<12x256xf32>
    %c15_i32_79 = arith.constant 15 : i32
    %278 = vector.broadcast %c15_i32_79 : i32 to vector<1x256xi32>
    %279 = arith.cmpi slt, %211, %278 : vector<1x256xi32>
    %cst_80 = arith.constant 0.000000e+00 : f32
    %280 = vector.shape_cast %279 : vector<1x256xi1> to vector<1x256xi1>
    %281 = vector.broadcast %280 : vector<1x256xi1> to vector<12x256xi1>
    %282 = vector.broadcast %cst_80 : f32 to vector<12x256xf32>
    %283 = arith.select %281, %277, %282 : vector<12x256xi1>, vector<12x256xf32>
    %284 = vector.extract_strided_slice %206 {offsets = [0, 17], sizes = [12, 239], strides = [1, 1]} : vector<12x256xf32> to vector<12x239xf32>
    %285 = vector.extract_strided_slice %206 {offsets = [0, 0], sizes = [12, 17], strides = [1, 1]} : vector<12x256xf32> to vector<12x17xf32>
    %286 = tpu.concatenate %284, %285 in 1 : vector<12x239xf32>, vector<12x17xf32> -> vector<12x256xf32>
    %c15_i32_81 = arith.constant 15 : i32
    %287 = vector.broadcast %c15_i32_81 : i32 to vector<1x256xi32>
    %288 = arith.cmpi slt, %211, %287 : vector<1x256xi32>
    %c15_i32_82 = arith.constant 15 : i32
    %289 = vector.broadcast %c15_i32_82 : i32 to vector<1x256xi32>
    %290 = arith.cmpi slt, %209, %289 : vector<1x256xi32>
    %291 = arith.andi %288, %290 : vector<1x256xi1>
    %cst_83 = arith.constant 0.000000e+00 : f32
    %292 = vector.shape_cast %291 : vector<1x256xi1> to vector<1x256xi1>
    %293 = vector.broadcast %292 : vector<1x256xi1> to vector<12x256xi1>
    %294 = vector.broadcast %cst_83 : f32 to vector<12x256xf32>
    %295 = arith.select %293, %286, %294 : vector<12x256xi1>, vector<12x256xf32>
    %296 = tpu.concatenate %223, %232, %244, %253, %206, %262, %274, %283, %295 in 0 : vector<12x256xf32>, vector<12x256xf32>, vector<12x256xf32>, vector<12x256xf32>, vector<12x256xf32>, vector<12x256xf32>, vector<12x256xf32>, vector<12x256xf32>, vector<12x256xf32> -> vector<108x256xf32>
    %297 = arith.truncf %104 : vector<12x108xf32> to vector<12x108xbf16>
    %298 = arith.truncf %296 : vector<108x256xf32> to vector<108x256xbf16>
    %cst_84 = arith.constant dense<0.000000e+00> : vector<12x256xf32>
    %299 = tpu.matmul %297, %298, %cst_84 {dimension_numbers = #tpu.dot_dimension_numbers<[1], [0], [0], [1], [0, 0, 1, 1], [], []>} : vector<12x108xbf16>, vector<108x256xbf16>, vector<12x256xf32> -> vector<12x256xf32>
    %300 = vector.broadcast %105 : vector<12x1xf32> to vector<12x256xf32>
    %301 = arith.addf %299, %300 : vector<12x256xf32>
    %302 = arith.addf %301, %101 : vector<12x256xf32>
    %c0_85 = arith.constant 0 : index
    %c0_86 = arith.constant 0 : index
    %c0_87 = arith.constant 0 : index
    %303 = vector.load %arg10[%c0_85, %c0_86, %c0_87] : memref<1x12x256xf32, #tpu.memory_space<vmem>>, vector<1x12x256xf32>
    %304 = vector.shape_cast %303 : vector<1x12x256xf32> to vector<12x256xf32>
    %305 = vector.shape_cast %302 : vector<12x256xf32> to vector<1x12x256xf32>
    tpu.vector_store %arg10[%c0_85, %c0_86, %c0_87], %305 {strides = array<i32>} : memref<1x12x256xf32, #tpu.memory_space<vmem>>, vector<1x12x256xf32>,
    return
  }
  func.func @transform_0(%arg0: i32) -> (i32, i32, i32) {
    %c0_i32 = arith.constant 0 : i32
    %c0_i32_0 = arith.constant 0 : i32
    %c0_i32_1 = arith.constant 0 : i32
    return %arg0, %c0_i32, %c0_i32_0 : i32, i32, i32
  }
  func.func @transform_1(%arg0: i32) -> (i32, i32, i32) {
    %c0_i32 = arith.constant 0 : i32
    %c0_i32_0 = arith.constant 0 : i32
    %c0_i32_1 = arith.constant 0 : i32
    return %arg0, %c0_i32, %c0_i32_0 : i32, i32, i32
  }
  func.func @transform_2(%arg0: i32) -> (i32, i32) {
    %c0_i32 = arith.constant 0 : i32
    %c0_i32_0 = arith.constant 0 : i32
    %c0_i32_1 = arith.constant 0 : i32
    return %c0_i32, %c0_i32_0 : i32, i32
  }
  func.func @transform_3(%arg0: i32) -> (i32, i32) {
    %c0_i32 = arith.constant 0 : i32
    %c0_i32_0 = arith.constant 0 : i32
    %c0_i32_1 = arith.constant 0 : i32
    return %c0_i32, %c0_i32_0 : i32, i32
  }
  func.func @transform_4(%arg0: i32) -> (i32, i32) {
    %c0_i32 = arith.constant 0 : i32
    %c0_i32_0 = arith.constant 0 : i32
    %c0_i32_1 = arith.constant 0 : i32
    return %c0_i32, %c0_i32_0 : i32, i32
  }
  func.func @transform_5(%arg0: i32) -> (i32, i32) {
    %c0_i32 = arith.constant 0 : i32
    %c0_i32_0 = arith.constant 0 : i32
    %c0_i32_1 = arith.constant 0 : i32
    return %c0_i32, %c0_i32_0 : i32, i32
  }
  func.func @transform_6(%arg0: i32) -> (i32, i32) {
    %c0_i32 = arith.constant 0 : i32
    %c0_i32_0 = arith.constant 0 : i32
    %c0_i32_1 = arith.constant 0 : i32
    return %c0_i32, %c0_i32_0 : i32, i32
  }
  func.func @transform_7(%arg0: i32) -> (i32, i32) {
    %c0_i32 = arith.constant 0 : i32
    %c0_i32_0 = arith.constant 0 : i32
    %c0_i32_1 = arith.constant 0 : i32
    return %c0_i32, %c0_i32_0 : i32, i32
  }
  func.func @transform_8(%arg0: i32) -> (i32, i32) {
    %c0_i32 = arith.constant 0 : i32
    %c0_i32_0 = arith.constant 0 : i32
    %c0_i32_1 = arith.constant 0 : i32
    return %c0_i32, %c0_i32_0 : i32, i32
  }
  func.func @transform_9(%arg0: i32) -> (i32, i32, i32) {
    %c0_i32 = arith.constant 0 : i32
    %c0_i32_0 = arith.constant 0 : i32
    %c0_i32_1 = arith.constant 0 : i32
    return %arg0, %c0_i32, %c0_i32_0 : i32, i32, i32
  }
}

module attributes {stable_mosaic.version = 11 : i64} {
  func.func @_skip_resblock_kernel(%arg0: i32, %arg1: memref<1x8x1024xf32, #tpu.memory_space<vmem>>, %arg2: memref<1x8x1024xf32, #tpu.memory_space<vmem>>, %arg3: memref<8x72xf32, #tpu.memory_space<vmem>>, %arg4: memref<8x1xf32, #tpu.memory_space<vmem>>, %arg5: memref<8x72xf32, #tpu.memory_space<vmem>>, %arg6: memref<8x1xf32, #tpu.memory_space<vmem>>, %arg7: memref<8x72xf32, #tpu.memory_space<vmem>>, %arg8: memref<8x1xf32, #tpu.memory_space<vmem>>, %arg9: memref<1x1xf32, #tpu.memory_space<vmem>>, %arg10: memref<1x8x1024xf32, #tpu.memory_space<vmem>>) attributes {dimension_semantics = [#tpu.dimension_semantics<parallel>], iteration_bounds = array<i64: 2>, scalar_prefetch = 0 : i64, scratch_operands = 0 : i64, tpu.core_type = #tpu.core_type<tc>, window_params = [{transform_indices = @transform_0, window_bounds = array<i64: 1, 8, 1024>}, {transform_indices = @transform_1, window_bounds = array<i64: 1, 8, 1024>}, {pipeline_mode = #tpu.pipeline_mode<synchronous>, transform_indices = @transform_2, window_bounds = array<i64: 8, 72>}, {pipeline_mode = #tpu.pipeline_mode<synchronous>, transform_indices = @transform_3, window_bounds = array<i64: 8, 1>}, {pipeline_mode = #tpu.pipeline_mode<synchronous>, transform_indices = @transform_4, window_bounds = array<i64: 8, 72>}, {pipeline_mode = #tpu.pipeline_mode<synchronous>, transform_indices = @transform_5, window_bounds = array<i64: 8, 1>}, {pipeline_mode = #tpu.pipeline_mode<synchronous>, transform_indices = @transform_6, window_bounds = array<i64: 8, 72>}, {pipeline_mode = #tpu.pipeline_mode<synchronous>, transform_indices = @transform_7, window_bounds = array<i64: 8, 1>}, {pipeline_mode = #tpu.pipeline_mode<synchronous>, transform_indices = @transform_8, window_bounds = array<i64: 1, 1>}, {transform_indices = @transform_9, window_bounds = array<i64: 1, 8, 1024>}]} {
    %c0 = arith.constant 0 : index
    %c0_0 = arith.constant 0 : index
    %c0_1 = arith.constant 0 : index
    %0 = vector.load %arg2[%c0, %c0_0, %c0_1] : memref<1x8x1024xf32, #tpu.memory_space<vmem>>, vector<1x8x1024xf32>
    %1 = vector.shape_cast %0 : vector<1x8x1024xf32> to vector<8x1024xf32>
    %c0_2 = arith.constant 0 : index
    %c0_3 = arith.constant 0 : index
    %2 = vector.load %arg3[%c0_2, %c0_3] : memref<8x72xf32, #tpu.memory_space<vmem>>, vector<8x72xf32>
    %3 = tpu.iota {dimensions = array<i32: 1>} : vector<1x1024xi32>
    %c31_i32 = arith.constant 31 : i32
    %4 = vector.broadcast %c31_i32 : i32 to vector<1x1024xi32>
    %5 = arith.andi %3, %4 : vector<1x1024xi32>
    %c5_i32 = arith.constant 5 : i32
    %6 = vector.broadcast %c5_i32 : i32 to vector<1x1024xi32>
    %7 = arith.shrsi %3, %6 : vector<1x1024xi32>
    %8 = vector.extract_strided_slice %1 {offsets = [0, 991], sizes = [8, 33], strides = [1, 1]} : vector<8x1024xf32> to vector<8x33xf32>
    %9 = vector.extract_strided_slice %1 {offsets = [0, 0], sizes = [8, 991], strides = [1, 1]} : vector<8x1024xf32> to vector<8x991xf32>
    %10 = tpu.concatenate %8, %9 in 1 : vector<8x33xf32>, vector<8x991xf32> -> vector<8x1024xf32>
    %c1_i32 = arith.constant 1 : i32
    %11 = vector.broadcast %c1_i32 : i32 to vector<1x1024xi32>
    %12 = arith.cmpi sge, %7, %11 : vector<1x1024xi32>
    %c1_i32_4 = arith.constant 1 : i32
    %13 = vector.broadcast %c1_i32_4 : i32 to vector<1x1024xi32>
    %14 = arith.cmpi sge, %5, %13 : vector<1x1024xi32>
    %15 = arith.andi %12, %14 : vector<1x1024xi1>
    %cst = arith.constant 0.000000e+00 : f32
    %16 = vector.shape_cast %15 : vector<1x1024xi1> to vector<1x1024xi1>
    %17 = vector.broadcast %16 : vector<1x1024xi1> to vector<8x1024xi1>
    %18 = vector.broadcast %cst : f32 to vector<8x1024xf32>
    %19 = arith.select %17, %10, %18 : vector<8x1024xi1>, vector<8x1024xf32>
    %20 = vector.extract_strided_slice %1 {offsets = [0, 992], sizes = [8, 32], strides = [1, 1]} : vector<8x1024xf32> to vector<8x32xf32>
    %21 = vector.extract_strided_slice %1 {offsets = [0, 0], sizes = [8, 992], strides = [1, 1]} : vector<8x1024xf32> to vector<8x992xf32>
    %22 = tpu.concatenate %20, %21 in 1 : vector<8x32xf32>, vector<8x992xf32> -> vector<8x1024xf32>
    %c1_i32_5 = arith.constant 1 : i32
    %23 = vector.broadcast %c1_i32_5 : i32 to vector<1x1024xi32>
    %24 = arith.cmpi sge, %7, %23 : vector<1x1024xi32>
    %cst_6 = arith.constant 0.000000e+00 : f32
    %25 = vector.shape_cast %24 : vector<1x1024xi1> to vector<1x1024xi1>
    %26 = vector.broadcast %25 : vector<1x1024xi1> to vector<8x1024xi1>
    %27 = vector.broadcast %cst_6 : f32 to vector<8x1024xf32>
    %28 = arith.select %26, %22, %27 : vector<8x1024xi1>, vector<8x1024xf32>
    %29 = vector.extract_strided_slice %1 {offsets = [0, 993], sizes = [8, 31], strides = [1, 1]} : vector<8x1024xf32> to vector<8x31xf32>
    %30 = vector.extract_strided_slice %1 {offsets = [0, 0], sizes = [8, 993], strides = [1, 1]} : vector<8x1024xf32> to vector<8x993xf32>
    %31 = tpu.concatenate %29, %30 in 1 : vector<8x31xf32>, vector<8x993xf32> -> vector<8x1024xf32>
    %c1_i32_7 = arith.constant 1 : i32
    %32 = vector.broadcast %c1_i32_7 : i32 to vector<1x1024xi32>
    %33 = arith.cmpi sge, %7, %32 : vector<1x1024xi32>
    %c31_i32_8 = arith.constant 31 : i32
    %34 = vector.broadcast %c31_i32_8 : i32 to vector<1x1024xi32>
    %35 = arith.cmpi slt, %5, %34 : vector<1x1024xi32>
    %36 = arith.andi %33, %35 : vector<1x1024xi1>
    %cst_9 = arith.constant 0.000000e+00 : f32
    %37 = vector.shape_cast %36 : vector<1x1024xi1> to vector<1x1024xi1>
    %38 = vector.broadcast %37 : vector<1x1024xi1> to vector<8x1024xi1>
    %39 = vector.broadcast %cst_9 : f32 to vector<8x1024xf32>
    %40 = arith.select %38, %31, %39 : vector<8x1024xi1>, vector<8x1024xf32>
    %41 = vector.extract_strided_slice %1 {offsets = [0, 1023], sizes = [8, 1], strides = [1, 1]} : vector<8x1024xf32> to vector<8x1xf32>
    %42 = vector.extract_strided_slice %1 {offsets = [0, 0], sizes = [8, 1023], strides = [1, 1]} : vector<8x1024xf32> to vector<8x1023xf32>
    %43 = tpu.concatenate %41, %42 in 1 : vector<8x1xf32>, vector<8x1023xf32> -> vector<8x1024xf32>
    %c1_i32_10 = arith.constant 1 : i32
    %44 = vector.broadcast %c1_i32_10 : i32 to vector<1x1024xi32>
    %45 = arith.cmpi sge, %5, %44 : vector<1x1024xi32>
    %cst_11 = arith.constant 0.000000e+00 : f32
    %46 = vector.shape_cast %45 : vector<1x1024xi1> to vector<1x1024xi1>
    %47 = vector.broadcast %46 : vector<1x1024xi1> to vector<8x1024xi1>
    %48 = vector.broadcast %cst_11 : f32 to vector<8x1024xf32>
    %49 = arith.select %47, %43, %48 : vector<8x1024xi1>, vector<8x1024xf32>
    %50 = vector.extract_strided_slice %1 {offsets = [0, 1], sizes = [8, 1023], strides = [1, 1]} : vector<8x1024xf32> to vector<8x1023xf32>
    %51 = vector.extract_strided_slice %1 {offsets = [0, 0], sizes = [8, 1], strides = [1, 1]} : vector<8x1024xf32> to vector<8x1xf32>
    %52 = tpu.concatenate %50, %51 in 1 : vector<8x1023xf32>, vector<8x1xf32> -> vector<8x1024xf32>
    %c31_i32_12 = arith.constant 31 : i32
    %53 = vector.broadcast %c31_i32_12 : i32 to vector<1x1024xi32>
    %54 = arith.cmpi slt, %5, %53 : vector<1x1024xi32>
    %cst_13 = arith.constant 0.000000e+00 : f32
    %55 = vector.shape_cast %54 : vector<1x1024xi1> to vector<1x1024xi1>
    %56 = vector.broadcast %55 : vector<1x1024xi1> to vector<8x1024xi1>
    %57 = vector.broadcast %cst_13 : f32 to vector<8x1024xf32>
    %58 = arith.select %56, %52, %57 : vector<8x1024xi1>, vector<8x1024xf32>
    %59 = vector.extract_strided_slice %1 {offsets = [0, 31], sizes = [8, 993], strides = [1, 1]} : vector<8x1024xf32> to vector<8x993xf32>
    %60 = vector.extract_strided_slice %1 {offsets = [0, 0], sizes = [8, 31], strides = [1, 1]} : vector<8x1024xf32> to vector<8x31xf32>
    %61 = tpu.concatenate %59, %60 in 1 : vector<8x993xf32>, vector<8x31xf32> -> vector<8x1024xf32>
    %c31_i32_14 = arith.constant 31 : i32
    %62 = vector.broadcast %c31_i32_14 : i32 to vector<1x1024xi32>
    %63 = arith.cmpi slt, %7, %62 : vector<1x1024xi32>
    %c1_i32_15 = arith.constant 1 : i32
    %64 = vector.broadcast %c1_i32_15 : i32 to vector<1x1024xi32>
    %65 = arith.cmpi sge, %5, %64 : vector<1x1024xi32>
    %66 = arith.andi %63, %65 : vector<1x1024xi1>
    %cst_16 = arith.constant 0.000000e+00 : f32
    %67 = vector.shape_cast %66 : vector<1x1024xi1> to vector<1x1024xi1>
    %68 = vector.broadcast %67 : vector<1x1024xi1> to vector<8x1024xi1>
    %69 = vector.broadcast %cst_16 : f32 to vector<8x1024xf32>
    %70 = arith.select %68, %61, %69 : vector<8x1024xi1>, vector<8x1024xf32>
    %71 = vector.extract_strided_slice %1 {offsets = [0, 32], sizes = [8, 992], strides = [1, 1]} : vector<8x1024xf32> to vector<8x992xf32>
    %72 = vector.extract_strided_slice %1 {offsets = [0, 0], sizes = [8, 32], strides = [1, 1]} : vector<8x1024xf32> to vector<8x32xf32>
    %73 = tpu.concatenate %71, %72 in 1 : vector<8x992xf32>, vector<8x32xf32> -> vector<8x1024xf32>
    %c31_i32_17 = arith.constant 31 : i32
    %74 = vector.broadcast %c31_i32_17 : i32 to vector<1x1024xi32>
    %75 = arith.cmpi slt, %7, %74 : vector<1x1024xi32>
    %cst_18 = arith.constant 0.000000e+00 : f32
    %76 = vector.shape_cast %75 : vector<1x1024xi1> to vector<1x1024xi1>
    %77 = vector.broadcast %76 : vector<1x1024xi1> to vector<8x1024xi1>
    %78 = vector.broadcast %cst_18 : f32 to vector<8x1024xf32>
    %79 = arith.select %77, %73, %78 : vector<8x1024xi1>, vector<8x1024xf32>
    %80 = vector.extract_strided_slice %1 {offsets = [0, 33], sizes = [8, 991], strides = [1, 1]} : vector<8x1024xf32> to vector<8x991xf32>
    %81 = vector.extract_strided_slice %1 {offsets = [0, 0], sizes = [8, 33], strides = [1, 1]} : vector<8x1024xf32> to vector<8x33xf32>
    %82 = tpu.concatenate %80, %81 in 1 : vector<8x991xf32>, vector<8x33xf32> -> vector<8x1024xf32>
    %c31_i32_19 = arith.constant 31 : i32
    %83 = vector.broadcast %c31_i32_19 : i32 to vector<1x1024xi32>
    %84 = arith.cmpi slt, %7, %83 : vector<1x1024xi32>
    %c31_i32_20 = arith.constant 31 : i32
    %85 = vector.broadcast %c31_i32_20 : i32 to vector<1x1024xi32>
    %86 = arith.cmpi slt, %5, %85 : vector<1x1024xi32>
    %87 = arith.andi %84, %86 : vector<1x1024xi1>
    %cst_21 = arith.constant 0.000000e+00 : f32
    %88 = vector.shape_cast %87 : vector<1x1024xi1> to vector<1x1024xi1>
    %89 = vector.broadcast %88 : vector<1x1024xi1> to vector<8x1024xi1>
    %90 = vector.broadcast %cst_21 : f32 to vector<8x1024xf32>
    %91 = arith.select %89, %82, %90 : vector<8x1024xi1>, vector<8x1024xf32>
    %92 = tpu.concatenate %19, %28, %40, %49, %1, %58, %70, %79, %91 in 0 : vector<8x1024xf32>, vector<8x1024xf32>, vector<8x1024xf32>, vector<8x1024xf32>, vector<8x1024xf32>, vector<8x1024xf32>, vector<8x1024xf32>, vector<8x1024xf32>, vector<8x1024xf32> -> vector<72x1024xf32>
    %93 = arith.truncf %2 : vector<8x72xf32> to vector<8x72xbf16>
    %94 = arith.truncf %92 : vector<72x1024xf32> to vector<72x1024xbf16>
    %cst_22 = arith.constant dense<0.000000e+00> : vector<8x1024xf32>
    %95 = tpu.matmul %93, %94, %cst_22 {dimension_numbers = #tpu.dot_dimension_numbers<[1], [0], [0], [1], [0, 0, 1, 1], [], []>} : vector<8x72xbf16>, vector<72x1024xbf16>, vector<8x1024xf32> -> vector<8x1024xf32>
    %c0_23 = arith.constant 0 : index
    %c0_24 = arith.constant 0 : index
    %96 = vector.load %arg4[%c0_23, %c0_24] : memref<8x1xf32, #tpu.memory_space<vmem>>, vector<8x1xf32>
    %97 = vector.broadcast %96 : vector<8x1xf32> to vector<8x1024xf32>
    %98 = arith.addf %95, %97 : vector<8x1024xf32>
    %c0_25 = arith.constant 0 : index
    %c0_26 = arith.constant 0 : index
    %c0_27 = arith.constant 0 : index
    %99 = vector.load %arg1[%c0_25, %c0_26, %c0_27] : memref<1x8x1024xf32, #tpu.memory_space<vmem>>, vector<1x8x1024xf32>
    %100 = vector.shape_cast %99 : vector<1x8x1024xf32> to vector<8x1024xf32>
    %101 = arith.addf %100, %98 : vector<8x1024xf32>
    %c0_28 = arith.constant 0 : index
    %c0_29 = arith.constant 0 : index
    %102 = vector.load %arg5[%c0_28, %c0_29] : memref<8x72xf32, #tpu.memory_space<vmem>>, vector<8x72xf32>
    %c0_30 = arith.constant 0 : index
    %c0_31 = arith.constant 0 : index
    %103 = vector.load %arg6[%c0_30, %c0_31] : memref<8x1xf32, #tpu.memory_space<vmem>>, vector<8x1xf32>
    %c0_32 = arith.constant 0 : index
    %c0_33 = arith.constant 0 : index
    %104 = vector.load %arg7[%c0_32, %c0_33] : memref<8x72xf32, #tpu.memory_space<vmem>>, vector<8x72xf32>
    %c0_34 = arith.constant 0 : index
    %c0_35 = arith.constant 0 : index
    %105 = vector.load %arg8[%c0_34, %c0_35] : memref<8x1xf32, #tpu.memory_space<vmem>>, vector<8x1xf32>
    %c0_36 = arith.constant 0 : index
    %c0_37 = arith.constant 0 : index
    %106 = vector.load %arg9[%c0_36, %c0_37] : memref<1x1xf32, #tpu.memory_space<vmem>>, vector<1x1xf32>
    %107 = tpu.iota {dimensions = array<i32: 1>} : vector<1x1024xi32>
    %c31_i32_38 = arith.constant 31 : i32
    %108 = vector.broadcast %c31_i32_38 : i32 to vector<1x1024xi32>
    %109 = arith.andi %107, %108 : vector<1x1024xi32>
    %c5_i32_39 = arith.constant 5 : i32
    %110 = vector.broadcast %c5_i32_39 : i32 to vector<1x1024xi32>
    %111 = arith.shrsi %107, %110 : vector<1x1024xi32>
    %112 = vector.extract_strided_slice %101 {offsets = [0, 991], sizes = [8, 33], strides = [1, 1]} : vector<8x1024xf32> to vector<8x33xf32>
    %113 = vector.extract_strided_slice %101 {offsets = [0, 0], sizes = [8, 991], strides = [1, 1]} : vector<8x1024xf32> to vector<8x991xf32>
    %114 = tpu.concatenate %112, %113 in 1 : vector<8x33xf32>, vector<8x991xf32> -> vector<8x1024xf32>
    %c1_i32_40 = arith.constant 1 : i32
    %115 = vector.broadcast %c1_i32_40 : i32 to vector<1x1024xi32>
    %116 = arith.cmpi sge, %111, %115 : vector<1x1024xi32>
    %c1_i32_41 = arith.constant 1 : i32
    %117 = vector.broadcast %c1_i32_41 : i32 to vector<1x1024xi32>
    %118 = arith.cmpi sge, %109, %117 : vector<1x1024xi32>
    %119 = arith.andi %116, %118 : vector<1x1024xi1>
    %cst_42 = arith.constant 0.000000e+00 : f32
    %120 = vector.shape_cast %119 : vector<1x1024xi1> to vector<1x1024xi1>
    %121 = vector.broadcast %120 : vector<1x1024xi1> to vector<8x1024xi1>
    %122 = vector.broadcast %cst_42 : f32 to vector<8x1024xf32>
    %123 = arith.select %121, %114, %122 : vector<8x1024xi1>, vector<8x1024xf32>
    %124 = vector.extract_strided_slice %101 {offsets = [0, 992], sizes = [8, 32], strides = [1, 1]} : vector<8x1024xf32> to vector<8x32xf32>
    %125 = vector.extract_strided_slice %101 {offsets = [0, 0], sizes = [8, 992], strides = [1, 1]} : vector<8x1024xf32> to vector<8x992xf32>
    %126 = tpu.concatenate %124, %125 in 1 : vector<8x32xf32>, vector<8x992xf32> -> vector<8x1024xf32>
    %c1_i32_43 = arith.constant 1 : i32
    %127 = vector.broadcast %c1_i32_43 : i32 to vector<1x1024xi32>
    %128 = arith.cmpi sge, %111, %127 : vector<1x1024xi32>
    %cst_44 = arith.constant 0.000000e+00 : f32
    %129 = vector.shape_cast %128 : vector<1x1024xi1> to vector<1x1024xi1>
    %130 = vector.broadcast %129 : vector<1x1024xi1> to vector<8x1024xi1>
    %131 = vector.broadcast %cst_44 : f32 to vector<8x1024xf32>
    %132 = arith.select %130, %126, %131 : vector<8x1024xi1>, vector<8x1024xf32>
    %133 = vector.extract_strided_slice %101 {offsets = [0, 993], sizes = [8, 31], strides = [1, 1]} : vector<8x1024xf32> to vector<8x31xf32>
    %134 = vector.extract_strided_slice %101 {offsets = [0, 0], sizes = [8, 993], strides = [1, 1]} : vector<8x1024xf32> to vector<8x993xf32>
    %135 = tpu.concatenate %133, %134 in 1 : vector<8x31xf32>, vector<8x993xf32> -> vector<8x1024xf32>
    %c1_i32_45 = arith.constant 1 : i32
    %136 = vector.broadcast %c1_i32_45 : i32 to vector<1x1024xi32>
    %137 = arith.cmpi sge, %111, %136 : vector<1x1024xi32>
    %c31_i32_46 = arith.constant 31 : i32
    %138 = vector.broadcast %c31_i32_46 : i32 to vector<1x1024xi32>
    %139 = arith.cmpi slt, %109, %138 : vector<1x1024xi32>
    %140 = arith.andi %137, %139 : vector<1x1024xi1>
    %cst_47 = arith.constant 0.000000e+00 : f32
    %141 = vector.shape_cast %140 : vector<1x1024xi1> to vector<1x1024xi1>
    %142 = vector.broadcast %141 : vector<1x1024xi1> to vector<8x1024xi1>
    %143 = vector.broadcast %cst_47 : f32 to vector<8x1024xf32>
    %144 = arith.select %142, %135, %143 : vector<8x1024xi1>, vector<8x1024xf32>
    %145 = vector.extract_strided_slice %101 {offsets = [0, 1023], sizes = [8, 1], strides = [1, 1]} : vector<8x1024xf32> to vector<8x1xf32>
    %146 = vector.extract_strided_slice %101 {offsets = [0, 0], sizes = [8, 1023], strides = [1, 1]} : vector<8x1024xf32> to vector<8x1023xf32>
    %147 = tpu.concatenate %145, %146 in 1 : vector<8x1xf32>, vector<8x1023xf32> -> vector<8x1024xf32>
    %c1_i32_48 = arith.constant 1 : i32
    %148 = vector.broadcast %c1_i32_48 : i32 to vector<1x1024xi32>
    %149 = arith.cmpi sge, %109, %148 : vector<1x1024xi32>
    %cst_49 = arith.constant 0.000000e+00 : f32
    %150 = vector.shape_cast %149 : vector<1x1024xi1> to vector<1x1024xi1>
    %151 = vector.broadcast %150 : vector<1x1024xi1> to vector<8x1024xi1>
    %152 = vector.broadcast %cst_49 : f32 to vector<8x1024xf32>
    %153 = arith.select %151, %147, %152 : vector<8x1024xi1>, vector<8x1024xf32>
    %154 = vector.extract_strided_slice %101 {offsets = [0, 1], sizes = [8, 1023], strides = [1, 1]} : vector<8x1024xf32> to vector<8x1023xf32>
    %155 = vector.extract_strided_slice %101 {offsets = [0, 0], sizes = [8, 1], strides = [1, 1]} : vector<8x1024xf32> to vector<8x1xf32>
    %156 = tpu.concatenate %154, %155 in 1 : vector<8x1023xf32>, vector<8x1xf32> -> vector<8x1024xf32>
    %c31_i32_50 = arith.constant 31 : i32
    %157 = vector.broadcast %c31_i32_50 : i32 to vector<1x1024xi32>
    %158 = arith.cmpi slt, %109, %157 : vector<1x1024xi32>
    %cst_51 = arith.constant 0.000000e+00 : f32
    %159 = vector.shape_cast %158 : vector<1x1024xi1> to vector<1x1024xi1>
    %160 = vector.broadcast %159 : vector<1x1024xi1> to vector<8x1024xi1>
    %161 = vector.broadcast %cst_51 : f32 to vector<8x1024xf32>
    %162 = arith.select %160, %156, %161 : vector<8x1024xi1>, vector<8x1024xf32>
    %163 = vector.extract_strided_slice %101 {offsets = [0, 31], sizes = [8, 993], strides = [1, 1]} : vector<8x1024xf32> to vector<8x993xf32>
    %164 = vector.extract_strided_slice %101 {offsets = [0, 0], sizes = [8, 31], strides = [1, 1]} : vector<8x1024xf32> to vector<8x31xf32>
    %165 = tpu.concatenate %163, %164 in 1 : vector<8x993xf32>, vector<8x31xf32> -> vector<8x1024xf32>
    %c31_i32_52 = arith.constant 31 : i32
    %166 = vector.broadcast %c31_i32_52 : i32 to vector<1x1024xi32>
    %167 = arith.cmpi slt, %111, %166 : vector<1x1024xi32>
    %c1_i32_53 = arith.constant 1 : i32
    %168 = vector.broadcast %c1_i32_53 : i32 to vector<1x1024xi32>
    %169 = arith.cmpi sge, %109, %168 : vector<1x1024xi32>
    %170 = arith.andi %167, %169 : vector<1x1024xi1>
    %cst_54 = arith.constant 0.000000e+00 : f32
    %171 = vector.shape_cast %170 : vector<1x1024xi1> to vector<1x1024xi1>
    %172 = vector.broadcast %171 : vector<1x1024xi1> to vector<8x1024xi1>
    %173 = vector.broadcast %cst_54 : f32 to vector<8x1024xf32>
    %174 = arith.select %172, %165, %173 : vector<8x1024xi1>, vector<8x1024xf32>
    %175 = vector.extract_strided_slice %101 {offsets = [0, 32], sizes = [8, 992], strides = [1, 1]} : vector<8x1024xf32> to vector<8x992xf32>
    %176 = vector.extract_strided_slice %101 {offsets = [0, 0], sizes = [8, 32], strides = [1, 1]} : vector<8x1024xf32> to vector<8x32xf32>
    %177 = tpu.concatenate %175, %176 in 1 : vector<8x992xf32>, vector<8x32xf32> -> vector<8x1024xf32>
    %c31_i32_55 = arith.constant 31 : i32
    %178 = vector.broadcast %c31_i32_55 : i32 to vector<1x1024xi32>
    %179 = arith.cmpi slt, %111, %178 : vector<1x1024xi32>
    %cst_56 = arith.constant 0.000000e+00 : f32
    %180 = vector.shape_cast %179 : vector<1x1024xi1> to vector<1x1024xi1>
    %181 = vector.broadcast %180 : vector<1x1024xi1> to vector<8x1024xi1>
    %182 = vector.broadcast %cst_56 : f32 to vector<8x1024xf32>
    %183 = arith.select %181, %177, %182 : vector<8x1024xi1>, vector<8x1024xf32>
    %184 = vector.extract_strided_slice %101 {offsets = [0, 33], sizes = [8, 991], strides = [1, 1]} : vector<8x1024xf32> to vector<8x991xf32>
    %185 = vector.extract_strided_slice %101 {offsets = [0, 0], sizes = [8, 33], strides = [1, 1]} : vector<8x1024xf32> to vector<8x33xf32>
    %186 = tpu.concatenate %184, %185 in 1 : vector<8x991xf32>, vector<8x33xf32> -> vector<8x1024xf32>
    %c31_i32_57 = arith.constant 31 : i32
    %187 = vector.broadcast %c31_i32_57 : i32 to vector<1x1024xi32>
    %188 = arith.cmpi slt, %111, %187 : vector<1x1024xi32>
    %c31_i32_58 = arith.constant 31 : i32
    %189 = vector.broadcast %c31_i32_58 : i32 to vector<1x1024xi32>
    %190 = arith.cmpi slt, %109, %189 : vector<1x1024xi32>
    %191 = arith.andi %188, %190 : vector<1x1024xi1>
    %cst_59 = arith.constant 0.000000e+00 : f32
    %192 = vector.shape_cast %191 : vector<1x1024xi1> to vector<1x1024xi1>
    %193 = vector.broadcast %192 : vector<1x1024xi1> to vector<8x1024xi1>
    %194 = vector.broadcast %cst_59 : f32 to vector<8x1024xf32>
    %195 = arith.select %193, %186, %194 : vector<8x1024xi1>, vector<8x1024xf32>
    %196 = tpu.concatenate %123, %132, %144, %153, %101, %162, %174, %183, %195 in 0 : vector<8x1024xf32>, vector<8x1024xf32>, vector<8x1024xf32>, vector<8x1024xf32>, vector<8x1024xf32>, vector<8x1024xf32>, vector<8x1024xf32>, vector<8x1024xf32>, vector<8x1024xf32> -> vector<72x1024xf32>
    %197 = arith.truncf %102 : vector<8x72xf32> to vector<8x72xbf16>
    %198 = arith.truncf %196 : vector<72x1024xf32> to vector<72x1024xbf16>
    %cst_60 = arith.constant dense<0.000000e+00> : vector<8x1024xf32>
    %199 = tpu.matmul %197, %198, %cst_60 {dimension_numbers = #tpu.dot_dimension_numbers<[1], [0], [0], [1], [0, 0, 1, 1], [], []>} : vector<8x72xbf16>, vector<72x1024xbf16>, vector<8x1024xf32> -> vector<8x1024xf32>
    %200 = vector.broadcast %103 : vector<8x1xf32> to vector<8x1024xf32>
    %201 = arith.addf %199, %200 : vector<8x1024xf32>
    %cst_61 = arith.constant 0.000000e+00 : f32
    %202 = vector.broadcast %cst_61 : f32 to vector<8x1024xf32>
    %203 = arith.cmpf oge, %201, %202 : vector<8x1024xf32>
    %204 = vector.broadcast %106 : vector<1x1xf32> to vector<8x1024xf32>
    %205 = arith.mulf %204, %201 : vector<8x1024xf32>
    %206 = arith.select %203, %201, %205 : vector<8x1024xi1>, vector<8x1024xf32>
    %207 = tpu.iota {dimensions = array<i32: 1>} : vector<1x1024xi32>
    %c31_i32_62 = arith.constant 31 : i32
    %208 = vector.broadcast %c31_i32_62 : i32 to vector<1x1024xi32>
    %209 = arith.andi %207, %208 : vector<1x1024xi32>
    %c5_i32_63 = arith.constant 5 : i32
    %210 = vector.broadcast %c5_i32_63 : i32 to vector<1x1024xi32>
    %211 = arith.shrsi %207, %210 : vector<1x1024xi32>
    %212 = vector.extract_strided_slice %206 {offsets = [0, 991], sizes = [8, 33], strides = [1, 1]} : vector<8x1024xf32> to vector<8x33xf32>
    %213 = vector.extract_strided_slice %206 {offsets = [0, 0], sizes = [8, 991], strides = [1, 1]} : vector<8x1024xf32> to vector<8x991xf32>
    %214 = tpu.concatenate %212, %213 in 1 : vector<8x33xf32>, vector<8x991xf32> -> vector<8x1024xf32>
    %c1_i32_64 = arith.constant 1 : i32
    %215 = vector.broadcast %c1_i32_64 : i32 to vector<1x1024xi32>
    %216 = arith.cmpi sge, %211, %215 : vector<1x1024xi32>
    %c1_i32_65 = arith.constant 1 : i32
    %217 = vector.broadcast %c1_i32_65 : i32 to vector<1x1024xi32>
    %218 = arith.cmpi sge, %209, %217 : vector<1x1024xi32>
    %219 = arith.andi %216, %218 : vector<1x1024xi1>
    %cst_66 = arith.constant 0.000000e+00 : f32
    %220 = vector.shape_cast %219 : vector<1x1024xi1> to vector<1x1024xi1>
    %221 = vector.broadcast %220 : vector<1x1024xi1> to vector<8x1024xi1>
    %222 = vector.broadcast %cst_66 : f32 to vector<8x1024xf32>
    %223 = arith.select %221, %214, %222 : vector<8x1024xi1>, vector<8x1024xf32>
    %224 = vector.extract_strided_slice %206 {offsets = [0, 992], sizes = [8, 32], strides = [1, 1]} : vector<8x1024xf32> to vector<8x32xf32>
    %225 = vector.extract_strided_slice %206 {offsets = [0, 0], sizes = [8, 992], strides = [1, 1]} : vector<8x1024xf32> to vector<8x992xf32>
    %226 = tpu.concatenate %224, %225 in 1 : vector<8x32xf32>, vector<8x992xf32> -> vector<8x1024xf32>
    %c1_i32_67 = arith.constant 1 : i32
    %227 = vector.broadcast %c1_i32_67 : i32 to vector<1x1024xi32>
    %228 = arith.cmpi sge, %211, %227 : vector<1x1024xi32>
    %cst_68 = arith.constant 0.000000e+00 : f32
    %229 = vector.shape_cast %228 : vector<1x1024xi1> to vector<1x1024xi1>
    %230 = vector.broadcast %229 : vector<1x1024xi1> to vector<8x1024xi1>
    %231 = vector.broadcast %cst_68 : f32 to vector<8x1024xf32>
    %232 = arith.select %230, %226, %231 : vector<8x1024xi1>, vector<8x1024xf32>
    %233 = vector.extract_strided_slice %206 {offsets = [0, 993], sizes = [8, 31], strides = [1, 1]} : vector<8x1024xf32> to vector<8x31xf32>
    %234 = vector.extract_strided_slice %206 {offsets = [0, 0], sizes = [8, 993], strides = [1, 1]} : vector<8x1024xf32> to vector<8x993xf32>
    %235 = tpu.concatenate %233, %234 in 1 : vector<8x31xf32>, vector<8x993xf32> -> vector<8x1024xf32>
    %c1_i32_69 = arith.constant 1 : i32
    %236 = vector.broadcast %c1_i32_69 : i32 to vector<1x1024xi32>
    %237 = arith.cmpi sge, %211, %236 : vector<1x1024xi32>
    %c31_i32_70 = arith.constant 31 : i32
    %238 = vector.broadcast %c31_i32_70 : i32 to vector<1x1024xi32>
    %239 = arith.cmpi slt, %209, %238 : vector<1x1024xi32>
    %240 = arith.andi %237, %239 : vector<1x1024xi1>
    %cst_71 = arith.constant 0.000000e+00 : f32
    %241 = vector.shape_cast %240 : vector<1x1024xi1> to vector<1x1024xi1>
    %242 = vector.broadcast %241 : vector<1x1024xi1> to vector<8x1024xi1>
    %243 = vector.broadcast %cst_71 : f32 to vector<8x1024xf32>
    %244 = arith.select %242, %235, %243 : vector<8x1024xi1>, vector<8x1024xf32>
    %245 = vector.extract_strided_slice %206 {offsets = [0, 1023], sizes = [8, 1], strides = [1, 1]} : vector<8x1024xf32> to vector<8x1xf32>
    %246 = vector.extract_strided_slice %206 {offsets = [0, 0], sizes = [8, 1023], strides = [1, 1]} : vector<8x1024xf32> to vector<8x1023xf32>
    %247 = tpu.concatenate %245, %246 in 1 : vector<8x1xf32>, vector<8x1023xf32> -> vector<8x1024xf32>
    %c1_i32_72 = arith.constant 1 : i32
    %248 = vector.broadcast %c1_i32_72 : i32 to vector<1x1024xi32>
    %249 = arith.cmpi sge, %209, %248 : vector<1x1024xi32>
    %cst_73 = arith.constant 0.000000e+00 : f32
    %250 = vector.shape_cast %249 : vector<1x1024xi1> to vector<1x1024xi1>
    %251 = vector.broadcast %250 : vector<1x1024xi1> to vector<8x1024xi1>
    %252 = vector.broadcast %cst_73 : f32 to vector<8x1024xf32>
    %253 = arith.select %251, %247, %252 : vector<8x1024xi1>, vector<8x1024xf32>
    %254 = vector.extract_strided_slice %206 {offsets = [0, 1], sizes = [8, 1023], strides = [1, 1]} : vector<8x1024xf32> to vector<8x1023xf32>
    %255 = vector.extract_strided_slice %206 {offsets = [0, 0], sizes = [8, 1], strides = [1, 1]} : vector<8x1024xf32> to vector<8x1xf32>
    %256 = tpu.concatenate %254, %255 in 1 : vector<8x1023xf32>, vector<8x1xf32> -> vector<8x1024xf32>
    %c31_i32_74 = arith.constant 31 : i32
    %257 = vector.broadcast %c31_i32_74 : i32 to vector<1x1024xi32>
    %258 = arith.cmpi slt, %209, %257 : vector<1x1024xi32>
    %cst_75 = arith.constant 0.000000e+00 : f32
    %259 = vector.shape_cast %258 : vector<1x1024xi1> to vector<1x1024xi1>
    %260 = vector.broadcast %259 : vector<1x1024xi1> to vector<8x1024xi1>
    %261 = vector.broadcast %cst_75 : f32 to vector<8x1024xf32>
    %262 = arith.select %260, %256, %261 : vector<8x1024xi1>, vector<8x1024xf32>
    %263 = vector.extract_strided_slice %206 {offsets = [0, 31], sizes = [8, 993], strides = [1, 1]} : vector<8x1024xf32> to vector<8x993xf32>
    %264 = vector.extract_strided_slice %206 {offsets = [0, 0], sizes = [8, 31], strides = [1, 1]} : vector<8x1024xf32> to vector<8x31xf32>
    %265 = tpu.concatenate %263, %264 in 1 : vector<8x993xf32>, vector<8x31xf32> -> vector<8x1024xf32>
    %c31_i32_76 = arith.constant 31 : i32
    %266 = vector.broadcast %c31_i32_76 : i32 to vector<1x1024xi32>
    %267 = arith.cmpi slt, %211, %266 : vector<1x1024xi32>
    %c1_i32_77 = arith.constant 1 : i32
    %268 = vector.broadcast %c1_i32_77 : i32 to vector<1x1024xi32>
    %269 = arith.cmpi sge, %209, %268 : vector<1x1024xi32>
    %270 = arith.andi %267, %269 : vector<1x1024xi1>
    %cst_78 = arith.constant 0.000000e+00 : f32
    %271 = vector.shape_cast %270 : vector<1x1024xi1> to vector<1x1024xi1>
    %272 = vector.broadcast %271 : vector<1x1024xi1> to vector<8x1024xi1>
    %273 = vector.broadcast %cst_78 : f32 to vector<8x1024xf32>
    %274 = arith.select %272, %265, %273 : vector<8x1024xi1>, vector<8x1024xf32>
    %275 = vector.extract_strided_slice %206 {offsets = [0, 32], sizes = [8, 992], strides = [1, 1]} : vector<8x1024xf32> to vector<8x992xf32>
    %276 = vector.extract_strided_slice %206 {offsets = [0, 0], sizes = [8, 32], strides = [1, 1]} : vector<8x1024xf32> to vector<8x32xf32>
    %277 = tpu.concatenate %275, %276 in 1 : vector<8x992xf32>, vector<8x32xf32> -> vector<8x1024xf32>
    %c31_i32_79 = arith.constant 31 : i32
    %278 = vector.broadcast %c31_i32_79 : i32 to vector<1x1024xi32>
    %279 = arith.cmpi slt, %211, %278 : vector<1x1024xi32>
    %cst_80 = arith.constant 0.000000e+00 : f32
    %280 = vector.shape_cast %279 : vector<1x1024xi1> to vector<1x1024xi1>
    %281 = vector.broadcast %280 : vector<1x1024xi1> to vector<8x1024xi1>
    %282 = vector.broadcast %cst_80 : f32 to vector<8x1024xf32>
    %283 = arith.select %281, %277, %282 : vector<8x1024xi1>, vector<8x1024xf32>
    %284 = vector.extract_strided_slice %206 {offsets = [0, 33], sizes = [8, 991], strides = [1, 1]} : vector<8x1024xf32> to vector<8x991xf32>
    %285 = vector.extract_strided_slice %206 {offsets = [0, 0], sizes = [8, 33], strides = [1, 1]} : vector<8x1024xf32> to vector<8x33xf32>
    %286 = tpu.concatenate %284, %285 in 1 : vector<8x991xf32>, vector<8x33xf32> -> vector<8x1024xf32>
    %c31_i32_81 = arith.constant 31 : i32
    %287 = vector.broadcast %c31_i32_81 : i32 to vector<1x1024xi32>
    %288 = arith.cmpi slt, %211, %287 : vector<1x1024xi32>
    %c31_i32_82 = arith.constant 31 : i32
    %289 = vector.broadcast %c31_i32_82 : i32 to vector<1x1024xi32>
    %290 = arith.cmpi slt, %209, %289 : vector<1x1024xi32>
    %291 = arith.andi %288, %290 : vector<1x1024xi1>
    %cst_83 = arith.constant 0.000000e+00 : f32
    %292 = vector.shape_cast %291 : vector<1x1024xi1> to vector<1x1024xi1>
    %293 = vector.broadcast %292 : vector<1x1024xi1> to vector<8x1024xi1>
    %294 = vector.broadcast %cst_83 : f32 to vector<8x1024xf32>
    %295 = arith.select %293, %286, %294 : vector<8x1024xi1>, vector<8x1024xf32>
    %296 = tpu.concatenate %223, %232, %244, %253, %206, %262, %274, %283, %295 in 0 : vector<8x1024xf32>, vector<8x1024xf32>, vector<8x1024xf32>, vector<8x1024xf32>, vector<8x1024xf32>, vector<8x1024xf32>, vector<8x1024xf32>, vector<8x1024xf32>, vector<8x1024xf32> -> vector<72x1024xf32>
    %297 = arith.truncf %104 : vector<8x72xf32> to vector<8x72xbf16>
    %298 = arith.truncf %296 : vector<72x1024xf32> to vector<72x1024xbf16>
    %cst_84 = arith.constant dense<0.000000e+00> : vector<8x1024xf32>
    %299 = tpu.matmul %297, %298, %cst_84 {dimension_numbers = #tpu.dot_dimension_numbers<[1], [0], [0], [1], [0, 0, 1, 1], [], []>} : vector<8x72xbf16>, vector<72x1024xbf16>, vector<8x1024xf32> -> vector<8x1024xf32>
    %300 = vector.broadcast %105 : vector<8x1xf32> to vector<8x1024xf32>
    %301 = arith.addf %299, %300 : vector<8x1024xf32>
    %302 = arith.addf %301, %101 : vector<8x1024xf32>
    %c0_85 = arith.constant 0 : index
    %c0_86 = arith.constant 0 : index
    %c0_87 = arith.constant 0 : index
    %303 = vector.load %arg10[%c0_85, %c0_86, %c0_87] : memref<1x8x1024xf32, #tpu.memory_space<vmem>>, vector<1x8x1024xf32>
    %304 = vector.shape_cast %303 : vector<1x8x1024xf32> to vector<8x1024xf32>
    %305 = vector.shape_cast %302 : vector<8x1024xf32> to vector<1x8x1024xf32>
    tpu.vector_store %arg10[%c0_85, %c0_86, %c0_87], %305 {strides = array<i32>} : memref<1x8x1024xf32, #tpu.memory_space<vmem>>, vector<1x8x1024xf32>,
    return
  }
  func.func @transform_0(%arg0: i32) -> (i32, i32, i32) {
    %c0_i32 = arith.constant 0 : i32
    %c0_i32_0 = arith.constant 0 : i32
    %c0_i32_1 = arith.constant 0 : i32
    return %arg0, %c0_i32, %c0_i32_0 : i32, i32, i32
  }
  func.func @transform_1(%arg0: i32) -> (i32, i32, i32) {
    %c0_i32 = arith.constant 0 : i32
    %c0_i32_0 = arith.constant 0 : i32
    %c0_i32_1 = arith.constant 0 : i32
    return %arg0, %c0_i32, %c0_i32_0 : i32, i32, i32
  }
  func.func @transform_2(%arg0: i32) -> (i32, i32) {
    %c0_i32 = arith.constant 0 : i32
    %c0_i32_0 = arith.constant 0 : i32
    %c0_i32_1 = arith.constant 0 : i32
    return %c0_i32, %c0_i32_0 : i32, i32
  }
  func.func @transform_3(%arg0: i32) -> (i32, i32) {
    %c0_i32 = arith.constant 0 : i32
    %c0_i32_0 = arith.constant 0 : i32
    %c0_i32_1 = arith.constant 0 : i32
    return %c0_i32, %c0_i32_0 : i32, i32
  }
  func.func @transform_4(%arg0: i32) -> (i32, i32) {
    %c0_i32 = arith.constant 0 : i32
    %c0_i32_0 = arith.constant 0 : i32
    %c0_i32_1 = arith.constant 0 : i32
    return %c0_i32, %c0_i32_0 : i32, i32
  }
  func.func @transform_5(%arg0: i32) -> (i32, i32) {
    %c0_i32 = arith.constant 0 : i32
    %c0_i32_0 = arith.constant 0 : i32
    %c0_i32_1 = arith.constant 0 : i32
    return %c0_i32, %c0_i32_0 : i32, i32
  }
  func.func @transform_6(%arg0: i32) -> (i32, i32) {
    %c0_i32 = arith.constant 0 : i32
    %c0_i32_0 = arith.constant 0 : i32
    %c0_i32_1 = arith.constant 0 : i32
    return %c0_i32, %c0_i32_0 : i32, i32
  }
  func.func @transform_7(%arg0: i32) -> (i32, i32) {
    %c0_i32 = arith.constant 0 : i32
    %c0_i32_0 = arith.constant 0 : i32
    %c0_i32_1 = arith.constant 0 : i32
    return %c0_i32, %c0_i32_0 : i32, i32
  }
  func.func @transform_8(%arg0: i32) -> (i32, i32) {
    %c0_i32 = arith.constant 0 : i32
    %c0_i32_0 = arith.constant 0 : i32
    %c0_i32_1 = arith.constant 0 : i32
    return %c0_i32, %c0_i32_0 : i32, i32
  }
  func.func @transform_9(%arg0: i32) -> (i32, i32, i32) {
    %c0_i32 = arith.constant 0 : i32
    %c0_i32_0 = arith.constant 0 : i32
    %c0_i32_1 = arith.constant 0 : i32
    return %arg0, %c0_i32, %c0_i32_0 : i32, i32, i32
  }
}

</mosaic_0001>

<bundles_post_ra>
// kernel: decoder_forward.6
= control target key start
LH: loop header
LB: loop body
LE: loop exit
PB: predicated region body
PF: predicated region fallthrough
CT: control target
= control target key end

     0   :  { %s648_s9 = smov 0   ;;  %s775_s0 = inlined_call_operand.vmem [shape: f32[2,16,64], index: 0, kind: input, shape index: {}]   ;;  %s776_s1 = inlined_call_operand.vmem [shape: f32[12,16], index: 1, kind: input, shape index: {}]   ;;  %s777_s2 = inlined_call_operand.vmem [shape: f32[2,4,12,64], index: 2, kind: output, shape index: {}]  }
   0x1 LB: > { %s542_s10 = sadd.s32 4294967295, %s621_s9   ;;  %p546_p0 = scmp.ge.s32.totalorder %s621_s9, 1  ;;  %s621_s9 = sphi %s648_s9, %s12_s9  }
   0x2   : > { %p112_p1 = scmp.lt.s32.totalorder %s621_s9, 3 }
   0x4   : > { %p113_p2 = pnand %p546_p0, %p112_p1 }
   0x5   : > { %p134_p3 = scmp.lt.s32.totalorder (!%p113_p2), %s542_s10, 1  ;;  %s623_s15 = smov (!%p113_p2), 8   ;;  %v147_v2 = vlaneseq (!%p113_p2)  ;;  %vm169_vm0 = vcmask (!%p113_p2), 64512   ;;  %v628_v21 = vmov (!%p113_p2), 0.0   ;;  %vm189_vm2 = vcmask (!%p113_p2), 457728   ;;  %v151_v53 = vld [vmem:[%s776_s1] sm:$0xff] (!%p113_p2) }
   0x6   : > { %116 = sbr.rel (%p113_p2) target bundleno = 511 (0x1ff), region = 28  ;;  %s624_s16 = smov (!%p113_p2), 72   ;;  %573 = vmatprep.subr.bf16.mxu0 (!%p113_p2), %v628_v21  ;;  %579 = vmatprep.subr.bf16.mxu1 (!%p113_p2), %v628_v21  ;;  %vm632_vm4 = vmmov (!%p113_p2), 0   ;;  %vm221_vm5 = vcmask (!%p113_p2), 7168   ;;  %vm241_vm7 = vcmask (!%p113_p2), 515072   ;;  %vm259_vm9 = vcmask (!%p113_p2), 130048  }
   0x7   : > { %s625_s17 = smov (!%p113_p2), 120   ;;  %s626_s18 = smov (!%p113_p2), 56   ;;  %v662_v3 = vand.u32 (!%p113_p2), 127, %v147_v2  ;;  %575 = vmatprep.mubr.msk.bf16.mxu0 (!%p113_p2), %vm632_vm4, %v628_v21  ;;  %581 = vmatprep.mubr.msk.bf16.mxu1 (!%p113_p2), %vm632_vm4, %v628_v21  ;;  %v152_v54 = vld [vmem:[%s776_s1 + $0x8] sm:$0xf] (!%p113_p2)  ;;  %vm304_vm10 = vcmask (!%p113_p2), 523264  }
   0x8   : > { %s627_s19 = smov (!%p113_p2), 65   ;;  %s629_s20 = smov (!%p113_p2), 1   ;;  %v153_v59 = vpack.c.bf16 (!%p113_p2), %v152_v54, %v151_v53  ;;  %vm306_vm11 = vcmask (!%p113_p2), 519168  }
   0x9   : > { %v150_v4 = vshra.s32 (!%p113_p2), %v662_v3, 3  ;;  %s630_s21 = smov (!%p113_p2), 127   ;;  %s631_s22 = smov (!%p113_p2), 63   ;;  %v149_v32 = vand.u32 (!%p113_p2), 7, %v662_v3 }
   0xb   : > { %vm154_vm1 = vcmp.ge.s32.totalorder (!%p113_p2), %v150_v4, 1  ;;  %vm176_vm3 = vcmp.lt.s32.totalorder (!%p113_p2), %v150_v4, 7  ;;  %vm700_vm6 = vcmp.ge.s32.totalorder (!%p113_p2), %v149_v32, 1  ;;  %vm712_vm8 = vcmp.lt.s32.totalorder (!%p113_p2), %v149_v32, 7 }
   0xd   : > { %s783_s10 = smov (!%p134_p3, %s542_s10), 1 }
   0xe   : > { %s563_s11 = sshll.u32 %s783_s10, 4  ;;  %s564_s27 = sshll.u32 %s783_s10, 6 }
   0xf   : > { %s138_s14 = scalar_lea.vmem %s775_s0, %s563_s11  ;;  %s143_s30 = scalar_lea.vmem %s777_s2, %s564_s27 }
  0x10   : > { %v145_v0 = vld [vmem:[%s138_s14] sm:$0xff]  ;;  %v146_v1 = vld [vmem:[%s138_s14 + $0x8] sm:$0xff] }
  0x11   : > { %163 = vrot.lane.b32.xlu1 %v145_v0, %s623_s15  ;;  %157 = vrot.lane.b32.xlu0 %v145_v0, %s624_s16  ;;  %v198_v8 = vmul.f32 0.75, %v145_v0  ;;  %v199_v14 = vmul.f32 0.75, %v146_v1 }
  0x15   : > { %165 = vrot.lane.b32.xlu1 %v146_v1, %s623_s15  ;;  %159 = vrot.lane.b32.xlu0 %v146_v1, %s624_s16 }
  0x19   : > { %179 = vrot.lane.b32.xlu1 %v146_v1, %s625_s17  ;;  %177 = vrot.lane.b32.xlu0 %v145_v0, %s625_s17 }
  0x1d   : > { %185 = vrot.lane.b32.xlu1 %v146_v1, %s626_s18  ;;  %183 = vrot.lane.b32.xlu0 %v145_v0, %s626_s18 }
  0x83   : > { %v164_v5 = vpop.permute.xlu1 %163  ;;  %v158_v6 = vpop.permute.xlu0 %157 }
  0x84   : > { %v170_v7 = vsel %vm169_vm0, %v158_v6, %v164_v5 }
  0x85   : > { %v174_v9 = vsel %vm154_vm1, %v170_v7, %v145_v0 }
  0x86   : > { %v196_v10 = vmul.f32 0.25, %v174_v9 }
  0x87   : > { %v166_v11 = vpop.permute.xlu1 %165  ;;  %v160_v12 = vpop.permute.xlu0 %159 }
  0x88   : > { %v665_v13 = vadd.f32 %v198_v8, %v196_v10  ;;  %v171_v15 = vsel %vm169_vm0, %v160_v12, %v166_v11 }
  0x89   : > { %v175_v16 = vsel %vm154_vm1, %v171_v15, %v146_v1 }
  0x8a   : > { %v197_v17 = vmul.f32 0.25, %v175_v16  ;;  %209 = vrot.lane.b32.xlu0 %v665_v13, %s627_s19  ;;  %v250_v46 = vmul.f32 0.75, %v665_v13 }
  0x8b   : > { %v180_v18 = vpop.permute.xlu1 %179  ;;  %v178_v19 = vpop.permute.xlu0 %177 }
  0x8c   : > { %v669_v20 = vadd.f32 %v199_v14, %v197_v17 }
  0x8e   : > { %211 = vrot.lane.b32.xlu1 %v669_v20, %s627_s19  ;;  %215 = vrot.lane.b32.xlu0 %v665_v13, %s629_s20  ;;  %v251_v47 = vmul.f32 0.75, %v669_v20 }
  0x8f   : > { %v186_v22 = vpop.permute.xlu1 %185  ;;  %v184_v23 = vpop.permute.xlu0 %183 }
  0x90   : > { %v190_v24 = vsel %vm189_vm2, %v178_v19, %v184_v23  ;;  %v191_v26 = vsel %vm189_vm2, %v180_v18, %v186_v22 }
  0x91   : > { %v194_v25 = vsel %vm176_vm3, %v190_v24, %v145_v0  ;;  %v195_v28 = vsel %vm176_vm3, %v191_v26, %v146_v1 }
  0x92   : > { %217 = vrot.lane.b32.xlu1 %v669_v20, %s629_s20  ;;  %229 = vrot.lane.b32.xlu0 %v665_v13, %s630_s21  ;;  %v202_v27 = vmul.f32 0.25, %v194_v25  ;;  %v203_v30 = vmul.f32 0.25, %v195_v28 }
  0x94   : > { %v678_v29 = vadd.f32 %v202_v27, %v198_v8  ;;  %v685_v31 = vadd.f32 %v203_v30, %v199_v14 }
  0x96   : > { %231 = vrot.lane.b32.xlu1 %v669_v20, %s630_s21  ;;  %235 = vrot.lane.b32.xlu0 %v665_v13, %s631_s22  ;;  %v389_v12 = vmul.f32 0.75, %v678_v29 }
  0x9a   : > { %237 = vrot.lane.b32.xlu1 %v669_v20, %s631_s22  ;;  %355 = vrot.lane.b32.xlu0 %v678_v29, %s627_s19 }
  0x9e   : > { %357 = vrot.lane.b32.xlu1 %v685_v31, %s627_s19  ;;  %361 = vrot.lane.b32.xlu0 %v678_v29, %s629_s20 }
  0xa2   : > { %363 = vrot.lane.b32.xlu1 %v685_v31, %s629_s20  ;;  %371 = vrot.lane.b32.xlu0 %v678_v29, %s630_s21 }
  0xa6   : > { %373 = vrot.lane.b32.xlu1 %v685_v31, %s630_s21  ;;  %377 = vrot.lane.b32.xlu0 %v678_v29, %s631_s22 }
  0xaa   : > { %379 = vrot.lane.b32.xlu1 %v685_v31, %s631_s22 }
  0xfc   : > { %v210_v33 = vpop.permute.xlu0 %209 }
 0x100   : > { %v212_v35 = vpop.permute.xlu1 %211  ;;  %v216_v36 = vpop.permute.xlu0 %215 }
 0x101   : > { %v222_v37 = vsel %vm221_vm5, %v210_v33, %v216_v36 }
 0x102   : > { %v226_v38 = vsel %vm700_vm6, %v222_v37, %v665_v13 }
 0x103   : > { %v248_v41 = vmul.f32 0.25, %v226_v38 }
 0x104   : > { %v218_v39 = vpop.permute.xlu1 %217  ;;  %v230_v40 = vpop.permute.xlu0 %229 }
 0x105   : > { %v223_v42 = vsel %vm221_vm5, %v212_v35, %v218_v39  ;;  %v252_v51 = vadd.f32 %v250_v46, %v248_v41 }
 0x106   : > { %v227_v43 = vsel %vm700_vm6, %v223_v42, %v669_v20 }
 0x107   : > { %v249_v44 = vmul.f32 0.25, %v227_v43 }
 0x108   : > { %v232_v48 = vpop.permute.xlu1 %231  ;;  %v236_v49 = vpop.permute.xlu0 %235 }
 0x109   : > { %v242_v50 = vsel %vm241_vm7, %v230_v40, %v236_v49  ;;  %v253_v52 = vadd.f32 %v251_v47, %v249_v44 }
 0x10a   : > { %v246_v55 = vsel %vm712_vm8, %v242_v50, %v665_v13  ;;  %v390_v13 = vmul.f32 0.75, %v685_v31 }
 0x10b   : > { %v258_v56 = vpack.c.bf16 %v253_v52, %v252_v51  ;;  %v254_v60 = vmul.f32 0.25, %v246_v55 }
 0x10c   : > { %v238_v57 = vpop.permute.xlu1 %237  ;;  %v356_v58 = vpop.permute.xlu0 %355 }
 0x10d   : > { %v243_v61 = vsel %vm241_vm7, %v232_v48, %v238_v57  ;;  %574 = vmatpush3.bf16.msra.mxu0 %v258_v56  ;;  %v256_v3 = vadd.f32 %v254_v60, %v250_v46 }
 0x10e   : > { %v247_v62 = vsel %vm712_vm8, %v243_v61, %v669_v20  ;;  %585 = vmatprep.subr.bf16.mxu0 %v628_v21 }
 0x10f   : > { %v255_v63 = vmul.f32 0.25, %v247_v62 }
 0x110   : > { %v358_v0 = vpop.permute.xlu1 %357  ;;  %v362_v1 = vpop.permute.xlu0 %361  ;;  %576 = vmatmul.mubr.msk.bf16.vlgmr.msra.gmra.mrb[0].mxu0 %vm259_vm9, %v153_v59 }
 0x111   : > { %v367_v2 = vsel %vm221_vm5, %v356_v58, %v362_v1  ;;  %v257_v4 = vadd.f32 %v255_v63, %v251_v47  ;;  %587 = vmatprep.mubr.msk.bf16.mxu0 %vm632_vm4, %v628_v21 }
 0x112   : > { %v369_v5 = vsel %vm700_vm6, %v367_v2, %v678_v29 }
 0x113   : > { %v308_v6 = vpack.c.bf16 %v257_v4, %v256_v3  ;;  %v387_v9 = vmul.f32 0.25, %v369_v5 }
 0x114   : > { %v364_v7 = vpop.permute.xlu1 %363  ;;  %v372_v8 = vpop.permute.xlu0 %371 }
 0x115   : > { %v368_v10 = vsel %vm221_vm5, %v358_v0, %v364_v7  ;;  %580 = vmatpush3.bf16.msra.mxu1 %v308_v6  ;;  %v391_v17 = vadd.f32 %v389_v12, %v387_v9 }
 0x116   : > { %v370_v11 = vsel %vm700_vm6, %v368_v10, %v685_v31  ;;  %591 = vmatprep.subr.bf16.mxu1 %v628_v21 }
 0x117   : > { %v388_v14 = vmul.f32 0.25, %v370_v11 }
 0x118   : > { %v374_v15 = vpop.permute.xlu1 %373  ;;  %v378_v16 = vpop.permute.xlu0 %377  ;;  %582 = vmatmul.mubr.msk.bf16.vlgmr.msra.gmra.mrb[0].mxu1 %vm259_vm9, %v153_v59 }
 0x119   : > { %v392_v18 = vadd.f32 %v390_v13, %v388_v14  ;;  %v383_v19 = vsel %vm241_vm7, %v372_v8, %v378_v16  ;;  %593 = vmatprep.mubr.msk.bf16.mxu1 %vm632_vm4, %v628_v21 }
 0x11a   : > { %v385_v20 = vsel %vm712_vm8, %v383_v19, %v678_v29 }
 0x11b   : > { %v397_v22 = vpack.c.bf16 %v392_v18, %v391_v17  ;;  %v393_v24 = vmul.f32 0.25, %v385_v20 }
 0x11c   : > { %v380_v23 = vpop.permute.xlu1 %379 }
 0x11d   : > { %v384_v25 = vsel %vm241_vm7, %v374_v15, %v380_v23  ;;  %586 = vmatpush3.bf16.msra.mxu0 %v397_v22  ;;  %v395_v28 = vadd.f32 %v393_v24, %v389_v12 }
 0x11e   : > { %v386_v26 = vsel %vm712_vm8, %v384_v25, %v685_v31 }
 0x11f   : > { %v394_v27 = vmul.f32 0.25, %v386_v26 }
 0x120   : > { %588 = vmatmul.mubr.msk.bf16.vlgmr.msra.gmra.mrb[4].mxu0 %vm259_vm9, %v153_v59 }
 0x121   : > { %v396_v30 = vadd.f32 %v394_v27, %v390_v13 }
 0x123   : > { %v442_v21 = vpack.c.bf16 %v396_v30, %v395_v28 }
 0x125   : > { %592 = vmatpush3.bf16.msra.mxu1 %v442_v21 }
 0x128   : > { %594 = vmatmul.mubr.msk.bf16.vlgmr.msra.gmra.mrb[4].mxu1 %vm259_vm9, %v153_v59 }
 0x1e3   : > { %v297_v29 = vpop.f32.mrb[0].mxu0 }
 0x1e4   : > { %305 = vst.msk [vmem:[%s143_s30] sm:$0xff] %vm304_vm10, %v297_v29  ;;  %v577_v31 = vpop.f32.mrb[1].mxu0 }
 0x1e5   : > { %v300_v32 = vpop.f32.mrb[2].mxu0 }
 0x1e6   : > { %307 = vst.msk [vmem:[%s143_s30 + $0x8] sm:$0xf] %vm306_vm11, %v300_v32  ;;  %v578_v33 = vpop.f32.mrb[3].mxu0 }
 0x1eb   : > { %v343_v34 = vpop.f32.mrb[0].mxu1 }
 0x1ec   : > { %553 = vst.msk [vmem:[%s143_s30 + $0x10] sm:$0xff] %vm304_vm10, %v343_v34  ;;  %v583_v35 = vpop.f32.mrb[1].mxu1 }
 0x1ed   : > { %v346_v36 = vpop.f32.mrb[2].mxu1 }
 0x1ee   : > { %554 = vst.msk [vmem:[%s143_s30 + $0x18] sm:$0xf] %vm306_vm11, %v346_v36  ;;  %v584_v37 = vpop.f32.mrb[3].mxu1 }
 0x1f3   : > { %v432_v38 = vpop.f32.mrb[4].mxu0 }
 0x1f4   : > { %556 = vst.msk [vmem:[%s143_s30 + $0x20] sm:$0xff] %vm304_vm10, %v432_v38  ;;  %v589_v39 = vpop.f32.mrb[5].mxu0 }
 0x1f5   : > { %v435_v40 = vpop.f32.mrb[6].mxu0 }
 0x1f6   : > { %557 = vst.msk [vmem:[%s143_s30 + $0x28] sm:$0xf] %vm306_vm11, %v435_v40  ;;  %v590_v41 = vpop.f32.mrb[7].mxu0 }
 0x1fb   : > { %v477_v42 = vpop.f32.mrb[4].mxu1 }
 0x1fc   : > { %559 = vst.msk [vmem:[%s143_s30 + $0x30] sm:$0xff] %vm304_vm10, %v477_v42  ;;  %v595_v43 = vpop.f32.mrb[5].mxu1 }
 0x1fd   : > { %v480_v44 = vpop.f32.mrb[6].mxu1 }
 0x1fe   : > { %560 = vst.msk [vmem:[%s143_s30 + $0x38] sm:$0xf] %vm306_vm11, %v480_v44  ;;  %v596_v45 = vpop.f32.mrb[7].mxu1 }
 0x1ff PF: > { %s12_s9 = sadd.s32 1, %s621_s9  }
 0x200   : > { %p9_p4 = scmp.ge.s32.totalorder %s12_s9, 4  }
 0x202   :  { %11 = sbr.rel (!%p9_p4) target bundleno = 1 (0x1), region = 61 }

// kernel: decoder_forward.5
= control target key start
LH: loop header
LB: loop body
LE: loop exit
PB: predicated region body
PF: predicated region fallthrough
CT: control target
= control target key end

     0   :  { %s1086_s23 = smov 0   ;;  %s1377_s0 = inlined_call_operand.vmem [shape: f32[2,16,64], index: 0, kind: input, shape index: {}]   ;;  %s1378_s1 = inlined_call_operand.vmem [shape: f32[16,144], index: 1, kind: input, shape index: {}]   ;;  %s1379_s2 = inlined_call_operand.vmem [shape: f32[16,1], index: 2, kind: input, shape index: {}]   ;;  %s1380_s3 = inlined_call_operand.vmem [shape: f32[16,144], index: 3, kind: input, shape index: {}]   ;;  %s1381_s4 = inlined_call_operand.vmem [shape: f32[16,1], index: 4, kind: input, shape index: {}]   ;;  %s1382_s5 = inlined_call_operand.<no memory space> [shape: f32[1,1], index: 5, kind: input, shape index: {}]   ;;  %s1383_s6 = inlined_call_operand.vmem [shape: f32[2,16,64], index: 6, kind: output, shape index: {}]  }
   0x1   :  { %v11_v0 = vstv %s1382_s5 }
   0x2   :  { %12 = vst [vmem:[#allocation2] sm:$0x1] %v11_v0 }
   0x3 LB: > { %s772_s24 = sadd.s32 4294967295, %s1029_s23   ;;  %p776_p0 = scmp.ge.s32.totalorder %s1029_s23, 1  ;;  %s1029_s23 = sphi %s1086_s23, %s18_s23  }
   0x4   : > { %p214_p1 = scmp.lt.s32.totalorder %s1029_s23, 3 }
   0x6   : > { %p215_p2 = pnand %p776_p0, %p214_p1 }
   0x7   : > { %p244_p3 = scmp.lt.s32.totalorder (!%p215_p2), %s772_s24, 1  ;;  %v1031_v1 = vmov (!%p215_p2), 0   ;;  %s1032_s28 = smov (!%p215_p2), 72   ;;  %v258_v5 = vld [vmem:[%s1378_s1 + $0x8] sm:$0xff] (!%p215_p2)  ;;  %v260_v6 = vld [vmem:[%s1378_s1 + $0x18] sm:$0xff] (!%p215_p2)  ;;  %vm457_vm0 = vcmask (!%p215_p2), 130048   ;;  %v270_v11 = vlaneseq (!%p215_p2) }
   0x8   : > { %218 = sbr.rel (%p215_p2) target bundleno = 775 (0x307), region = 44  ;;  %461 = vmatprep.subr.bf16.mxu0 (!%p215_p2), %v1031_v1  ;;  %942 = vset.pattern.permute.xlu1 (!%p215_p2), %v1031_v1  ;;  %s1033_s29 = smov (!%p215_p2), 73   ;;  %v437_v7 = vpack.c.bf16 (!%p215_p2), %v260_v6, %v258_v5  ;;  %v262_v8 = vld [vmem:[%s1379_s2 + $0x8] sm:$0xff] (!%p215_p2)  ;;  %v261_v9 = vld [vmem:[%s1379_s2] sm:$0xff] (!%p215_p2)  ;;  %vm310_vm3 = vcmask (!%p215_p2), 64512   ;;  %vm288_vm4 = vcmask (!%p215_p2), 72704  }
   0x9   : > { %941 = vset.pattern.permute.xlu0 (!%p215_p2), %v1031_v1  ;;  %671 = vmatprep.subr.bf16.mxu1 (!%p215_p2), %v1031_v1  ;;  %s1034_s30 = smov (!%p215_p2), 8   ;;  %s1035_s7 = smov (!%p215_p2), 9   ;;  %v806_v10 = vld [vmem:[#allocation2] ss:$0 sm:$0xff] (!%p215_p2)  ;;  %v1141_v12 = vand.u32 (!%p215_p2), 127, %v270_v11  ;;  %vm329_vm7 = vcmask (!%p215_p2), 56320  }
   0xa   : > { %s1036_s8 = smov (!%p215_p2), 7   ;;  %s1037_s9 = smov (!%p215_p2), 71   ;;  %805 = vmatprep.mubr.msk.bf16.mxu0 (!%p215_p2), %vm457_vm0, %v437_v7  ;;  %vm1387_vm10 = vcmask (!%p215_p2), 7168   ;;  %vm1384_vm14 = vcmask (!%p215_p2), 515072   ;;  %vm1386_vm15 = vcmask (!%p215_p2), 465920  }
   0xb   : > { %s1038_s10 = smov (!%p215_p2), 1   ;;  %s1039_s11 = smov (!%p215_p2), 65   ;;  %v272_v13 = vand.u32 (!%p215_p2), 7, %v1141_v12  ;;  %v273_v14 = vshra.s32 (!%p215_p2), %v1141_v12, 3 }
   0xc   : > { %s1040_s12 = smov (!%p215_p2), 63   ;;  %s1041_s13 = smov (!%p215_p2), 127  }
   0xd   : > { %s1042_s14 = smov (!%p215_p2), 57   ;;  %s1043_s15 = smov (!%p215_p2), 121   ;;  %vm1147_vm1 = vcmp.ge.s32.totalorder (!%p215_p2), %v273_v14, 1  ;;  %vm1151_vm2 = vcmp.ge.s32.totalorder (!%p215_p2), %v272_v13, 1  ;;  %vm1167_vm8 = vcmp.lt.s32.totalorder (!%p215_p2), %v272_v13, 7 }
   0xe   : > { %s1044_s16 = smov (!%p215_p2), 56   ;;  %s1045_s17 = smov (!%p215_p2), 120   ;;  %vm293_vm5 = vmand (!%p215_p2), %vm1147_vm1, %vm1151_vm2 }
   0xf   : > { %s1420_s24 = smov (!%p244_p3, %s772_s24), 1  ;;  %s1046_s22 = smov 55   ;;  %vm1161_vm6 = vmpackc.low %vm293_vm5, %vm293_vm5  ;;  %vm1213_vm5 = vcmp.lt.s32.totalorder %v273_v14, 7 }
  0x10   : > { %s834_s5 = sshll.u32 %s1420_s24, 4  ;;  %s1047_s25 = smov 119   ;;  %vm784_vm9 = vmpackc.low %vm1147_vm1, %vm1147_vm1 }
  0x11   : > { %s248_s27 = scalar_lea.vmem %s1377_s0, %s834_s5  ;;  %vm333_vm11 = vmand %vm1147_vm1, %vm1167_vm8 }
  0x12   : > { %v1106_v2 = vld [vmem:[%s248_s27] sm:$0xff]  ;;  %v1108_v3 = vld [vmem:[%s248_s27 + $0x8] sm:$0xff]  ;;  %vm1191_vm12 = vmpackc.low %vm333_vm11, %vm333_vm11 }
  0x13   : > { %v871_v4 = vpack.i.bf16 %v1108_v3, %v1106_v2  ;;  %vm1385_vm13 = vmpackc.low %vm1151_vm2, %vm1151_vm2  ;;  %v442_v5 = vpack.c.bf16 %v1108_v3, %v1106_v2 }
  0x14   : > { %vm793_vm11 = vmpackc.low %vm1167_vm8, %vm1167_vm8 }
  0x15   : > { %872 = vrot.lane.b32.xlu1 %v871_v4, %s1032_s28  ;;  %862 = vrot.lane.b32.xlu0 %v871_v4, %s1033_s29 }
  0x19   : > { %877 = vrot.lane.b32.xlu1 %v871_v4, %s1034_s30  ;;  %867 = vrot.lane.b32.xlu0 %v871_v4, %s1035_s7 }
  0x1d   : > { %887 = vrot.lane.b32.xlu1 %v871_v4, %s1036_s8  ;;  %882 = vrot.lane.b32.xlu0 %v871_v4, %s1037_s9 }
  0x21   : > { %897 = vrot.lane.b32.xlu1 %v871_v4, %s1038_s10  ;;  %892 = vrot.lane.b32.xlu0 %v871_v4, %s1039_s11 }
  0x25   : > { %907 = vrot.lane.b32.xlu1 %v871_v4, %s1040_s12  ;;  %902 = vrot.lane.b32.xlu0 %v871_v4, %s1041_s13 }
  0x29   : > { %917 = vrot.lane.b32.xlu1 %v871_v4, %s1042_s14  ;;  %912 = vrot.lane.b32.xlu0 %v871_v4, %s1043_s15 }
  0x2d   : > { %927 = vrot.lane.b32.xlu1 %v871_v4, %s1044_s16  ;;  %922 = vrot.lane.b32.xlu0 %v871_v4, %s1045_s17 }
  0x31   : > { %937 = vrot.lane.b32.xlu1 %v871_v4, %s1046_s22  ;;  %932 = vrot.lane.b32.xlu0 %v871_v4, %s1047_s25 }
  0x35   : > { %454 = vperm.xlu1 %942, %v262_v8   ;;  %449 = vperm.xlu0 %941, %v261_v9  }
  0x39   : > { %510 = vperm.xlu1 %942, %v806_v10  }
  0x87   : > { %v873_v15 = vpop.permute.xlu1 %872  ;;  %v863_v16 = vpop.permute.xlu0 %862 }
  0x88   : > { %v875_v19 = vunpack.i.h.bf16 %v873_v15  ;;  %v874_v20 = vunpack.i.l.bf16 %v873_v15  ;;  %v865_v21 = vunpack.i.h.bf16 %v863_v16  ;;  %v864_v22 = vunpack.i.l.bf16 %v863_v16 }
  0x8b   : > { %v878_v23 = vpop.permute.xlu1 %877  ;;  %v868_v24 = vpop.permute.xlu0 %867 }
  0x8c   : > { %v880_v25 = vunpack.i.h.bf16 %v878_v23  ;;  %v879_v26 = vunpack.i.l.bf16 %v878_v23  ;;  %v870_v27 = vunpack.i.h.bf16 %v868_v24  ;;  %v869_v28 = vunpack.i.l.bf16 %v868_v24 }
  0x8e   : > { %v289_v29 = vsel %vm288_vm4, %v864_v22, %v869_v28  ;;  %v290_v30 = vsel %vm288_vm4, %v865_v21, %v870_v27  ;;  %v311_v32 = vsel %vm310_vm3, %v874_v20, %v879_v26  ;;  %v312_v33 = vsel %vm310_vm3, %v875_v19, %v880_v25  ;;  %v265_v27 = vld [vmem:[%s1380_s3 + $0x10] sm:$0xff] }
  0x8f   : > { %v782_v34 = vpack.c.bf16 %v290_v30, %v289_v29  ;;  %v888_v35 = vpop.permute.xlu1 %887  ;;  %v883_v36 = vpop.permute.xlu0 %882  ;;  %v785_v44 = vpack.c.bf16 %v312_v33, %v311_v32 }
  0x90   : > { %v890_v38 = vunpack.i.h.bf16 %v888_v35  ;;  %v889_v39 = vunpack.i.l.bf16 %v888_v35  ;;  %v885_v40 = vunpack.i.h.bf16 %v883_v36  ;;  %v884_v41 = vunpack.i.l.bf16 %v883_v36 }
  0x91   : > { %783 = vmatpush1.bf16.msk.msra.mxu0 %vm1161_vm6, %v782_v34 }
  0x92   : > { %v331_v42 = vsel %vm329_vm7, %v885_v40, %v890_v38  ;;  %v330_v43 = vsel %vm329_vm7, %v884_v41, %v889_v39  ;;  %463 = vmatprep.subr.bf16.mxu0 %v1031_v1  ;;  %v257_v38 = vld [vmem:[%s1378_s1] sm:$0xff]  ;;  %v259_v39 = vld [vmem:[%s1378_s1 + $0x10] sm:$0xff] }
  0x93   : > { %v898_v45 = vpop.permute.xlu1 %897  ;;  %v893_v46 = vpop.permute.xlu0 %892  ;;  %v788_v51 = vpack.c.bf16 %v331_v42, %v330_v43  ;;  %v436_v41 = vpack.c.bf16 %v259_v39, %v257_v38 }
  0x94   : > { %v900_v47 = vunpack.i.h.bf16 %v898_v45  ;;  %v899_v48 = vunpack.i.l.bf16 %v898_v45  ;;  %v895_v49 = vunpack.i.h.bf16 %v893_v46  ;;  %v894_v50 = vunpack.i.l.bf16 %v893_v46 }
  0x95   : > { %786 = vmatpush1.bf16.msk.msra.mxu0 %vm784_vm9, %v785_v44 }
  0x96   : > { %v352_v52 = vsel %vm1387_vm10, %v895_v49, %v900_v47  ;;  %v351_v53 = vsel %vm1387_vm10, %v894_v50, %v899_v48  ;;  %465 = vmatprep.subr.bf16.mxu0 %v1031_v1  ;;  %vm1389_vm10 = vcmask 449536  }
  0x97   : > { %v908_v55 = vpop.permute.xlu1 %907  ;;  %v903_v56 = vpop.permute.xlu0 %902  ;;  %v791_v57 = vpack.c.bf16 %v352_v52, %v351_v53 }
  0x98   : > { %v910_v58 = vunpack.i.h.bf16 %v908_v55  ;;  %v909_v59 = vunpack.i.l.bf16 %v908_v55  ;;  %v905_v60 = vunpack.i.h.bf16 %v903_v56  ;;  %v904_v61 = vunpack.i.l.bf16 %v903_v56 }
  0x99   : > { %789 = vmatpush1.bf16.msk.msra.mxu0 %vm1191_vm12, %v788_v51 }
  0x9a   : > { %467 = vmatprep.subr.bf16.mxu0 %v1031_v1  ;;  %v371_v0 = vsel %vm1384_vm14, %v905_v60, %v910_v58  ;;  %v370_v4 = vsel %vm1384_vm14, %v904_v61, %v909_v59  ;;  %vm1388_vm14 = vcmask 457728   ;;  %v264_v58 = vld [vmem:[%s1380_s3 + $0x8] sm:$0xff]  ;;  %v266_v59 = vld [vmem:[%s1380_s3 + $0x18] sm:$0xff] }
  0x9b   : > { %v918_v62 = vpop.permute.xlu1 %917  ;;  %v913_v63 = vpop.permute.xlu0 %912  ;;  %v794_v13 = vpack.c.bf16 %v371_v0, %v370_v4  ;;  %v648_v60 = vpack.c.bf16 %v266_v59, %v264_v58  ;;  %v268_v61 = vld [vmem:[%s1381_s4 + $0x8] sm:$0xff] }
  0x9c   : > { %v920_v6 = vunpack.i.h.bf16 %v918_v62  ;;  %v919_v7 = vunpack.i.l.bf16 %v918_v62  ;;  %v915_v8 = vunpack.i.h.bf16 %v913_v63  ;;  %v914_v9 = vunpack.i.l.bf16 %v913_v63  ;;  %v267_v62 = vld [vmem:[%s1381_s4] sm:$0xff] }
  0x9d   : > { %792 = vmatpush1.bf16.msk.msra.mxu0 %vm1385_vm13, %v791_v57  ;;  %vm392_vm13 = vmand %vm1213_vm5, %vm1151_vm2  ;;  %831 = vmatprep.mubr.msk.bf16.mxu1 %vm457_vm0, %v648_v60  ;;  %vm1407_vm0 = vcmask 7168  }
  0x9e   : > { %469 = vmatprep.subr.bf16.mxu0 %v1031_v1  ;;  %v390_v22 = vsel %vm1386_vm15, %v915_v8, %v920_v6  ;;  %v389_v23 = vsel %vm1386_vm15, %v914_v9, %v919_v7  ;;  %vm1235_vm15 = vmpackc.low %vm392_vm13, %vm392_vm13 }
  0x9f   : > { %v928_v10 = vpop.permute.xlu1 %927  ;;  %v923_v11 = vpop.permute.xlu0 %922  ;;  %v797_v24 = vpack.c.bf16 %v390_v22, %v389_v23  ;;  %vm1390_vm13 = vmpackc.low %vm1213_vm5, %vm1213_vm5 }
  0xa0   : > { %v930_v16 = vunpack.i.h.bf16 %v928_v10  ;;  %v929_v19 = vunpack.i.l.bf16 %v928_v10  ;;  %v925_v20 = vunpack.i.h.bf16 %v923_v11  ;;  %v924_v21 = vunpack.i.l.bf16 %v923_v11  ;;  %vm1408_vm1 = vmmov %vm1407_vm0 }
  0xa1   : > { %470 = vmatpush1.bf16.msra.mxu0 %v442_v5 }
  0xa2   : > { %471 = vmatprep.subr.bf16.mxu0 %v1031_v1  ;;  %v411_v25 = vsel %vm1388_vm14, %v925_v20, %v930_v16  ;;  %v410_v26 = vsel %vm1388_vm14, %v924_v21, %v929_v19  ;;  %vm431_vm14 = vmand %vm1213_vm5, %vm1167_vm8  ;;  %vm1416_vm8 = vcmask 449536  }
  0xa3   : > { %v938_v12 = vpop.permute.xlu1 %937  ;;  %v933_v14 = vpop.permute.xlu0 %932  ;;  %v800_v33 = vpack.c.bf16 %v411_v25, %v410_v26 }
  0xa4   : > { %v940_v28 = vunpack.i.h.bf16 %v938_v12  ;;  %v939_v29 = vunpack.i.l.bf16 %v938_v12  ;;  %v935_v30 = vunpack.i.h.bf16 %v933_v14  ;;  %v934_v32 = vunpack.i.l.bf16 %v933_v14 }
  0xa5   : > { %795 = vmatpush1.bf16.msk.msra.mxu0 %vm793_vm11, %v794_v13 }
  0xa6   : > { %473 = vmatprep.subr.bf16.mxu0 %v1031_v1  ;;  %v430_v34 = vsel %vm1389_vm10, %v935_v30, %v940_v28  ;;  %v429_v35 = vsel %vm1389_vm10, %v934_v32, %v939_v29  ;;  %vm1263_vm10 = vmpackc.low %vm431_vm14, %vm431_vm14 }
  0xa7   : > { %v803_v36 = vpack.c.bf16 %v430_v34, %v429_v35 }
  0xa9   : > { %798 = vmatpush1.bf16.msk.msra.mxu0 %vm1235_vm15, %v797_v24 }
  0xaa   : > { %475 = vmatprep.subr.bf16.mxu0 %v1031_v1 }
  0xad   : > { %801 = vmatpush1.bf16.msk.msra.mxu0 %vm1390_vm13, %v800_v33 }
  0xae   : > { %477 = vmatprep.subr.bf16.mxu0 %v1031_v1 }
  0xb1   : > { %804 = vmatpush1.bf16.msk.msra.mxu0 %vm1263_vm10, %v803_v36 }
  0xb4   : > { %494 = vmatmul.mubr.bf16.vlgmr.msra.gmra.mrb[0].mxu0 %v436_v41  ;;  %v455_v42 = vpop.permute.xlu1 %454  ;;  %v450_v43 = vpop.permute.xlu0 %449 }
  0xb8   : > { %v511_v47 = vpop.permute.xlu1 %510 }
 0x187   : > { %v495_v44 = vpop.f32.mrb[0].mxu0 }
 0x188   : > { %v496_v45 = vadd.f32 %v495_v44, %v450_v43  ;;  %v497_v46 = vpop.f32.mrb[1].mxu0 }
 0x189   : > { %v498_v48 = vpop.f32.mrb[2].mxu0 }
 0x18a   : > { %v513_v49 = vmul.f32 %v511_v47, %v496_v45  ;;  %v499_v50 = vadd.f32 %v498_v48, %v455_v42  ;;  %v500_v51 = vpop.f32.mrb[3].mxu0  ;;  %vm502_vm13 = vcmp.ge.f32.partialorder %v496_v45, 0.0 }
 0x18c   : > { %vm503_vm14 = vcmp.ge.f32.partialorder %v499_v50, 0.0  ;;  %v514_v52 = vmul.f32 %v511_v47, %v499_v50  ;;  %v1269_v53 = vsel %vm502_vm13, %v496_v45, %v513_v49  ;;  %vm1418_vm13 = vmpackc.low %vm1213_vm5, %vm1213_vm5 }
 0x18e   : > { %v1271_v55 = vsel %vm503_vm14, %v499_v50, %v514_v52 }
 0x18f   : > { %v948_v56 = vpack.i.bf16 %v1271_v55, %v1269_v53  ;;  %v653_v57 = vpack.c.bf16 %v1271_v55, %v1269_v53 }
 0x191   : > { %949 = vrot.lane.b32.xlu1 %v948_v56, %s1035_s7  ;;  %944 = vrot.lane.b32.xlu0 %v948_v56, %s1033_s29 }
 0x195   : > { %959 = vrot.lane.b32.xlu1 %v948_v56, %s1034_s30  ;;  %954 = vrot.lane.b32.xlu0 %v948_v56, %s1032_s28 }
 0x199   : > { %969 = vrot.lane.b32.xlu1 %v948_v56, %s1036_s8  ;;  %964 = vrot.lane.b32.xlu0 %v948_v56, %s1037_s9 }
 0x19d   : > { %979 = vrot.lane.b32.xlu1 %v948_v56, %s1038_s10  ;;  %974 = vrot.lane.b32.xlu0 %v948_v56, %s1039_s11 }
 0x1a1   : > { %989 = vrot.lane.b32.xlu1 %v948_v56, %s1040_s12  ;;  %984 = vrot.lane.b32.xlu0 %v948_v56, %s1041_s13 }
 0x1a5   : > { %999 = vrot.lane.b32.xlu1 %v948_v56, %s1042_s14  ;;  %994 = vrot.lane.b32.xlu0 %v948_v56, %s1043_s15 }
 0x1a9   : > { %1009 = vrot.lane.b32.xlu1 %v948_v56, %s1044_s16  ;;  %1004 = vrot.lane.b32.xlu0 %v948_v56, %s1045_s17 }
 0x1ad   : > { %1019 = vrot.lane.b32.xlu1 %v948_v56, %s1046_s22  ;;  %1014 = vrot.lane.b32.xlu0 %v948_v56, %s1047_s25  ;;  %s253_s22 = scalar_lea.vmem %s1383_s6, %s834_s5 }
 0x1b1   : > { %665 = vperm.xlu1 %942, %v268_v61   ;;  %660 = vperm.xlu0 %941, %v267_v62  }
 0x203   : > { %v950_v63 = vpop.permute.xlu1 %949  ;;  %v945_v0 = vpop.permute.xlu0 %944 }
 0x204   : > { %v952_v4 = vunpack.i.h.bf16 %v950_v63  ;;  %v951_v5 = vunpack.i.l.bf16 %v950_v63  ;;  %v947_v6 = vunpack.i.h.bf16 %v945_v0  ;;  %v946_v7 = vunpack.i.l.bf16 %v945_v0 }
 0x206   : > { %v531_v8 = vsel %vm288_vm4, %v946_v7, %v951_v5  ;;  %v532_v9 = vsel %vm288_vm4, %v947_v6, %v952_v4  ;;  %vm1410_vm4 = vcmask 515072  }
 0x207   : > { %v960_v10 = vpop.permute.xlu1 %959  ;;  %v955_v11 = vpop.permute.xlu0 %954  ;;  %v808_v13 = vpack.c.bf16 %v532_v9, %v531_v8 }
 0x208   : > { %v962_v16 = vunpack.i.h.bf16 %v960_v10  ;;  %v961_v19 = vunpack.i.l.bf16 %v960_v10  ;;  %v957_v20 = vunpack.i.h.bf16 %v955_v11  ;;  %v956_v21 = vunpack.i.l.bf16 %v955_v11 }
 0x209   : > { %809 = vmatpush1.bf16.msk.msra.mxu1 %vm1161_vm6, %v808_v13  ;;  %vm1411_vm6 = vmmov %vm1410_vm4 }
 0x20a   : > { %v548_v22 = vsel %vm310_vm3, %v957_v20, %v962_v16  ;;  %v547_v23 = vsel %vm310_vm3, %v956_v21, %v961_v19  ;;  %673 = vmatprep.subr.bf16.mxu1 %v1031_v1  ;;  %vm1409_vm3 = vmpackc.low %vm1151_vm2, %vm1151_vm2  ;;  %vm1412_vm2 = vcmask 465920   ;;  %v263_v20 = vld [vmem:[%s1380_s3] sm:$0xff] }
 0x20b   : > { %v811_v12 = vpack.c.bf16 %v548_v22, %v547_v23  ;;  %v970_v14 = vpop.permute.xlu1 %969  ;;  %v965_v24 = vpop.permute.xlu0 %964  ;;  %v647_v22 = vpack.c.bf16 %v265_v27, %v263_v20 }
 0x20c   : > { %v972_v25 = vunpack.i.h.bf16 %v970_v14  ;;  %v971_v26 = vunpack.i.l.bf16 %v970_v14  ;;  %v967_v28 = vunpack.i.h.bf16 %v965_v24  ;;  %v966_v29 = vunpack.i.l.bf16 %v965_v24 }
 0x20d   : > { %812 = vmatpush1.bf16.msk.msra.mxu1 %vm784_vm9, %v811_v12  ;;  %vm1414_vm9 = vcmask 457728  }
 0x20e   : > { %v564_v31 = vsel %vm329_vm7, %v967_v28, %v972_v25  ;;  %v563_v30 = vsel %vm329_vm7, %v966_v29, %v971_v26  ;;  %675 = vmatprep.subr.bf16.mxu1 %v1031_v1  ;;  %vm1413_vm7 = vmmov %vm1412_vm2 }
 0x20f   : > { %v814_v32 = vpack.c.bf16 %v564_v31, %v563_v30  ;;  %v980_v33 = vpop.permute.xlu1 %979  ;;  %v975_v34 = vpop.permute.xlu0 %974 }
 0x210   : > { %v982_v35 = vunpack.i.h.bf16 %v980_v33  ;;  %v981_v36 = vunpack.i.l.bf16 %v980_v33  ;;  %v977_v38 = vunpack.i.h.bf16 %v975_v34  ;;  %v976_v39 = vunpack.i.l.bf16 %v975_v34 }
 0x211   : > { %815 = vmatpush1.bf16.msk.msra.mxu1 %vm1191_vm12, %v814_v32  ;;  %vm1415_vm12 = vmmov %vm1414_vm9 }
 0x212   : > { %v580_v17 = vsel %vm1407_vm0, %v977_v38, %v982_v35  ;;  %v579_v41 = vsel %vm1408_vm1, %v976_v39, %v981_v36  ;;  %677 = vmatprep.subr.bf16.mxu1 %v1031_v1 }
 0x213   : > { %v817_v42 = vpack.c.bf16 %v580_v17, %v579_v41  ;;  %v990_v43 = vpop.permute.xlu1 %989  ;;  %v985_v44 = vpop.permute.xlu0 %984 }
 0x214   : > { %v992_v45 = vunpack.i.h.bf16 %v990_v43  ;;  %v991_v46 = vunpack.i.l.bf16 %v990_v43  ;;  %v987_v47 = vunpack.i.h.bf16 %v985_v44  ;;  %v986_v48 = vunpack.i.l.bf16 %v985_v44 }
 0x215   : > { %818 = vmatpush1.bf16.msk.msra.mxu1 %vm1409_vm3, %v817_v42 }
 0x216   : > { %679 = vmatprep.subr.bf16.mxu1 %v1031_v1  ;;  %v596_v54 = vsel %vm1410_vm4, %v987_v47, %v992_v45  ;;  %v595_v49 = vsel %vm1411_vm6, %v986_v48, %v991_v46 }
 0x217   : > { %v1000_v50 = vpop.permute.xlu1 %999  ;;  %v995_v51 = vpop.permute.xlu0 %994  ;;  %v820_v18 = vpack.c.bf16 %v596_v54, %v595_v49 }
 0x218   : > { %v1002_v52 = vunpack.i.h.bf16 %v1000_v50  ;;  %v1001_v56 = vunpack.i.l.bf16 %v1000_v50  ;;  %v997_v58 = vunpack.i.h.bf16 %v995_v51  ;;  %v996_v59 = vunpack.i.l.bf16 %v995_v51 }
 0x219   : > { %680 = vmatpush1.bf16.msra.mxu1 %v653_v57 }
 0x21a   : > { %681 = vmatprep.subr.bf16.mxu1 %v1031_v1  ;;  %v612_v60 = vsel %vm1412_vm2, %v997_v58, %v1002_v52  ;;  %v611_v61 = vsel %vm1413_vm7, %v996_v59, %v1001_v56 }
 0x21b   : > { %v1010_v62 = vpop.permute.xlu1 %1009  ;;  %v1005_v63 = vpop.permute.xlu0 %1004  ;;  %v823_v53 = vpack.c.bf16 %v612_v60, %v611_v61 }
 0x21c   : > { %v1012_v0 = vunpack.i.h.bf16 %v1010_v62  ;;  %v1011_v4 = vunpack.i.l.bf16 %v1010_v62  ;;  %v1007_v5 = vunpack.i.h.bf16 %v1005_v63  ;;  %v1006_v6 = vunpack.i.l.bf16 %v1005_v63 }
 0x21d   : > { %821 = vmatpush1.bf16.msk.msra.mxu1 %vm793_vm11, %v820_v18  ;;  %vm1417_vm11 = vmmov %vm1416_vm8 }
 0x21e   : > { %683 = vmatprep.subr.bf16.mxu1 %v1031_v1  ;;  %v628_v55 = vsel %vm1414_vm9, %v1007_v5, %v1012_v0  ;;  %v627_v57 = vsel %vm1415_vm12, %v1006_v6, %v1011_v4 }
 0x21f   : > { %v1020_v7 = vpop.permute.xlu1 %1019  ;;  %v1015_v8 = vpop.permute.xlu0 %1014  ;;  %v826_v37 = vpack.c.bf16 %v628_v55, %v627_v57 }
 0x220   : > { %v1022_v9 = vunpack.i.h.bf16 %v1020_v7  ;;  %v1021_v10 = vunpack.i.l.bf16 %v1020_v7  ;;  %v1017_v11 = vunpack.i.h.bf16 %v1015_v8  ;;  %v1016_v13 = vunpack.i.l.bf16 %v1015_v8 }
 0x221   : > { %824 = vmatpush1.bf16.msk.msra.mxu1 %vm1235_vm15, %v823_v53  ;;  %vm714_vm15 = vcmask 523264  }
 0x222   : > { %685 = vmatprep.subr.bf16.mxu1 %v1031_v1  ;;  %v644_v16 = vsel %vm1416_vm8, %v1017_v11, %v1022_v9  ;;  %v643_v19 = vsel %vm1417_vm11, %v1016_v13, %v1021_v10 }
 0x223   : > { %v829_v21 = vpack.c.bf16 %v644_v16, %v643_v19 }
 0x225   : > { %827 = vmatpush1.bf16.msk.msra.mxu1 %vm1418_vm13, %v826_v37 }
 0x226   : > { %687 = vmatprep.subr.bf16.mxu1 %v1031_v1 }
 0x229   : > { %830 = vmatpush1.bf16.msk.msra.mxu1 %vm1263_vm10, %v829_v21 }
 0x22c   : > { %704 = vmatmul.mubr.bf16.vlgmr.msra.gmra.mrb[0].mxu1 %v647_v22 }
 0x230   : > { %v661_v23 = vpop.permute.xlu0 %660  ;;  %v666_v24 = vpop.permute.xlu1 %665 }
 0x2ff   : > { %v705_v15 = vpop.f32.mrb[0].mxu1 }
 0x300   : > { %v706_v12 = vadd.f32 %v705_v15, %v661_v23  ;;  %v707_v14 = vpop.f32.mrb[1].mxu1 }
 0x301   : > { %v708_v25 = vpop.f32.mrb[2].mxu1 }
 0x302   : > { %v712_v1 = vadd.f32 %v706_v12, %v1106_v2  ;;  %v709_v26 = vadd.f32 %v708_v25, %v666_v24  ;;  %v710_v28 = vpop.f32.mrb[3].mxu1 }
 0x304   : > { %715 = vst.msk [vmem:[%s253_s22] sm:$0xff] %vm714_vm15, %v712_v1  ;;  %v713_v40 = vadd.f32 %v709_v26, %v1108_v3 }
 0x306   : > { %716 = vst.msk [vmem:[%s253_s22 + $0x8] sm:$0xff] %vm714_vm15, %v713_v40 }
 0x307 PF: > { %s18_s23 = sadd.s32 1, %s1029_s23  }
 0x308   : > { %p15_p4 = scmp.ge.s32.totalorder %s18_s23, 4  }
 0x30a   :  { %17 = sbr.rel (!%p15_p4) target bundleno = 3 (0x3), region = 74 }

// kernel: decoder_forward.8
= control target key start
LH: loop header
LB: loop body
LE: loop exit
PB: predicated region body
PF: predicated region fallthrough
CT: control target
= control target key end

     0   :  { %s725_s9 = smov 0   ;;  %s976_s0 = inlined_call_operand.vmem [shape: f32[2,12,256], index: 0, kind: input, shape index: {}]   ;;  %s977_s1 = inlined_call_operand.vmem [shape: f32[8,12], index: 1, kind: input, shape index: {}]   ;;  %s978_s2 = inlined_call_operand.vmem [shape: f32[2,4,8,256], index: 2, kind: output, shape index: {}]  }
   0x1 LB: > { %s657_s10 = sadd.s32 4294967295, %s703_s9   ;;  %p661_p0 = scmp.ge.s32.totalorder %s703_s9, 1  ;;  %s703_s9 = sphi %s725_s9, %s12_s9  }
   0x2   : > { %p112_p1 = scmp.lt.s32.totalorder %s703_s9, 3 }
   0x4   : > { %p113_p2 = pnand %p661_p0, %p112_p1 }
   0x5   : > { %p134_p3 = scmp.lt.s32.totalorder (!%p113_p2), %s657_s10, 1  ;;  %s705_s15 = smov (!%p113_p2), 16   ;;  %v149_v4 = vlaneseq (!%p113_p2)  ;;  %vm174_vm0 = vcmask (!%p113_p2), 130048   ;;  %vm201_vm3 = vcmask (!%p113_p2), 916480   ;;  %v709_v56 = vmov (!%p113_p2), 0   ;;  %v156_v32 = vld [vmem:[%s977_s1] sm:$0xff] (!%p113_p2) }
   0x6   : > { %116 = sbr.rel (%p113_p2) target bundleno = 512 (0x200), region = 28  ;;  %s706_s16 = smov (!%p113_p2), 112   ;;  %367 = vmatprep.mubr.bf16.mxu0 (!%p113_p2), %v709_v56  ;;  %418 = vmatprep.mubr.bf16.mxu1 (!%p113_p2), %v709_v56  ;;  %vm256_vm6 = vcmask (!%p113_p2), 7168   ;;  %vm283_vm11 = vcmask (!%p113_p2), 1039360   ;;  %vm328_vm12 = vcmask (!%p113_p2), 1045504   ;;  %vm324_vm13 = vcmask (!%p113_p2), 97280  }
   0x7   : > { %v755_v5 = vand.u32 (!%p113_p2), 127, %v149_v4  ;;  %s707_s17 = smov (!%p113_p2), 1   ;;  %s708_s18 = smov (!%p113_p2), 127  }
   0x9   : > { %v758_v6 = vadd.s32 (!%p113_p2), 128, %v755_v5  ;;  %v154_v7 = vshra.s32 (!%p113_p2), %v755_v5, 4  ;;  %v152_v58 = vand.u32 (!%p113_p2), 15, %v755_v5 }
   0xb   : > { %v155_v8 = vshra.s32 (!%p113_p2), %v758_v6, 4  ;;  %vm762_vm1 = vcmp.ge.s32.totalorder (!%p113_p2), %v154_v7, 1  ;;  %vm816_vm5 = vcmp.lt.s32.totalorder (!%p113_p2), %v154_v7, 15  ;;  %v153_v59 = vand.u32 (!%p113_p2), 15, %v758_v6 }
   0xc   : > { %vm858_vm7 = vcmp.ge.s32.totalorder (!%p113_p2), %v152_v58, 1  ;;  %vm874_vm9 = vcmp.lt.s32.totalorder (!%p113_p2), %v152_v58, 15 }
   0xd   : > { %s996_s10 = smov (!%p134_p3, %s657_s10), 1  ;;  %vm766_vm2 = vcmp.ge.s32.totalorder %v155_v8, 1  ;;  %vm794_vm4 = vcmp.lt.s32.totalorder %v155_v8, 15  ;;  %vm862_vm8 = vcmp.ge.s32.totalorder %v153_v59, 1  ;;  %vm880_vm10 = vcmp.lt.s32.totalorder %v153_v59, 15 }
   0xe   : > { %s682_s11 = sshll.u32 %s996_s10, 5  ;;  %s683_s21 = sshll.u32 %s996_s10, 6 }
   0xf   : > { %s138_s14 = scalar_lea.vmem %s976_s0, %s682_s11  ;;  %s143_s24 = scalar_lea.vmem %s978_s2, %s683_s21 }
  0x10   : > { %v739_v0 = vld [vmem:[%s138_s14 + $0x8] sm:$0xff]  ;;  %v741_v1 = vld [vmem:[%s138_s14] sm:$0xff]  ;;  %v745_v2 = vld [vmem:[%s138_s14 + $0x18] sm:$0xf] }
  0x11   : > { %162 = vrot.lane.b32.xlu0 %v739_v0, %s705_s15  ;;  %170 = vrot.lane.b32.xlu1 %v741_v1, %s705_s15  ;;  %v747_v3 = vld [vmem:[%s138_s14 + $0x10] sm:$0xf]  ;;  %v225_v13 = vmul.f32 0.75, %v739_v0  ;;  %v224_v19 = vmul.f32 0.75, %v741_v1  ;;  %v227_v21 = vmul.f32 0.75, %v745_v2 }
  0x12   : > { %v226_v30 = vmul.f32 0.75, %v747_v3 }
  0x15   : > { %164 = vrot.lane.b32.xlu0 %v745_v2, %s705_s15  ;;  %172 = vrot.lane.b32.xlu1 %v747_v3, %s705_s15 }
  0x19   : > { %193 = vrot.lane.b32.xlu0 %v741_v1, %s706_s16  ;;  %195 = vrot.lane.b32.xlu1 %v739_v0, %s706_s16 }
  0x1d   : > { %197 = vrot.lane.b32.xlu0 %v747_v3, %s706_s16  ;;  %199 = vrot.lane.b32.xlu1 %v745_v2, %s706_s16 }
  0x83   : > { %v163_v11 = vpop.permute.xlu0 %162  ;;  %v171_v12 = vpop.permute.xlu1 %170 }
  0x84   : > { %v175_v14 = vsel %vm174_vm0, %v171_v12, %v163_v11  ;;  %v181_v15 = vsel %vm174_vm0, %v163_v11, %v171_v12 }
  0x85   : > { %v187_v16 = vsel %vm762_vm1, %v181_v15, %v741_v1  ;;  %v188_v17 = vsel %vm766_vm2, %v175_v14, %v739_v0 }
  0x86   : > { %v221_v18 = vmul.f32 0.25, %v188_v17  ;;  %v220_v23 = vmul.f32 0.25, %v187_v16 }
  0x87   : > { %v165_v20 = vpop.permute.xlu0 %164  ;;  %v173_v22 = vpop.permute.xlu1 %172 }
  0x88   : > { %v781_v24 = vadd.f32 %v225_v13, %v221_v18  ;;  %v176_v25 = vsel %vm174_vm0, %v173_v22, %v165_v20  ;;  %v182_v26 = vsel %vm174_vm0, %v165_v20, %v173_v22  ;;  %v798_v34 = vadd.f32 %v224_v19, %v220_v23 }
  0x89   : > { %v189_v27 = vsel %vm762_vm1, %v182_v26, %v747_v3  ;;  %v190_v28 = vsel %vm766_vm2, %v176_v25, %v745_v2 }
  0x8a   : > { %v223_v29 = vmul.f32 0.25, %v190_v28  ;;  %244 = vrot.lane.b32.xlu0 %v781_v24, %s707_s17  ;;  %v222_v35 = vmul.f32 0.25, %v189_v27  ;;  %v307_v15 = vmul.f32 0.75, %v781_v24  ;;  %v306_v16 = vmul.f32 0.75, %v798_v34 }
  0x8b   : > { %v194_v31 = vpop.permute.xlu0 %193  ;;  %v196_v33 = vpop.permute.xlu1 %195 }
  0x8c   : > { %v800_v36 = vadd.f32 %v227_v21, %v223_v29  ;;  %v210_v37 = vsel %vm201_vm3, %v196_v33, %v194_v31  ;;  %v810_v41 = vadd.f32 %v226_v30, %v222_v35  ;;  %v202_v44 = vsel %vm201_vm3, %v194_v31, %v196_v33 }
  0x8d   : > { %v217_v38 = vsel %vm794_vm4, %v210_v37, %v739_v0  ;;  %v216_v47 = vsel %vm816_vm5, %v202_v44, %v741_v1 }
  0x8e   : > { %246 = vrot.lane.b32.xlu1 %v800_v36, %s707_s17  ;;  %252 = vrot.lane.b32.xlu0 %v798_v34, %s707_s17  ;;  %v233_v45 = vmul.f32 0.25, %v217_v38  ;;  %v232_v51 = vmul.f32 0.25, %v216_v47  ;;  %v308_v20 = vmul.f32 0.75, %v810_v41 }
  0x8f   : > { %v198_v39 = vpop.permute.xlu0 %197  ;;  %v200_v40 = vpop.permute.xlu1 %199 }
  0x90   : > { %v211_v42 = vsel %vm201_vm3, %v200_v40, %v198_v39  ;;  %v827_v48 = vadd.f32 %v233_v45, %v225_v13  ;;  %v203_v49 = vsel %vm201_vm3, %v198_v39, %v200_v40  ;;  %v840_v54 = vadd.f32 %v232_v51, %v224_v19 }
  0x91   : > { %v219_v46 = vsel %vm794_vm4, %v211_v42, %v745_v2  ;;  %v218_v52 = vsel %vm816_vm5, %v203_v49, %v747_v3  ;;  %v309_v19 = vmul.f32 0.75, %v800_v36 }
  0x92   : > { %254 = vrot.lane.b32.xlu1 %v810_v41, %s707_s17  ;;  %275 = vrot.lane.b32.xlu0 %v798_v34, %s708_s18  ;;  %v235_v50 = vmul.f32 0.25, %v219_v46  ;;  %v234_v55 = vmul.f32 0.25, %v218_v52 }
  0x94   : > { %v835_v53 = vadd.f32 %v235_v50, %v227_v21  ;;  %v848_v57 = vadd.f32 %v234_v55, %v226_v30 }
  0x96   : > { %277 = vrot.lane.b32.xlu1 %v781_v24, %s708_s18  ;;  %279 = vrot.lane.b32.xlu0 %v810_v41, %s708_s18 }
  0x9a   : > { %281 = vrot.lane.b32.xlu1 %v800_v36, %s708_s18  ;;  %432 = vrot.lane.b32.xlu0 %v827_v48, %s707_s17 }
  0x9e   : > { %434 = vrot.lane.b32.xlu1 %v835_v53, %s707_s17  ;;  %440 = vrot.lane.b32.xlu0 %v840_v54, %s707_s17 }
  0xa2   : > { %442 = vrot.lane.b32.xlu1 %v848_v57, %s707_s17  ;;  %456 = vrot.lane.b32.xlu0 %v840_v54, %s708_s18 }
  0xa6   : > { %458 = vrot.lane.b32.xlu1 %v827_v48, %s708_s18  ;;  %460 = vrot.lane.b32.xlu0 %v848_v57, %s708_s18 }
  0xaa   : > { %462 = vrot.lane.b32.xlu1 %v835_v53, %s708_s18 }
  0xfc   : > { %v245_v60 = vpop.permute.xlu0 %244 }
 0x100   : > { %v247_v63 = vpop.permute.xlu1 %246  ;;  %v253_v0 = vpop.permute.xlu0 %252 }
 0x101   : > { %v257_v1 = vsel %vm256_vm6, %v253_v0, %v245_v60  ;;  %v263_v2 = vsel %vm256_vm6, %v245_v60, %v253_v0 }
 0x102   : > { %v269_v3 = vsel %vm858_vm7, %v263_v2, %v798_v34  ;;  %v270_v4 = vsel %vm862_vm8, %v257_v1, %v781_v24 }
 0x103   : > { %v302_v5 = vmul.f32 0.25, %v269_v3  ;;  %v303_v6 = vmul.f32 0.25, %v270_v4  ;;  %v482_v4 = vmul.f32 0.75, %v840_v54 }
 0x104   : > { %v255_v7 = vpop.permute.xlu1 %254  ;;  %v276_v8 = vpop.permute.xlu0 %275 }
 0x105   : > { %v258_v10 = vsel %vm256_vm6, %v255_v7, %v247_v63  ;;  %v264_v11 = vsel %vm256_vm6, %v247_v63, %v255_v7  ;;  %v311_v23 = vadd.f32 %v307_v15, %v303_v6  ;;  %v310_v25 = vadd.f32 %v306_v16, %v302_v5 }
 0x106   : > { %v271_v13 = vsel %vm858_vm7, %v264_v11, %v810_v41  ;;  %v272_v14 = vsel %vm862_vm8, %v258_v10, %v800_v36  ;;  %v483_v7 = vmul.f32 0.75, %v827_v48 }
 0x107   : > { %v304_v17 = vmul.f32 0.25, %v271_v13  ;;  %v305_v18 = vmul.f32 0.25, %v272_v14  ;;  %v484_v14 = vmul.f32 0.75, %v848_v57 }
 0x108   : > { %v278_v21 = vpop.permute.xlu1 %277  ;;  %v280_v22 = vpop.permute.xlu0 %279 }
 0x109   : > { %v284_v26 = vsel %vm283_vm11, %v276_v8, %v278_v21  ;;  %v292_v27 = vsel %vm283_vm11, %v278_v21, %v276_v8  ;;  %v313_v28 = vadd.f32 %v309_v19, %v305_v18  ;;  %v312_v29 = vadd.f32 %v308_v20, %v304_v17 }
 0x10a   : > { %v298_v30 = vsel %vm874_vm9, %v284_v26, %v798_v34  ;;  %v299_v31 = vsel %vm880_vm10, %v292_v27, %v781_v24  ;;  %v909_v24 = vpack.c.bf16 %v156_v32, %v156_v32 }
 0x10b   : > { %v323_v33 = vpack.c.bf16 %v313_v28, %v311_v23  ;;  %v322_v35 = vpack.c.bf16 %v312_v29, %v310_v25  ;;  %v314_v37 = vmul.f32 0.25, %v298_v30  ;;  %v315_v38 = vmul.f32 0.25, %v299_v31 }
 0x10c   : > { %v282_v39 = vpop.permute.xlu1 %281  ;;  %v433_v40 = vpop.permute.xlu0 %432 }
 0x10d   : > { %v285_v42 = vsel %vm283_vm11, %v280_v22, %v282_v39  ;;  %v293_v43 = vsel %vm283_vm11, %v282_v39, %v280_v22  ;;  %666 = vmatprep.subr.msk.bf16.mxu0 %vm328_vm12, %v323_v33  ;;  %v330_v34 = vsel %vm328_vm12, %v322_v35, 0  ;;  %v319_v51 = vadd.f32 %v315_v38, %v307_v15 }
 0x10e   : > { %v300_v44 = vsel %vm874_vm9, %v285_v42, %v810_v41  ;;  %v301_v45 = vsel %vm880_vm10, %v293_v43, %v800_v36  ;;  %336 = vmatpush1.bf16.msra.mxu0 %v330_v34  ;;  %v318_v52 = vadd.f32 %v314_v37, %v306_v16  ;;  %v485_v15 = vmul.f32 0.75, %v835_v53 }
 0x10f   : > { %v316_v46 = vmul.f32 0.25, %v300_v44  ;;  %v317_v47 = vmul.f32 0.25, %v301_v45 }
 0x110   : > { %v435_v49 = vpop.permute.xlu1 %434  ;;  %v441_v50 = vpop.permute.xlu0 %440 }
 0x111   : > { %v444_v55 = vsel %vm256_vm6, %v441_v50, %v433_v40  ;;  %v450_v58 = vsel %vm256_vm6, %v433_v40, %v441_v50  ;;  %v321_v59 = vadd.f32 %v317_v47, %v309_v19  ;;  %v320_v60 = vadd.f32 %v316_v46, %v308_v20  ;;  %667 = vmatmul.mubr.msk.bf16.vlgmr.msra.gmra.mrb[0].mxu0 %vm324_vm13, %v909_v24 }
 0x112   : > { %v452_v36 = vsel %vm858_vm7, %v450_v58, %v840_v54  ;;  %v453_v41 = vsel %vm862_vm8, %v444_v55, %v827_v48  ;;  %538 = vmatprep.mubr.bf16.mxu0 %v709_v56 }
 0x113   : > { %v379_v63 = vpack.c.bf16 %v321_v59, %v319_v51  ;;  %v378_v0 = vpack.c.bf16 %v320_v60, %v318_v52  ;;  %v478_v1 = vmul.f32 0.25, %v452_v36  ;;  %v479_v2 = vmul.f32 0.25, %v453_v41 }
 0x114   : > { %v443_v3 = vpop.permute.xlu1 %442  ;;  %v457_v11 = vpop.permute.xlu0 %456 }
 0x115   : > { %v445_v5 = vsel %vm256_vm6, %v443_v3, %v435_v49  ;;  %v451_v6 = vsel %vm256_vm6, %v435_v49, %v443_v3  ;;  %668 = vmatprep.subr.msk.bf16.mxu1 %vm328_vm12, %v379_v63  ;;  %v381_v13 = vsel %vm328_vm12, %v378_v0, 0  ;;  %v486_v18 = vadd.f32 %v482_v4, %v478_v1 }
 0x116   : > { %v454_v8 = vsel %vm858_vm7, %v451_v6, %v848_v57  ;;  %v455_v10 = vsel %vm862_vm8, %v445_v5, %v835_v53  ;;  %387 = vmatpush1.bf16.msra.mxu1 %v381_v13  ;;  %v487_v19 = vadd.f32 %v483_v7, %v479_v2 }
 0x117   : > { %v480_v16 = vmul.f32 0.25, %v454_v8  ;;  %v481_v17 = vmul.f32 0.25, %v455_v10 }
 0x118   : > { %v459_v20 = vpop.permute.xlu1 %458  ;;  %v461_v28 = vpop.permute.xlu0 %460 }
 0x119   : > { %v488_v21 = vadd.f32 %v484_v14, %v480_v16  ;;  %v489_v61 = vadd.f32 %v485_v15, %v481_v17  ;;  %v464_v22 = vsel %vm283_vm11, %v457_v11, %v459_v20  ;;  %v472_v62 = vsel %vm283_vm11, %v459_v20, %v457_v11  ;;  %669 = vmatmul.mubr.msk.bf16.vlgmr.msra.gmra.mrb[0].mxu1 %vm324_vm13, %v909_v24 }
 0x11a   : > { %v474_v23 = vsel %vm874_vm9, %v464_v22, %v840_v54  ;;  %v475_v25 = vsel %vm880_vm10, %v472_v62, %v827_v48  ;;  %590 = vmatprep.mubr.bf16.mxu1 %v709_v56 }
 0x11b   : > { %v499_v26 = vpack.c.bf16 %v489_v61, %v487_v19  ;;  %v498_v27 = vpack.c.bf16 %v488_v21, %v486_v18  ;;  %v490_v30 = vmul.f32 0.25, %v474_v23  ;;  %v491_v31 = vmul.f32 0.25, %v475_v25 }
 0x11c   : > { %v463_v29 = vpop.permute.xlu1 %462 }
 0x11d   : > { %v465_v32 = vsel %vm283_vm11, %v461_v28, %v463_v29  ;;  %v473_v33 = vsel %vm283_vm11, %v463_v29, %v461_v28  ;;  %672 = vmatprep.subr.msk.bf16.mxu0 %vm328_vm12, %v499_v26  ;;  %v501_v56 = vsel %vm328_vm12, %v498_v27, 0  ;;  %v494_v38 = vadd.f32 %v490_v30, %v482_v4 }
 0x11e   : > { %v476_v48 = vsel %vm874_vm9, %v465_v32, %v848_v57  ;;  %v477_v54 = vsel %vm880_vm10, %v473_v33, %v835_v53  ;;  %507 = vmatpush1.bf16.msra.mxu0 %v501_v56  ;;  %v495_v39 = vadd.f32 %v491_v31, %v483_v7 }
 0x11f   : > { %v492_v35 = vmul.f32 0.25, %v476_v48  ;;  %v493_v37 = vmul.f32 0.25, %v477_v54 }
 0x121   : > { %v496_v40 = vadd.f32 %v492_v35, %v484_v14  ;;  %v497_v42 = vadd.f32 %v493_v37, %v485_v15  ;;  %673 = vmatmul.mubr.msk.bf16.vlgmr.msra.gmra.mrb[4].mxu0 %vm324_vm13, %v909_v24 }
 0x123   : > { %v551_v43 = vpack.c.bf16 %v497_v42, %v495_v39  ;;  %v550_v9 = vpack.c.bf16 %v496_v40, %v494_v38 }
 0x125   : > { %676 = vmatprep.subr.msk.bf16.mxu1 %vm328_vm12, %v551_v43  ;;  %v553_v57 = vsel %vm328_vm12, %v550_v9, 0 }
 0x126   : > { %559 = vmatpush1.bf16.msra.mxu1 %v553_v57 }
 0x129   : > { %677 = vmatmul.mubr.msk.bf16.vlgmr.msra.gmra.mrb[4].mxu1 %vm324_vm13, %v909_v24 }
 0x1e4   : > { %v369_v53 = vpop.f32.mrb[0].mxu0 }
 0x1e5   : > { %376 = vst [vmem:[%s143_s24] sm:$0xff] %v369_v53  ;;  %v371_v12 = vpop.f32.mrb[1].mxu0 }
 0x1e6   : > { %377 = vst [vmem:[%s143_s24 + $0x8] sm:$0xff] %v371_v12  ;;  %v373_v34 = vpop.f32.mrb[2].mxu0 }
 0x1e7   : > { %v374_v44 = vpop.f32.mrb[3].mxu0 }
 0x1ec   : > { %v420_v45 = vpop.f32.mrb[0].mxu1 }
 0x1ed   : > { %670 = vst [vmem:[%s143_s24 + $0x10] sm:$0xff] %v420_v45  ;;  %v422_v46 = vpop.f32.mrb[1].mxu1 }
 0x1ee   : > { %671 = vst [vmem:[%s143_s24 + $0x18] sm:$0xff] %v422_v46  ;;  %v424_v47 = vpop.f32.mrb[2].mxu1 }
 0x1ef   : > { %v425_v49 = vpop.f32.mrb[3].mxu1 }
 0x1f4   : > { %v540_v50 = vpop.f32.mrb[4].mxu0 }
 0x1f5   : > { %674 = vst [vmem:[%s143_s24 + $0x20] sm:$0xff] %v540_v50  ;;  %v542_v24 = vpop.f32.mrb[5].mxu0 }
 0x1f6   : > { %675 = vst [vmem:[%s143_s24 + $0x28] sm:$0xff] %v542_v24  ;;  %v544_v51 = vpop.f32.mrb[6].mxu0 }
 0x1f7   : > { %v545_v52 = vpop.f32.mrb[7].mxu0 }
 0x1fc   : > { %v592_v55 = vpop.f32.mrb[4].mxu1 }
 0x1fd   : > { %678 = vst [vmem:[%s143_s24 + $0x30] sm:$0xff] %v592_v55  ;;  %v594_v58 = vpop.f32.mrb[5].mxu1 }
 0x1fe   : > { %679 = vst [vmem:[%s143_s24 + $0x38] sm:$0xff] %v594_v58  ;;  %v596_v59 = vpop.f32.mrb[6].mxu1 }
 0x1ff   : > { %v597_v60 = vpop.f32.mrb[7].mxu1 }
 0x200 PF: > { %s12_s9 = sadd.s32 1, %s703_s9  }
 0x201   : > { %p9_p4 = scmp.ge.s32.totalorder %s12_s9, 4  }
 0x203   :  { %11 = sbr.rel (!%p9_p4) target bundleno = 1 (0x1), region = 61 }

// kernel: decoder_forward.7
= control target key start
LH: loop header
LB: loop body
LE: loop exit
PB: predicated region body
PF: predicated region fallthrough
CT: control target
= control target key end

     0   :  { %s1914_s11 = smov 0   ;;  %s2604_s0 = inlined_call_operand.vmem [shape: f32[2,12,256], index: 0, kind: input, shape index: {}]   ;;  %s2605_s1 = inlined_call_operand.vmem [shape: f32[2,12,256], index: 1, kind: input, shape index: {}]   ;;  %s2606_s2 = inlined_call_operand.vmem [shape: f32[12,108], index: 2, kind: input, shape index: {}]   ;;  %s2607_s3 = inlined_call_operand.vmem [shape: f32[12,1], index: 3, kind: input, shape index: {}]   ;;  %s2608_s4 = inlined_call_operand.vmem [shape: f32[12,108], index: 4, kind: input, shape index: {}]   ;;  %s2609_s5 = inlined_call_operand.vmem [shape: f32[12,1], index: 5, kind: input, shape index: {}]   ;;  %s2610_s6 = inlined_call_operand.vmem [shape: f32[12,108], index: 6, kind: input, shape index: {}]   ;;  %s2611_s7 = inlined_call_operand.vmem [shape: f32[12,1], index: 7, kind: input, shape index: {}]   ;;  %s2612_s8 = inlined_call_operand.<no memory space> [shape: f32[1,1], index: 8, kind: input, shape index: {}]   ;;  %s2613_s9 = inlined_call_operand.vmem [shape: f32[2,12,256], index: 9, kind: output, shape index: {}]  }
   0x1   :  { %v14_v0 = vstv %s2612_s8 }
   0x2   :  { %15 = vst [vmem:[#allocation2] sm:$0x1] %v14_v0 }
   0x3 LB: > { %s1506_s12 = sadd.s32 4294967295, %s1849_s11   ;;  %p1510_p0 = scmp.ge.s32.totalorder %s1849_s11, 1  ;;  %s1849_s11 = sphi %s1914_s11, %s21_s11  }
   0x4   : > { %p299_p1 = scmp.lt.s32.totalorder %s1849_s11, 3 }
   0x6   : > { %p300_p2 = pnand %p1510_p0, %p299_p1 }
   0x7   : > { %p340_p3 = scmp.lt.s32.totalorder (!%p300_p2), %s1506_s12, 1  ;;  %s1851_s16 = smov (!%p300_p2), 17   ;;  %v1859_v11 = vmov (!%p300_p2), 0   ;;  %v685_v12 = vld [vmem:[%s2607_s3] sm:$0xff] (!%p300_p2)  ;;  %v686_v13 = vld [vmem:[%s2607_s3 + $0x8] sm:$0xf] (!%p300_p2)  ;;  %v362_v14 = vlaneseq (!%p300_p2) }
   0x8   : > { %303 = sbr.rel (%p300_p2) target bundleno = 1181 (0x49d), region = 56  ;;  %s1852_s17 = smov (!%p300_p2), 16   ;;  %740 = vmatprep.mubr.bf16.mxu0 (!%p300_p2), %v1859_v11  ;;  %1681 = vset.pattern.permute.xlu0 (!%p300_p2), %v1859_v11  ;;  %vm2615_vm0 = vcmask (!%p300_p2), 130048   ;;  %vm2614_vm1 = vcmask (!%p300_p2), 138240   ;;  %v2662_v26 = vmov (!%p300_p2), 0  ;;  %vm2621_vm4 = vcmask (!%p300_p2), 121856  }
   0x9   : > { %s1853_s18 = smov (!%p300_p2), 1   ;;  %s1854_s19 = smov (!%p300_p2), 15   ;;  %1682 = vset.pattern.permute.xlu1 (!%p300_p2), %v1859_v11  ;;  %1078 = vmatprep.mubr.bf16.mxu1 (!%p300_p2), %v1859_v11  ;;  %v1974_v15 = vand.u32 (!%p300_p2), 127, %v362_v14  ;;  %vm2616_vm6 = vcmask (!%p300_p2), 1043456   ;;  %vm2626_vm8 = vcmask (!%p300_p2), 7168   ;;  %v2668_v38 = vmov (!%p300_p2), 0 }
   0xa   : > { %s1855_s20 = smov (!%p300_p2), 127   ;;  %s1856_s21 = smov (!%p300_p2), 112   ;;  %v2670_v42 = vmov (!%p300_p2), 0  ;;  %v2672_v43 = vmov (!%p300_p2), 0  ;;  %v2674_v47 = vmov (!%p300_p2), 0  ;;  %v2676_v59 = vmov (!%p300_p2), 0 }
   0xb   : > { %s1857_s22 = smov (!%p300_p2), 113   ;;  %s1858_s23 = smov (!%p300_p2), 111   ;;  %v1977_v16 = vadd.s32 (!%p300_p2), 128, %v1974_v15  ;;  %v367_v17 = vshra.s32 (!%p300_p2), %v1974_v15, 4  ;;  %v365_v19 = vand.u32 (!%p300_p2), 15, %v1974_v15  ;;  %vm2617_vm15 = vmmov (!%p300_p2), 1  }
   0xc   : > { %v2678_v0 = vmov (!%p300_p2), 0 }
   0xd   : > { %v368_v18 = vshra.s32 (!%p300_p2), %v1977_v16, 4  ;;  %v366_v22 = vand.u32 (!%p300_p2), 15, %v1977_v16  ;;  %vm1985_vm2 = vcmp.ge.s32.totalorder (!%p300_p2), %v367_v17, 1  ;;  %vm1995_vm5 = vcmp.ge.s32.totalorder (!%p300_p2), %v365_v19, 1 }
   0xe   : > { %vm2005_vm9 = vcmp.lt.s32.totalorder (!%p300_p2), %v365_v19, 15  ;;  %vm2017_vm10 = vmand (!%p300_p2), %vm1985_vm2, %vm1995_vm5  ;;  %v2689_v16 = vmov (!%p300_p2), 0 }
   0xf   : > { %s2855_s12 = smov (!%p340_p3, %s1506_s12), 1  ;;  %vm1991_vm3 = vcmp.ge.s32.totalorder %v368_v18, 1  ;;  %vm2001_vm7 = vcmp.ge.s32.totalorder %v366_v22, 1  ;;  %v2669_v38 = vsel %vm2005_vm9, 4294967295, %v2668_v38  ;;  %v2671_v42 = vsel %vm2017_vm10, 4294967295, %v2670_v42 }
  0x10   : > { %s1922_s13 = sshll.u32 %s2855_s12, 5  ;;  %v2663_v26 = vsel %vm1991_vm3, 4294967295, %v2662_v26  ;;  %vm2021_vm11 = vcmp.lt.s32.totalorder %v366_v22, 15  ;;  %vm2032_vm12 = vmand %vm1991_vm3, %vm2001_vm7 }
  0x11   : > { %s349_s15 = scalar_lea.vmem %s2605_s1, %s1922_s13  ;;  %v2673_v43 = vsel %vm2021_vm11, 4294967295, %v2672_v43  ;;  %v2675_v47 = vsel %vm2032_vm12, 4294967295, %v2674_v47  ;;  %vm2047_vm13 = vmand %vm1991_vm3, %vm2021_vm11  ;;  %s344_s14 = scalar_lea.vmem %s2604_s0, %s1922_s13 }
  0x12   : > { %v1928_v1 = vld [vmem:[%s349_s15] sm:$0xff]  ;;  %v1930_v2 = vld [vmem:[%s349_s15 + $0x8] sm:$0xff]  ;;  %v1932_v3 = vld [vmem:[%s349_s15 + $0x10] sm:$0xf]  ;;  %v2677_v59 = vsel %vm2047_vm13, 4294967295, %v2676_v59  ;;  %s354_s8 = scalar_lea.vmem %s2613_s9, %s1922_s13 }
  0x13   : > { %v1611_v4 = vpack.i.bf16 %v1928_v1, %v1930_v2  ;;  %v1936_v5 = vld [vmem:[%s349_s15 + $0x18] sm:$0xf]  ;;  %v1631_v8 = vpack.i.bf16 %v1932_v3, %v1928_v1  ;;  %v1641_v10 = vpack.i.bf16 %v1930_v2, %v1928_v1  ;;  %vm2078_vm14 = vmpackc.low %vm2047_vm13, %vm2617_vm15 }
  0x14   : > { %v1616_v6 = vpack.i.bf16 %v1932_v3, %v1936_v5  ;;  %v1626_v7 = vpack.i.bf16 %v1936_v5, %v1930_v2  ;;  %v1646_v9 = vpack.i.bf16 %v1936_v5, %v1932_v3 }
  0x15   : > { %1612 = vrot.lane.b32.xlu1 %v1611_v4, %s1851_s16  ;;  %1602 = vrot.lane.b32.xlu0 %v1611_v4, %s1852_s17 }
  0x19   : > { %1617 = vrot.lane.b32.xlu1 %v1616_v6, %s1852_s17  ;;  %1607 = vrot.lane.b32.xlu0 %v1616_v6, %s1851_s16 }
  0x1d   : > { %1627 = vrot.lane.b32.xlu1 %v1626_v7, %s1853_s18  ;;  %1622 = vrot.lane.b32.xlu0 %v1611_v4, %s1854_s19  ;;  %v2680_v7 = vmov 0 }
  0x21   : > { %1637 = vrot.lane.b32.xlu1 %v1616_v6, %s1854_s19  ;;  %1632 = vrot.lane.b32.xlu0 %v1631_v8, %s1853_s18 }
  0x25   : > { %1647 = vrot.lane.b32.xlu1 %v1646_v9, %s1855_s20  ;;  %1642 = vrot.lane.b32.xlu0 %v1641_v10, %s1855_s20 }
  0x29   : > { %1657 = vrot.lane.b32.xlu1 %v1641_v10, %s1856_s21  ;;  %1652 = vrot.lane.b32.xlu0 %v1641_v10, %s1857_s22 }
  0x2d   : > { %1667 = vrot.lane.b32.xlu1 %v1646_v9, %s1857_s22  ;;  %1662 = vrot.lane.b32.xlu0 %v1646_v9, %s1856_s21 }
  0x31   : > { %1677 = vrot.lane.b32.xlu1 %v1646_v9, %s1858_s23  ;;  %1672 = vrot.lane.b32.xlu0 %v1641_v10, %s1858_s23 }
  0x35   : > { %689 = vperm.xlu0 %1681, %v685_v12   ;;  %694 = vperm.xlu1 %1682, %v686_v13  }
  0x87   : > { %v1613_v20 = vpop.permute.xlu1 %1612  ;;  %v1603_v21 = vpop.permute.xlu0 %1602 }
  0x88   : > { %v1605_v23 = vunpack.i.h.bf16 %v1603_v21  ;;  %v1604_v24 = vunpack.i.l.bf16 %v1603_v21  ;;  %v1615_v28 = vunpack.i.h.bf16 %v1613_v20  ;;  %v1614_v29 = vunpack.i.l.bf16 %v1613_v20 }
  0x89   : > { %v2682_v21 = vmov 0 }
  0x8a   : > { %v417_v30 = vsel %vm2615_vm0, %v1605_v23, %v1604_v24  ;;  %v423_v31 = vsel %vm2615_vm0, %v1604_v24, %v1605_v23  ;;  %v384_v46 = vsel %vm2614_vm1, %v1615_v28, %v1614_v29  ;;  %v390_v48 = vsel %vm2614_vm1, %v1614_v29, %v1615_v28 }
  0x8b   : > { %v1618_v32 = vpop.permute.xlu1 %1617  ;;  %v1608_v33 = vpop.permute.xlu0 %1607  ;;  %v429_v39 = vsel %vm1985_vm2, %v423_v31, 0.0  ;;  %v430_v41 = vsel %vm1991_vm3, %v417_v30, 0.0  ;;  %v2683_v21 = vsel %vm2078_vm14, 4294967295, %v2682_v21  ;;  %v2684_v29 = vmov 0 }
  0x8c   : > { %v1620_v35 = vunpack.i.h.bf16 %v1618_v32  ;;  %v1619_v36 = vunpack.i.l.bf16 %v1618_v32  ;;  %v1610_v37 = vunpack.i.h.bf16 %v1608_v33  ;;  %v1609_v40 = vunpack.i.l.bf16 %v1608_v33 }
  0x8d   : > { %v610_v55 = vrot.slane %v429_v39, 4  ;;  %v611_v58 = vrot.slane %v430_v41, 4  ;;  %v2686_v39 = vmov 0 }
  0x8e   : > { %v418_v44 = vsel %vm2615_vm0, %v1620_v35, %v1619_v36  ;;  %v424_v45 = vsel %vm2615_vm0, %v1619_v36, %v1620_v35  ;;  %v391_v51 = vsel %vm2614_vm1, %v1609_v40, %v1610_v37  ;;  %v385_v54 = vsel %vm2614_vm1, %v1610_v37, %v1609_v40  ;;  %vm2058_vm1 = vmpackc.low %vm2617_vm15, %vm2017_vm10 }
  0x8f   : > { %v431_v49 = vsel %vm1985_vm2, %v424_v45, 0.0  ;;  %v432_v50 = vsel %vm1991_vm3, %v418_v44, 0.0  ;;  %v1628_v52 = vpop.permute.xlu1 %1627  ;;  %v1623_v53 = vpop.permute.xlu0 %1622  ;;  %v405_v62 = vsel %vm2032_vm12, %v385_v54, 0.0  ;;  %v404_v63 = vsel %vm2017_vm10, %v391_v51, 0.0  ;;  %vm2067_vm0 = vmpackc.low %vm2617_vm15, %vm2032_vm12 }
  0x90   : > { %v612_v56 = vrot.slane %v431_v49, 4  ;;  %v614_v57 = vrot.slane %v432_v50, 4  ;;  %v1625_v60 = vunpack.i.h.bf16 %v1623_v53  ;;  %v1624_v61 = vunpack.i.l.bf16 %v1623_v53 }
  0x91   : > { %v2679_v0 = vsel %vm2058_vm1, 4294967295, %v2678_v0  ;;  %v663_v6 = vsel %vm2616_vm6, %v405_v62, %v611_v58  ;;  %v2681_v7 = vsel %vm2067_vm0, 4294967295, %v2680_v7  ;;  %v662_v8 = vsel %vm2616_vm6, %v404_v63, %v610_v55 }
  0x92   : > { %v613_v4 = vsel %vm2616_vm6, %v610_v55, %v612_v56  ;;  %v615_v9 = vsel %vm2616_vm6, %v611_v58, %v614_v57  ;;  %v444_v10 = vsel %vm2621_vm4, %v1625_v60, %v1624_v61  ;;  %v450_v12 = vsel %vm2621_vm4, %v1624_v61, %v1625_v60  ;;  %vm2086_vm6 = vmand %vm1985_vm2, %vm2005_vm9 }
  0x93   : > { %v1638_v13 = vpop.permute.xlu1 %1637  ;;  %v1633_v14 = vpop.permute.xlu0 %1632  ;;  %v1518_v19 = vpack.c.bf16 %v663_v6, %v384_v46  ;;  %v1521_v20 = vpack.c.bf16 %v662_v8, %v390_v48  ;;  %v1630_v22 = vunpack.i.h.bf16 %v1628_v52  ;;  %v2685_v29 = vsel %vm2086_vm6, 4294967295, %v2684_v29 }
  0x94   : > { %v1640_v23 = vunpack.i.h.bf16 %v1638_v13  ;;  %v1639_v24 = vunpack.i.l.bf16 %v1638_v13  ;;  %v1635_v28 = vunpack.i.h.bf16 %v1633_v14  ;;  %v1629_v30 = vunpack.i.l.bf16 %v1628_v52 }
  0x95   : > { %v1634_v31 = vunpack.i.l.bf16 %v1633_v14  ;;  %1519 = vmatprep.subr.msk.bf16.mxu0 %vm2067_vm0, %v1518_v19  ;;  %v1524_v32 = vpack.c.bf16 %v444_v10, %v615_v9  ;;  %v1527_v33 = vpack.c.bf16 %v450_v12, %v613_v4  ;;  %vm2099_vm12 = vcmp.lt.s32.totalorder %v368_v18, 15 }
  0x96   : > { %v445_v35 = vsel %vm2621_vm4, %v1640_v23, %v1639_v24  ;;  %v476_v36 = vsel %vm2626_vm8, %v1635_v28, %v1630_v22  ;;  %v482_v37 = vsel %vm2626_vm8, %v1630_v22, %v1635_v28  ;;  %1522 = vmatpush1.bf16.msk.msra.mxu0 %vm2058_vm1, %v1521_v20  ;;  %v2687_v39 = vsel %vm2099_vm12, 4294967295, %v2686_v39 }
  0x97   : > { %v489_v40 = vsel %vm1995_vm5, %v482_v37, 0.0  ;;  %v490_v41 = vsel %vm2001_vm7, %v476_v36, 0.0  ;;  %v475_v44 = vsel %vm2626_vm8, %v1634_v31, %v1629_v30  ;;  %v481_v45 = vsel %vm2626_vm8, %v1629_v30, %v1634_v31  ;;  %1525 = vmatprep.subr.msk.bf16.mxu0 %vm2078_vm14, %v1524_v32  ;;  %v1648_v46 = vpop.permute.xlu1 %1647  ;;  %v1643_v48 = vpop.permute.xlu0 %1642 }
  0x98   : > { %vm2688_vm15 = vmmov 1   ;;  %vm2120_vm1 = vcmp.lt.s32.totalorder %v367_v17, 15  ;;  %vm2693_vm0 = vcmask 121856   ;;  %v628_v50 = vrot.slane %v490_v41, 4 }
  0x99   : > { %vm2114_vm4 = vmpackc.low %vm2086_vm6, %vm2688_vm15  ;;  %v451_v49 = vsel %vm2693_vm0, %v1639_v24, %v1640_v23  ;;  %v487_v51 = vsel %vm1995_vm5, %v481_v45, 0.0  ;;  %v488_v52 = vsel %vm2001_vm7, %v475_v44, 0.0  ;;  %v626_v53 = vrot.slane %v489_v40, 4 }
  0x9a   : > { %v2690_v16 = vsel %vm2114_vm4, 4294967295, %v2689_v16  ;;  %v625_v54 = vrot.slane %v488_v52, 4  ;;  %v1650_v55 = vunpack.i.h.bf16 %v1648_v46  ;;  %v1649_v56 = vunpack.i.l.bf16 %v1648_v46  ;;  %1528 = vmatpush1.bf16.msk.msra.mxu0 %vm2114_vm4, %v1527_v33 }
  0x9b   : > { %v624_v57 = vrot.slane %v487_v51, 4  ;;  %v1645_v58 = vunpack.i.h.bf16 %v1643_v48  ;;  %v1644_v15 = vunpack.i.l.bf16 %v1643_v48  ;;  %v463_v17 = vsel %vm2047_vm13, %v445_v35, 0.0  ;;  %v1658_v62 = vpop.permute.xlu1 %1657  ;;  %v1653_v63 = vpop.permute.xlu0 %1652 }
  0x9c   : > { %vm2694_vm0 = vcmask 1039360   ;;  %vm2696_vm14 = vcmask 1043456   ;;  %v1660_v24 = vunpack.i.h.bf16 %v1658_v62  ;;  %v1659_v28 = vunpack.i.l.bf16 %v1658_v62 }
  0x9d   : > { %v501_v60 = vsel %vm2694_vm0, %v1649_v56, %v1650_v55  ;;  %vm2695_vm8 = vmmov %vm2694_vm0  ;;  %v629_v4 = vsel %vm2696_vm14, %v625_v54, %v628_v50  ;;  %v1655_v30 = vunpack.i.h.bf16 %v1653_v63  ;;  %v1654_v31 = vunpack.i.l.bf16 %v1653_v63 }
  0x9e   : > { %v509_v61 = vsel %vm2695_vm8, %v1650_v55, %v1649_v56  ;;  %vm2697_vm10 = vmmov %vm2696_vm14  ;;  %v516_v8 = vsel %vm2005_vm9, %v501_v60, 0.0  ;;  %vm2637_vm8 = vcmask 924672   ;;  %v462_v37 = vsel %vm2086_vm6, %v451_v49, 0.0 }
  0x9f   : > { %v665_v6 = vsel %vm2697_vm10, %v463_v17, %v625_v54  ;;  %v517_v9 = vsel %vm2021_vm11, %v509_v61, 0.0  ;;  %vm2698_vm4 = vmmov %vm2694_vm0  ;;  %v640_v13 = vrot.slane %v516_v8, 4  ;;  %v1668_v33 = vpop.permute.xlu1 %1667  ;;  %v1663_v40 = vpop.permute.xlu0 %1662  ;;  %v535_v50 = vsel %vm2637_vm8, %v1655_v30, %v1654_v31 }
  0xa0   : > { %v500_v10 = vsel %vm2698_vm4, %v1644_v15, %v1645_v58  ;;  %vm2699_vm3 = vmmov %vm2694_vm0  ;;  %v642_v14 = vrot.slane %v517_v9, 4  ;;  %v676_v32 = vpack.c.bf16 %v629_v4, %v665_v6  ;;  %vm2700_vm4 = vcmask 916480  }
  0xa1   : > { %v508_v12 = vsel %vm2699_vm3, %v1645_v58, %v1644_v15  ;;  %v514_v19 = vsel %vm2005_vm9, %v500_v10, 0.0  ;;  %v558_v35 = vsel %vm2700_vm4, %v1659_v28, %v1660_v24  ;;  %vm2701_vm3 = vmmov %vm2700_vm4  ;;  %v1670_v52 = vunpack.i.h.bf16 %v1668_v33 }
  0xa2   : > { %v515_v20 = vsel %vm2021_vm11, %v508_v12, 0.0  ;;  %v638_v22 = vrot.slane %v514_v19, 4  ;;  %v566_v36 = vsel %vm2701_vm3, %v1660_v24, %v1659_v28  ;;  %712 = vmatprep.subr.bf16.mxu0 %v676_v32  ;;  %vm2702_vm14 = vmmov %vm2697_vm10  ;;  %v572_v46 = vsel %vm2120_vm1, %v558_v35, 0.0 }
  0xa3   : > { %v639_v23 = vrot.slane %v515_v20, 4  ;;  %v573_v41 = vsel %vm2099_vm12, %v566_v36, 0.0  ;;  %v627_v45 = vsel %vm2702_vm14, %v624_v57, %v626_v53  ;;  %vm2703_vm4 = vmmov %vm2697_vm10  ;;  %v1669_v54 = vunpack.i.l.bf16 %v1668_v33  ;;  %v1678_v56 = vpop.permute.xlu1 %1677  ;;  %v1673_v60 = vpop.permute.xlu0 %1672 }
  0xa4   : > { %v641_v44 = vsel %vm2697_vm10, %v638_v22, %v640_v13  ;;  %v653_v48 = vrot.slane %v573_v41, 4  ;;  %vm2704_vm3 = vmmov %vm2703_vm4  ;;  %v1665_v55 = vunpack.i.h.bf16 %v1663_v40  ;;  %v2705_v53 = vmov 0 }
  0xa5   : > { %v643_v51 = vsel %vm2703_vm4, %v639_v23, %v642_v14  ;;  %v664_v49 = vsel %vm2704_vm3, %v462_v37, %v624_v57  ;;  %vm2164_vm10 = vmand %vm2099_vm12, %vm2001_vm7  ;;  %v1664_v15 = vunpack.i.l.bf16 %v1663_v40  ;;  %v528_v61 = vsel %vm2637_vm8, %v1669_v54, %v1670_v52 }
  0xa6   : > { %v2706_v53 = vsel %vm2164_vm10, 4294967295, %v2705_v53  ;;  %v675_v58 = vpack.c.bf16 %v627_v45, %v664_v49  ;;  %vm2707_vm14 = vmmov %vm2704_vm3  ;;  %v536_v62 = vsel %vm2637_vm8, %v1670_v52, %v1669_v54  ;;  %v1679_v9 = vunpack.i.l.bf16 %v1678_v56 }
  0xa7   : > { %v667_v17 = vsel %vm2707_vm14, %v1936_v5, %v639_v23  ;;  %vm2708_vm4 = vmmov %vm2704_vm3  ;;  %vm2709_vm3 = vcmask 916480   ;;  %v2711_v5 = vmov 0  ;;  %v1674_v12 = vunpack.i.l.bf16 %v1673_v60 }
  0xa8   : > { %v666_v57 = vsel %vm2708_vm4, %v1932_v3, %v638_v22  ;;  %v678_v63 = vpack.c.bf16 %v667_v17, %v1930_v2  ;;  %713 = vmatpush1.bf16.msra.mxu0 %v675_v58  ;;  %v559_v6 = vsel %vm2709_vm3, %v1664_v15, %v1665_v55  ;;  %vm2710_vm0 = vmmov %vm2709_vm3  ;;  %v1680_v3 = vunpack.i.h.bf16 %v1678_v56  ;;  %v360_v58 = vld [vmem:[%s2606_s2] sm:$0xff] }
  0xa9   : > { %v677_v4 = vpack.c.bf16 %v666_v57, %v1928_v1  ;;  %v567_v8 = vsel %vm2710_vm0, %v1665_v55, %v1664_v15  ;;  %vm2181_vm14 = vmpackc.low %vm2164_vm10, %vm2688_vm15  ;;  %v574_v10 = vsel %vm2120_vm1, %v559_v6, 0.0  ;;  %v1675_v2 = vunpack.i.h.bf16 %v1673_v60  ;;  %v361_v15 = vld [vmem:[%s2606_s2 + $0x8] sm:$0xf] }
  0xaa   : > { %v2712_v5 = vsel %vm2181_vm14, 4294967295, %v2711_v5  ;;  %v575_v1 = vsel %vm2099_vm12, %v567_v8, 0.0  ;;  %714 = vmatprep.subr.bf16.mxu0 %v678_v63  ;;  %vm2193_vm0 = vmand %vm2120_vm1, %vm1995_vm5  ;;  %v2713_v13 = vmov 0  ;;  %v527_v14 = vsel %vm2637_vm8, %v1654_v31, %v1655_v30  ;;  %v752_v8 = vld [vmem:[%s344_s14 + $0x8] sm:$0xff] }
  0xab   : > { %v2714_v13 = vsel %vm2193_vm0, 4294967295, %v2713_v13  ;;  %v654_v19 = vrot.slane %v574_v10, 4  ;;  %v656_v20 = vrot.slane %v575_v1, 4  ;;  %vm2202_vm4 = vmand %vm2099_vm12, %vm2021_vm11  ;;  %v2715_v22 = vmov 0  ;;  %v753_v10 = vld [vmem:[%s344_s14 + $0x10] sm:$0xf] }
  0xac   : > { %v2716_v22 = vsel %vm2202_vm4, 4294967295, %v2715_v22  ;;  %v548_v23 = vsel %vm2164_vm10, %v536_v62, 0.0  ;;  %v652_v24 = vrot.slane %v572_v46, 4  ;;  %v1530_v28 = vpack.c.bf16 %v535_v50, %v643_v51  ;;  %vm2214_vm8 = vmand %vm2120_vm1, %vm2005_vm9  ;;  %715 = vmatpush1.bf16.msra.mxu0 %v677_v4  ;;  %v751_v62 = vld [vmem:[%s344_s14] sm:$0xff] }
  0xad   : > { %vm2717_vm3 = vcmask 908288   ;;  %v2719_v30 = vmov 0  ;;  %vm2721_vm12 = vcmask 1043456   ;;  %v547_v36 = vsel %vm2193_vm0, %v528_v61, 0.0 }
  0xae   : > { %v594_v32 = vsel %vm2717_vm3, %v1680_v3, %v1679_v9  ;;  %vm2718_vm6 = vmmov %vm2717_vm3  ;;  %v2720_v30 = vsel %vm2214_vm8, 4294967295, %v2719_v30  ;;  %v657_v31 = vsel %vm2721_vm12, %v653_v48, %v656_v20  ;;  %v1533_v37 = vpack.c.bf16 %v527_v14, %v641_v44  ;;  %1531 = vmatprep.subr.msk.bf16.mxu0 %vm2181_vm14, %v1530_v28  ;;  %v754_v14 = vld [vmem:[%s344_s14 + $0x18] sm:$0xf] }
  0xaf   : > { %v593_v33 = vsel %vm2718_vm6, %v1675_v2, %v1674_v12  ;;  %vm2722_vm13 = vmmov %vm2721_vm12  ;;  %v2723_v40 = vmov 0  ;;  %v670_v57 = vpack.c.bf16 %v361_v15, %v360_v58 }
  0xb0   : > { %v669_v35 = vsel %vm2722_vm13, %v548_v23, %v653_v48  ;;  %vm2227_vm6 = vmpackc.low %vm2193_vm0, %vm2688_vm15  ;;  %v604_v48 = vsel %vm2202_vm4, %v594_v32, 0.0  ;;  %v602_v44 = vsel %vm2202_vm4, %v593_v33, 0.0  ;;  %vm2737_vm4 = vcmask 1043456  }
  0xb1   : > { %v2724_v40 = vsel %vm2227_vm6, 4294967295, %v2723_v40  ;;  %v682_v41 = vpack.c.bf16 %v657_v31, %v669_v35  ;;  %vm2725_vm3 = vmmov %vm2721_vm12  ;;  %vm2726_vm12 = vcmask 908288   ;;  %1534 = vmatpush1.bf16.msk.msra.mxu0 %vm2227_vm6, %v1533_v37  ;;  %v684_v55 = vpack.c.bf16 %v604_v48, %v602_v44  ;;  %v762_v37 = vld [vmem:[%s2609_s5 + $0x8] sm:$0xf] }
  0xb2   : > { %v655_v45 = vsel %vm2725_vm3, %v652_v24, %v654_v19  ;;  %v585_v46 = vsel %vm2726_vm12, %v1674_v12, %v1675_v2  ;;  %vm2727_vm13 = vmmov %vm2726_vm12  ;;  %vm2642_vm12 = vcmask 883712   ;;  %vm2739_vm0 = vcmask 130048  }
  0xb3   : > { %v586_v50 = vsel %vm2727_vm13, %v1679_v9, %v1680_v3  ;;  %v601_v51 = vsel %vm2214_vm8, %v585_v46, 0.0  ;;  %vm2728_vm15 = vmmov %vm2725_vm3  ;;  %718 = vmatprep.subr.bf16.mxu0 %v682_v41  ;;  %vm2643_vm3 = vcmask 1045504   ;;  %v1557_v41 = vld [vmem:[#allocation2] ss:$0 sm:$0xff]  ;;  %vm2729_vm13 = vcmask 130048  }
  0xb4   : > { %v668_v49 = vsel %vm2728_vm15, %v547_v36, %v652_v24  ;;  %v603_v52 = vsel %vm2214_vm8, %v586_v50, 0.0  ;;  %v690_v60 = vpop.permute.xlu0 %689  ;;  %v695_v63 = vpop.permute.xlu1 %694  ;;  %v761_v36 = vld [vmem:[%s2609_s5] sm:$0xff]  ;;  %vm2730_vm15 = vmmov %vm2729_vm13  ;;  %vm2736_vm8 = vnez %v2675_v47 }
  0xb5   : > { %v681_v54 = vpack.c.bf16 %v655_v45, %v668_v49  ;;  %v683_v56 = vpack.c.bf16 %v603_v52, %v601_v51  ;;  %vm2738_vm14 = vmmov %vm2737_vm4 }
  0xb7   : > { %719 = vmatpush1.bf16.msra.mxu0 %v681_v54  ;;  %v703_v17 = vsel %vm2643_vm3, %v683_v56, 0 }
  0xb8   : > { %1535 = vmatprep.subr.msk.bf16.mxu0 %vm2643_vm3, %v684_v55  ;;  %vm2732_vm3 = vcmask 138240  }
  0xb9   : > { %vm2733_vm6 = vmmov %vm2732_vm3 }
  0xbb   : > { %721 = vmatpush1.bf16.msra.mxu0 %v703_v17 }
  0xbe   : > { %1536 = vmatmul.mubr.msk.bf16.vlgmr.msra.gmra.mrb[0].mxu0 %vm2642_vm12, %v670_v57  ;;  %vm2731_vm12 = vnez %v2663_v26 }
  0xbf   : > { %1420 = vmatprep.mubr.bf16.mxu0 %v1859_v11 }
 0x191   : > { %v742_v61 = vpop.f32.mrb[0].mxu0 }
 0x192   : > { %v743_v4 = vadd.f32 %v742_v61, %v690_v60  ;;  %v744_v6 = vpop.f32.mrb[1].mxu0 }
 0x193   : > { %v745_v3 = vadd.f32 %v744_v6, %v690_v60  ;;  %v746_v9 = vpop.f32.mrb[2].mxu0 }
 0x194   : > { %v2259_v1 = vadd.f32 %v751_v62, %v743_v4  ;;  %v747_v2 = vadd.f32 %v746_v9, %v695_v63  ;;  %v748_v12 = vpop.f32.mrb[3].mxu0 }
 0x195   : > { %v2261_v11 = vadd.f32 %v752_v8, %v745_v3  ;;  %v749_v19 = vadd.f32 %v748_v12, %v695_v63 }
 0x196   : > { %v2263_v20 = vadd.f32 %v753_v10, %v747_v2 }
 0x197   : > { %v2265_v23 = vadd.f32 %v754_v14, %v749_v19  ;;  %v1683_v24 = vpack.i.bf16 %v2259_v1, %v2261_v11  ;;  %v1703_v31 = vpack.i.bf16 %v2261_v11, %v2259_v1 }
 0x198   : > { %v1698_v33 = vpack.i.bf16 %v2263_v20, %v2259_v1 }
 0x199   : > { %1684 = vrot.lane.b32.xlu1 %v1683_v24, %s1852_s17  ;;  %v1713_v28 = vpack.i.bf16 %v2263_v20, %v2265_v23  ;;  %v1723_v32 = vpack.i.bf16 %v2265_v23, %v2261_v11  ;;  %v1733_v35 = vpack.i.bf16 %v2265_v23, %v2263_v20 }
 0x19b   : > { %1714 = vrot.lane.b32.xlu0 %v1713_v28, %s1851_s16 }
 0x19d   : > { %1689 = vrot.lane.b32.xlu1 %v1683_v24, %s1851_s16 }
 0x19f   : > { %1719 = vrot.lane.b32.xlu0 %v1713_v28, %s1852_s17 }
 0x1a1   : > { %1694 = vrot.lane.b32.xlu1 %v1683_v24, %s1854_s19 }
 0x1a3   : > { %1724 = vrot.lane.b32.xlu0 %v1723_v32, %s1853_s18 }
 0x1a5   : > { %1699 = vrot.lane.b32.xlu1 %v1698_v33, %s1853_s18 }
 0x1a7   : > { %1729 = vrot.lane.b32.xlu0 %v1713_v28, %s1854_s19 }
 0x1a9   : > { %1704 = vrot.lane.b32.xlu1 %v1703_v31, %s1855_s20 }
 0x1ab   : > { %1734 = vrot.lane.b32.xlu0 %v1733_v35, %s1855_s20 }
 0x1ad   : > { %1709 = vrot.lane.b32.xlu1 %v1703_v31, %s1857_s22 }
 0x1af   : > { %1739 = vrot.lane.b32.xlu0 %v1703_v31, %s1856_s21 }
 0x1b1   : > { %1744 = vrot.lane.b32.xlu1 %v1733_v35, %s1856_s21 }
 0x1b3   : > { %1749 = vrot.lane.b32.xlu0 %v1733_v35, %s1857_s22 }
 0x1b5   : > { %1754 = vrot.lane.b32.xlu1 %v1703_v31, %s1858_s23 }
 0x1b7   : > { %1759 = vrot.lane.b32.xlu0 %v1733_v35, %s1858_s23 }
 0x1b9   : > { %1029 = vperm.xlu1 %1682, %v761_v36  }
 0x1bb   : > { %1034 = vperm.xlu0 %1681, %v762_v37  }
 0x1bd   : > { %1099 = vperm.xlu1 %1682, %v1557_v41  }
 0x20b   : > { %v1685_v45 = vpop.permute.xlu1 %1684 }
 0x20c   : > { %v1687_v46 = vunpack.i.h.bf16 %v1685_v45  ;;  %v1686_v48 = vunpack.i.l.bf16 %v1685_v45 }
 0x20d   : > { %v1715_v44 = vpop.permute.xlu0 %1714 }
 0x20e   : > { %v804_v50 = vsel %vm2729_vm13, %v1687_v46, %v1686_v48  ;;  %v810_v51 = vsel %vm2730_vm15, %v1686_v48, %v1687_v46  ;;  %v1717_v49 = vunpack.i.h.bf16 %v1715_v44  ;;  %v1716_v52 = vunpack.i.l.bf16 %v1715_v44  ;;  %vm2735_vm15 = vmmov %vm2732_vm3 }
 0x20f   : > { %v812_v54 = vsel %vm1985_vm2, %v810_v51, 0.0  ;;  %v1690_v55 = vpop.permute.xlu1 %1689  ;;  %v813_v56 = vsel %vm2731_vm12, %v804_v50, 0.0  ;;  %vm2734_vm13 = vnez %v2671_v42 }
 0x210   : > { %v952_v58 = vrot.slane %v812_v54, 4  ;;  %v789_v15 = vsel %vm2732_vm3, %v1716_v52, %v1717_v49  ;;  %v1692_v17 = vunpack.i.h.bf16 %v1690_v55  ;;  %v1691_v57 = vunpack.i.l.bf16 %v1690_v55 }
 0x211   : > { %v1720_v60 = vpop.permute.xlu0 %1719  ;;  %v783_v61 = vsel %vm2733_vm6, %v1717_v49, %v1716_v52  ;;  %v953_v62 = vrot.slane %v813_v56, 4  ;;  %v792_v63 = vsel %vm2734_vm13, %v789_v15, 0.0  ;;  %vm2740_vm6 = vmmov %vm2739_vm0 }
 0x212   : > { %v1722_v4 = vunpack.i.h.bf16 %v1720_v60  ;;  %v1721_v6 = vunpack.i.l.bf16 %v1720_v60  ;;  %v782_v8 = vsel %vm2735_vm15, %v1692_v17, %v1691_v57  ;;  %v793_v3 = vsel %vm2736_vm8, %v783_v61, 0.0 }
 0x213   : > { %v1695_v9 = vpop.permute.xlu1 %1694  ;;  %v1005_v10 = vsel %vm2737_vm4, %v793_v3, %v953_v62  ;;  %v788_v2 = vsel %vm2732_vm3, %v1691_v57, %v1692_v17  ;;  %v1004_v12 = vsel %vm2738_vm14, %v792_v63, %v952_v58  ;;  %vm2741_vm4 = vcmask 121856  }
 0x214   : > { %v805_v14 = vsel %vm2739_vm0, %v1722_v4, %v1721_v6  ;;  %v811_v19 = vsel %vm2740_vm6, %v1721_v6, %v1722_v4  ;;  %v1697_v24 = vunpack.i.h.bf16 %v1695_v9  ;;  %v1696_v28 = vunpack.i.l.bf16 %v1695_v9  ;;  %vm2742_vm14 = vmmov %vm2741_vm4 }
 0x215   : > { %v814_v32 = vsel %vm1985_vm2, %v811_v19, 0.0  ;;  %v815_v33 = vsel %vm2731_vm12, %v805_v14, 0.0  ;;  %v1725_v31 = vpop.permute.xlu0 %1724  ;;  %v1538_v35 = vpack.c.bf16 %v1005_v10, %v782_v8  ;;  %v1541_v36 = vpack.c.bf16 %v1004_v12, %v788_v2 }
 0x216   : > { %v954_v37 = vrot.slane %v814_v32, 4  ;;  %v956_v41 = vrot.slane %v815_v33, 4  ;;  %v826_v45 = vsel %vm2741_vm4, %v1697_v24, %v1696_v28  ;;  %v832_v46 = vsel %vm2742_vm14, %v1696_v28, %v1697_v24 }
 0x217   : > { %v1727_v48 = vunpack.i.h.bf16 %v1725_v31  ;;  %v1726_v44 = vunpack.i.l.bf16 %v1725_v31  ;;  %vm2743_vm0 = vnez %v2681_v7  ;;  %v1700_v50 = vpop.permute.xlu1 %1699  ;;  %vm2744_vm15 = vcmask 1043456  }
 0x218   : > { %1539 = vmatprep.subr.msk.bf16.mxu1 %vm2743_vm0, %v1538_v35  ;;  %v955_v51 = vsel %vm2744_vm15, %v952_v58, %v954_v37  ;;  %vm2745_vm3 = vnez %v2679_v0  ;;  %v1702_v49 = vunpack.i.h.bf16 %v1700_v50  ;;  %v1701_v52 = vunpack.i.l.bf16 %v1700_v50  ;;  %vm2746_vm6 = vmmov %vm2744_vm15 }
 0x219   : > { %1542 = vmatpush1.bf16.msk.msra.mxu1 %vm2745_vm3, %v1541_v36  ;;  %v957_v54 = vsel %vm2746_vm6, %v953_v62, %v956_v41  ;;  %v1547_v55 = vpack.c.bf16 %v832_v46, %v955_v51  ;;  %v1730_v56 = vpop.permute.xlu0 %1729  ;;  %vm2747_vm4 = vcmask 7168   ;;  %vm2751_vm15 = vnez %v2683_v21 }
 0x21a   : > { %v1544_v15 = vpack.c.bf16 %v826_v45, %v957_v54  ;;  %v849_v17 = vsel %vm2747_vm4, %v1702_v49, %v1727_v48  ;;  %vm2748_vm14 = vmmov %vm2747_vm4  ;;  %v1732_v9 = vunpack.i.h.bf16 %v1730_v56  ;;  %v1731_v10 = vunpack.i.l.bf16 %v1730_v56 }
 0x21b   : > { %v855_v57 = vsel %vm2748_vm14, %v1727_v48, %v1702_v49  ;;  %vm2749_vm8 = vmmov %vm2747_vm4  ;;  %v859_v63 = vsel %vm2001_vm7, %v849_v17, 0.0  ;;  %v1705_v4 = vpop.permute.xlu1 %1704  ;;  %vm2754_vm6 = vcmask 1039360  }
 0x21c   : > { %v848_v60 = vsel %vm2749_vm8, %v1701_v52, %v1726_v44  ;;  %vm2750_vm0 = vmmov %vm2747_vm4  ;;  %v858_v58 = vsel %vm1995_vm5, %v855_v57, 0.0  ;;  %1545 = vmatprep.subr.msk.bf16.mxu1 %vm2751_vm15, %v1544_v15  ;;  %v970_v6 = vrot.slane %v859_v63, 4  ;;  %vm2752_vm8 = vnez %v2690_v16 }
 0x21d   : > { %v854_v61 = vsel %vm2750_vm0, %v1726_v44, %v1701_v52  ;;  %v857_v62 = vsel %vm2001_vm7, %v848_v60, 0.0  ;;  %1548 = vmatpush1.bf16.msk.msra.mxu1 %vm2752_vm8, %v1547_v55  ;;  %v1707_v2 = vunpack.i.h.bf16 %v1705_v4  ;;  %v1706_v12 = vunpack.i.l.bf16 %v1705_v4  ;;  %v1735_v14 = vpop.permute.xlu0 %1734  ;;  %vm2755_vm4 = vmmov %vm2754_vm6 }
 0x21e   : > { %v856_v8 = vsel %vm1995_vm5, %v854_v61, 0.0  ;;  %v967_v3 = vrot.slane %v857_v62, 4  ;;  %v968_v19 = vrot.slane %v858_v58, 4  ;;  %v1737_v24 = vunpack.i.h.bf16 %v1735_v14  ;;  %vm2757_vm8 = vmmov %vm2755_vm4 }
 0x21f   : > { %v1736_v28 = vunpack.i.l.bf16 %v1735_v14  ;;  %v966_v32 = vrot.slane %v856_v8, 4  ;;  %vm2753_vm0 = vcmask 121856   ;;  %v868_v31 = vsel %vm2754_vm6, %v1706_v12, %v1707_v2  ;;  %v1710_v36 = vpop.permute.xlu1 %1709  ;;  %vm2758_vm15 = vmmov %vm2755_vm4 }
 0x220   : > { %v827_v33 = vsel %vm2753_vm0, %v1732_v9, %v1731_v10  ;;  %v876_v35 = vsel %vm2755_vm4, %v1707_v2, %v1706_v12  ;;  %vm2756_vm14 = vmmov %vm2753_vm0  ;;  %v878_v48 = vsel %vm2005_vm9, %v868_v31, 0.0  ;;  %vm2759_vm0 = vcmask 1043456  }
 0x221   : > { %v833_v37 = vsel %vm2756_vm14, %v1731_v10, %v1732_v9  ;;  %v879_v41 = vsel %vm2021_vm11, %v876_v35, 0.0  ;;  %v869_v45 = vsel %vm2757_vm8, %v1736_v28, %v1737_v24  ;;  %v877_v46 = vsel %vm2758_vm15, %v1737_v24, %v1736_v28  ;;  %v1740_v51 = vpop.permute.xlu0 %1739  ;;  %vm2762_vm6 = vmmov %vm2759_vm0 }
 0x222   : > { %v880_v44 = vsel %vm2005_vm9, %v869_v45, 0.0  ;;  %v881_v50 = vsel %vm2021_vm11, %v877_v46, 0.0  ;;  %v971_v49 = vsel %vm2759_vm0, %v967_v3, %v970_v6  ;;  %v981_v52 = vrot.slane %v879_v41, 4  ;;  %vm2763_vm4 = vmmov %vm2759_vm0 }
 0x223   : > { %v984_v54 = vrot.slane %v881_v50, 4  ;;  %v1712_v55 = vunpack.i.h.bf16 %v1710_v36  ;;  %v1711_v56 = vunpack.i.l.bf16 %v1710_v36  ;;  %v1742_v15 = vunpack.i.h.bf16 %v1740_v51  ;;  %v1745_v61 = vpop.permute.xlu1 %1744 }
 0x224   : > { %v1741_v17 = vunpack.i.l.bf16 %v1740_v51  ;;  %vm2760_vm15 = vnez %v2677_v59  ;;  %vm2761_vm8 = vnez %v2685_v29  ;;  %v980_v58 = vrot.slane %v878_v48, 4 }
 0x225   : > { %v837_v57 = vsel %vm2760_vm15, %v827_v33, 0.0  ;;  %v836_v60 = vsel %vm2761_vm8, %v833_v37, 0.0  ;;  %v982_v63 = vrot.slane %v880_v44, 4  ;;  %v985_v62 = vsel %vm2762_vm6, %v981_v52, %v984_v54  ;;  %v1750_v2 = vpop.permute.xlu0 %1749  ;;  %vm2768_vm8 = vmmov %vm2763_vm4 }
 0x226   : > { %v969_v4 = vsel %vm2763_vm4, %v966_v32, %v968_v19  ;;  %vm2764_vm14 = vcmask 924672   ;;  %vm2766_vm9 = vcmask 916480   ;;  %v1007_v24 = vsel %vm2768_vm8, %v837_v57, %v967_v3  ;;  %vm2769_vm15 = vmmov %vm2763_vm4 }
 0x227   : > { %v890_v6 = vsel %vm2764_vm14, %v1711_v56, %v1712_v55  ;;  %vm2765_vm0 = vmmov %vm2764_vm14  ;;  %v912_v9 = vsel %vm2766_vm9, %v1741_v17, %v1742_v15  ;;  %v1006_v28 = vsel %vm2769_vm15, %v836_v60, %v966_v32  ;;  %vm2770_vm6 = vnez %v2687_v39  ;;  %v1755_v36 = vpop.permute.xlu1 %1754 }
 0x228   : > { %v898_v8 = vsel %vm2765_vm0, %v1712_v55, %v1711_v56  ;;  %vm2767_vm11 = vmmov %vm2766_vm9  ;;  %v922_v14 = vsel %vm2120_vm1, %v912_v9, 0.0  ;;  %v1018_v31 = vpack.c.bf16 %v971_v49, %v1007_v24  ;;  %v1017_v35 = vpack.c.bf16 %v969_v4, %v1006_v28 }
 0x229   : > { %v920_v10 = vsel %vm2767_vm11, %v1742_v15, %v1741_v17  ;;  %v1550_v12 = vpack.c.bf16 %v898_v8, %v985_v62  ;;  %v994_v33 = vrot.slane %v922_v14, 4  ;;  %v1747_v37 = vunpack.i.h.bf16 %v1745_v61  ;;  %vm2771_vm9 = vmmov %vm2763_vm4  ;;  %v1760_v50 = vpop.permute.xlu0 %1759 }
 0x22a   : > { %v923_v19 = vsel %vm2770_vm6, %v920_v10, 0.0  ;;  %v1746_v41 = vunpack.i.l.bf16 %v1745_v61  ;;  %v1752_v45 = vunpack.i.h.bf16 %v1750_v2  ;;  %v1751_v46 = vunpack.i.l.bf16 %v1750_v2  ;;  %1050 = vmatprep.subr.bf16.mxu1 %v1018_v31  ;;  %vm2772_vm11 = vmmov %vm2763_vm4 }
 0x22b   : > { %v1009_v48 = vsel %vm2771_vm9, %v2265_v23, %v981_v52  ;;  %v1008_v3 = vsel %vm2772_vm11, %v2263_v20, %v980_v58  ;;  %v1757_v44 = vunpack.i.h.bf16 %v1755_v36  ;;  %v1756_v32 = vunpack.i.l.bf16 %v1755_v36  ;;  %1051 = vmatpush1.bf16.msra.mxu1 %v1017_v35  ;;  %vm2775_vm4 = vmmov %vm2765_vm0 }
 0x22c   : > { %vm2773_vm15 = vcmask 916480   ;;  %v891_v54 = vsel %vm2775_vm4, %v1751_v46, %v1752_v45  ;;  %vm2776_vm14 = vmmov %vm2765_vm0  ;;  %v1020_v15 = vpack.c.bf16 %v1009_v48, %v2261_v11  ;;  %v1019_v17 = vpack.c.bf16 %v1008_v3, %v2259_v1  ;;  %v759_v48 = vld [vmem:[%s2608_s4] sm:$0xff]  ;;  %v760_v3 = vld [vmem:[%s2608_s4 + $0x8] sm:$0xf] }
 0x22d   : > { %v913_v51 = vsel %vm2773_vm15, %v1746_v41, %v1747_v37  ;;  %vm2774_vm8 = vmmov %vm2773_vm15  ;;  %v899_v55 = vsel %vm2776_vm14, %v1752_v45, %v1751_v46  ;;  %v995_v57 = vrot.slane %v923_v19, 4  ;;  %v1762_v62 = vunpack.i.h.bf16 %v1760_v50 }
 0x22e   : > { %v921_v49 = vsel %vm2774_vm8, %v1747_v37, %v1746_v41  ;;  %v924_v56 = vsel %vm2120_vm1, %v913_v51, 0.0  ;;  %vm2777_vm0 = vmmov %vm2771_vm9  ;;  %1052 = vmatprep.subr.bf16.mxu1 %v1020_v15  ;;  %v1761_v8 = vunpack.i.l.bf16 %v1760_v50  ;;  %v903_v9 = vsel %vm2164_vm10, %v899_v55, 0.0 }
 0x22f   : > { %v925_v52 = vsel %vm2770_vm6, %v921_v49, 0.0  ;;  %v996_v60 = vrot.slane %v924_v56, 4  ;;  %v983_v4 = vsel %vm2777_vm0, %v980_v58, %v982_v63  ;;  %vm2778_vm9 = vnez %v2714_v13  ;;  %1053 = vmatpush1.bf16.msra.mxu1 %v1019_v17  ;;  %vm2780_vm15 = vmmov %vm2777_vm0 }
 0x230   : > { %v998_v61 = vrot.slane %v925_v52, 4  ;;  %v902_v10 = vsel %vm2778_vm9, %v891_v54, 0.0  ;;  %vm2779_vm11 = vcmask 908288   ;;  %vm2781_vm8 = vmmov %vm2777_vm0  ;;  %vm2783_vm14 = vnez %v2712_v5 }
 0x231   : > { %v942_v2 = vsel %vm2779_vm11, %v1757_v44, %v1756_v32  ;;  %v1011_v24 = vsel %vm2781_vm8, %v903_v9, %v995_v57  ;;  %vm2782_vm4 = vmmov %vm2777_vm0  ;;  %1551 = vmatprep.subr.msk.bf16.mxu1 %vm2783_vm14, %v1550_v12  ;;  %v1553_v35 = vpack.c.bf16 %v890_v6, %v983_v4  ;;  %vm2787_vm9 = vnez %v2716_v22  ;;  %v764_v22 = vld [vmem:[%s2610_s6 + $0x8] sm:$0xf] }
 0x232   : > { %v999_v14 = vsel %vm2780_vm15, %v995_v57, %v998_v61  ;;  %v997_v28 = vsel %vm2782_vm4, %v994_v33, %v996_v60  ;;  %vm2784_vm0 = vmmov %vm2779_vm11  ;;  %vm2789_vm15 = vnez %v2720_v30  ;;  %v945_v45 = vsel %vm2787_vm9, %v942_v2, 0.0 }
 0x233   : > { %v943_v58 = vsel %vm2784_vm0, %v1762_v62, %v1761_v8  ;;  %v1024_v63 = vpack.c.bf16 %v999_v14, %v1011_v24  ;;  %vm2785_vm6 = vmmov %vm2782_vm4  ;;  %vm2790_vm8 = vnez %v2724_v40  ;;  %vm2793_vm4 = vcmask 883712  }
 0x234   : > { %v1010_v19 = vsel %vm2785_vm6, %v902_v10, %v994_v33  ;;  %vm2786_vm10 = vmmov %vm2784_vm0  ;;  %v947_v36 = vsel %vm2787_vm9, %v943_v58, 0.0  ;;  %1554 = vmatpush1.bf16.msk.msra.mxu1 %vm2790_vm8, %v1553_v35  ;;  %v765_v35 = vld [vmem:[%s2611_s7] sm:$0xff] }
 0x235   : > { %v934_v31 = vsel %vm2786_vm10, %v1756_v32, %v1757_v44  ;;  %vm2788_vm11 = vmmov %vm2784_vm0  ;;  %v1023_v12 = vpack.c.bf16 %v997_v28, %v1010_v19  ;;  %1056 = vmatprep.subr.bf16.mxu1 %v1024_v63  ;;  %v1026_v6 = vpack.c.bf16 %v947_v36, %v945_v45  ;;  %vm2791_vm10 = vcmask 1045504   ;;  %v766_v36 = vld [vmem:[%s2611_s7 + $0x8] sm:$0xf] }
 0x236   : > { %v935_v37 = vsel %vm2788_vm11, %v1761_v8, %v1762_v62  ;;  %v944_v33 = vsel %vm2789_vm15, %v934_v31, 0.0  ;;  %vm2792_vm6 = vmmov %vm2791_vm10  ;;  %v1012_v32 = vpack.c.bf16 %v760_v3, %v759_v48 }
 0x237   : > { %v946_v41 = vsel %vm2789_vm15, %v935_v37, 0.0 }
 0x238   : > { %v1025_v46 = vpack.c.bf16 %v946_v41, %v944_v33  ;;  %1057 = vmatpush1.bf16.msra.mxu1 %v1023_v12  ;;  %v1030_v50 = vpop.permute.xlu1 %1029 }
 0x239   : > { %1555 = vmatprep.subr.msk.bf16.mxu1 %vm2791_vm10, %v1026_v6 }
 0x23a   : > { %v1041_v44 = vsel %vm2792_vm6, %v1025_v46, 0  ;;  %v1035_v49 = vpop.permute.xlu0 %1034 }
 0x23c   : > { %1059 = vmatpush1.bf16.msra.mxu1 %v1041_v44  ;;  %v1100_v56 = vpop.permute.xlu1 %1099 }
 0x23f   : > { %1556 = vmatmul.mubr.msk.bf16.vlgmr.msra.gmra.mrb[0].mxu1 %vm2793_vm4, %v1012_v32  ;;  %vm2794_vm4 = vcmask 130048  }
 0x312   : > { %v1080_v51 = vpop.f32.mrb[0].mxu1 }
 0x313   : > { %v1081_v54 = vadd.f32 %v1080_v51, %v1030_v50  ;;  %v1082_v55 = vpop.f32.mrb[1].mxu1 }
 0x314   : > { %v1083_v52 = vadd.f32 %v1082_v55, %v1030_v50  ;;  %v1084_v15 = vpop.f32.mrb[2].mxu1 }
 0x315   : > { %vm1089_vm0 = vcmp.ge.f32.partialorder %v1081_v54, 0.0  ;;  %v1102_v17 = vmul.f32 %v1100_v56, %v1081_v54  ;;  %v1085_v57 = vadd.f32 %v1084_v15, %v1035_v49  ;;  %v1086_v60 = vpop.f32.mrb[3].mxu1 }
 0x316   : > { %vm1090_vm11 = vcmp.ge.f32.partialorder %v1083_v52, 0.0  ;;  %v1103_v61 = vmul.f32 %v1100_v56, %v1083_v52  ;;  %v1087_v62 = vadd.f32 %v1086_v60, %v1035_v49 }
 0x317   : > { %v2426_v4 = vsel %vm1089_vm0, %v1081_v54, %v1102_v17  ;;  %vm1091_vm10 = vcmp.ge.f32.partialorder %v1085_v57, 0.0  ;;  %v1104_v8 = vmul.f32 %v1100_v56, %v1085_v57  ;;  %vm2795_vm0 = vmmov %vm2794_vm4 }
 0x318   : > { %v2428_v9 = vsel %vm1090_vm11, %v1083_v52, %v1103_v61  ;;  %vm1092_vm6 = vcmp.ge.f32.partialorder %v1087_v62, 0.0  ;;  %v1105_v10 = vmul.f32 %v1100_v56, %v1087_v62  ;;  %vm2796_vm11 = vcmask 138240  }
 0x319   : > { %v2430_v2 = vsel %vm1091_vm10, %v1085_v57, %v1104_v8  ;;  %v1763_v14 = vpack.i.bf16 %v2426_v4, %v2428_v9  ;;  %v1783_v19 = vpack.i.bf16 %v2428_v9, %v2426_v4  ;;  %vm2797_vm10 = vmmov %vm2796_vm11 }
 0x31a   : > { %v2434_v24 = vsel %vm1092_vm6, %v1087_v62, %v1105_v10  ;;  %v1778_v63 = vpack.i.bf16 %v2430_v2, %v2426_v4  ;;  %vm2798_vm6 = vnez %v2675_v47  ;;  %vm2801_vm8 = vmmov %vm2797_vm10 }
 0x31b   : > { %1764 = vrot.lane.b32.xlu0 %v1763_v14, %s1852_s17  ;;  %v1793_v28 = vpack.i.bf16 %v2430_v2, %v2434_v24  ;;  %v1803_v58 = vpack.i.bf16 %v2434_v24, %v2428_v9  ;;  %v1813_v31 = vpack.i.bf16 %v2434_v24, %v2430_v2 }
 0x31d   : > { %1794 = vrot.lane.b32.xlu1 %v1793_v28, %s1851_s16 }
 0x31f   : > { %1769 = vrot.lane.b32.xlu0 %v1763_v14, %s1851_s16 }
 0x321   : > { %1799 = vrot.lane.b32.xlu1 %v1793_v28, %s1852_s17 }
 0x323   : > { %1774 = vrot.lane.b32.xlu0 %v1763_v14, %s1854_s19 }
 0x325   : > { %1804 = vrot.lane.b32.xlu1 %v1803_v58, %s1853_s18 }
 0x327   : > { %1779 = vrot.lane.b32.xlu0 %v1778_v63, %s1853_s18 }
 0x329   : > { %1809 = vrot.lane.b32.xlu1 %v1793_v28, %s1854_s19 }
 0x32b   : > { %1784 = vrot.lane.b32.xlu0 %v1783_v19, %s1855_s20 }
 0x32d   : > { %1814 = vrot.lane.b32.xlu1 %v1813_v31, %s1855_s20 }
 0x32f   : > { %1789 = vrot.lane.b32.xlu0 %v1783_v19, %s1857_s22 }
 0x331   : > { %1819 = vrot.lane.b32.xlu1 %v1783_v19, %s1856_s21 }
 0x333   : > { %1824 = vrot.lane.b32.xlu0 %v1813_v31, %s1856_s21 }
 0x335   : > { %1829 = vrot.lane.b32.xlu1 %v1813_v31, %s1857_s22 }
 0x337   : > { %1834 = vrot.lane.b32.xlu0 %v1783_v19, %s1858_s23 }
 0x339   : > { %1839 = vrot.lane.b32.xlu1 %v1813_v31, %s1858_s23 }
 0x33b   : > { %1371 = vperm.xlu0 %1681, %v765_v35  }
 0x33d   : > { %1376 = vperm.xlu1 %1682, %v766_v36  }
 0x38d   : > { %v1765_v37 = vpop.permute.xlu0 %1764 }
 0x38e   : > { %v1767_v41 = vunpack.i.h.bf16 %v1765_v37  ;;  %v1766_v45 = vunpack.i.l.bf16 %v1765_v37 }
 0x38f   : > { %v1795_v12 = vpop.permute.xlu1 %1794 }
 0x390   : > { %v1146_v33 = vsel %vm2794_vm4, %v1767_v41, %v1766_v45  ;;  %v1152_v6 = vsel %vm2795_vm0, %v1766_v45, %v1767_v41  ;;  %v1797_v46 = vunpack.i.h.bf16 %v1795_v12  ;;  %v1796_v48 = vunpack.i.l.bf16 %v1795_v12 }
 0x391   : > { %v1154_v3 = vsel %vm1985_vm2, %v1152_v6, 0.0  ;;  %v1155_v44 = vsel %vm2731_vm12, %v1146_v33, 0.0  ;;  %v1770_v32 = vpop.permute.xlu0 %1769  ;;  %vm2799_vm4 = vcmask 1043456  }
 0x392   : > { %v1294_v50 = vrot.slane %v1154_v3, 4  ;;  %v1295_v51 = vrot.slane %v1155_v44, 4  ;;  %v1125_v49 = vsel %vm2796_vm11, %v1797_v46, %v1796_v48  ;;  %v1131_v54 = vsel %vm2797_vm10, %v1796_v48, %v1797_v46  ;;  %vm2800_vm0 = vmmov %vm2799_vm4 }
 0x393   : > { %v1134_v55 = vsel %vm2734_vm13, %v1131_v54, 0.0  ;;  %v1135_v56 = vsel %vm2798_vm6, %v1125_v49, 0.0  ;;  %v1772_v52 = vunpack.i.h.bf16 %v1770_v32  ;;  %v1771_v15 = vunpack.i.l.bf16 %v1770_v32  ;;  %v1800_v17 = vpop.permute.xlu1 %1799  ;;  %vm2802_vm11 = vmmov %vm2801_vm8 }
 0x394   : > { %v1346_v57 = vsel %vm2799_vm4, %v1134_v55, %v1294_v50  ;;  %v1347_v60 = vsel %vm2800_vm0, %v1135_v56, %v1295_v51  ;;  %v1802_v61 = vunpack.i.h.bf16 %v1800_v17  ;;  %v1801_v62 = vunpack.i.l.bf16 %v1800_v17 }
 0x395   : > { %v1124_v8 = vsel %vm2801_vm8, %v1772_v52, %v1771_v15  ;;  %v1130_v10 = vsel %vm2802_vm11, %v1771_v15, %v1772_v52  ;;  %v1775_v14 = vpop.permute.xlu0 %1774  ;;  %vm2803_vm13 = vcmask 130048   ;;  %vm2805_vm8 = vnez %v2681_v7 }
 0x396   : > { %v1559_v28 = vpack.c.bf16 %v1347_v60, %v1124_v8  ;;  %v1562_v42 = vpack.c.bf16 %v1346_v57, %v1130_v10  ;;  %v1147_v58 = vsel %vm2803_vm13, %v1802_v61, %v1801_v62  ;;  %vm2804_vm10 = vmmov %vm2803_vm13  ;;  %v1777_v31 = vunpack.i.h.bf16 %v1775_v14 }
 0x397   : > { %v1153_v47 = vsel %vm2804_vm10, %v1801_v62, %v1802_v61  ;;  %v1157_v19 = vsel %vm2731_vm12, %v1147_v58, 0.0  ;;  %v1776_v35 = vunpack.i.l.bf16 %v1775_v14  ;;  %v1805_v36 = vpop.permute.xlu1 %1804  ;;  %vm2806_vm6 = vcmask 121856   ;;  %vm2809_vm12 = vmmov %vm2800_vm0 }
 0x398   : > { %v1156_v63 = vsel %vm1985_vm2, %v1153_v47, 0.0  ;;  %v1298_v41 = vrot.slane %v1157_v19, 4  ;;  %1560 = vmatprep.subr.msk.bf16.mxu0 %vm2805_vm8, %v1559_v28  ;;  %vm2807_vm4 = vmmov %vm2806_vm6  ;;  %v1807_v33 = vunpack.i.h.bf16 %v1805_v36  ;;  %v1806_v6 = vunpack.i.l.bf16 %v1805_v36 }
 0x399   : > { %v1296_v37 = vrot.slane %v1156_v63, 4  ;;  %v1168_v45 = vsel %vm2806_vm6, %v1777_v31, %v1776_v35  ;;  %v1174_v12 = vsel %vm2807_vm4, %v1776_v35, %v1777_v31  ;;  %1563 = vmatpush1.bf16.msk.msra.mxu0 %vm2745_vm3, %v1562_v42  ;;  %v1780_v25 = vpop.permute.xlu0 %1779  ;;  %vm2808_vm2 = vmmov %vm2800_vm0  ;;  %vm2810_vm0 = vcmask 7168  }
 0x39a   : > { %v1299_v46 = vsel %vm2809_vm12, %v1295_v51, %v1298_v41  ;;  %v1782_v48 = vunpack.i.h.bf16 %v1780_v25  ;;  %v1781_v3 = vunpack.i.l.bf16 %v1780_v25  ;;  %vm2811_vm11 = vmmov %vm2810_vm0  ;;  %vm2814_vm3 = vnez %v2683_v21 }
 0x39b   : > { %v1297_v26 = vsel %vm2808_vm2, %v1294_v50, %v1296_v37  ;;  %v1565_v44 = vpack.c.bf16 %v1168_v45, %v1299_v46  ;;  %v1810_v7 = vpop.permute.xlu1 %1809  ;;  %vm2812_vm13 = vmmov %vm2810_vm0  ;;  %vm2815_vm8 = vnez %v2690_v16 }
 0x39c   : > { %v1568_v32 = vpack.c.bf16 %v1174_v12, %v1297_v26  ;;  %v1191_v49 = vsel %vm2810_vm0, %v1782_v48, %v1807_v33  ;;  %v1197_v54 = vsel %vm2811_vm11, %v1807_v33, %v1782_v48  ;;  %v1190_v55 = vsel %vm2812_vm13, %v1781_v3, %v1806_v6  ;;  %vm2813_vm10 = vmmov %vm2810_vm0 }
 0x39d   : > { %v1196_v56 = vsel %vm2813_vm10, %v1806_v6, %v1781_v3  ;;  %v1200_v0 = vsel %vm1995_vm5, %v1197_v54, 0.0  ;;  %v1201_v50 = vsel %vm2001_vm7, %v1191_v49, 0.0  ;;  %v1199_v52 = vsel %vm2001_vm7, %v1190_v55, 0.0  ;;  %v1785_v15 = vpop.permute.xlu0 %1784  ;;  %1566 = vmatprep.subr.msk.bf16.mxu0 %vm2814_vm3, %v1565_v44  ;;  %vm2818_vm6 = vmmov %vm2808_vm2 }
 0x39e   : > { %v1198_v51 = vsel %vm1995_vm5, %v1196_v56, 0.0  ;;  %v1310_v17 = vrot.slane %v1200_v0, 4  ;;  %v1312_v57 = vrot.slane %v1201_v50, 4  ;;  %v1309_v61 = vrot.slane %v1199_v52, 4  ;;  %1569 = vmatpush1.bf16.msk.msra.mxu0 %vm2815_vm8, %v1568_v32  ;;  %vm2819_vm4 = vmmov %vm2808_vm2 }
 0x39f   : > { %v1308_v60 = vrot.slane %v1198_v51, 4  ;;  %v1812_v62 = vunpack.i.h.bf16 %v1810_v7  ;;  %v1811_v8 = vunpack.i.l.bf16 %v1810_v7  ;;  %v1787_v10 = vunpack.i.h.bf16 %v1785_v15  ;;  %v1815_v27 = vpop.permute.xlu1 %1814 }
 0x3a0   : > { %v1786_v14 = vunpack.i.l.bf16 %v1785_v15  ;;  %v1817_v28 = vunpack.i.h.bf16 %v1815_v27  ;;  %v1816_v42 = vunpack.i.l.bf16 %v1815_v27  ;;  %vm2816_vm5 = vcmask 1039360  }
 0x3a1   : > { %vm2817_vm7 = vmmov %vm2816_vm5  ;;  %v1790_v21 = vpop.permute.xlu0 %1789  ;;  %v1313_v47 = vsel %vm2818_vm6, %v1309_v61, %v1312_v57  ;;  %v1311_v63 = vsel %vm2819_vm4, %v1308_v60, %v1310_v17  ;;  %vm2820_vm2 = vcmask 121856   ;;  %vm2822_vm0 = vnez %v2673_v43 }
 0x3a2   : > { %v1210_v34 = vsel %vm2816_vm5, %v1786_v14, %v1787_v10  ;;  %v1218_v58 = vsel %vm2817_vm7, %v1787_v10, %v1786_v14  ;;  %v1169_v19 = vsel %vm2820_vm2, %v1812_v62, %v1811_v8  ;;  %vm2821_vm12 = vmmov %vm2820_vm2  ;;  %vm2824_vm13 = vnez %v2669_v38 }
 0x3a3   : > { %v1175_v16 = vsel %vm2821_vm12, %v1811_v8, %v1812_v62  ;;  %v1221_v31 = vsel %vm2822_vm0, %v1218_v58, 0.0  ;;  %vm2823_vm11 = vmmov %vm2816_vm5  ;;  %v1220_v36 = vsel %vm2824_vm13, %v1210_v34, 0.0  ;;  %v1820_v12 = vpop.permute.xlu1 %1819  ;;  %v1792_v25 = vunpack.i.h.bf16 %v1790_v21 }
 0x3a4   : > { %v1211_v35 = vsel %vm2823_vm11, %v1816_v42, %v1817_v28  ;;  %v1323_v37 = vrot.slane %v1221_v31, 4  ;;  %vm2825_vm10 = vmmov %vm2816_vm5  ;;  %v1791_v26 = vunpack.i.l.bf16 %v1790_v21  ;;  %v1822_v48 = vunpack.i.h.bf16 %v1820_v12 }
 0x3a5   : > { %v1219_v41 = vsel %vm2825_vm10, %v1817_v28, %v1816_v42  ;;  %v1222_v45 = vsel %vm2824_vm13, %v1211_v35, 0.0  ;;  %v1821_v3 = vunpack.i.l.bf16 %v1820_v12  ;;  %vm2826_vm3 = vnez %v2677_v59  ;;  %v1825_v32 = vpop.permute.xlu0 %1824  ;;  %vm2829_vm7 = vmmov %vm2819_vm4 }
 0x3a6   : > { %v1223_v33 = vsel %vm2822_vm0, %v1219_v41, 0.0  ;;  %v1324_v6 = vrot.slane %v1222_v45, 4  ;;  %v1179_v44 = vsel %vm2826_vm3, %v1169_v19, 0.0  ;;  %vm2827_vm8 = vnez %v2685_v29  ;;  %vm2833_vm0 = vmmov %vm2819_vm4 }
 0x3a7   : > { %v1326_v46 = vrot.slane %v1223_v33, 4  ;;  %v1178_v7 = vsel %vm2827_vm8, %v1175_v16, 0.0  ;;  %v1322_v49 = vrot.slane %v1220_v36, 4  ;;  %vm2828_vm5 = vcmask 924672   ;;  %v1830_v50 = vpop.permute.xlu1 %1829  ;;  %vm2835_vm13 = vmmov %vm2833_vm0 }
 0x3a8   : > { %v1232_v38 = vsel %vm2828_vm5, %v1791_v26, %v1792_v25  ;;  %v1349_v54 = vsel %vm2829_vm7, %v1179_v44, %v1309_v61  ;;  %vm2830_vm6 = vmmov %vm2828_vm5  ;;  %vm2831_vm2 = vcmask 916480   ;;  %vm2834_vm11 = vnez %v2687_v39 }
 0x3a9   : > { %v1240_v43 = vsel %vm2830_vm6, %v1792_v25, %v1791_v26  ;;  %v1327_v55 = vsel %vm2819_vm4, %v1323_v37, %v1326_v46  ;;  %v1254_v56 = vsel %vm2831_vm2, %v1821_v3, %v1822_v48  ;;  %vm2832_vm12 = vmmov %vm2831_vm2  ;;  %v1325_v59 = vsel %vm2833_vm0, %v1322_v49, %v1324_v6  ;;  %v1835_v62 = vpop.permute.xlu0 %1834 }
 0x3aa   : > { %v1262_v0 = vsel %vm2832_vm12, %v1822_v48, %v1821_v3  ;;  %v1571_v51 = vpack.c.bf16 %v1240_v43, %v1327_v55  ;;  %v1264_v29 = vsel %vm2120_vm1, %v1254_v56, 0.0  ;;  %v1360_v52 = vpack.c.bf16 %v1313_v47, %v1349_v54  ;;  %vm2836_vm10 = vmmov %vm2833_vm0 }
 0x3ab   : > { %v1265_v15 = vsel %vm2834_vm11, %v1262_v0, 0.0  ;;  %v1336_v17 = vrot.slane %v1264_v29, 4  ;;  %v1348_v57 = vsel %vm2835_vm13, %v1178_v7, %v1308_v60  ;;  %v1827_v61 = vunpack.i.h.bf16 %v1825_v32  ;;  %vm2837_vm3 = vmmov %vm2833_vm0  ;;  %v1840_v19 = vpop.permute.xlu1 %1839 }
 0x3ac   : > { %1392 = vmatprep.subr.bf16.mxu0 %v1360_v52  ;;  %v1359_v8 = vpack.c.bf16 %v1311_v63, %v1348_v57  ;;  %v1826_v10 = vunpack.i.l.bf16 %v1825_v32  ;;  %v1832_v14 = vunpack.i.h.bf16 %v1830_v50  ;;  %v1831_v27 = vunpack.i.l.bf16 %v1830_v50  ;;  %vm2838_vm8 = vmmov %vm2831_vm2 }
 0x3ad   : > { %v1351_v28 = vsel %vm2836_vm10, %v2434_v24, %v1323_v37  ;;  %v1350_v42 = vsel %vm2837_vm3, %v2430_v2, %v1322_v49  ;;  %v1837_v34 = vunpack.i.h.bf16 %v1835_v62  ;;  %v1836_v58 = vunpack.i.l.bf16 %v1835_v62  ;;  %vm2839_vm5 = vmmov %vm2831_vm2 }
 0x3ae   : > { %1393 = vmatpush1.bf16.msra.mxu0 %v1359_v8  ;;  %v1255_v21 = vsel %vm2838_vm8, %v1826_v10, %v1827_v61  ;;  %v1263_v60 = vsel %vm2839_vm5, %v1827_v61, %v1826_v10  ;;  %vm2840_vm7 = vmmov %vm2830_vm6  ;;  %v1241_v63 = vsel %vm2830_vm6, %v1832_v14, %v1831_v27  ;;  %v1337_v16 = vrot.slane %v1265_v15, 4 }
 0x3af   : > { %v1233_v47 = vsel %vm2840_vm7, %v1831_v27, %v1832_v14  ;;  %v1266_v31 = vsel %vm2120_vm1, %v1255_v21, 0.0  ;;  %v1267_v24 = vsel %vm2834_vm11, %v1263_v60, 0.0  ;;  %v1362_v2 = vpack.c.bf16 %v1351_v28, %v2428_v9  ;;  %vm2845_vm11 = vmmov %vm2833_vm0 }
 0x3b0   : > { %v1338_v35 = vrot.slane %v1266_v31, 4  ;;  %v1340_v36 = vrot.slane %v1267_v24, 4  ;;  %vm2841_vm4 = vnez %v2714_v13  ;;  %v1361_v41 = vpack.c.bf16 %v1350_v42, %v2426_v4  ;;  %vm2846_vm13 = vmmov %vm2833_vm0 }
 0x3b1   : > { %v1244_v37 = vsel %vm2841_vm4, %v1233_v47, 0.0  ;;  %1394 = vmatprep.subr.bf16.mxu0 %v1362_v2  ;;  %vm2842_vm2 = vcmask 908288   ;;  %v1842_v12 = vunpack.i.h.bf16 %v1840_v19  ;;  %v1841_v33 = vunpack.i.l.bf16 %v1840_v19  ;;  %vm2849_vm8 = vmmov %vm2833_vm0 }
 0x3b2   : > { %v1276_v45 = vsel %vm2842_vm2, %v1836_v58, %v1837_v34  ;;  %vm2843_vm12 = vnez %v2706_v53  ;;  %1395 = vmatpush1.bf16.msra.mxu0 %v1361_v41  ;;  %vm2844_vm1 = vmmov %vm2842_vm2  ;;  %v1341_v9 = vsel %vm2833_vm0, %v1337_v16, %v1340_v36  ;;  %v1339_v13 = vsel %vm2846_vm13, %v1336_v17, %v1338_v35 }
 0x3b3   : > { %v1245_v18 = vsel %vm2843_vm12, %v1241_v63, 0.0  ;;  %v1284_v39 = vsel %vm2844_vm1, %v1837_v34, %v1836_v58  ;;  %1572 = vmatprep.subr.msk.bf16.mxu0 %vm2783_vm14, %v1571_v51  ;;  %vm2847_vm10 = vmmov %vm2844_vm1  ;;  %v1352_v53 = vsel %vm2849_vm8, %v1244_v37, %v1336_v17  ;;  %v1574_v46 = vpack.c.bf16 %v1232_v38, %v1325_v59  ;;  %v763_v38 = vld [vmem:[%s2610_s6] sm:$0xff] }
 0x3b4   : > { %v1353_v6 = vsel %vm2845_vm11, %v1245_v18, %v1337_v16  ;;  %v1277_v4 = vsel %vm2847_vm10, %v1841_v33, %v1842_v12  ;;  %vm2848_vm3 = vmmov %vm2844_vm1  ;;  %v1287_v44 = vsel %vm2787_vm9, %v1284_v39, 0.0  ;;  %vm2850_vm5 = vnez %v2724_v40 }
 0x3b5   : > { %v1285_v25 = vsel %vm2848_vm3, %v1842_v12, %v1841_v33  ;;  %v1366_v26 = vpack.c.bf16 %v1341_v9, %v1353_v6  ;;  %v1288_v3 = vsel %vm2789_vm15, %v1277_v4, 0.0  ;;  %v1365_v5 = vpack.c.bf16 %v1339_v13, %v1352_v53 }
 0x3b6   : > { %v1289_v48 = vsel %vm2787_vm9, %v1285_v25, 0.0  ;;  %1575 = vmatpush1.bf16.msk.msra.mxu0 %vm2850_vm5, %v1574_v46  ;;  %v1286_v32 = vsel %vm2789_vm15, %v1276_v45, 0.0  ;;  %vm2851_vm9 = vcmask 1045504   ;;  %v1354_v54 = vpack.c.bf16 %v764_v22, %v763_v38 }
 0x3b7   : > { %1398 = vmatprep.subr.bf16.mxu0 %v1366_v26  ;;  %v1368_v7 = vpack.c.bf16 %v1289_v48, %v1287_v44  ;;  %v1367_v49 = vpack.c.bf16 %v1288_v3, %v1286_v32  ;;  %vm2852_vm14 = vmmov %vm2851_vm9  ;;  %vm2853_vm15 = vcmask 883712  }
 0x3b9   : > { %v1383_v40 = vsel %vm2852_vm14, %v1367_v49, 0 }
 0x3ba   : > { %1399 = vmatpush1.bf16.msra.mxu0 %v1365_v5  ;;  %v1372_v30 = vpop.permute.xlu0 %1371 }
 0x3bb   : > { %1576 = vmatprep.subr.msk.bf16.mxu0 %vm2851_vm9, %v1368_v7 }
 0x3bc   : > { %v1377_v0 = vpop.permute.xlu1 %1376 }
 0x3be   : > { %1401 = vmatpush1.bf16.msra.mxu0 %v1383_v40 }
 0x3c1   : > { %1577 = vmatmul.mubr.msk.bf16.vlgmr.msra.gmra.mrb[4].mxu0 %vm2853_vm15, %v1354_v54 }
 0x494   : > { %v1422_v43 = vpop.f32.mrb[4].mxu0 }
 0x495   : > { %v1423_v55 = vadd.f32 %v1422_v43, %v1372_v30  ;;  %v1424_v56 = vpop.f32.mrb[5].mxu0 }
 0x496   : > { %v1425_v50 = vadd.f32 %v1424_v56, %v1372_v30  ;;  %v1426_v59 = vpop.f32.mrb[6].mxu0 }
 0x497   : > { %v1431_v51 = vadd.f32 %v1423_v55, %v2259_v1  ;;  %v1427_v29 = vadd.f32 %v1426_v59, %v1377_v0  ;;  %v1428_v52 = vpop.f32.mrb[7].mxu0 }
 0x498   : > { %v1432_v15 = vadd.f32 %v1425_v50, %v2261_v11  ;;  %v1429_v17 = vadd.f32 %v1428_v52, %v1377_v0 }
 0x499   : > { %1435 = vst [vmem:[%s354_s8] sm:$0xff] %v1431_v51  ;;  %v1433_v57 = vadd.f32 %v1427_v29, %v2263_v20 }
 0x49a   : > { %1436 = vst [vmem:[%s354_s8 + $0x8] sm:$0xff] %v1432_v15  ;;  %v1434_v61 = vadd.f32 %v1429_v17, %v2265_v23 }
 0x49b   : > { %1437 = vst [vmem:[%s354_s8 + $0x10] sm:$0xf] %v1433_v57 }
 0x49c   : > { %1438 = vst [vmem:[%s354_s8 + $0x18] sm:$0xf] %v1434_v61 }
 0x49d PF: > { %s21_s11 = sadd.s32 1, %s1849_s11  }
 0x49e   : > { %p18_p4 = scmp.ge.s32.totalorder %s21_s11, 4  }
 0x4a0   :  { %20 = sbr.rel (!%p18_p4) target bundleno = 3 (0x3), region = 89 }

// kernel: decoder_forward.9
= control target key start
LH: loop header
LB: loop body
LE: loop exit
PB: predicated region body
PF: predicated region fallthrough
CT: control target
= control target key end

     0   :  { %s3279_s11 = smov 0   ;;  %s5215_s0 = inlined_call_operand.vmem [shape: f32[2,8,1024], index: 0, kind: input, shape index: {}]   ;;  %s5216_s1 = inlined_call_operand.vmem [shape: f32[2,8,1024], index: 1, kind: input, shape index: {}]   ;;  %s5217_s2 = inlined_call_operand.vmem [shape: f32[8,72], index: 2, kind: input, shape index: {}]   ;;  %s5218_s3 = inlined_call_operand.vmem [shape: f32[8,1], index: 3, kind: input, shape index: {}]   ;;  %s5219_s4 = inlined_call_operand.vmem [shape: f32[8,72], index: 4, kind: input, shape index: {}]   ;;  %s5220_s5 = inlined_call_operand.vmem [shape: f32[8,1], index: 5, kind: input, shape index: {}]   ;;  %s5221_s6 = inlined_call_operand.vmem [shape: f32[8,72], index: 6, kind: input, shape index: {}]   ;;  %s5222_s7 = inlined_call_operand.vmem [shape: f32[8,1], index: 7, kind: input, shape index: {}]   ;;  %s5223_s8 = inlined_call_operand.<no memory space> [shape: f32[1,1], index: 8, kind: input, shape index: {}]   ;;  %s5224_s9 = inlined_call_operand.vmem [shape: f32[2,8,1024], index: 9, kind: output, shape index: {}]  }
   0x1   :  { %v14_v0 = vstv %s5223_s8 }
   0x2   :  { %15 = vst [vmem:[#allocation2] sm:$0x1] %v14_v0 }
   0x3 LB: > { %s2449_s12 = sadd.s32 4294967295, %s3214_s11   ;;  %p2453_p0 = scmp.ge.s32.totalorder %s3214_s11, 1  ;;  %s3214_s11 = sphi %s3279_s11, %s21_s11  }
   0x4   : > { %p299_p1 = scmp.lt.s32.totalorder %s3214_s11, 3 }
   0x6   : > { %p300_p2 = pnand %p2453_p0, %p299_p1 }
   0x8   : > { %303 = sbr.rel (%p300_p2) target bundleno = 1258 (0x4ea), region = 56 }
   0xf   : > { %p340_p3 = scmp.lt.s32.totalorder %s2449_s12, 1  ;;  %s3216_s16 = smov 32   ;;  %v5258_v14 = vmov 0   ;;  %v967_v17 = vld [vmem:[%s5218_s3] sm:$0xff]  ;;  %v365_v18 = vlaneseq  ;;  %vm5225_vm2 = vcmask 269312   ;;  %vm5226_vm4 = vcmask 261120  }
  0x10   : > { %s3217_s17 = smov 33   ;;  %s3218_s18 = smov 31   ;;  %1034 = vmatprep.mubr.bf16.mxu0 %v5258_v14  ;;  %1075 = vmatprep.mubr.bf16.mxu1 %v5258_v14  ;;  %v5416_v45 = vmov 0  ;;  %v5421_v47 = vmov 0  ;;  %v5423_v57 = vmov 0  ;;  %v5426_v63 = vmov 0 }
  0x11   : > { %s5992_s12 = smov (!%p340_p3, %s2449_s12), 1  ;;  %s3219_s19 = smov 1   ;;  %2931 = vset.pattern.permute.xlu1 %v5258_v14  ;;  %3072 = vset.pattern.permute.xlu0 %v5258_v14  ;;  %v3387_v19 = vand.u32 127, %v365_v18  ;;  %v5450_v46 = vmov 0  ;;  %v5484_v36 = vmov 0  ;;  %v5499_v42 = vmov 0 }
  0x12   : > { %s3287_s13 = sshll.u32 %s5992_s12, 6  ;;  %s3220_s20 = smov 127  }
  0x13   : > { %s3293_s15 = scalar_lea.vmem %s5216_s1, %s3287_s13  ;;  %s3221_s21 = smov 97   ;;  %v3390_v20 = vadd.s32 128, %v3387_v19  ;;  %v3393_v21 = vadd.s32 384, %v3387_v19  ;;  %v3398_v24 = vadd.s32 256, %v3387_v19  ;;  %v374_v31 = vand.u32 31, %v3387_v19 }
  0x14   : > { %v3296_v1 = vld [vmem:[%s3293_s15] sm:$0xff]  ;;  %v3299_v2 = vld [vmem:[%s3293_s15 + $0x8] sm:$0xff]  ;;  %v3302_v3 = vld [vmem:[%s3293_s15 + $0x10] sm:$0xff]  ;;  %s3222_s22 = smov 96   ;;  %s3223_s23 = smov 95   ;;  %v382_v32 = vshra.s32 %v3387_v19, 5 }
  0x15   : > { %v2806_v4 = vpack.i.bf16 %v3299_v2, %v3296_v1  ;;  %v3307_v5 = vld [vmem:[%s3293_s15 + $0x18] sm:$0xff]  ;;  %v3314_v7 = vld [vmem:[%s3293_s15 + $0x20] sm:$0xff]  ;;  %v2851_v11 = vpack.i.bf16 %v3302_v3, %v3299_v2  ;;  %v3350_v12 = vld [vmem:[%s3293_s15 + $0x28] sm:$0xff]  ;;  %v375_v22 = vand.u32 31, %v3390_v20  ;;  %v383_v23 = vshra.s32 %v3390_v20, 5  ;;  %s4328_s30 = scalar_lea.vmem %s5215_s0, %s3287_s13 }
  0x16   : > { %v2811_v6 = vpack.i.bf16 %v3307_v5, %v3302_v3  ;;  %v3317_v8 = vld [vmem:[%s3293_s15 + $0x38] sm:$0xff]  ;;  %v2856_v10 = vpack.i.bf16 %v3314_v7, %v3307_v5  ;;  %v3353_v13 = vld [vmem:[%s3293_s15 + $0x30] sm:$0xff]  ;;  %v2906_v16 = vpack.i.bf16 %v3350_v12, %v3314_v7  ;;  %v377_v25 = vand.u32 31, %v3393_v21 }
  0x17   : > { %2807 = vrot.lane.b32.xlu1 %v2806_v4, %s3216_s16  ;;  %2797 = vrot.lane.b32.xlu0 %v2806_v4, %s3217_s17  ;;  %v2821_v9 = vpack.i.bf16 %v3314_v7, %v3317_v8  ;;  %v2896_v15 = vpack.i.bf16 %v3353_v13, %v3350_v12  ;;  %v385_v26 = vshra.s32 %v3393_v21, 5  ;;  %vm3404_vm0 = vcmp.ge.s32.totalorder %v383_v23, 1 }
  0x18   : > { %vm3408_vm1 = vcmp.ge.s32.totalorder %v375_v22, 1  ;;  %v376_v29 = vand.u32 31, %v3398_v24  ;;  %v384_v30 = vshra.s32 %v3398_v24, 5  ;;  %vm3426_vm6 = vcmp.ge.s32.totalorder %v377_v25, 1 }
  0x19   : > { %vm449_vm3 = vmand %vm3404_vm0, %vm3408_vm1  ;;  %vm3422_vm5 = vcmp.ge.s32.totalorder %v385_v26, 1  ;;  %vm3450_vm10 = vcmp.ge.s32.totalorder %v382_v32, 1  ;;  %vm3456_vm11 = vcmp.ge.s32.totalorder %v374_v31, 1  ;;  %v5475_v24 = vmov 0 }
  0x1a   : > { %vm3432_vm7 = vcmp.ge.s32.totalorder %v384_v30, 1  ;;  %vm3436_vm8 = vcmp.ge.s32.totalorder %v376_v29, 1  ;;  %vm3444_vm9 = vmpackc.low %vm3404_vm0, %vm449_vm3  ;;  %v5422_v47 = vsel %vm3456_vm11, 4294967295, %v5421_v47 }
  0x1b   : > { %2812 = vrot.lane.b32.xlu1 %v2811_v6, %s3216_s16  ;;  %2802 = vrot.lane.b32.xlu0 %v2811_v6, %s3217_s17  ;;  %v5417_v45 = vsel %vm3444_vm9, 4294967295, %v5416_v45  ;;  %vm451_vm12 = vmand %vm3422_vm5, %vm3426_vm6 }
  0x1c   : > { %5418 = vst [vmem:[#allocation3_spill] sm:$0xff] %v5417_v45  ;;  %vm450_vm13 = vmand %vm3432_vm7, %vm3436_vm8 }
  0x1d   : > { %vm448_vm14 = vmand %vm3450_vm10, %vm3456_vm11  ;;  %vm3563_vm11 = vcmp.lt.s32.totalorder %v374_v31, 31 }
  0x1e   : > { %vm3490_vm15 = vmpackc.low %vm3422_vm5, %vm451_vm12 }
  0x1f   : > { %2822 = vrot.lane.b32.xlu1 %v2821_v9, %s3216_s16  ;;  %2817 = vrot.lane.b32.xlu0 %v2821_v9, %s3217_s17  ;;  %v5424_v57 = vsel %vm3490_vm15, 4294967295, %v5423_v57  ;;  %vm3502_vm3 = vmpackc.low %vm3432_vm7, %vm450_vm13  ;;  %vm3529_vm13 = vcmp.lt.s32.totalorder %v375_v22, 31 }
  0x20   : > { %5425 = vst [vmem:[#allocation4_spill] sm:$0xff] %v5424_v57  ;;  %v5427_v63 = vsel %vm3502_vm3, 4294967295, %v5426_v63  ;;  %vm3525_vm12 = vmpackc.low %vm3450_vm10, %vm448_vm14 }
  0x21   : > { %5428 = vst [vmem:[#allocation5_spill] sm:$0xff] %v5427_v63  ;;  %vm581_vm14 = vmand %vm3404_vm0, %vm3529_vm13 }
  0x22   : > { %vm3571_vm0 = vmpackc.low %vm3408_vm1, %vm581_vm14  ;;  %vm3645_vm14 = vcmp.lt.s32.totalorder %v383_v23, 31 }
  0x23   : > { %2832 = vrot.lane.b32.xlu1 %v2811_v6, %s3218_s18  ;;  %2827 = vrot.lane.b32.xlu0 %v2806_v4, %s3218_s18 }
  0x27   : > { %2842 = vrot.lane.b32.xlu1 %v2811_v6, %s3219_s19  ;;  %2837 = vrot.lane.b32.xlu0 %v2806_v4, %s3219_s19 }
  0x2b   : > { %612 = vrot.lane.b32.xlu1 %v3317_v8, %s3219_s19  ;;  %2847 = vrot.lane.b32.xlu0 %v2821_v9, %s3218_s18 }
  0x2f   : > { %2857 = vrot.lane.b32.xlu1 %v2856_v10, %s3220_s20  ;;  %2852 = vrot.lane.b32.xlu0 %v2851_v11, %s3220_s20 }
  0x33   : > { %2862 = vrot.lane.b32.xlu1 %v2851_v11, %s3221_s21  ;;  %670 = vrot.lane.b32.xlu0 %v3296_v1, %s3220_s20 }
  0x37   : > { %2872 = vrot.lane.b32.xlu1 %v2851_v11, %s3222_s22  ;;  %2867 = vrot.lane.b32.xlu0 %v2856_v10, %s3221_s21  ;;  %v5429_v11 = vmov 0 }
  0x38   : > { %v5430_v11 = vsel %vm3525_vm12, 4294967295, %v5429_v11 }
  0x39   : > { %5431 = vst [vmem:[#allocation6_spill] sm:$0xff] %v5430_v11 }
  0x3b   : > { %728 = vrot.lane.b32.xlu1 %v3296_v1, %s3221_s21  ;;  %2877 = vrot.lane.b32.xlu0 %v2856_v10, %s3222_s22 }
  0x3f   : > { %2882 = vrot.lane.b32.xlu1 %v2806_v4, %s3223_s23  ;;  %802 = vrot.lane.b32.xlu0 %v3296_v1, %s3222_s22 }
  0x43   : > { %868 = vrot.lane.b32.xlu1 %v3314_v7, %s3223_s23  ;;  %2887 = vrot.lane.b32.xlu0 %v2811_v6, %s3223_s23 }
  0x47   : > { %2897 = vrot.lane.b32.xlu1 %v2896_v15, %s3216_s16  ;;  %2892 = vrot.lane.b32.xlu0 %v2896_v15, %s3217_s17 }
  0x4b   : > { %2907 = vrot.lane.b32.xlu1 %v2906_v16, %s3219_s19  ;;  %2902 = vrot.lane.b32.xlu0 %v2896_v15, %s3218_s18 }
  0x4f   : > { %2912 = vrot.lane.b32.xlu1 %v2896_v15, %s3220_s20  ;;  %627 = vrot.lane.b32.xlu0 %v3353_v13, %s3219_s19 }
  0x53   : > { %2917 = vrot.lane.b32.xlu1 %v2896_v15, %s3221_s21  ;;  %684 = vrot.lane.b32.xlu0 %v3317_v8, %s3220_s20 }
  0x57   : > { %2922 = vrot.lane.b32.xlu1 %v2896_v15, %s3222_s22  ;;  %742 = vrot.lane.b32.xlu0 %v3317_v8, %s3221_s21 }
  0x5b   : > { %2927 = vrot.lane.b32.xlu1 %v2896_v15, %s3223_s23  ;;  %816 = vrot.lane.b32.xlu0 %v3317_v8, %s3222_s22  ;;  %v5491_v15 = vmov 0 }
  0x5f   : > { %874 = vrot.lane.b32.xlu0 %v3317_v8, %s3223_s23  ;;  %970 = vperm.xlu1 %2931, %v967_v17  }
  0x89   : > { %v2808_v33 = vpop.permute.xlu1 %2807  ;;  %v2798_v34 = vpop.permute.xlu0 %2797 }
  0x8a   : > { %v2810_v37 = vunpack.i.h.bf16 %v2808_v33  ;;  %v2809_v38 = vunpack.i.l.bf16 %v2808_v33  ;;  %v2800_v39 = vunpack.i.h.bf16 %v2798_v34  ;;  %v2799_v40 = vunpack.i.l.bf16 %v2798_v34 }
  0x8c   : > { %v416_v43 = vsel %vm5225_vm2, %v2799_v40, %v2800_v39  ;;  %v498_v44 = vsel %vm5226_vm4, %v2809_v38, %v2810_v37 }
  0x8d   : > { %v3460_v48 = vpop.permute.xlu1 %2812  ;;  %v3462_v49 = vpop.permute.xlu0 %2802  ;;  %v2461_v50 = vpack.c.bf16 %v498_v44, %v416_v43 }
  0x8e   : > { %v5268_v51 = vunpack.i.h.bf16 %v3460_v48  ;;  %v2814_v52 = vunpack.i.l.bf16 %v3460_v48  ;;  %v5267_v53 = vunpack.i.h.bf16 %v3462_v49  ;;  %v2804_v54 = vunpack.i.l.bf16 %v3462_v49 }
  0x8f   : > { %2462 = vmatprep.subr.msk.bf16.mxu0 %vm3444_vm9, %v2461_v50  ;;  %v5440_v50 = vmov 0 }
  0x90   : > { %v418_v55 = vsel %vm5225_vm2, %v2804_v54, %v5267_v53  ;;  %v500_v56 = vsel %vm5226_vm4, %v2814_v52, %v5268_v51  ;;  %v417_v58 = vsel %vm5225_vm2, %v2800_v39, %v2804_v54  ;;  %v499_v59 = vsel %vm5226_vm4, %v2810_v37, %v2814_v52 }
  0x91   : > { %v3496_v60 = vpop.permute.xlu1 %2822  ;;  %v3498_v61 = vpop.permute.xlu0 %2817  ;;  %v2487_v62 = vpack.c.bf16 %v500_v56, %v418_v55  ;;  %v2490_v0 = vpack.c.bf16 %v499_v59, %v417_v58  ;;  %v5441_v50 = vsel %vm3571_vm0, 4294967295, %v5440_v50  ;;  %v5443_v52 = vmov 0 }
  0x92   : > { %v5265_v4 = vunpack.i.l.bf16 %v3496_v60  ;;  %v5264_v6 = vunpack.i.l.bf16 %v3498_v61  ;;  %5442 = vst [vmem:[#allocation7_spill] sm:$0xff] %v5441_v50  ;;  %v5446_v59 = vmov 0 }
  0x93   : > { %2488 = vmatprep.subr.msk.bf16.mxu1 %vm3490_vm15, %v2487_v62  ;;  %vm5238_vm15 = vcmask 7168  }
  0x94   : > { %2491 = vmatpush1.bf16.msk.msra.mxu1 %vm3502_vm3, %v2490_v0  ;;  %v431_v9 = vsel %vm5225_vm2, %v5264_v6, %v2799_v40  ;;  %v513_v10 = vsel %vm5226_vm4, %v5265_v4, %v2809_v38  ;;  %vm3535_vm2 = vcmp.lt.s32.totalorder %v377_v25, 31  ;;  %vm3539_vm4 = vcmp.lt.s32.totalorder %v376_v29, 31 }
  0x95   : > { %v3533_v16 = vpop.permute.xlu1 %2832  ;;  %v2828_v17 = vpop.permute.xlu0 %2827  ;;  %v2464_v18 = vpack.c.bf16 %v513_v10, %v431_v9  ;;  %vm5237_vm3 = vcmask 252928   ;;  %vm583_vm9 = vmand %vm3422_vm5, %vm3535_vm2  ;;  %v5487_v4 = vmov 0 }
  0x96   : > { %v5261_v37 = vunpack.i.h.bf16 %v3533_v16  ;;  %v2834_v38 = vunpack.i.l.bf16 %v3533_v16  ;;  %v2830_v22 = vunpack.i.h.bf16 %v2828_v17  ;;  %v2829_v25 = vunpack.i.l.bf16 %v2828_v17  ;;  %vm3581_vm5 = vmpackc.low %vm3426_vm6, %vm583_vm9 }
  0x97   : > { %2465 = vmatpush1.bf16.msk.msra.mxu0 %vm3525_vm12, %v2464_v18  ;;  %vm582_vm12 = vmand %vm3432_vm7, %vm3539_vm4  ;;  %v5444_v52 = vsel %vm3581_vm5, 4294967295, %v5443_v52 }
  0x98   : > { %v558_v41 = vsel %vm5237_vm3, %v2834_v38, %v5261_v37  ;;  %v557_v31 = vsel %vm5237_vm3, %v2830_v22, %v2834_v38  ;;  %5445 = vst [vmem:[#allocation8_spill] sm:$0xff] %v5444_v52  ;;  %v556_v54 = vsel %vm5237_vm3, %v2829_v25, %v2830_v22  ;;  %vm3593_vm7 = vmpackc.low %vm3436_vm8, %vm582_vm12 }
  0x99   : > { %v3555_v29 = vpop.permute.xlu1 %2842  ;;  %v2838_v39 = vpop.permute.xlu0 %2837  ;;  %v5447_v59 = vsel %vm3593_vm7, 4294967295, %v5446_v59  ;;  %vm580_vm9 = vmand %vm3450_vm10, %vm3563_vm11  ;;  %vm5449_vm10 = vnez %v5422_v47 }
  0x9a   : > { %v5263_v40 = vunpack.i.h.bf16 %v3555_v29  ;;  %v2844_v35 = vunpack.i.l.bf16 %v3555_v29  ;;  %v2840_v43 = vunpack.i.h.bf16 %v2838_v39  ;;  %v2839_v44 = vunpack.i.l.bf16 %v2838_v39  ;;  %5448 = vst [vmem:[#allocation9_spill] sm:$0xff] %v5447_v59  ;;  %vm3619_vm12 = vmpackc.low %vm5449_vm10, %vm580_vm9 }
  0x9b   : > { %v5451_v46 = vsel %vm3619_vm12, 4294967295, %v5450_v46  ;;  %v5589_v27 = vunpack.i.h.bf16 %v3555_v29 }
  0x9c   : > { %v632_v55 = vsel %vm5238_vm15, %v2844_v35, %v5263_v40  ;;  %v631_v56 = vsel %vm5238_vm15, %v2840_v43, %v2844_v35  ;;  %v630_v58 = vsel %vm5238_vm15, %v2839_v44, %v2840_v43  ;;  %5452 = vst [vmem:[#allocation10_spill] sm:$0xff] %v5451_v46  ;;  %v5542_v46 = vmov 0 }
  0x9d   : > { %v3597_v62 = vpop.permute.xlu1 %612  ;;  %v3599_v0 = vpop.permute.xlu0 %2847  ;;  %v2467_v9 = vpack.c.bf16 %v630_v58, %v556_v54  ;;  %v2493_v10 = vpack.c.bf16 %v632_v55, %v558_v41  ;;  %v2496_v17 = vpack.c.bf16 %v631_v56, %v557_v31  ;;  %v5453_v54 = vmov 0 }
  0x9e   : > { %v5260_v18 = vunpack.i.l.bf16 %v3599_v0  ;;  %v645_v38 = vsel %vm5238_vm15, %v3597_v62, %v2839_v44  ;;  %v5456_v55 = vmov 0  ;;  %v5496_v56 = vmov 0 }
  0x9f   : > { %2468 = vmatprep.subr.msk.bf16.mxu0 %vm3571_vm0, %v2467_v9  ;;  %2494 = vmatprep.subr.msk.bf16.mxu1 %vm3581_vm5, %v2493_v10  ;;  %vm5461_vm0 = vcmask 1039360  }
  0xa0   : > { %v571_v22 = vsel %vm5237_vm3, %v5260_v18, %v2829_v25  ;;  %2497 = vmatpush1.bf16.msk.msra.mxu1 %vm3593_vm7, %v2496_v17  ;;  %vm5247_vm3 = vmmov 1   ;;  %vm5462_vm7 = vmmov %vm5461_vm0  ;;  %v5464_v17 = vmov 0 }
  0xa1   : > { %v3623_v39 = vpop.permute.xlu1 %2857  ;;  %v2853_v35 = vpop.permute.xlu0 %2852  ;;  %v2470_v43 = vpack.c.bf16 %v645_v38, %v571_v22  ;;  %vm3630_vm15 = vmpackc.low %vm3529_vm13, %vm5247_vm3 }
  0xa2   : > { %v5257_v44 = vunpack.i.h.bf16 %v3623_v39  ;;  %v2859_v41 = vunpack.i.l.bf16 %v3623_v39  ;;  %v2855_v31 = vunpack.i.h.bf16 %v2853_v35  ;;  %v2854_v25 = vunpack.i.l.bf16 %v2853_v35  ;;  %vm3639_vm9 = vmpackc.low %vm3535_vm2, %vm5247_vm3 }
  0xa3   : > { %v5454_v54 = vsel %vm3630_vm15, 4294967295, %v5453_v54  ;;  %2471 = vmatpush1.bf16.msk.msra.mxu0 %vm3619_vm12, %v2470_v43  ;;  %v5457_v55 = vsel %vm3639_vm9, 4294967295, %v5456_v55  ;;  %vm5463_vm12 = vmmov %vm5461_vm0  ;;  %v5467_v43 = vmov 0 }
  0xa4   : > { %5455 = vst [vmem:[#allocation11_spill] sm:$0xff] %v5454_v54  ;;  %5458 = vst [vmem:[#allocation12_spill] sm:$0xff] %v5457_v55  ;;  %v690_v58 = vsel %vm5461_vm0, %v2859_v41, %v5257_v44  ;;  %v689_v9 = vsel %vm5462_vm7, %v2855_v31, %v2859_v41  ;;  %v688_v10 = vsel %vm5463_vm12, %v2854_v25, %v2855_v31  ;;  %v3696_v31 = vadd.s32 896, %v3387_v19 }
  0xa5   : > { %vm3657_vm5 = vmpackc.low %vm3539_vm4, %vm5247_vm3  ;;  %v3661_v20 = vpop.permute.xlu1 %2862  ;;  %v3663_v23 = vpop.permute.xlu0 %670  ;;  %v2473_v38 = vpack.c.bf16 %v688_v10, %v3299_v2  ;;  %v2499_v22 = vpack.c.bf16 %v690_v58, %v3307_v5  ;;  %v2502_v35 = vpack.c.bf16 %v689_v9, %v3302_v3  ;;  %v3682_v2 = vadd.s32 640, %v3387_v19 }
  0xa6   : > { %v5465_v17 = vsel %vm3657_vm5, 4294967295, %v5464_v17  ;;  %vm3671_vm0 = vmpackc.low %vm3563_vm11, %vm5247_vm3  ;;  %v687_v41 = vsel %vm5462_vm7, %v3663_v23, %v2854_v25  ;;  %vm3691_vm3 = vcmp.lt.s32.totalorder %v385_v26, 31  ;;  %v2865_v25 = vunpack.i.h.bf16 %v3661_v20 }
  0xa7   : > { %5466 = vst [vmem:[#allocation13_spill] sm:$0xff] %v5465_v17  ;;  %v5468_v43 = vsel %vm3671_vm0, 4294967295, %v5467_v43  ;;  %v2476_v3 = vpack.c.bf16 %v687_v41, %v3296_v1  ;;  %2474 = vmatprep.subr.msk.bf16.mxu0 %vm3630_vm15, %v2473_v38  ;;  %2500 = vmatprep.subr.msk.bf16.mxu1 %vm3639_vm9, %v2499_v22  ;;  %v2864_v58 = vunpack.i.l.bf16 %v3661_v20  ;;  %vm3704_vm7 = vcmp.lt.s32.totalorder %v384_v30, 31  ;;  %vm5474_vm9 = vmand %vm3645_vm14, %vm3408_vm1 }
  0xa8   : > { %5469 = vst [vmem:[#allocation14_spill] sm:$0xff] %v5468_v43  ;;  %2503 = vmatpush1.bf16.msk.msra.mxu1 %vm3657_vm5, %v2502_v35  ;;  %vm5262_vm12 = vcmask 793600   ;;  %vm3719_vm5 = vmpackc.low %vm3645_vm14, %vm5474_vm9  ;;  %vm3725_vm15 = vcmp.lt.s32.totalorder %v382_v32, 31  ;;  %v3730_v9 = vadd.s32 512, %v3387_v19  ;;  %v379_v28 = vand.u32 31, %v3682_v2 }
  0xa9   : > { %v2873_v21 = vpop.permute.xlu1 %2872  ;;  %v3708_v26 = vpop.permute.xlu0 %2867  ;;  %2477 = vmatpush1.bf16.msk.msra.mxu0 %vm3671_vm0, %v2476_v3  ;;  %v5476_v24 = vsel %vm3719_vm5, 4294967295, %v5475_v24  ;;  %vm773_vm1 = vmand %vm3691_vm3, %vm3426_vm6  ;;  %v5266_v38 = vshra.s32 %v3682_v2, 5  ;;  %v5274_v32 = vand.u32 31, %v3696_v31  ;;  %v5271_v22 = vshra.s32 %v3696_v31, 5 }
  0xaa   : > { %5477 = vst [vmem:[#allocation15_spill] sm:$0xff] %v5476_v24  ;;  %v2875_v10 = vunpack.i.h.bf16 %v2873_v21  ;;  %v2874_v20 = vunpack.i.l.bf16 %v2873_v21  ;;  %v3745_v35 = vadd.s32 768, %v3387_v19  ;;  %v746_v41 = vsel %vm5262_vm12, %v2864_v58, %v2865_v25  ;;  %vm3778_vm6 = vmand %vm3645_vm14, %vm3529_vm13 }
  0xab   : > { %vm5480_vm0 = vcmask 785408   ;;  %v5280_v21 = vunpack.i.h.bf16 %v3708_v26  ;;  %v2869_v44 = vunpack.i.l.bf16 %v3708_v26  ;;  %v5481_v19 = vmov 0  ;;  %vm5490_vm12 = vmand %vm3704_vm7, %vm3436_vm8 }
  0xac   : > { %v820_v3 = vsel %vm5480_vm0, %v2874_v20, %v2875_v10  ;;  %vm3766_vm0 = vmpackc.low %vm3691_vm3, %vm773_vm1  ;;  %v378_v40 = vand.u32 31, %v3730_v9  ;;  %v5485_v36 = vsel %vm3778_vm6, 4294967295, %v5484_v36  ;;  %vm3803_vm13 = vcmp.ge.s32.totalorder %v5266_v38, 1 }
  0xad   : > { %v2479_v14 = vpack.c.bf16 %v820_v3, %v746_v41  ;;  %v3755_v18 = vpop.permute.xlu1 %728  ;;  %v3757_v37 = vpop.permute.xlu0 %2877  ;;  %v5482_v19 = vsel %vm3766_vm0, 4294967295, %v5481_v19  ;;  %5486 = vst [vmem:[#allocation17_spill] sm:$0xff] %v5485_v36  ;;  %vm3786_vm1 = vmand %vm3691_vm3, %vm3535_vm2  ;;  %vm3807_vm2 = vcmp.ge.s32.totalorder %v379_v28, 1  ;;  %vm3826_vm14 = vcmp.ge.s32.totalorder %v5271_v22, 1 }
  0xae   : > { %5483 = vst [vmem:[#allocation16_spill] sm:$0xff] %v5482_v19  ;;  %v5279_v3 = vunpack.i.h.bf16 %v3757_v37  ;;  %v2879_v6 = vunpack.i.l.bf16 %v3757_v37  ;;  %v5488_v4 = vsel %vm3786_vm1, 4294967295, %v5487_v4  ;;  %vm3797_vm9 = vmpackc.low %vm3704_vm7, %vm5490_vm12  ;;  %v5497_v56 = vsel %vm3807_vm2, 4294967295, %v5496_v56 }
  0xaf   : > { %5489 = vst [vmem:[#allocation18_spill] sm:$0xff] %v5488_v4  ;;  %v5492_v15 = vsel %vm3797_vm9, 4294967295, %v5491_v15  ;;  %2480 = vmatprep.subr.msk.bf16.mxu0 %vm3719_vm5, %v2479_v14  ;;  %vm5498_vm8 = vmand %vm3725_vm15, %vm5449_vm10  ;;  %v5502_v5 = vmov 0  ;;  %vm3832_vm12 = vcmp.ge.s32.totalorder %v5274_v32, 1  ;;  %v5504_v14 = vmov 0 }
  0xb0   : > { %5493 = vst [vmem:[#allocation19_spill] sm:$0xff] %v5492_v15  ;;  %vm3820_vm3 = vmpackc.low %vm3725_vm15, %vm5498_vm8  ;;  %v5503_v5 = vsel %vm3826_vm14, 4294967295, %v5502_v5  ;;  %v5505_v14 = vsel %vm3832_vm12, 4294967295, %v5504_v14  ;;  %v380_v47 = vand.u32 31, %v3745_v35  ;;  %vm5506_vm10 = vcmask 793600  }
  0xb1   : > { %v5500_v42 = vsel %vm3820_vm3, 4294967295, %v5499_v42  ;;  %v747_v53 = vsel %vm5506_vm10, %v2865_v25, %v2869_v44  ;;  %vm5507_vm8 = vmmov %vm5506_vm10  ;;  %vm5508_vm5 = vcmask 785408   ;;  %v5510_v32 = vmov 0  ;;  %v3854_v24 = vpop.permute.xlu1 %2882  ;;  %v3856_v43 = vpop.permute.xlu0 %802 }
  0xb2   : > { %5501 = vst [vmem:[#allocation20_spill] sm:$0xff] %v5500_v42  ;;  %v748_v51 = vsel %vm5507_vm8, %v2869_v44, %v5280_v21  ;;  %v821_v22 = vsel %vm5508_vm5, %v2875_v10, %v2879_v6  ;;  %vm5509_vm6 = vmmov %vm5508_vm5  ;;  %v5285_v30 = vunpack.i.l.bf16 %v3854_v24  ;;  %vm5519_vm10 = vcmask 785408  }
  0xb3   : > { %v822_v41 = vsel %vm5509_vm6, %v2879_v6, %v5279_v3  ;;  %vm3850_vm1 = vmand %vm3725_vm15, %vm3563_vm11  ;;  %v2508_v25 = vpack.c.bf16 %v821_v22, %v747_v53  ;;  %v5513_v6 = vshra.s32 %v3730_v9, 5  ;;  %vm3868_vm11 = vcmp.ge.s32.totalorder %v378_v40, 1  ;;  %v364_v22 = vld [vmem:[%s5217_s2] sm:$0xff] }
  0xb4   : > { %v5511_v32 = vsel %vm3850_vm1, 4294967295, %v5510_v32  ;;  %v2505_v38 = vpack.c.bf16 %v822_v41, %v748_v51  ;;  %vm453_vm5 = vmand %vm3803_vm13, %vm3807_vm2  ;;  %v2885_v53 = vunpack.i.h.bf16 %v3854_v24  ;;  %v819_v10 = vsel %vm5519_vm10, %v3856_v43, %v2874_v20 }
  0xb5   : > { %5512 = vst [vmem:[#allocation21_spill] sm:$0xff] %v5511_v32  ;;  %vm3864_vm6 = vcmp.ge.s32.totalorder %v5513_v6, 1  ;;  %vm5518_vm15 = vmmov %vm5507_vm8  ;;  %v2825_v41 = vunpack.i.h.bf16 %v3496_v60  ;;  %v5523_v20 = vshra.s32 %v3745_v35, 5  ;;  %vm3902_vm8 = vcmp.ge.s32.totalorder %v380_v47, 1 }
  0xb6   : > { %v745_v51 = vsel %vm5518_vm15, %v3755_v18, %v2864_v58  ;;  %2506 = vmatprep.subr.msk.bf16.mxu1 %vm3766_vm0, %v2505_v38  ;;  %vm3892_vm15 = vmand %vm3704_vm7, %vm3539_vm4  ;;  %v5520_v58 = vmov 0  ;;  %v5526_v21 = vmov 0  ;;  %v2820_v38 = vunpack.i.h.bf16 %v3498_v61 }
  0xb7   : > { %v2482_v6 = vpack.c.bf16 %v819_v10, %v745_v51  ;;  %v5521_v58 = vsel %vm3892_vm15, 4294967295, %v5520_v58  ;;  %vm3898_vm10 = vcmp.ge.s32.totalorder %v5523_v20, 1  ;;  %v5527_v21 = vsel %vm3902_vm8, 4294967295, %v5526_v21  ;;  %2509 = vmatpush1.bf16.msk.msra.mxu1 %vm3797_vm9, %v2508_v25  ;;  %vm3919_vm7 = vmpackc.low %vm3803_vm13, %vm453_vm5  ;;  %v3927_v25 = vpop.permute.xlu1 %868  ;;  %v2888_v10 = vpop.permute.xlu0 %2887 }
  0xb8   : > { %5522 = vst [vmem:[#allocation22_spill] sm:$0xff] %v5521_v58  ;;  %vm5528_vm4 = vcmask 777216   ;;  %v5529_v1 = vmov 0  ;;  %vm3923_vm0 = vcmp.lt.s32.totalorder %v379_v28, 31  ;;  %v5531_v51 = vmov 0  ;;  %vm5533_vm5 = vmand %vm3826_vm14, %vm3832_vm12 }
  0xb9   : > { %v877_v34 = vsel %vm5528_vm4, %v5285_v30, %v2885_v53  ;;  %v5530_v1 = vsel %vm3919_vm7, 4294967295, %v5529_v1  ;;  %v5532_v51 = vsel %vm3923_vm0, 4294967295, %v5531_v51  ;;  %2483 = vmatpush1.bf16.msk.msra.mxu0 %vm3820_vm3, %v2482_v6  ;;  %vm3940_vm9 = vmpackc.low %vm3826_vm14, %vm5533_vm5  ;;  %v5534_v28 = vmov 0 }
  0xba   : > { %v918_v20 = vsel %vm3850_vm1, %v877_v34, 0.0  ;;  %v5535_v28 = vsel %vm3940_vm9, 4294967295, %v5534_v28  ;;  %v3944_v30 = vpack.c.bf16 %v364_v22, %v364_v22  ;;  %v2890_v6 = vunpack.i.h.bf16 %v2888_v10  ;;  %vm5551_vm14 = vmand %vm3864_vm6, %vm3868_vm11 }
  0xbb   : > { %5536 = vst [vmem:[#allocation23_spill] sm:$0xff] %v5535_v28  ;;  %v2889_v34 = vunpack.i.l.bf16 %v2888_v10  ;;  %vm3954_vm12 = vcmp.lt.s32.totalorder %v378_v40, 31  ;;  %v5537_v42 = vmov 0  ;;  %v5539_v22 = vunpack.i.h.bf16 %v3460_v48 }
  0xbc   : > { %v5538_v42 = vsel %vm3954_vm12, 4294967295, %v5537_v42  ;;  %vm5540_vm5 = vcmask 261120   ;;  %v959_v32 = vpack.c.bf16 %v918_v20, %v918_v20  ;;  %v5541_v10 = vand.u32 31, %v3696_v31 }
  0xbd   : > { %v3961_v54 = vsel %vm5540_vm5, %v5539_v22, %v2825_v41  ;;  %vm3973_vm1 = vcmp.lt.s32.totalorder %v380_v47, 31  ;;  %v5544_v40 = vmov 0  ;;  %v5546_v48 = vunpack.i.h.bf16 %v3462_v49 }
  0xbe   : > { %vm3969_vm4 = vcmp.lt.s32.totalorder %v5541_v10, 31  ;;  %v5545_v40 = vsel %vm3973_vm1, 4294967295, %v5544_v40  ;;  %vm5547_vm5 = vcmask 269312   ;;  %vm5548_vm9 = vcmask 777216   ;;  %vm3993_vm1 = vmpackc.low %vm3864_vm6, %vm5551_vm14 }
  0xbf   : > { %v5543_v46 = vsel %vm3969_vm4, 4294967295, %v5542_v46  ;;  %v3980_v22 = vsel %vm5547_vm5, %v5546_v48, %v2820_v38  ;;  %v880_v20 = vsel %vm5548_vm9, %v2890_v6, %v3927_v25  ;;  %vm5549_vm7 = vmmov %vm5548_vm9  ;;  %v5552_v47 = vmov 0 }
  0xc0   : > { %v878_v50 = vsel %vm5549_vm7, %v2885_v53, %v2889_v34  ;;  %vm5550_vm3 = vmmov %vm5549_vm7  ;;  %v5553_v47 = vsel %vm3993_vm1, 4294967295, %v5552_v47  ;;  %v2850_v49 = vunpack.i.h.bf16 %v3599_v0  ;;  %vm5554_vm5 = vnez %v5488_v4 }
  0xc1   : > { %v879_v11 = vsel %vm5550_vm3, %v2889_v34, %v2890_v6  ;;  %v921_v10 = vsel %vm5554_vm5, %v880_v20, 0.0  ;;  %vm5555_vm9 = vnez %v5485_v36  ;;  %v2898_v6 = vpop.permute.xlu1 %2897  ;;  %v2893_v34 = vpop.permute.xlu0 %2892  ;;  %vm5556_vm3 = vmand %vm3898_vm10, %vm3902_vm8  ;;  %v5557_v15 = vmov 0 }
  0xc2   : > { %v919_v53 = vsel %vm5555_vm9, %v878_v50, 0.0  ;;  %v920_v48 = vsel %vm3892_vm15, %v879_v11, 0.0  ;;  %vm4011_vm14 = vmpackc.low %vm3898_vm10, %vm5556_vm3  ;;  %v2900_v20 = vunpack.i.h.bf16 %v2898_v6  ;;  %v2899_v19 = vunpack.i.l.bf16 %v2898_v6 }
  0xc3   : > { %v5558_v15 = vsel %vm4011_vm14, 4294967295, %v5557_v15  ;;  %v2895_v36 = vunpack.i.h.bf16 %v2893_v34  ;;  %v2894_v50 = vunpack.i.l.bf16 %v2893_v34  ;;  %vm5559_vm7 = vmand %vm3803_vm13, %vm3923_vm0  ;;  %v5560_v11 = vmov 0 }
  0xc4   : > { %vm4022_vm9 = vmpackc.low %vm3807_vm2, %vm5559_vm7  ;;  %v960_v4 = vpack.c.bf16 %v919_v53, %v919_v53  ;;  %v962_v17 = vpack.c.bf16 %v921_v10, %v921_v10  ;;  %vm5562_vm3 = vcmask 1043456   ;;  %v961_v55 = vpack.c.bf16 %v920_v48, %v920_v48 }
  0xc5   : > { %v5561_v11 = vsel %vm4022_vm9, 4294967295, %v5560_v11  ;;  %v979_v58 = vsel %vm5562_vm3, %v959_v32, 0  ;;  %vm5563_vm15 = vcmask 261120   ;;  %v5565_v34 = vunpack.i.l.bf16 %v3496_v60  ;;  %v2908_v60 = vpop.permute.xlu1 %2907 }
  0xc6   : > { %v502_v33 = vsel %vm5563_vm15, %v2825_v41, %v2899_v19  ;;  %vm5564_vm14 = vmmov %vm5563_vm15  ;;  %vm5567_vm7 = vcmask 269312   ;;  %vm5568_vm3 = vnez %v5503_v5  ;;  %v5570_v10 = vunpack.i.l.bf16 %v3498_v61 }
  0xc7   : > { %v503_v6 = vsel %vm5564_vm14, %v2899_v19, %v2900_v20  ;;  %vm5566_vm13 = vmmov %vm5564_vm14  ;;  %v420_v52 = vsel %vm5567_vm7, %v2820_v38, %v2894_v50  ;;  %vm5572_vm15 = vcmask 1043456   ;;  %v2903_v19 = vpop.permute.xlu0 %2902  ;;  %v2909_v61 = vunpack.i.l.bf16 %v2908_v60 }
  0xc8   : > { %v504_v59 = vsel %vm5566_vm13, %v2900_v20, %v5565_v34  ;;  %vm5569_vm9 = vmmov %vm5567_vm7  ;;  %v2513_v41 = vpack.c.bf16 %v502_v33, %v420_v52  ;;  %2484 = vmatprep.subr.msk.bf16.mxu0 %vm5572_vm15, %v960_v4  ;;  %v5577_v4 = vmov 0  ;;  %v2905_v52 = vunpack.i.h.bf16 %v2903_v19 }
  0xc9   : > { %v421_v32 = vsel %vm5569_vm9, %v2894_v50, %v2895_v36  ;;  %vm5571_vm5 = vmmov %vm5567_vm7  ;;  %vm5575_vm7 = vnez %v5545_v40  ;;  %v2910_v50 = vunpack.i.h.bf16 %v2908_v60  ;;  %1011 = vmatpush1.bf16.msra.mxu0 %v979_v58  ;;  %v5587_v5 = vmov 0  ;;  %v2913_v3 = vpop.permute.xlu1 %2912 }
  0xca   : > { %v422_v53 = vsel %vm5571_vm5, %v2895_v36, %v5570_v10  ;;  %vm5573_vm14 = vmmov %vm5572_vm15  ;;  %v2542_v20 = vpack.c.bf16 %v503_v6, %v421_v32  ;;  %vm5579_vm15 = vnez %v5530_v1  ;;  %v5596_v6 = vmov 0 }
  0xcb   : > { %2510 = vmatprep.subr.msk.bf16.mxu1 %vm5573_vm14, %v962_v17  ;;  %vm5574_vm13 = vmmov %vm5573_vm14  ;;  %v2539_v48 = vpack.c.bf16 %v504_v59, %v422_v53  ;;  %2514 = vmatprep.subr.msk.bf16.mxu0 %vm5579_vm15, %v2513_v41  ;;  %v5582_v59 = vmov 0  ;;  %v2516_v17 = vpack.c.bf16 %v3961_v54, %v3980_v22  ;;  %v628_v22 = vpop.permute.xlu0 %627  ;;  %v5598_v29 = vshra.s32 %v3682_v2, 5 }
  0xcc   : > { %v985_v38 = vsel %vm5574_vm13, %v961_v55, 0  ;;  %vm5576_vm5 = vmand %vm3864_vm6, %vm3954_vm12  ;;  %v2904_v55 = vunpack.i.l.bf16 %v2903_v19  ;;  %vm5581_vm13 = vnez %v5505_v14  ;;  %vm5584_vm6 = vcmask 7168  }
  0xcd   : > { %1052 = vmatpush1.bf16.msra.mxu1 %v985_v38  ;;  %vm4059_vm9 = vmpackc.low %vm3868_vm11, %vm5576_vm5  ;;  %v634_v36 = vsel %vm5584_vm6, %v2909_v61, %v2910_v50  ;;  %vm5585_vm5 = vnez %v5535_v28  ;;  %v5601_v32 = vunpack.i.h.bf16 %v3533_v16  ;;  %v2915_v41 = vunpack.i.h.bf16 %v2913_v3 }
  0xce   : > { %v5578_v4 = vsel %vm4059_vm9, 4294967295, %v5577_v4  ;;  %vm5580_vm14 = vmand %vm5568_vm3, %vm3969_vm4  ;;  %2540 = vmatprep.subr.msk.bf16.mxu1 %vm5585_vm5, %v2539_v48  ;;  %v2914_v60 = vunpack.i.l.bf16 %v2913_v3  ;;  %v5604_v2 = vmov 0  ;;  %v5607_v16 = vunpack.i.l.bf16 %v3599_v0 }
  0xcf   : > { %vm4072_vm2 = vmpackc.low %vm5581_vm13, %vm5580_vm14  ;;  %vm5591_vm13 = vcmask 252928   ;;  %v5611_v48 = vmov 0  ;;  %v5616_v0 = vmov 0   ;;  %v5630_v44 = vshra.s32 %v3696_v31, 5 }
  0xd0   : > { %v5583_v59 = vsel %vm4072_vm2, 4294967295, %v5582_v59  ;;  %vm5586_vm15 = vmand %vm3898_vm10, %vm5575_vm7  ;;  %v560_v58 = vsel %vm5591_vm13, %v2850_v49, %v2904_v55 }
  0xd1   : > { %vm4088_vm3 = vmpackc.low %vm3902_vm8, %vm5586_vm15  ;;  %vm5595_vm15 = vmmov 1   ;;  %v2519_v53 = vpack.c.bf16 %v634_v36, %v560_v58  ;;  %v685_v58 = vpop.permute.xlu0 %684 }
  0xd2   : > { %v5588_v5 = vsel %vm4088_vm3, 4294967295, %v5587_v5  ;;  %vm5590_vm14 = vmmov %vm5584_vm6  ;;  %vm5592_vm6 = vcmask 588800  }
  0xd3   : > { %v633_v54 = vsel %vm5590_vm14, %v5589_v27, %v2909_v61  ;;  %2485 = vmatmul.mubr.msk.bf16.vlgmr.msra.gmra.mrb[0].mxu0 %vm5592_vm6, %v3944_v30  ;;  %vm5593_vm5 = vmmov %vm5592_vm6  ;;  %vm5603_vm14 = vnez %v5558_v15 }
  0xd4   : > { %2511 = vmatmul.mubr.msk.bf16.vlgmr.msra.gmra.mrb[0].mxu1 %vm5593_vm5, %v3944_v30  ;;  %vm5594_vm10 = vmmov %vm5591_vm13  ;;  %vm4110_vm13 = vcmp.lt.s32.totalorder %v5598_v29, 31  ;;  %2517 = vmatpush1.bf16.msk.msra.mxu0 %vm3993_vm1, %v2516_v17  ;;  %v5621_v17 = vunpack.i.h.bf16 %v3623_v39 }
  0xd5   : > { %v561_v33 = vsel %vm5594_vm10, %v2904_v55, %v2905_v52  ;;  %vm4104_vm8 = vmpackc.low %vm3923_vm0, %vm5595_vm15  ;;  %2543 = vmatpush1.bf16.msk.msra.mxu1 %vm5603_vm14, %v2542_v20  ;;  %v5613_v20 = vshra.s32 %v3730_v9, 5  ;;  %1116 = vmatprep.mubr.bf16.mxu0 %v5616_v0  ;;  %v5619_v9 = vmov 0 }
  0xd6   : > { %v5597_v6 = vsel %vm4104_vm8, 4294967295, %v5596_v6  ;;  %vm5602_vm5 = vmmov %vm5594_vm10  ;;  %1157 = vmatprep.mubr.bf16.mxu1 %v5616_v0 }
  0xd7   : > { %v559_v10 = vsel %vm5602_vm5, %v5601_v32, %v2850_v49  ;;  %vm4124_vm6 = vmpackc.low %vm3954_vm12, %vm5595_vm15  ;;  %vm4143_vm14 = vcmp.lt.s32.totalorder %v5613_v20, 31  ;;  %v743_v32 = vpop.permute.xlu0 %742 }
  0xd8   : > { %v5605_v2 = vsel %vm4124_vm6, 4294967295, %v5604_v2  ;;  %vm5608_vm10 = vmmov %vm5602_vm5  ;;  %vm5609_vm5 = vcmask 7168  }
  0xd9   : > { %5606 = vst [vmem:[#allocation24_spill] sm:$0xff] %v5605_v2  ;;  %v562_v49 = vsel %vm5608_vm10, %v2905_v52, %v5607_v16  ;;  %v635_v19 = vsel %vm5609_vm5, %v2910_v50, %v628_v22  ;;  %vm5610_vm0 = vmmov %vm5609_vm5  ;;  %v2522_v50 = vpack.c.bf16 %v633_v54, %v559_v10  ;;  %vm5617_vm10 = vcmask 1039360   ;;  %v2918_v54 = vpop.permute.xlu1 %2917  ;;  %v1166_v10 = vld [vmem:[%s4328_s30] sm:$0xff] }
  0xda   : > { %v636_v38 = vsel %vm5610_vm0, %v628_v22, %v3597_v62  ;;  %vm4137_vm1 = vmpackc.low %vm3969_vm4, %vm5595_vm15  ;;  %v692_v62 = vsel %vm5617_vm10, %v2914_v60, %v2915_v41  ;;  %v2548_v55 = vpack.c.bf16 %v635_v19, %v561_v33  ;;  %vm5618_vm0 = vnez %v5561_v11 }
  0xdb   : > { %v5612_v48 = vsel %vm4137_vm1, 4294967295, %v5611_v48  ;;  %v2545_v52 = vpack.c.bf16 %v636_v38, %v562_v49  ;;  %2520 = vmatprep.subr.msk.bf16.mxu0 %vm5618_vm0, %v2519_v53  ;;  %vm4155_vm5 = vmpackc.low %vm5575_vm7, %vm5595_vm15  ;;  %v2525_v27 = vpack.c.bf16 %v692_v62, %v3350_v12  ;;  %v2920_v33 = vunpack.i.h.bf16 %v2918_v54  ;;  %v817_v62 = vpop.permute.xlu0 %816 }
  0xdc   : > { %v5620_v9 = vsel %vm4155_vm5, 4294967295, %v5619_v9  ;;  %vm5622_vm4 = vmmov %vm5617_vm10  ;;  %vm5623_vm10 = vnez %v5497_v56  ;;  %2523 = vmatpush1.bf16.msk.msra.mxu0 %vm4059_vm9, %v2522_v50  ;;  %v2919_v29 = vunpack.i.l.bf16 %v2918_v54  ;;  %v5639_v56 = vshra.s32 %v3745_v35, 5 }
  0xdd   : > { %v691_v36 = vsel %vm5622_vm4, %v5621_v17, %v2914_v60  ;;  %vm775_vm0 = vmand %vm4110_vm13, %vm5623_vm10  ;;  %2546 = vmatprep.subr.msk.bf16.mxu1 %vm4072_vm2, %v2545_v52  ;;  %2526 = vmatprep.subr.msk.bf16.mxu0 %vm4104_vm8, %v2525_v27  ;;  %v2923_v31 = vpop.permute.xlu1 %2922  ;;  %v5643_v35 = vmov 0  ;;  %vm5647_vm9 = vcmask 793600   ;;  %v5649_v16 = vunpack.i.h.bf16 %v3757_v37 }
  0xde   : > { %vm5624_vm12 = vmmov %vm5622_vm4  ;;  %2549 = vmatpush1.bf16.msk.msra.mxu1 %vm4088_vm3, %v2548_v55  ;;  %vm4220_vm10 = vcmp.lt.s32.totalorder %v5639_v56, 31  ;;  %v2925_v34 = vunpack.i.h.bf16 %v2923_v31  ;;  %v2924_v53 = vunpack.i.l.bf16 %v2923_v31  ;;  %v5655_v37 = vmov 0 }
  0xdf   : > { %v693_v3 = vsel %vm5624_vm12, %v2915_v41, %v685_v58  ;;  %vm5625_vm15 = vmmov %vm5622_vm4  ;;  %vm5626_vm12 = vnez %v5532_v51  ;;  %v5633_v51 = vmov 0  ;;  %v5646_v41 = vunpack.i.h.bf16 %v3708_v26 }
  0xe0   : > { %v703_v22 = vsel %vm5625_vm15, %v685_v58, %v3663_v23  ;;  %vm774_vm4 = vmand %vm4143_vm14, %vm3868_vm11  ;;  %v2554_v39 = vpack.c.bf16 %v693_v3, %v3353_v13  ;;  %v5627_v23 = vmov 0  ;;  %vm4194_vm11 = vcmp.lt.s32.totalorder %v5630_v44, 31  ;;  %v875_v58 = vpop.permute.xlu0 %874 }
  0xe1   : > { %v2551_v12 = vpack.c.bf16 %v703_v22, %v3317_v8  ;;  %vm4188_vm15 = vmand %vm4110_vm13, %vm5626_vm12  ;;  %v2528_v13 = vpack.c.bf16 %v691_v36, %v3314_v7  ;;  %v5636_v7 = vmov 0  ;;  %v749_v60 = vsel %vm5647_vm9, %v5646_v41, %v2919_v29  ;;  %v2928_v50 = vpop.permute.xlu1 %2927 }
  0xe2   : > { %v5628_v23 = vsel %vm4188_vm15, 4294967295, %v5627_v23  ;;  %vm4206_vm12 = vmpackc.low %vm4110_vm13, %vm775_vm0  ;;  %vm5642_vm13 = vnez %v5505_v14  ;;  %v2930_v52 = vunpack.i.h.bf16 %v2928_v50  ;;  %v2929_v55 = vunpack.i.l.bf16 %v2928_v50 }
  0xe3   : > { %5629 = vst [vmem:[#allocation25_spill] sm:$0xff] %v5628_v23  ;;  %v5634_v51 = vsel %vm4206_vm12, 4294967295, %v5633_v51  ;;  %2552 = vmatprep.subr.msk.bf16.mxu1 %vm4137_vm1, %v2551_v12  ;;  %vm4214_vm8 = vmpackc.low %vm4143_vm14, %vm774_vm4  ;;  %2529 = vmatpush1.bf16.msk.msra.mxu0 %vm4124_vm6, %v2528_v13 }
  0xe4   : > { %5635 = vst [vmem:[#allocation26_spill] sm:$0xff] %v5634_v51  ;;  %v5637_v7 = vsel %vm4214_vm8, 4294967295, %v5636_v7  ;;  %vm777_vm0 = vmand %vm4194_vm11, %vm5642_vm13  ;;  %2555 = vmatpush1.bf16.msk.msra.mxu1 %vm4155_vm5, %v2554_v39  ;;  %vm5650_vm13 = vcmask 785408   ;;  %vm5652_vm5 = vnez %v5527_v21  ;;  %v5668_v21 = vmov 0 }
  0xe5   : > { %5638 = vst [vmem:[#allocation27_spill] sm:$0xff] %v5637_v7  ;;  %vm4236_vm4 = vmand %vm4220_vm10, %vm5575_vm7  ;;  %v823_v49 = vsel %vm5650_vm13, %v5649_v16, %v2924_v53  ;;  %v1169_v16 = vld [vmem:[%s4328_s30 + $0x18] sm:$0xff]  ;;  %v5709_v7 = vld [vmem:[#allocation12_spill] sm:$0xff] }
  0xe6   : > { %v5644_v35 = vsel %vm4236_vm4, 4294967295, %v5643_v35  ;;  %vm5648_vm6 = vmmov %vm5647_vm9  ;;  %v2534_v38 = vpack.c.bf16 %v823_v49, %v749_v60 }
  0xe7   : > { %5645 = vst [vmem:[#allocation28_spill] sm:$0xff] %v5644_v35  ;;  %v750_v14 = vsel %vm5648_vm6, %v2919_v29, %v2920_v33  ;;  %vm5651_vm1 = vmmov %vm5650_vm13 }
  0xe8   : > { %v824_v19 = vsel %vm5651_vm1, %v2924_v53, %v2925_v34  ;;  %vm776_vm7 = vmand %vm4220_vm10, %vm5652_vm5  ;;  %v825_v17 = vsel %vm5651_vm1, %v2925_v34, %v817_v62  ;;  %v1168_v53 = vld [vmem:[%s4328_s30 + $0x10] sm:$0xff] }
  0xe9   : > { %v2531_v40 = vpack.c.bf16 %v824_v19, %v750_v14  ;;  %vm5653_vm3 = vmmov %vm5648_vm6 }
  0xea   : > { %v751_v20 = vsel %vm5653_vm3, %v2920_v33, %v743_v32  ;;  %vm5654_vm2 = vmmov %vm5653_vm3  ;;  %vm5659_vm3 = vnez %v5538_v42 }
  0xeb   : > { %v761_v26 = vsel %vm5654_vm2, %v743_v32, %v3755_v18  ;;  %vm4257_vm9 = vmpackc.low %vm4194_vm11, %vm777_vm0  ;;  %v2560_v54 = vpack.c.bf16 %v825_v17, %v751_v20  ;;  %2532 = vmatprep.subr.msk.bf16.mxu0 %vm4206_vm12, %v2531_v40  ;;  %v4330_v32 = vpop.permute.xlu1 %970 }
  0xec   : > { %v5656_v37 = vsel %vm4257_vm9, 4294967295, %v5655_v37  ;;  %vm5658_vm6 = vmmov %vm5651_vm1  ;;  %2535 = vmatpush1.bf16.msk.msra.mxu0 %vm4214_vm8, %v2534_v38  ;;  %vm5667_vm1 = vnez %v5543_v46  ;;  %v5672_v46 = vunpack.i.l.bf16 %v3854_v24 }
  0xed   : > { %5657 = vst [vmem:[#allocation29_spill] sm:$0xff] %v5656_v37  ;;  %v835_v36 = vsel %vm5658_vm6, %v817_v62, %v3856_v43  ;;  %vm4268_vm2 = vmand %vm4143_vm14, %vm5659_vm3  ;;  %v5662_v43 = vmov 0  ;;  %vm5665_vm14 = vcmask 777216   ;;  %v5892_v37 = vld [vmem:[#allocation17_spill] sm:$0xff] }
  0xee   : > { %v2557_v27 = vpack.c.bf16 %v835_v36, %v761_v26  ;;  %vm4281_vm0 = vmpackc.low %vm4220_vm10, %vm776_vm7  ;;  %v881_v42 = vsel %vm5665_vm14, %v3927_v25, %v2929_v55 }
  0xef   : > { %v5663_v43 = vsel %vm4281_vm0, 4294967295, %v5662_v43  ;;  %vm5666_vm13 = vmmov %vm5665_vm14  ;;  %v922_v3 = vsel %vm4268_vm2, %v881_v42, 0.0 }
  0xf0   : > { %5664 = vst [vmem:[#allocation30_spill] sm:$0xff] %v5663_v43  ;;  %v882_v61 = vsel %vm5666_vm13, %v2929_v55, %v2930_v52  ;;  %vm4294_vm6 = vmand %vm4194_vm11, %vm5667_vm1  ;;  %2558 = vmatprep.subr.msk.bf16.mxu1 %vm4257_vm9, %v2557_v27  ;;  %v963_v44 = vpack.c.bf16 %v922_v3, %v922_v3  ;;  %vm5674_vm11 = vcmask 1043456   ;;  %v5865_v43 = vld [vmem:[#allocation6_spill] sm:$0xff] }
  0xf1   : > { %v5669_v21 = vsel %vm4294_vm6, 4294967295, %v5668_v21  ;;  %v923_v25 = vsel %vm4188_vm15, %v882_v61, 0.0  ;;  %vm5671_vm5 = vmmov %vm5666_vm13  ;;  %2561 = vmatpush1.bf16.msk.msra.mxu1 %vm4281_vm0, %v2560_v54  ;;  %vm5678_vm13 = vcmask 588800  }
  0xf2   : > { %5670 = vst [vmem:[#allocation31_spill] sm:$0xff] %v5669_v21  ;;  %v883_v22 = vsel %vm5671_vm5, %v2930_v52, %v875_v58  ;;  %vm5673_vm10 = vmmov %vm5671_vm5  ;;  %v964_v39 = vpack.c.bf16 %v923_v25, %v923_v25  ;;  %v1167_v52 = vld [vmem:[%s4328_s30 + $0x8] sm:$0xff]  ;;  %vm5688_vm5 = vcmask 269312   ;;  %v5879_v21 = vld [vmem:[#allocation21_spill] sm:$0xff] }
  0xf3   : > { %v893_v12 = vsel %vm5673_vm10, %v875_v58, %v5672_v46  ;;  %v924_v8 = vsel %vm4236_vm4, %v883_v22, 0.0  ;;  %vm5675_vm7 = vmmov %vm5674_vm11  ;;  %v1170_v58 = vld [vmem:[%s4328_s30 + $0x20] sm:$0xff]  ;;  %vm5689_vm10 = vcmask 261120  }
  0xf4   : > { %v925_v13 = vsel %vm4294_vm6, %v893_v12, 0.0  ;;  %v965_v33 = vpack.c.bf16 %v924_v8, %v924_v8  ;;  %2536 = vmatprep.subr.msk.bf16.mxu0 %vm5674_vm11, %v964_v39  ;;  %v991_v24 = vsel %vm5675_vm7, %v963_v44, 0  ;;  %vm5676_vm3 = vmmov %vm5675_vm7  ;;  %vm5690_vm11 = vnez %v5424_v57 }
  0xf5   : > { %v966_v29 = vpack.c.bf16 %v925_v13, %v925_v13  ;;  %1093 = vmatpush1.bf16.msra.mxu0 %v991_v24  ;;  %vm5677_vm14 = vmmov %vm5676_vm3  ;;  %v1172_v24 = vld [vmem:[%s4328_s30 + $0x30] sm:$0xff] }
  0xf6   : > { %v997_v31 = vsel %vm5677_vm14, %v965_v33, 0  ;;  %vm5679_vm1 = vmmov %vm5678_vm13 }
  0xf7   : > { %2562 = vmatprep.subr.msk.bf16.mxu1 %vm5676_vm3, %v966_v29  ;;  %vm5691_vm7 = vmmov %vm5688_vm5 }
  0xf8   : > { %1134 = vmatpush1.bf16.msra.mxu1 %v997_v31  ;;  %2537 = vmatmul.mubr.msk.bf16.vlgmr.msra.gmra.mrb[4].mxu0 %vm5678_vm13, %v3944_v30  ;;  %v1173_v31 = vld [vmem:[%s4328_s30 + $0x38] sm:$0xff]  ;;  %vm5692_vm3 = vmmov %vm5688_vm5 }
  0xf9   : > { %1628 = vmatprep.mubr.bf16.mxu0 %v5616_v0  ;;  %vm5693_vm14 = vmmov %vm5689_vm10 }
  0xfa   : > { %vm5694_vm13 = vmmov %vm5689_vm10 }
  0xfb   : > { %2563 = vmatmul.mubr.msk.bf16.vlgmr.msra.gmra.mrb[4].mxu1 %vm5679_vm1, %v3944_v30  ;;  %vm5695_vm1 = vnez %v5417_v45 }
  0xfc   : > { %1669 = vmatprep.mubr.bf16.mxu1 %v5616_v0 }
 0x1a6   : > { %v1036_v56 = vpop.f32.mrb[0].mxu0 }
 0x1a7   : > { %v1077_v34 = vpop.f32.mrb[0].mxu1  ;;  %v1037_v41 = vadd.f32 %v1036_v56, %v4330_v32  ;;  %v1038_v60 = vpop.f32.mrb[1].mxu0 }
 0x1a8   : > { %v1078_v30 = vadd.f32 %v1077_v34, %v4330_v32  ;;  %v1079_v14 = vpop.f32.mrb[1].mxu1  ;;  %v1040_v19 = vpop.f32.mrb[2].mxu0  ;;  %v1039_v26 = vadd.f32 %v1038_v60, %v4330_v32 }
 0x1a9   : > { %v1080_v49 = vadd.f32 %v1079_v14, %v4330_v32  ;;  %v1081_v40 = vpop.f32.mrb[2].mxu1  ;;  %v4338_v38 = vadd.f32 %v1166_v10, %v1037_v41  ;;  %v1041_v50 = vpop.f32.mrb[3].mxu0  ;;  %v1183_v19 = vld [vmem:[%s5220_s5] sm:$0xff] }
 0x1aa   : > { %v4340_v20 = vadd.f32 %v1168_v53, %v1078_v30  ;;  %v1082_v62 = vpop.f32.mrb[3].mxu1  ;;  %v4352_v36 = vadd.f32 %v1167_v52, %v1039_v26  ;;  %v1171_v30 = vld [vmem:[%s4328_s30 + $0x28] sm:$0xff] }
 0x1ab   : > { %5680 = vst [vmem:[#allocation32_spill] sm:$0xff] %v4338_v38  ;;  %v4344_v55 = vadd.f32 %v1169_v16, %v1080_v49  ;;  %1441 = vrot.lane.b32.xlu0 %v4338_v38, %s3222_s22  ;;  %1400 = vrot.lane.b32.xlu1 %v4338_v38, %s3221_s21  ;;  %v2668_v49 = vld [vmem:[#allocation2] ss:$0 sm:$0xff] }
 0x1ac   : > { %5681 = vst [vmem:[#allocation33_spill] sm:$0xff] %v4340_v20  ;;  %5683 = vst [vmem:[#allocation35_spill] sm:$0xff] %v4352_v36  ;;  %v2942_v27 = vpack.i.bf16 %v4338_v38, %v4352_v36  ;;  %v2977_v42 = vpack.i.bf16 %v4352_v36, %v4340_v20 }
 0x1ad   : > { %5682 = vst [vmem:[#allocation34_spill] sm:$0xff] %v4344_v55  ;;  %v2932_v17 = vpack.i.bf16 %v4344_v55, %v4340_v20 }
 0x1af   : > { %2933 = vrot.lane.b32.xlu0 %v2932_v17, %s3217_s17  ;;  %2938 = vrot.lane.b32.xlu1 %v2932_v17, %s3216_s16 }
 0x1b3   : > { %2943 = vrot.lane.b32.xlu0 %v2942_v27, %s3217_s17  ;;  %2948 = vrot.lane.b32.xlu1 %v2942_v27, %s3216_s16 }
 0x1b7   : > { %2953 = vrot.lane.b32.xlu0 %v2932_v17, %s3218_s18  ;;  %2958 = vrot.lane.b32.xlu1 %v2932_v17, %s3219_s19 }
 0x1bb   : > { %2963 = vrot.lane.b32.xlu0 %v2942_v27, %s3218_s18  ;;  %2968 = vrot.lane.b32.xlu1 %v2942_v27, %s3219_s19 }
 0x1bf   : > { %2978 = vrot.lane.b32.xlu0 %v2977_v42, %s3221_s21  ;;  %2973 = vrot.lane.b32.xlu1 %v2977_v42, %s3220_s20 }
 0x1c3   : > { %2988 = vrot.lane.b32.xlu0 %v2932_v17, %s3223_s23  ;;  %2983 = vrot.lane.b32.xlu1 %v2977_v42, %s3222_s22 }
 0x1cb   : > { %v1118_v54 = vpop.f32.mrb[4].mxu0 }
 0x1cc   : > { %v1119_v61 = vadd.f32 %v1118_v54, %v4330_v32  ;;  %v1120_v25 = vpop.f32.mrb[5].mxu0 }
 0x1cd   : > { %v1122_v3 = vpop.f32.mrb[6].mxu0  ;;  %v1121_v41 = vadd.f32 %v1120_v25, %v4330_v32 }
 0x1ce   : > { %v1159_v22 = vpop.f32.mrb[4].mxu1  ;;  %v1123_v46 = vpop.f32.mrb[7].mxu0  ;;  %v4370_v39 = vadd.f32 %v1170_v58, %v1119_v61 }
 0x1cf   : > { %v1161_v12 = vpop.f32.mrb[5].mxu1  ;;  %v1160_v13 = vadd.f32 %v1159_v22, %v4330_v32  ;;  %v4398_v60 = vadd.f32 %v1171_v30, %v1121_v41 }
 0x1d0   : > { %5684 = vst [vmem:[#allocation36_spill] sm:$0xff] %v4370_v39  ;;  %v1163_v44 = vpop.f32.mrb[6].mxu1  ;;  %v1162_v33 = vadd.f32 %v1161_v12, %v4330_v32  ;;  %v2992_v29 = vpack.i.bf16 %v4370_v39, %v4344_v55  ;;  %v3007_v34 = vpack.i.bf16 %v4338_v38, %v4370_v39 }
 0x1d1   : > { %v1164_v8 = vpop.f32.mrb[7].mxu1  ;;  %v4382_v56 = vadd.f32 %v1172_v24, %v1160_v13  ;;  %5687 = vst [vmem:[#allocation39_spill] sm:$0xff] %v4398_v60  ;;  %v3042_v16 = vpack.i.bf16 %v4370_v39, %v4398_v60 }
 0x1d2   : > { %2993 = vrot.lane.b32.xlu0 %v2992_v29, %s3220_s20  ;;  %3003 = vrot.lane.b32.xlu1 %v2992_v29, %s3222_s22  ;;  %v4384_v10 = vadd.f32 %v1173_v31, %v1162_v33 }
 0x1d3   : > { %5685 = vst [vmem:[#allocation37_spill] sm:$0xff] %v4382_v56 }
 0x1d4   : > { %5686 = vst [vmem:[#allocation38_spill] sm:$0xff] %v4384_v10  ;;  %v3017_v53 = vpack.i.bf16 %v4382_v56, %v4384_v10  ;;  %v3032_v14 = vpack.i.bf16 %v4384_v10, %v4338_v38  ;;  %v3067_v32 = vpack.i.bf16 %v4384_v10, %v4382_v56 }
 0x1d6   : > { %2998 = vrot.lane.b32.xlu0 %v2992_v29, %s3221_s21  ;;  %3008 = vrot.lane.b32.xlu1 %v3007_v34, %s3223_s23 }
 0x1da   : > { %3018 = vrot.lane.b32.xlu0 %v3017_v53, %s3216_s16  ;;  %3013 = vrot.lane.b32.xlu1 %v3017_v53, %s3217_s17 }
 0x1de   : > { %3023 = vrot.lane.b32.xlu0 %v3017_v53, %s3218_s18  ;;  %3028 = vrot.lane.b32.xlu1 %v3017_v53, %s3219_s19 }
 0x1e2   : > { %3033 = vrot.lane.b32.xlu0 %v3032_v14, %s3220_s20  ;;  %1484 = vrot.lane.b32.xlu1 %v4352_v36, %s3223_s23 }
 0x1e6   : > { %3043 = vrot.lane.b32.xlu0 %v3042_v16, %s3216_s16  ;;  %3038 = vrot.lane.b32.xlu1 %v3042_v16, %s3217_s17 }
 0x1ea   : > { %3048 = vrot.lane.b32.xlu0 %v3042_v16, %s3218_s18  ;;  %3053 = vrot.lane.b32.xlu1 %v3042_v16, %s3219_s19 }
 0x1ee   : > { %1371 = vrot.lane.b32.xlu0 %v4382_v56, %s3220_s20  ;;  %3058 = vrot.lane.b32.xlu1 %v3017_v53, %s3221_s21 }
 0x1f2   : > { %3063 = vrot.lane.b32.xlu0 %v3017_v53, %s3222_s22  ;;  %3068 = vrot.lane.b32.xlu1 %v3067_v32, %s3223_s23 }
 0x1f6   : > { %1369 = vrot.lane.b32.xlu0 %v4398_v60, %s3220_s20  ;;  %1410 = vrot.lane.b32.xlu1 %v4398_v60, %s3221_s21 }
 0x1fa   : > { %1451 = vrot.lane.b32.xlu0 %v4398_v60, %s3222_s22  ;;  %1492 = vrot.lane.b32.xlu1 %v4398_v60, %s3223_s23 }
 0x1fe   : > { %1774 = vperm.xlu1 %2931, %v2668_v49   ;;  %1566 = vperm.xlu0 %3072, %v1183_v19  }
 0x21d   : > { %v4429_v40 = vpop.permute.xlu0 %1441  ;;  %v4431_v26 = vpop.permute.xlu1 %1400 }
 0x221   : > { %v4433_v50 = vpop.permute.xlu0 %2933  ;;  %v4435_v62 = vpop.permute.xlu1 %2938 }
 0x222   : > { %v5356_v52 = vunpack.i.h.bf16 %v4433_v50  ;;  %v2935_v17 = vunpack.i.l.bf16 %v4433_v50  ;;  %v5357_v27 = vunpack.i.h.bf16 %v4435_v62  ;;  %v2940_v54 = vunpack.i.l.bf16 %v4435_v62 }
 0x224   : > { %v1214_v42 = vsel %vm5688_vm5, %v2935_v17, %v5356_v52  ;;  %v1255_v61 = vsel %vm5689_vm10, %v2940_v54, %v5357_v27  ;;  %vm5696_vm5 = vnez %v5427_v63  ;;  %vm5697_vm10 = vcmask 252928  }
 0x225   : > { %v2591_v58 = vpack.c.bf16 %v1255_v61, %v1214_v42  ;;  %v4447_v25 = vpop.permute.xlu0 %2943  ;;  %v4449_v3 = vpop.permute.xlu1 %2948 }
 0x226   : > { %v5358_v22 = vunpack.i.h.bf16 %v4447_v25  ;;  %v2945_v46 = vunpack.i.l.bf16 %v4447_v25  ;;  %v5359_v12 = vunpack.i.h.bf16 %v4449_v3  ;;  %v2950_v44 = vunpack.i.l.bf16 %v4449_v3 }
 0x227   : > { %2592 = vmatprep.subr.msk.bf16.mxu1 %vm5690_vm11, %v2591_v58  ;;  %v5699_v58 = vld [vmem:[#allocation8_spill] sm:$0xff]  ;;  %vm5789_vm11 = vcmask 269312  }
 0x228   : > { %v1212_v8 = vsel %vm5691_vm7, %v5358_v22, %v2945_v46  ;;  %v1213_v13 = vsel %vm5692_vm3, %v2945_v46, %v2935_v17  ;;  %v1253_v33 = vsel %vm5693_vm14, %v5359_v12, %v2950_v44  ;;  %v1254_v29 = vsel %vm5694_vm13, %v2950_v44, %v2940_v54  ;;  %vm5701_vm14 = vmmov %vm5697_vm10 }
 0x229   : > { %v2565_v24 = vpack.c.bf16 %v1253_v33, %v1212_v8  ;;  %v2594_v31 = vpack.c.bf16 %v1254_v29, %v1213_v13  ;;  %v4465_v34 = vpop.permute.xlu0 %2953  ;;  %v4467_v53 = vpop.permute.xlu1 %2958  ;;  %vm5698_vm7 = vcmask 7168   ;;  %vm5700_vm3 = vnez %v5699_v58  ;;  %v5703_v29 = vld [vmem:[#allocation9_spill] sm:$0xff] }
 0x22a   : > { %v5355_v41 = vunpack.i.h.bf16 %v4465_v34  ;;  %v2955_v30 = vunpack.i.l.bf16 %v4465_v34  ;;  %v5354_v14 = vunpack.i.h.bf16 %v4467_v53  ;;  %v2960_v16 = vunpack.i.l.bf16 %v4467_v53  ;;  %vm5702_vm13 = vmmov %vm5698_vm7 }
 0x22b   : > { %2566 = vmatprep.subr.msk.bf16.mxu0 %vm5695_vm1, %v2565_v24  ;;  %2595 = vmatpush1.bf16.msk.msra.mxu1 %vm5696_vm5, %v2594_v31 }
 0x22c   : > { %v1296_v32 = vsel %vm5697_vm10, %v2955_v30, %v5355_v41  ;;  %v1337_v49 = vsel %vm5698_vm7, %v2960_v16, %v5354_v14  ;;  %vm5704_vm10 = vnez %v5703_v29  ;;  %vm5705_vm7 = vcmask 777216  }
 0x22d   : > { %v2597_v19 = vpack.c.bf16 %v1337_v49, %v1296_v32  ;;  %v4483_v17 = vpop.permute.xlu0 %2963  ;;  %v4485_v54 = vpop.permute.xlu1 %2968 }
 0x22e   : > { %v2965_v42 = vunpack.i.l.bf16 %v4483_v17  ;;  %v2970_v61 = vunpack.i.l.bf16 %v4485_v54  ;;  %v2966_v22 = vunpack.i.h.bf16 %v4483_v17  ;;  %v2971_v17 = vunpack.i.h.bf16 %v4485_v54 }
 0x22f   : > { %2598 = vmatprep.subr.msk.bf16.mxu1 %vm5700_vm3, %v2597_v19  ;;  %vm5716_vm3 = vcmask 793600  }
 0x230   : > { %v1295_v46 = vsel %vm5701_vm14, %v2965_v42, %v2955_v30  ;;  %v1336_v44 = vsel %vm5702_vm13, %v2970_v61, %v2960_v16  ;;  %vm5706_vm14 = vcmask 1039360   ;;  %vm5718_vm5 = vmmov %vm5716_vm3 }
 0x231   : > { %v2600_v8 = vpack.c.bf16 %v1336_v44, %v1295_v46  ;;  %v4493_v13 = vpop.permute.xlu0 %2978  ;;  %v4495_v33 = vpop.permute.xlu1 %2973  ;;  %vm5707_vm13 = vmmov %vm5706_vm14 }
 0x232   : > { %v2975_v16 = vunpack.i.l.bf16 %v4495_v33  ;;  %v5715_v57 = vunpack.i.l.bf16 %v4493_v13 }
 0x233   : > { %2601 = vmatpush1.bf16.msk.msra.mxu1 %vm5704_vm10, %v2600_v8 }
 0x235   : > { %v4499_v24 = vpop.permute.xlu0 %2988  ;;  %v4501_v31 = vpop.permute.xlu1 %2983 }
 0x236   : > { %v2991_v32 = vunpack.i.h.bf16 %v4499_v24  ;;  %v5362_v49 = vunpack.i.l.bf16 %v4499_v24  ;;  %v2985_v12 = vunpack.i.l.bf16 %v4501_v31 }
 0x238   : > { %v1500_v14 = vsel %vm5705_vm7, %v5362_v49, %v2991_v32  ;;  %vm5708_vm7 = vcmask 785408  }
 0x239   : > { %vm5714_vm10 = vmmov %vm5708_vm7 }
 0x244   : > { %v4505_v19 = vpop.permute.xlu0 %2993  ;;  %v4507_v30 = vpop.permute.xlu1 %3003 }
 0x245   : > { %v5364_v46 = vunpack.i.h.bf16 %v4505_v19  ;;  %v2995_v44 = vunpack.i.l.bf16 %v4505_v19  ;;  %v3005_v8 = vunpack.i.l.bf16 %v4507_v30 }
 0x247   : > { %v1377_v41 = vsel %vm5706_vm14, %v2975_v16, %v2995_v44  ;;  %v1378_v52 = vsel %vm5707_vm13, %v2995_v44, %v5364_v46  ;;  %v1459_v27 = vsel %vm5708_vm7, %v2985_v12, %v3005_v8  ;;  %vm5710_vm14 = vnez %v5709_v7 }
 0x248   : > { %v2603_v29 = vpack.c.bf16 %v1378_v52, %v4344_v55  ;;  %v2606_v58 = vpack.c.bf16 %v1377_v41, %v4340_v20  ;;  %v4525_v63 = vpop.permute.xlu0 %2998  ;;  %v4527_v45 = vpop.permute.xlu1 %3008  ;;  %v5711_v52 = vld [vmem:[#allocation22_spill] sm:$0xff]  ;;  %v5713_v55 = vunpack.i.h.bf16 %v4507_v30  ;;  %vm5720_vm7 = vcmask 777216  }
 0x249   : > { %v3000_v44 = vunpack.i.l.bf16 %v4525_v63  ;;  %vm5712_vm13 = vnez %v5711_v52  ;;  %v5717_v46 = vunpack.i.h.bf16 %v4525_v63  ;;  %v5719_v51 = vunpack.i.l.bf16 %v4527_v45 }
 0x24a   : > { %2604 = vmatprep.subr.msk.bf16.mxu1 %vm5710_vm14, %v2603_v29  ;;  %v1517_v41 = vsel %vm5712_vm13, %v1500_v14, 0.0  ;;  %v1460_v49 = vsel %vm5714_vm10, %v3005_v8, %v5713_v55  ;;  %v5721_v29 = vld [vmem:[#allocation13_spill] sm:$0xff]  ;;  %vm5723_vm13 = vcmask 252928   ;;  %v5724_v55 = vld [vmem:[#allocation18_spill] sm:$0xff] }
 0x24b   : > { %v1418_v20 = vsel %vm5716_vm3, %v5715_v57, %v3000_v44  ;;  %v1419_v54 = vsel %vm5718_vm5, %v3000_v44, %v5717_v46  ;;  %v1501_v7 = vsel %vm5720_vm7, %v2991_v32, %v5719_v51  ;;  %vm5722_vm14 = vnez %v5721_v29  ;;  %v5733_v51 = vld [vmem:[#allocation19_spill] sm:$0xff]  ;;  %v5741_v29 = vld [vmem:[#allocation6_spill] sm:$0xff] }
 0x24c   : > { %2607 = vmatpush1.bf16.msk.msra.mxu1 %vm5722_vm14, %v2606_v58  ;;  %v1294_v14 = vsel %vm5723_vm13, %v2966_v22, %v2965_v42  ;;  %v2609_v52 = vpack.c.bf16 %v1460_v49, %v1419_v54  ;;  %v2612_v2 = vpack.c.bf16 %v1459_v27, %v1418_v20  ;;  %vm5725_vm10 = vnez %v5724_v55  ;;  %v4556_v23 = vpop.permute.xlu0 %3018  ;;  %v4558_v57 = vpop.permute.xlu1 %3013  ;;  %v5727_v20 = vld [vmem:[#allocation16_spill] sm:$0xff] }
 0x24d   : > { %v1518_v8 = vsel %vm5725_vm10, %v1501_v7, 0.0  ;;  %v3020_v44 = vunpack.i.l.bf16 %v4556_v23  ;;  %v3015_v32 = vunpack.i.l.bf16 %v4558_v57  ;;  %vm5726_vm5 = vcmask 7168  }
 0x24e   : > { %v1335_v58 = vsel %vm5726_vm5, %v2971_v17, %v2970_v61  ;;  %v2976_v42 = vunpack.i.h.bf16 %v4495_v33  ;;  %vm5728_vm3 = vnez %v5727_v20  ;;  %v1559_v7 = vpack.c.bf16 %v1518_v8, %v1518_v8  ;;  %v1182_v61 = vld [vmem:[%s5219_s4] sm:$0xff] }
 0x24f   : > { %2610 = vmatprep.subr.msk.bf16.mxu1 %vm5728_vm3, %v2609_v52  ;;  %v1558_v27 = vpack.c.bf16 %v1517_v41, %v1517_v41  ;;  %v5729_v49 = vunpack.i.h.bf16 %v4449_v3  ;;  %vm5730_vm13 = vcmask 261120   ;;  %v5731_v46 = vunpack.i.h.bf16 %v4447_v25 }
 0x250   : > { %vm5732_vm7 = vcmask 269312   ;;  %vm5734_vm10 = vnez %v5733_v51  ;;  %v5735_v33 = vunpack.i.h.bf16 %v4556_v23  ;;  %vm5736_vm5 = vmmov %vm5730_vm13  ;;  %v5737_v41 = vunpack.i.h.bf16 %v4558_v57  ;;  %v4587_v25 = vpop.permute.xlu1 %3028 }
 0x251   : > { %v1268_v54 = vsel %vm5730_vm13, %v3020_v44, %v5729_v49  ;;  %v1227_v55 = vsel %vm5732_vm7, %v3015_v32, %v5731_v46  ;;  %2613 = vmatpush1.bf16.msk.msra.mxu1 %vm5734_vm10, %v2612_v2  ;;  %vm5738_vm3 = vmmov %vm5732_vm7  ;;  %v4585_v49 = vpop.permute.xlu0 %3023  ;;  %vm5739_vm13 = vcmask 1043456   ;;  %v2571_v2 = vpack.c.bf16 %v1335_v58, %v1294_v14 }
 0x252   : > { %v1259_v52 = vsel %vm5736_vm5, %v5735_v33, %v3020_v44  ;;  %v1218_v3 = vsel %vm5738_vm3, %v5737_v41, %v3015_v32  ;;  %v2568_v8 = vpack.c.bf16 %v1268_v54, %v1227_v55  ;;  %2614 = vmatprep.subr.msk.bf16.mxu1 %vm5739_vm13, %v1559_v7  ;;  %v2986_v46 = vunpack.i.h.bf16 %v4501_v31  ;;  %vm5743_vm5 = vmmov %vm5739_vm13  ;;  %v5746_v54 = vld [vmem:[#allocation7_spill] sm:$0xff] }
 0x253   : > { %v3025_v51 = vunpack.i.l.bf16 %v4585_v49  ;;  %v3030_v20 = vunpack.i.l.bf16 %v4587_v25  ;;  %v2981_v44 = vunpack.i.h.bf16 %v4493_v13  ;;  %vm5740_vm7 = vcmask 1039360  }
 0x254   : > { %v1376_v33 = vsel %vm5740_vm7, %v2976_v42, %v2975_v16  ;;  %vm5742_vm3 = vnez %v5741_v29  ;;  %v1579_v55 = vsel %vm5743_vm5, %v1558_v27, 0  ;;  %v4598_v32 = vpack.c.bf16 %v1182_v61, %v1182_v61  ;;  %v1485_v29 = vpop.permute.xlu1 %1484 }
 0x255   : > { %2569 = vmatpush1.bf16.msk.msra.mxu0 %vm5742_vm3, %v2568_v8  ;;  %v5375_v7 = vunpack.i.h.bf16 %v4527_v45  ;;  %v2643_v14 = vpack.c.bf16 %v1259_v52, %v1218_v3  ;;  %vm5744_vm13 = vcmask 252928   ;;  %vm5745_vm10 = vcmask 7168   ;;  %1646 = vmatpush1.bf16.msra.mxu1 %v1579_v55  ;;  %v4605_v16 = vpop.permute.xlu0 %3033 }
 0x256   : > { %v1309_v31 = vsel %vm5744_vm13, %v3025_v51, %v2966_v22  ;;  %v1350_v58 = vsel %vm5745_vm10, %v3030_v20, %v2971_v17  ;;  %vm5747_vm14 = vnez %v5746_v54  ;;  %vm5748_vm7 = vcmask 785408  }
 0x257   : > { %2572 = vmatprep.subr.msk.bf16.mxu0 %vm5747_vm14, %v2571_v2  ;;  %v2574_v41 = vpack.c.bf16 %v1350_v58, %v1309_v31  ;;  %v1458_v8 = vsel %vm5748_vm7, %v2986_v46, %v2985_v12  ;;  %v3035_v27 = vunpack.i.l.bf16 %v4605_v16  ;;  %vm5749_vm5 = vcmask 777216   ;;  %v5753_v2 = vld [vmem:[#allocation10_spill] sm:$0xff] }
 0x258   : > { %v1498_v61 = vsel %vm5749_vm5, %v5375_v7, %v1485_v29  ;;  %v5750_v22 = vunpack.i.l.bf16 %v4499_v24  ;;  %vm5751_vm13 = vmmov %vm5749_vm5  ;;  %vm5752_vm10 = vnez %v5535_v28  ;;  %v2577_v52 = vpack.c.bf16 %v1376_v33, %v4352_v36 }
 0x259   : > { %2644 = vmatprep.subr.msk.bf16.mxu1 %vm5752_vm10, %v2643_v14  ;;  %v3026_v3 = vunpack.i.h.bf16 %v4585_v49  ;;  %vm5754_vm14 = vnez %v5753_v2  ;;  %v5755_v12 = vunpack.i.l.bf16 %v4493_v13  ;;  %vm5756_vm7 = vcmask 793600   ;;  %v5760_v14 = vld [vmem:[#allocation21_spill] sm:$0xff] }
 0x25a   : > { %v1499_v17 = vsel %vm5751_vm13, %v1485_v29, %v5750_v22  ;;  %2575 = vmatpush1.bf16.msk.msra.mxu0 %vm5754_vm14, %v2574_v41  ;;  %vm5757_vm5 = vcmask 785408   ;;  %v3031_v24 = vunpack.i.h.bf16 %v4587_v25  ;;  %vm5758_vm13 = vcmask 1039360   ;;  %v5762_v41 = vld [vmem:[#allocation17_spill] sm:$0xff]  ;;  %v5764_v22 = vld [vmem:[#allocation11_spill] sm:$0xff] }
 0x25b   : > { %v1417_v55 = vsel %vm5756_vm7, %v2981_v44, %v5755_v12  ;;  %v1457_v31 = vsel %vm5757_vm5, %v4429_v40, %v2986_v46  ;;  %v1375_v29 = vsel %vm5758_vm13, %v3035_v27, %v2976_v42  ;;  %vm5759_vm10 = vcmask 588800   ;;  %v3044_v46 = vpop.permute.xlu0 %3043  ;;  %v3039_v12 = vpop.permute.xlu1 %3038 }
 0x25c   : > { %2615 = vmatmul.mubr.msk.bf16.vlgmr.msra.gmra.mrb[8].mxu1 %vm5759_vm10, %v4598_v32  ;;  %v2583_v33 = vpack.c.bf16 %v1458_v8, %v1417_v55  ;;  %v2580_v49 = vpack.c.bf16 %v1375_v29, %v4338_v38  ;;  %vm5761_vm3 = vnez %v5760_v14  ;;  %vm5763_vm14 = vnez %v5762_v41 }
 0x25d   : > { %v1515_v58 = vsel %vm5761_vm3, %v1498_v61, 0.0  ;;  %v1516_v13 = vsel %vm5763_vm14, %v1499_v17, 0.0  ;;  %vm5765_vm7 = vnez %v5764_v22  ;;  %1751 = vmatprep.mubr.bf16.mxu1 %v5616_v0  ;;  %v3046_v42 = vunpack.i.h.bf16 %v3044_v46  ;;  %v5768_v61 = vld [vmem:[#allocation14_spill] sm:$0xff] }
 0x25e   : > { %2578 = vmatprep.subr.msk.bf16.mxu0 %vm5765_vm7, %v2577_v52  ;;  %v3045_v25 = vunpack.i.l.bf16 %v3044_v46  ;;  %v3041_v7 = vunpack.i.h.bf16 %v3039_v12  ;;  %v3040_v36 = vunpack.i.l.bf16 %v3039_v12  ;;  %vm5766_vm10 = vcmask 793600   ;;  %v5773_v46 = vld [vmem:[#allocation15_spill] sm:$0xff] }
 0x25f   : > { %v1416_v8 = vsel %vm5766_vm10, %v4431_v26, %v2981_v44  ;;  %vm5767_vm5 = vcmask 252928   ;;  %vm5769_vm13 = vnez %v5768_v61  ;;  %vm5770_vm14 = vcmask 7168   ;;  %v3049_v61 = vpop.permute.xlu0 %3048 }
 0x260   : > { %v1300_v55 = vsel %vm5767_vm5, %v3026_v3, %v3025_v51  ;;  %2581 = vmatpush1.bf16.msk.msra.mxu0 %vm5769_vm13, %v2580_v49  ;;  %v1341_v17 = vsel %vm5770_vm14, %v3031_v24, %v3030_v20  ;;  %v3036_v52 = vunpack.i.h.bf16 %v4605_v16  ;;  %v1556_v29 = vpack.c.bf16 %v1515_v58, %v1515_v58  ;;  %v3054_v20 = vpop.permute.xlu1 %3053 }
 0x261   : > { %v5771_v38 = vunpack.i.h.bf16 %v4556_v23  ;;  %vm5772_vm7 = vcmask 261120   ;;  %vm5774_vm3 = vnez %v5773_v46  ;;  %v2586_v12 = vpack.c.bf16 %v1457_v31, %v1416_v8  ;;  %v5779_v46 = vld [vmem:[#allocation20_spill] sm:$0xff] }
 0x262   : > { %2584 = vmatprep.subr.msk.bf16.mxu0 %vm5774_vm3, %v2583_v33  ;;  %v1557_v41 = vpack.c.bf16 %v1516_v13, %v1516_v13  ;;  %vm5775_vm10 = vmmov %vm5772_vm7  ;;  %v5776_v51 = vunpack.i.h.bf16 %v4558_v57  ;;  %vm5777_vm5 = vcmask 269312   ;;  %v3051_v22 = vunpack.i.h.bf16 %v3049_v61 }
 0x263   : > { %v1258_v28 = vsel %vm5772_vm7, %v3045_v25, %v5771_v38  ;;  %v1257_v44 = vsel %vm5775_vm10, %v3046_v42, %v3045_v25  ;;  %vm5778_vm14 = vmmov %vm5777_vm5  ;;  %v3050_v23 = vunpack.i.l.bf16 %v3049_v61  ;;  %v2649_v2 = vpack.c.bf16 %v1341_v17, %v1300_v55 }
 0x264   : > { %v1217_v49 = vsel %vm5777_vm5, %v3040_v36, %v5776_v51  ;;  %v1216_v16 = vsel %vm5778_vm14, %v3041_v7, %v3040_v36  ;;  %v3056_v38 = vunpack.i.h.bf16 %v3054_v20  ;;  %v3055_v14 = vunpack.i.l.bf16 %v3054_v20  ;;  %v3059_v55 = vpop.permute.xlu1 %3058 }
 0x265   : > { %v2646_v58 = vpack.c.bf16 %v1258_v28, %v1217_v49  ;;  %vm5780_vm7 = vnez %v5779_v46  ;;  %vm5781_vm3 = vcmask 1039360   ;;  %vm5782_vm10 = vcmask 252928  }
 0x266   : > { %2587 = vmatpush1.bf16.msk.msra.mxu0 %vm5780_vm7, %v2586_v12  ;;  %v1391_v31 = vsel %vm5781_vm3, %v3036_v52, %v3035_v27  ;;  %v1299_v33 = vsel %vm5782_vm10, %v3050_v23, %v3026_v3  ;;  %vm5783_vm13 = vnez %v5558_v15  ;;  %vm5784_vm5 = vcmask 1043456   ;;  %v1372_v3 = vpop.permute.xlu0 %1371 }
 0x267   : > { %2647 = vmatpush1.bf16.msk.msra.mxu1 %vm5783_vm13, %v2646_v58  ;;  %2588 = vmatprep.subr.msk.bf16.mxu0 %vm5784_vm5, %v1557_v41  ;;  %vm5785_vm1 = vmmov %vm5784_vm5  ;;  %v5786_v28 = vunpack.i.h.bf16 %v4435_v62  ;;  %vm5787_vm14 = vcmask 261120   ;;  %v5788_v13 = vunpack.i.h.bf16 %v4433_v50  ;;  %v2617_v8 = vpack.c.bf16 %v1257_v44, %v1216_v16 }
 0x268   : > { %v1573_v36 = vsel %vm5785_vm1, %v1556_v29, 0  ;;  %vm5790_vm7 = vcmask 7168   ;;  %vm5791_vm3 = vnez %v5583_v59  ;;  %v1298_v41 = vsel %vm5782_vm10, %v3051_v22, %v3050_v23  ;;  %v3069_v51 = vpop.permute.xlu1 %3068 }
 0x269   : > { %v1256_v57 = vsel %vm5787_vm14, %v5786_v28, %v3046_v42  ;;  %v1215_v25 = vsel %vm5789_vm11, %v5788_v13, %v3041_v7  ;;  %v1340_v27 = vsel %vm5790_vm7, %v3055_v14, %v3031_v24  ;;  %2650 = vmatprep.subr.msk.bf16.mxu1 %vm5791_vm3, %v2649_v2  ;;  %vm5792_vm5 = vmmov %vm5790_vm7  ;;  %vm5793_vm1 = vcmask 1039360  }
 0x26a   : > { %v1339_v61 = vsel %vm5792_vm5, %v3056_v38, %v3055_v14  ;;  %v2652_v17 = vpack.c.bf16 %v1340_v27, %v1299_v33  ;;  %v1381_v62 = vsel %vm5793_vm1, %v1372_v3, %v3036_v52  ;;  %v2655_v42 = vpack.c.bf16 %v1391_v31, %v4384_v10  ;;  %1605 = vmatpush1.bf16.msra.mxu0 %v1573_v36  ;;  %vm5795_vm11 = vmmov %vm5782_vm10  ;;  %v5848_v10 = vld [vmem:[#allocation5_spill] sm:$0xff] }
 0x26b   : > { %v3061_v50 = vunpack.i.h.bf16 %v3059_v55  ;;  %v3060_v29 = vunpack.i.l.bf16 %v3059_v55  ;;  %v5794_v7 = vunpack.i.h.bf16 %v4465_v34  ;;  %v5796_v2 = vunpack.i.h.bf16 %v4467_v53  ;;  %vm5797_vm7 = vmmov %vm5792_vm5  ;;  %v3064_v34 = vpop.permute.xlu0 %3063 }
 0x26c   : > { %vm5798_vm14 = vnez %v5588_v5  ;;  %vm5799_vm10 = vnez %v5530_v1  ;;  %v2620_v14 = vpack.c.bf16 %v1256_v57, %v1215_v25  ;;  %v2623_v52 = vpack.c.bf16 %v1339_v61, %v1298_v41 }
 0x26d   : > { %v1297_v24 = vsel %vm5795_vm11, %v5794_v7, %v3051_v22  ;;  %v1338_v12 = vsel %vm5797_vm7, %v5796_v2, %v3056_v38  ;;  %2653 = vmatpush1.bf16.msk.msra.mxu1 %vm5798_vm14, %v2652_v17  ;;  %2618 = vmatprep.subr.msk.bf16.mxu0 %vm5799_vm10, %v2617_v8  ;;  %v2658_v44 = vpack.c.bf16 %v1381_v62, %v4382_v56  ;;  %v3066_v22 = vunpack.i.h.bf16 %v3064_v34  ;;  %v1411_v8 = vpop.permute.xlu1 %1410 }
 0x26e   : > { %vm5800_vm5 = vnez %v5612_v48  ;;  %v3065_v49 = vunpack.i.l.bf16 %v3064_v34  ;;  %v3071_v53 = vunpack.i.h.bf16 %v3069_v51  ;;  %v3070_v20 = vunpack.i.l.bf16 %v3069_v51  ;;  %v5965_v34 = vld [vmem:[#allocation26_spill] sm:$0xff] }
 0x26f   : > { %2656 = vmatprep.subr.msk.bf16.mxu1 %vm5800_vm5, %v2655_v42  ;;  %vm5801_vm1 = vcmask 588800   ;;  %v2626_v16 = vpack.c.bf16 %v1338_v12, %v1297_v24  ;;  %vm5802_vm11 = vcmask 793600   ;;  %vm5804_vm14 = vnez %v5553_v47  ;;  %v1370_v25 = vpop.permute.xlu0 %1369 }
 0x270   : > { %2589 = vmatmul.mubr.msk.bf16.vlgmr.msra.gmra.mrb[8].mxu0 %vm5801_vm1, %v4598_v32  ;;  %v1422_v58 = vsel %vm5802_vm11, %v3061_v50, %v3060_v29  ;;  %vm5803_vm7 = vmmov %vm5802_vm11  ;;  %vm5805_vm5 = vcmask 785408   ;;  %vm5807_vm13 = vcmask 777216   ;;  %v5808_v36 = vunpack.i.h.bf16 %v4527_v45 }
 0x271   : > { %v1432_v23 = vsel %vm5803_vm7, %v3060_v29, %v4431_v26  ;;  %2621 = vmatpush1.bf16.msk.msra.mxu0 %vm5804_vm14, %v2620_v14  ;;  %1710 = vmatprep.mubr.bf16.mxu0 %v5616_v0  ;;  %v1463_v38 = vsel %vm5805_vm5, %v3066_v22, %v3065_v49  ;;  %vm5806_vm3 = vmmov %vm5805_vm5  ;;  %v1504_v33 = vsel %vm5807_vm13, %v3070_v20, %v3071_v53  ;;  %v5812_v27 = vunpack.i.h.bf16 %v4505_v19  ;;  %v1493_v7 = vpop.permute.xlu1 %1492 }
 0x272   : > { %v1473_v31 = vsel %vm5806_vm3, %v3065_v49, %v4429_v40  ;;  %vm5809_vm1 = vmmov %vm5807_vm13  ;;  %vm5810_vm11 = vnez %v5620_v9  ;;  %v2664_v57 = vpack.c.bf16 %v1463_v38, %v1422_v58  ;;  %vm5811_vm7 = vnez %v5561_v11  ;;  %v5826_v49 = vld [vmem:[#allocation24_spill] sm:$0xff] }
 0x273   : > { %v1514_v28 = vsel %vm5809_vm1, %v3071_v53, %v5808_v36  ;;  %2659 = vmatpush1.bf16.msk.msra.mxu1 %vm5810_vm11, %v2658_v44  ;;  %v2661_v26 = vpack.c.bf16 %v1473_v31, %v1432_v23  ;;  %2624 = vmatprep.subr.msk.bf16.mxu0 %vm5811_vm7, %v2623_v52  ;;  %v1521_v40 = vsel %vm4236_vm4, %v1504_v33, 0.0  ;;  %vm5813_vm13 = vcmask 1039360   ;;  %v1452_v29 = vpop.permute.xlu0 %1451 }
 0x274   : > { %v1522_v13 = vsel %vm4294_vm6, %v1514_v28, 0.0  ;;  %v1379_v55 = vsel %vm5813_vm13, %v5812_v27, %v1370_v25  ;;  %vm5814_vm3 = vmmov %vm5813_vm13  ;;  %vm5815_vm5 = vnez %v5578_v4  ;;  %v1562_v62 = vpack.c.bf16 %v1521_v40, %v1521_v40 }
 0x275   : > { %v1380_v41 = vsel %vm5814_vm3, %v1370_v25, %v1372_v3  ;;  %2627 = vmatpush1.bf16.msk.msra.mxu0 %vm5815_vm5, %v2626_v16  ;;  %2662 = vmatprep.subr.msk.bf16.mxu1 %vm4257_vm9, %v2661_v26  ;;  %v1563_v17 = vpack.c.bf16 %v1522_v13, %v1522_v13  ;;  %v2632_v42 = vpack.c.bf16 %v1379_v55, %v4370_v39  ;;  %vm5816_vm1 = vcmask 793600   ;;  %v5894_v16 = vld [vmem:[#allocation18_spill] sm:$0xff] }
 0x276   : > { %v2629_v61 = vpack.c.bf16 %v1380_v41, %v4398_v60  ;;  %v1421_v19 = vsel %vm5816_vm1, %v1411_v8, %v3061_v50  ;;  %vm5817_vm13 = vnez %v5597_v6  ;;  %vm5818_vm3 = vcmask 1043456  }
 0x277   : > { %2665 = vmatpush1.bf16.msk.msra.mxu1 %vm4281_vm0, %v2664_v57  ;;  %v5819_v3 = vunpack.i.h.bf16 %v4507_v30  ;;  %vm5820_vm6 = vcmask 785408   ;;  %v5822_v12 = vunpack.i.l.bf16 %v4527_v45  ;;  %vm5823_vm0 = vcmask 777216  }
 0x278   : > { %2630 = vmatprep.subr.msk.bf16.mxu0 %vm5817_vm13, %v2629_v61  ;;  %2666 = vmatprep.subr.msk.bf16.mxu1 %vm5818_vm3, %v1563_v17  ;;  %vm5821_vm4 = vmmov %vm5820_vm6  ;;  %vm5827_vm1 = vnez %v5826_v49  ;;  %v5828_v30 = vunpack.i.h.bf16 %v4525_v63  ;;  %v5967_v49 = vld [vmem:[#allocation29_spill] sm:$0xff] }
 0x279   : > { %v1461_v24 = vsel %vm5820_vm6, %v5819_v3, %v1452_v29  ;;  %v1462_v2 = vsel %vm5821_vm4, %v1452_v29, %v3066_v22  ;;  %v1502_v14 = vsel %vm5823_vm0, %v5822_v12, %v1493_v7  ;;  %vm5824_vm9 = vmmov %vm5823_vm0  ;;  %2633 = vmatpush1.bf16.msk.msra.mxu0 %vm5827_vm1, %v2632_v42  ;;  %vm5829_vm6 = vcmask 793600  }
 0x27a   : > { %v1503_v52 = vsel %vm5824_vm9, %v1493_v7, %v3070_v20  ;;  %v2635_v50 = vpack.c.bf16 %v1462_v2, %v1421_v19  ;;  %v1519_v44 = vsel %vm4268_vm2, %v1502_v14, 0.0  ;;  %v1420_v22 = vsel %vm5829_vm6, %v5828_v30, %v1411_v8  ;;  %vm5830_vm4 = vmmov %vm5818_vm3 }
 0x27b   : > { %v1520_v51 = vsel %vm4188_vm15, %v1503_v52, 0.0  ;;  %v1591_v45 = vsel %vm5830_vm4, %v1562_v62, 0  ;;  %v2638_v53 = vpack.c.bf16 %v1461_v24, %v1420_v22  ;;  %v1560_v20 = vpack.c.bf16 %v1519_v44, %v1519_v44  ;;  %vm5834_vm0 = vmmov %vm5818_vm3 }
 0x27c   : > { %1728 = vmatpush1.bf16.msra.mxu1 %v1591_v45  ;;  %2636 = vmatprep.subr.msk.bf16.mxu0 %vm4206_vm12, %v2635_v50  ;;  %v1561_v58 = vpack.c.bf16 %v1520_v51, %v1520_v51  ;;  %vm5833_vm9 = vcmask 588800   ;;  %vm5835_vm3 = vmmov %vm5834_vm0  ;;  %vm5887_vm12 = vcmask 785408  }
 0x27d   : > { %2639 = vmatpush1.bf16.msk.msra.mxu0 %vm4214_vm8, %v2638_v53  ;;  %v1585_v63 = vsel %vm5835_vm3, %v1560_v20, 0  ;;  %vm5836_vm6 = vmmov %vm5833_vm9  ;;  %v4758_v38 = vpop.permute.xlu0 %1566  ;;  %v4761_v28 = vpop.permute.xlu1 %1774  ;;  %vm5845_vm8 = vcmask 252928  }
 0x27e   : > { %2640 = vmatprep.subr.msk.bf16.mxu0 %vm5834_vm0, %v1561_v58 }
 0x27f   : > { %2667 = vmatmul.mubr.msk.bf16.vlgmr.msra.gmra.mrb[12].mxu1 %vm5833_vm9, %v4598_v32 }
 0x280   : > { %2275 = vmatprep.mubr.bf16.mxu1 %v5616_v0 }
 0x281   : > { %1687 = vmatpush1.bf16.msra.mxu0 %v1585_v63 }
 0x284   : > { %2641 = vmatmul.mubr.msk.bf16.vlgmr.msra.gmra.mrb[12].mxu0 %vm5836_vm6, %v4598_v32 }
 0x285   : > { %2234 = vmatprep.mubr.bf16.mxu0 %v5616_v0 }
 0x32f   : > { %v1671_v31 = vpop.f32.mrb[8].mxu1 }
 0x330   : > { %v1672_v33 = vadd.f32 %v1671_v31, %v4758_v38  ;;  %v1673_v36 = vpop.f32.mrb[9].mxu1 }
 0x331   : > { %v1674_v26 = vadd.f32 %v1673_v36, %v4758_v38  ;;  %v1675_v57 = vpop.f32.mrb[10].mxu1 }
 0x332   : > { %vm1762_vm4 = vcmp.ge.f32.partialorder %v1672_v33, 0.0  ;;  %v1779_v13 = vmul.f32 %v4761_v28, %v1672_v33  ;;  %v1676_v25 = vpop.f32.mrb[11].mxu1 }
 0x333   : > { %vm1763_vm9 = vcmp.ge.f32.partialorder %v1674_v26, 0.0  ;;  %v1780_v32 = vmul.f32 %v4761_v28, %v1674_v26 }
 0x334   : > { %v4766_v8 = vsel %vm1762_vm4, %v1672_v33, %v1779_v13 }
 0x335   : > { %v4768_v40 = vsel %vm1763_vm9, %v1674_v26, %v1780_v32 }
 0x336   : > { %v3073_v27 = vpack.i.bf16 %v4768_v40, %v4766_v8 }
 0x338   : > { %3074 = vrot.lane.b32.xlu0 %v3073_v27, %s3217_s17 }
 0x33c   : > { %3079 = vrot.lane.b32.xlu0 %v3073_v27, %s3216_s16 }
 0x340   : > { %3084 = vrot.lane.b32.xlu0 %v3073_v27, %s3218_s18 }
 0x343   : > { %v1630_v55 = vpop.f32.mrb[8].mxu0 }
 0x344   : > { %v1631_v41 = vadd.f32 %v1630_v55, %v4758_v38  ;;  %v1632_v61 = vpop.f32.mrb[9].mxu0  ;;  %3089 = vrot.lane.b32.xlu0 %v3073_v27, %s3219_s19 }
 0x345   : > { %v1633_v17 = vadd.f32 %v1632_v61, %v4758_v38  ;;  %v1634_v62 = vpop.f32.mrb[10].mxu0 }
 0x346   : > { %vm1760_vm0 = vcmp.ge.f32.partialorder %v1631_v41, 0.0  ;;  %v1777_v42 = vmul.f32 %v4761_v28, %v1631_v41  ;;  %v1635_v19 = vpop.f32.mrb[11].mxu0 }
 0x347   : > { %v1778_v7 = vmul.f32 %v4761_v28, %v1633_v17  ;;  %vm1761_vm3 = vcmp.ge.f32.partialorder %v1633_v17, 0.0 }
 0x348   : > { %v4778_v29 = vsel %vm1760_vm0, %v1631_v41, %v1777_v42 }
 0x349   : > { %1965 = vrot.lane.b32.xlu1 %v4778_v29, %s3220_s20  ;;  %v4784_v3 = vsel %vm1761_vm3, %v1633_v17, %v1778_v7  ;;  %2006 = vrot.lane.b32.xlu0 %v4778_v29, %s3221_s21  ;;  %vm5837_vm3 = vcmask 269312  }
 0x34a   : > { %v3093_v24 = vpack.i.bf16 %v4784_v3, %v4778_v29  ;;  %v3118_v2 = vpack.i.bf16 %v4766_v8, %v4784_v3 }
 0x34d   : > { %2047 = vrot.lane.b32.xlu1 %v4778_v29, %s3222_s22  ;;  %3119 = vrot.lane.b32.xlu0 %v3118_v2, %s3221_s21 }
 0x351   : > { %3094 = vrot.lane.b32.xlu1 %v3093_v24, %s3217_s17  ;;  %3124 = vrot.lane.b32.xlu0 %v3118_v2, %s3222_s22 }
 0x352   : > { %v1753_v12 = vpop.f32.mrb[12].mxu1 }
 0x353   : > { %v1755_v14 = vpop.f32.mrb[13].mxu1  ;;  %v1754_v26 = vadd.f32 %v1753_v12, %v4758_v38 }
 0x354   : > { %v1756_v52 = vadd.f32 %v1755_v14, %v4758_v38  ;;  %v1757_v50 = vpop.f32.mrb[14].mxu1  ;;  %v5839_v14 = vld [vmem:[#allocation4_spill] sm:$0xff] }
 0x355   : > { %v1758_v44 = vpop.f32.mrb[15].mxu1  ;;  %3099 = vrot.lane.b32.xlu1 %v3093_v24, %s3216_s16  ;;  %v1783_v25 = vmul.f32 %v4761_v28, %v1754_v26  ;;  %vm1766_vm0 = vcmp.ge.f32.partialorder %v1754_v26, 0.0 }
 0x356   : > { %v1784_v51 = vmul.f32 %v4761_v28, %v1756_v52  ;;  %vm1767_vm6 = vcmp.ge.f32.partialorder %v1756_v52, 0.0 }
 0x357   : > { %v1712_v30 = vpop.f32.mrb[12].mxu0 }
 0x358   : > { %v1713_v22 = vadd.f32 %v1712_v30, %v4758_v38  ;;  %v1714_v45 = vpop.f32.mrb[13].mxu0  ;;  %v4801_v53 = vsel %vm1767_vm6, %v1756_v52, %v1784_v51  ;;  %vm5838_vm6 = vcmask 261120  }
 0x359   : > { %3104 = vrot.lane.b32.xlu1 %v3093_v24, %s3218_s18  ;;  %v1716_v20 = vpop.f32.mrb[14].mxu0  ;;  %1924 = vrot.lane.b32.xlu0 %v4801_v53, %s3219_s19  ;;  %v1715_v36 = vadd.f32 %v1714_v45, %v4758_v38  ;;  %v4828_v38 = vsel %vm1766_vm0, %v1754_v26, %v1783_v25  ;;  %vm5842_vm0 = vmmov %vm5837_vm3 }
 0x35a   : > { %vm1764_vm4 = vcmp.ge.f32.partialorder %v1713_v22, 0.0  ;;  %v1781_v58 = vmul.f32 %v4761_v28, %v1713_v22  ;;  %v1717_v63 = vpop.f32.mrb[15].mxu0 }
 0x35b   : > { %v1782_v13 = vmul.f32 %v4761_v28, %v1715_v36  ;;  %vm1765_vm9 = vcmp.ge.f32.partialorder %v1715_v36, 0.0 }
 0x35c   : > { %v4807_v31 = vsel %vm1764_vm4, %v1713_v22, %v1781_v58  ;;  %vm5840_vm4 = vnez %v5839_v14 }
 0x35d   : > { %3109 = vrot.lane.b32.xlu1 %v3093_v24, %s3219_s19  ;;  %v3133_v33 = vpack.i.bf16 %v4807_v31, %v4801_v53  ;;  %v3153_v57 = vpack.i.bf16 %v4807_v31, %v4768_v40  ;;  %v4824_v32 = vsel %vm1765_vm9, %v1715_v36, %v1782_v13  ;;  %vm5841_vm9 = vcmask 7168  }
 0x35e   : > { %v3173_v55 = vpack.i.bf16 %v4828_v38, %v4824_v32  ;;  %v3183_v28 = vpack.i.bf16 %v4824_v32, %v4807_v31 }
 0x35f   : > { %3134 = vrot.lane.b32.xlu0 %v3133_v33, %s3216_s16 }
 0x361   : > { %3114 = vrot.lane.b32.xlu1 %v3118_v2, %s3220_s20 }
 0x363   : > { %3139 = vrot.lane.b32.xlu0 %v3093_v24, %s3223_s23 }
 0x365   : > { %3129 = vrot.lane.b32.xlu1 %v3133_v33, %s3217_s17 }
 0x367   : > { %3154 = vrot.lane.b32.xlu0 %v3153_v57, %s3220_s20 }
 0x369   : > { %3144 = vrot.lane.b32.xlu1 %v3073_v27, %s3223_s23  ;;  %v1185_v27 = vld [vmem:[%s5222_s7] sm:$0xff] }
 0x36b   : > { %2096 = vrot.lane.b32.xlu0 %v4807_v31, %s3223_s23 }
 0x36d   : > { %1939 = vrot.lane.b32.xlu1 %v4828_v38, %s3219_s19 }
 0x36f   : > { %3174 = vrot.lane.b32.xlu0 %v3173_v55, %s3216_s16 }
 0x371   : > { %3149 = vrot.lane.b32.xlu1 %v3133_v33, %s3218_s18 }
 0x373   : > { %3184 = vrot.lane.b32.xlu0 %v3183_v28, %s3219_s19 }
 0x375   : > { %3159 = vrot.lane.b32.xlu1 %v3153_v57, %s3221_s21 }
 0x377   : > { %3189 = vrot.lane.b32.xlu0 %v3173_v55, %s3220_s20 }
 0x379   : > { %3164 = vrot.lane.b32.xlu1 %v3153_v57, %s3222_s22 }
 0x37b   : > { %3194 = vrot.lane.b32.xlu0 %v3173_v55, %s3221_s21 }
 0x37d   : > { %1979 = vrot.lane.b32.xlu1 %v4801_v53, %s3220_s20 }
 0x37f   : > { %3199 = vrot.lane.b32.xlu0 %v3173_v55, %s3222_s22 }
 0x381   : > { %3169 = vrot.lane.b32.xlu1 %v3173_v55, %s3217_s17 }
 0x383   : > { %3204 = vrot.lane.b32.xlu0 %v3173_v55, %s3223_s23 }
 0x385   : > { %3179 = vrot.lane.b32.xlu1 %v3173_v55, %s3218_s18 }
 0x387   : > { %2172 = vperm.xlu0 %3072, %v1185_v27  }
 0x389   : > { %2020 = vrot.lane.b32.xlu1 %v4801_v53, %s3221_s21  ;;  %s5194_s21 = scalar_lea.vmem %s5224_s9, %s3287_s13 }
 0x38d   : > { %2061 = vrot.lane.b32.xlu1 %v4801_v53, %s3222_s22 }
 0x391   : > { %2102 = vrot.lane.b32.xlu1 %v4801_v53, %s3223_s23 }
 0x3aa   : > { %v4858_v41 = vpop.permute.xlu0 %3074 }
 0x3ab   : > { %v5384_v61 = vunpack.i.h.bf16 %v4858_v41  ;;  %v3076_v17 = vunpack.i.l.bf16 %v4858_v41 }
 0x3ad   : > { %v1820_v7 = vsel %vm5837_vm3, %v3076_v17, %v5384_v61  ;;  %vm5843_vm3 = vmmov %vm5842_vm0 }
 0x3ae   : > { %v3080_v62 = vpop.permute.xlu0 %3079 }
 0x3af   : > { %v3082_v42 = vunpack.i.h.bf16 %v3080_v62  ;;  %v3081_v19 = vunpack.i.l.bf16 %v3080_v62 }
 0x3b1   : > { %v1861_v24 = vsel %vm5838_vm6, %v3081_v19, %v3082_v42 }
 0x3b2   : > { %v2696_v2 = vpack.c.bf16 %v1861_v24, %v1820_v7  ;;  %v4866_v12 = vpop.permute.xlu0 %3084 }
 0x3b3   : > { %v5387_v33 = vunpack.i.h.bf16 %v4866_v12  ;;  %v3086_v36 = vunpack.i.l.bf16 %v4866_v12  ;;  %v5941_v1 = vunpack.i.h.bf16 %v4866_v12 }
 0x3b4   : > { %2697 = vmatprep.subr.msk.bf16.mxu1 %vm5840_vm4, %v2696_v2  ;;  %vm5844_vm4 = vmmov %vm5838_vm6 }
 0x3b5   : > { %v1902_v24 = vsel %vm5845_vm8, %v3086_v36, %v5387_v33 }
 0x3b6   : > { %v4872_v50 = vpop.permute.xlu0 %3089 }
 0x3b7   : > { %v5385_v45 = vunpack.i.h.bf16 %v4872_v50  ;;  %v3091_v20 = vunpack.i.l.bf16 %v4872_v50 }
 0x3b9   : > { %v1943_v55 = vsel %vm5841_vm9, %v3091_v20, %v5385_v45  ;;  %v5846_v45 = vld [vmem:[#allocation3_spill] sm:$0xff] }
 0x3ba   : > { %vm5847_vm9 = vnez %v5846_v45 }
 0x3bb   : > { %v4870_v52 = vpop.permute.xlu1 %1965  ;;  %v4876_v51 = vpop.permute.xlu0 %2006 }
 0x3bf   : > { %v4874_v44 = vpop.permute.xlu1 %2047  ;;  %v4878_v22 = vpop.permute.xlu0 %3119 }
 0x3c3   : > { %v3095_v30 = vpop.permute.xlu1 %3094  ;;  %v4884_v25 = vpop.permute.xlu0 %3124 }
 0x3c4   : > { %v3097_v58 = vunpack.i.h.bf16 %v3095_v30  ;;  %v3096_v63 = vunpack.i.l.bf16 %v3095_v30 }
 0x3c6   : > { %v1818_v28 = vsel %vm5842_vm0, %v3096_v63, %v3097_v58  ;;  %v1819_v27 = vsel %vm5843_vm3, %v3097_v58, %v3076_v17  ;;  %vm5849_vm0 = vnez %v5848_v10 }
 0x3c7   : > { %v3100_v26 = vpop.permute.xlu1 %3099 }
 0x3c8   : > { %v3102_v57 = vunpack.i.h.bf16 %v3100_v26  ;;  %v3101_v13 = vunpack.i.l.bf16 %v3100_v26  ;;  %v2702_v26 = vpack.c.bf16 %v1943_v55, %v1902_v24 }
 0x3ca   : > { %v1859_v62 = vsel %vm5838_vm6, %v3101_v13, %v3102_v57  ;;  %v1860_v7 = vsel %vm5844_vm4, %v3102_v57, %v3081_v19  ;;  %v5850_v19 = vld [vmem:[#allocation8_spill] sm:$0xff]  ;;  %vm5852_vm6 = vcmask 7168  }
 0x3cb   : > { %v2670_v2 = vpack.c.bf16 %v1859_v62, %v1818_v28  ;;  %v2699_v14 = vpack.c.bf16 %v1860_v7, %v1819_v27  ;;  %v4896_v30 = vpop.permute.xlu1 %3104  ;;  %v4898_v61 = vpop.permute.xlu0 %1924  ;;  %vm5851_vm3 = vnez %v5850_v19 }
 0x3cc   : > { %v3107_v17 = vunpack.i.h.bf16 %v4896_v30 }
 0x3cd   : > { %2671 = vmatprep.subr.msk.bf16.mxu0 %vm5847_vm9, %v2670_v2  ;;  %2700 = vmatpush1.bf16.msk.msra.mxu1 %vm5849_vm0, %v2699_v14  ;;  %v5854_v14 = vld [vmem:[#allocation9_spill] sm:$0xff]  ;;  %vm5856_vm9 = vmmov %vm5852_vm6  ;;  %vm5857_vm0 = vcmask 261120  }
 0x3ce   : > { %2703 = vmatprep.subr.msk.bf16.mxu1 %vm5851_vm3, %v2702_v26  ;;  %v1901_v27 = vsel %vm5845_vm8, %v3107_v17, %v3086_v36  ;;  %vm5855_vm4 = vnez %v5854_v14  ;;  %v3106_v26 = vunpack.i.l.bf16 %v4896_v30  ;;  %vm5858_vm3 = vmmov %vm5857_vm0  ;;  %v5859_v30 = vunpack.i.h.bf16 %v4858_v41 }
 0x3cf   : > { %v3110_v58 = vpop.permute.xlu1 %3109  ;;  %vm5860_vm8 = vcmask 269312  }
 0x3d0   : > { %v3112_v57 = vunpack.i.h.bf16 %v3110_v58  ;;  %v3111_v45 = vunpack.i.l.bf16 %v3110_v58 }
 0x3d1   : > { %v4907_v28 = vpop.permute.xlu0 %3134 }
 0x3d2   : > { %v1942_v55 = vsel %vm5852_vm6, %v3112_v57, %v3091_v20  ;;  %v5388_v24 = vunpack.i.h.bf16 %v4907_v28  ;;  %v5389_v10 = vunpack.i.l.bf16 %v4907_v28  ;;  %vm5861_vm6 = vmmov %vm5860_vm8 }
 0x3d3   : > { %v2705_v62 = vpack.c.bf16 %v1942_v55, %v1901_v27  ;;  %v3115_v7 = vpop.permute.xlu1 %3114  ;;  %v1941_v27 = vsel %vm5856_vm9, %v3111_v45, %v3112_v57  ;;  %vm5863_vm9 = vcmask 1039360  }
 0x3d4   : > { %v4926_v58 = vsel %vm5857_vm0, %v3082_v42, %v5388_v24  ;;  %v1874_v55 = vsel %vm5858_vm3, %v5389_v10, %v3101_v13  ;;  %vm5864_vm0 = vmmov %vm5863_vm9  ;;  %vm5866_vm3 = vnez %v5865_v43 }
 0x3d5   : > { %v4913_v2 = vpop.permute.xlu0 %3139  ;;  %2706 = vmatpush1.bf16.msk.msra.mxu1 %vm5855_vm4, %v2705_v62  ;;  %v3117_v62 = vunpack.i.h.bf16 %v3115_v7  ;;  %vm5862_vm4 = vcmask 252928  }
 0x3d6   : > { %5853 = vst [vmem:[#allocation7_spill] sm:$0xff] %v4913_v2  ;;  %v1900_v13 = vsel %vm5862_vm4, %v3106_v26, %v3107_v17 }
 0x3d7   : > { %v4918_v19 = vpop.permute.xlu1 %3129  ;;  %v2676_v39 = vpack.c.bf16 %v1941_v27, %v1900_v13  ;;  %v5868_v27 = vld [vmem:[#allocation12_spill] sm:$0xff] }
 0x3d8   : > { %v5394_v36 = vunpack.i.h.bf16 %v4918_v19  ;;  %v5393_v20 = vunpack.i.l.bf16 %v4918_v19 }
 0x3d9   : > { %v4931_v14 = vpop.permute.xlu0 %3154 }
 0x3da   : > { %v4938_v33 = vsel %vm5860_vm8, %v5859_v30, %v5394_v36  ;;  %v1833_v57 = vsel %vm5861_vm6, %v5393_v20, %v3096_v63  ;;  %v5396_v42 = vunpack.i.h.bf16 %v4931_v14  ;;  %v3156_v24 = vunpack.i.l.bf16 %v4931_v14 }
 0x3db   : > { %v2673_v10 = vpack.c.bf16 %v1874_v55, %v1833_v57  ;;  %v3145_v56 = vpop.permute.xlu1 %3144  ;;  %vm5867_vm8 = vnez %v5746_v54  ;;  %vm5869_vm6 = vnez %v5868_v27  ;;  %v5870_v55 = vld [vmem:[#allocation13_spill] sm:$0xff]  ;;  %v5397_v57 = vunpack.i.l.bf16 %v4913_v2 }
 0x3dc   : > { %v1983_v41 = vsel %vm5863_vm9, %v3117_v62, %v3156_v24  ;;  %v1984_v30 = vsel %vm5864_vm0, %v3156_v24, %v5396_v42  ;;  %vm5871_vm4 = vnez %v5870_v55  ;;  %v3127_v54 = vunpack.i.h.bf16 %v4884_v25  ;;  %vm5872_vm9 = vmmov %vm5864_vm0 }
 0x3dd   : > { %v2708_v63 = vpack.c.bf16 %v1984_v30, %v4768_v40  ;;  %v2711_v20 = vpack.c.bf16 %v1983_v41, %v4766_v8  ;;  %v4954_v36 = vpop.permute.xlu0 %2096  ;;  %2674 = vmatpush1.bf16.msk.msra.mxu0 %vm5866_vm3, %v2673_v10  ;;  %v3116_v40 = vunpack.i.l.bf16 %v3115_v7  ;;  %v3142_v8 = vunpack.i.h.bf16 %v4913_v2 }
 0x3de   : > { %2677 = vmatprep.subr.msk.bf16.mxu0 %vm5867_vm8, %v2676_v39  ;;  %v3126_v39 = vunpack.i.l.bf16 %v4884_v25  ;;  %v3147_v10 = vunpack.i.h.bf16 %v3145_v56  ;;  %v3146_v13 = vunpack.i.l.bf16 %v3145_v56  ;;  %vm5873_vm0 = vcmask 777216  }
 0x3df   : > { %v4960_v17 = vpop.permute.xlu1 %1939  ;;  %2709 = vmatprep.subr.msk.bf16.mxu1 %vm5869_vm6, %v2708_v63  ;;  %v2104_v7 = vsel %vm5873_vm0, %v5397_v57, %v3142_v8  ;;  %v3122_v63 = vunpack.i.h.bf16 %v4878_v22  ;;  %v3121_v27 = vunpack.i.l.bf16 %v4878_v22  ;;  %vm5874_vm3 = vcmask 7168  }
 0x3e0   : > { %2712 = vmatpush1.bf16.msk.msra.mxu1 %vm5871_vm4, %v2711_v20  ;;  %v1982_v20 = vsel %vm5872_vm9, %v3116_v40, %v3117_v62  ;;  %v1956_v55 = vsel %vm5874_vm3, %v4898_v61, %v3111_v45  ;;  %vm5875_vm8 = vcmask 252928   ;;  %vm5876_vm6 = vcmask 785408   ;;  %vm5877_vm4 = vmmov %vm5872_vm9 }
 0x3e1   : > { %v4966_v24 = vpop.permute.xlu0 %3174  ;;  %v2064_v42 = vsel %vm5876_vm6, %v3126_v39, %v3127_v54  ;;  %v1981_v60 = vsel %vm5877_vm4, %v4870_v52, %v3116_v40  ;;  %v2682_v57 = vpack.c.bf16 %v1982_v20, %v4784_v3  ;;  %vm5878_vm9 = vmmov %vm5873_vm0  ;;  %vm5880_vm0 = vnez %v5879_v21  ;;  %v5888_v20 = vld [vmem:[#allocation11_spill] sm:$0xff] }
 0x3e2   : > { %v2106_v23 = vsel %vm5878_vm9, %v3146_v13, %v3147_v10  ;;  %v2121_v45 = vsel %vm5880_vm0, %v2104_v7, 0.0  ;;  %vm5881_vm3 = vmmov %vm5878_vm9  ;;  %vm5885_vm4 = vcmask 793600   ;;  %v2063_v21 = vsel %vm5887_vm12, %v4874_v44, %v3126_v39 }
 0x3e3   : > { %v4970_v43 = vpop.permute.xlu1 %3149  ;;  %v2105_v35 = vsel %vm5881_vm3, %v3142_v8, %v3146_v13  ;;  %v2022_v3 = vsel %vm5885_vm4, %v4876_v51, %v3121_v27  ;;  %vm5886_vm9 = vmmov %vm5885_vm4  ;;  %vm5889_vm0 = vnez %v5888_v20  ;;  %vm5895_vm12 = vnez %v5894_v16 }
 0x3e4   : > { %v5400_v41 = vunpack.i.l.bf16 %v4970_v43  ;;  %v2023_v40 = vsel %vm5886_vm9, %v3121_v27, %v3122_v63  ;;  %vm5898_vm9 = vcmask 785408  }
 0x3e5   : > { %v4975_v30 = vpop.permute.xlu0 %3184 }
 0x3e6   : > { %v1915_v56 = vsel %vm5875_vm8, %v5400_v41, %v3106_v26  ;;  %vm5882_vm8 = vmmov %vm5881_vm3  ;;  %v2688_v41 = vpack.c.bf16 %v2064_v42, %v2023_v40 }
 0x3e7   : > { %v4988_v25 = vpop.permute.xlu1 %3159  ;;  %v2679_v62 = vpack.c.bf16 %v1956_v55, %v1915_v56  ;;  %v2107_v26 = vsel %vm5882_vm8, %v3147_v10, %v4954_v36  ;;  %v5883_v56 = vld [vmem:[#allocation10_spill] sm:$0xff]  ;;  %v2685_v10 = vpack.c.bf16 %v1981_v60, %v4778_v29  ;;  %vm5893_vm8 = vnez %v5892_v37 }
 0x3e8   : > { %v3161_v55 = vunpack.i.l.bf16 %v4988_v25  ;;  %vm5884_vm6 = vnez %v5883_v56  ;;  %v2122_v27 = vsel %vm5893_vm8, %v2105_v35, 0.0  ;;  %v2124_v39 = vsel %vm5895_vm12, %v2107_v26, 0.0  ;;  %v5901_v37 = vld [vmem:[#allocation14_spill] sm:$0xff] }
 0x3e9   : > { %v4995_v22 = vpop.permute.xlu0 %3189  ;;  %2680 = vmatpush1.bf16.msk.msra.mxu0 %vm5884_vm6, %v2679_v62  ;;  %v5890_v62 = vld [vmem:[#allocation22_spill] sm:$0xff]  ;;  %vm5896_vm6 = vmmov %vm5885_vm4  ;;  %v5897_v60 = vunpack.i.h.bf16 %v4988_v25  ;;  %v3176_v35 = vunpack.i.l.bf16 %v4966_v24  ;;  %v5958_v6 = vunpack.i.h.bf16 %v4988_v25  ;;  %v5962_v25 = vld [vmem:[#allocation7_spill] sm:$0xff] }
 0x3ea   : > { %2683 = vmatprep.subr.msk.bf16.mxu0 %vm5889_vm0, %v2682_v57  ;;  %vm5891_vm3 = vnez %v5890_v62  ;;  %v2162_v57 = vpack.c.bf16 %v2121_v45, %v2121_v45  ;;  %v2024_v2 = vsel %vm5896_vm6, %v3122_v63, %v3161_v55  ;;  %vm5900_vm0 = vmmov %vm5898_vm9  ;;  %v5903_v45 = vld [vmem:[#allocation15_spill] sm:$0xff]  ;;  %v2165_v62 = vpack.c.bf16 %v2124_v39, %v2124_v39 }
 0x3eb   : > { %v5013_v8 = vpop.permute.xlu1 %3164  ;;  %v2123_v56 = vsel %vm5891_vm3, %v2106_v23, 0.0  ;;  %v2025_v29 = vsel %vm5885_vm4, %v3161_v55, %v5897_v60  ;;  %vm5902_vm3 = vnez %v5901_v37  ;;  %vm5904_vm8 = vnez %v5903_v45  ;;  %v5905_v60 = vld [vmem:[#allocation16_spill] sm:$0xff] }
 0x3ec   : > { %v3166_v7 = vunpack.i.l.bf16 %v5013_v8  ;;  %v5899_v23 = vunpack.i.h.bf16 %v5013_v8  ;;  %v2164_v40 = vpack.c.bf16 %v2123_v56, %v2123_v56  ;;  %v2691_v55 = vpack.c.bf16 %v2063_v21, %v2022_v3 }
 0x3ed   : > { %v5024_v20 = vpop.permute.xlu0 %3194  ;;  %2686 = vmatpush1.bf16.msk.msra.mxu0 %vm5902_vm3, %v2685_v10  ;;  %vm5906_vm12 = vnez %v5905_v60  ;;  %v2163_v10 = vpack.c.bf16 %v2122_v27, %v2122_v27  ;;  %vm5907_vm6 = vnez %v5779_v46  ;;  %vm5913_vm3 = vcmask 1043456  }
 0x3ee   : > { %v2065_v13 = vsel %vm5898_vm9, %v3127_v54, %v3166_v7  ;;  %v2066_v42 = vsel %vm5900_vm0, %v3166_v7, %v5899_v23  ;;  %2689 = vmatprep.subr.msk.bf16.mxu0 %vm5904_vm8, %v2688_v41  ;;  %v1184_v54 = vld [vmem:[%s5221_s6] sm:$0xff]  ;;  %v3177_v7 = vunpack.i.h.bf16 %v4966_v24  ;;  %vm5910_vm9 = vcmask 7168   ;;  %vm5914_vm8 = vmmov %vm5913_vm3 }
 0x3ef   : > { %v2714_v16 = vpack.c.bf16 %v2066_v42, %v2025_v29  ;;  %v2717_v26 = vpack.c.bf16 %v2065_v13, %v2024_v2  ;;  %v5039_v63 = vpop.permute.xlu1 %1979  ;;  %v5908_v2 = vld [vmem:[#allocation19_spill] sm:$0xff]  ;;  %v5053_v41 = vpack.c.bf16 %v1184_v54, %v1184_v54  ;;  %v1947_v3 = vsel %vm5910_vm9, %v4960_v17, %v4898_v61 }
 0x3f0   : > { %vm5909_vm4 = vnez %v5908_v2  ;;  %v5911_v24 = vunpack.i.h.bf16 %v4907_v28  ;;  %vm5912_vm0 = vcmask 261120   ;;  %v3187_v27 = vunpack.i.h.bf16 %v4975_v30 }
 0x3f1   : > { %2715 = vmatprep.subr.msk.bf16.mxu1 %vm5906_vm12, %v2714_v16  ;;  %v5047_v29 = vpop.permute.xlu0 %3199  ;;  %2692 = vmatpush1.bf16.msk.msra.mxu0 %vm5907_vm6, %v2691_v55  ;;  %vm5915_vm12 = vmmov %vm5913_vm3  ;;  %v3186_v39 = vunpack.i.l.bf16 %v4975_v30  ;;  %v5918_v37 = vunpack.i.l.bf16 %v4907_v28  ;;  %v3191_v45 = vunpack.i.l.bf16 %v4995_v22  ;;  %v5923_v30 = vunpack.i.l.bf16 %v4918_v19 }
 0x3f2   : > { %2718 = vmatpush1.bf16.msk.msra.mxu1 %vm5909_vm4, %v2717_v26  ;;  %v1863_v21 = vsel %vm5912_vm0, %v5911_v24, %v3176_v35  ;;  %2693 = vmatprep.subr.msk.bf16.mxu0 %vm5913_vm3, %v2163_v10  ;;  %v2179_v46 = vsel %vm5915_vm12, %v2162_v57, 0  ;;  %vm5916_vm6 = vmmov %vm5913_vm3  ;;  %v3192_v26 = vunpack.i.h.bf16 %v4995_v22  ;;  %v5920_v57 = vunpack.i.h.bf16 %v4918_v19 }
 0x3f3   : > { %v3170_v13 = vpop.permute.xlu1 %3169  ;;  %2719 = vmatprep.subr.msk.bf16.mxu1 %vm5914_vm8, %v2165_v62  ;;  %v2185_v56 = vsel %vm5916_vm6, %v2164_v40, 0  ;;  %vm5917_vm4 = vmmov %vm5912_vm0  ;;  %v3152_v28 = vunpack.i.h.bf16 %v4970_v43  ;;  %vm5925_vm12 = vcmask 7168   ;;  %v5926_v10 = vunpack.i.h.bf16 %v4872_v50 }
 0x3f4   : > { %v3172_v23 = vunpack.i.h.bf16 %v3170_v13  ;;  %v3171_v42 = vunpack.i.l.bf16 %v3170_v13  ;;  %v1864_v61 = vsel %vm5917_vm4, %v3176_v35, %v3177_v7  ;;  %vm5919_vm9 = vmmov %vm5912_vm0  ;;  %vm5921_vm0 = vcmask 269312  }
 0x3f5   : > { %v1865_v16 = vsel %vm5919_vm9, %v3177_v7, %v5918_v37  ;;  %vm5922_vm3 = vmmov %vm5921_vm0  ;;  %2211 = vmatpush1.bf16.msra.mxu0 %v2179_v46  ;;  %v1946_v22 = vsel %vm5925_vm12, %v3187_v27, %v4960_v17  ;;  %v3205_v24 = vpop.permute.xlu0 %3204  ;;  %vm5929_vm9 = vcmask 1039360   ;;  %v3201_v50 = vunpack.i.l.bf16 %v5047_v29 }
 0x3f6   : > { %v1822_v40 = vsel %vm5921_vm0, %v5920_v57, %v3171_v42  ;;  %v1823_v54 = vsel %vm5922_vm3, %v3171_v42, %v3172_v23  ;;  %vm5924_vm8 = vmmov %vm5921_vm0  ;;  %2252 = vmatpush1.bf16.msra.mxu1 %v2185_v56  ;;  %v1986_v46 = vsel %vm5929_vm9, %v3191_v45, %v3192_v26  ;;  %v3202_v56 = vunpack.i.h.bf16 %v5047_v29 }
 0x3f7   : > { %v1824_v55 = vsel %vm5924_vm8, %v3172_v23, %v5923_v30  ;;  %v2722_v35 = vpack.c.bf16 %v1863_v21, %v1822_v40  ;;  %v2751_v7 = vpack.c.bf16 %v1864_v61, %v1823_v54  ;;  %v3180_v60 = vpop.permute.xlu1 %3179  ;;  %vm5927_vm6 = vmmov %vm5925_vm12  ;;  %vm5931_vm3 = vcmask 588800  }
 0x3f8   : > { %v2748_v62 = vpack.c.bf16 %v1865_v16, %v1824_v55  ;;  %v1944_v2 = vsel %vm5927_vm6, %v5926_v10, %v3186_v39  ;;  %v3182_v13 = vunpack.i.h.bf16 %v3180_v60  ;;  %v3181_v19 = vunpack.i.l.bf16 %v3180_v60  ;;  %vm5928_vm4 = vmmov %vm5927_vm6  ;;  %2694 = vmatmul.mubr.msk.bf16.vlgmr.msra.gmra.mrb[16].mxu0 %vm5931_vm3, %v5053_v41  ;;  %v5969_v60 = vld [vmem:[#allocation28_spill] sm:$0xff] }
 0x3f9   : > { %v1945_v23 = vsel %vm5928_vm4, %v3186_v39, %v3187_v27  ;;  %vm5930_vm0 = vmmov %vm5929_vm9  ;;  %vm5933_vm12 = vcmask 252928   ;;  %v5935_v39 = vunpack.i.l.bf16 %v4970_v43  ;;  %2723 = vmatprep.subr.msk.bf16.mxu0 %vm5799_vm10, %v2722_v35  ;;  %v3206_v61 = vunpack.i.l.bf16 %v3205_v24  ;;  %2316 = vmatprep.mubr.bf16.mxu0 %v5616_v0 }
 0x3fa   : > { %v1997_v21 = vsel %vm5930_vm0, %v5039_v63, %v4870_v52  ;;  %vm5932_vm8 = vmmov %vm5931_vm3  ;;  %v1904_v17 = vsel %vm5933_vm12, %v3152_v28, %v3181_v19  ;;  %v5937_v52 = vld [vmem:[#allocation23_spill] sm:$0xff]  ;;  %v5939_v29 = vpack.c.bf16 %v4926_v58, %v4938_v33  ;;  %vm5940_vm0 = vnez %v5558_v15 }
 0x3fb   : > { %2720 = vmatmul.mubr.msk.bf16.vlgmr.msra.gmra.mrb[16].mxu1 %vm5932_vm8, %v5053_v41  ;;  %vm5934_vm6 = vmmov %vm5933_vm12  ;;  %vm5938_vm9 = vnez %v5937_v52  ;;  %v2728_v37 = vpack.c.bf16 %v1945_v23, %v1904_v17  ;;  %v2021_v43 = vpop.permute.xlu1 %2020  ;;  %v3207_v54 = vunpack.i.h.bf16 %v3205_v24  ;;  %v3196_v55 = vunpack.i.l.bf16 %v5024_v20  ;;  %v5973_v23 = vld [vmem:[#allocation27_spill] sm:$0xff] }
 0x3fc   : > { %v1905_v27 = vsel %vm5934_vm6, %v3181_v19, %v3182_v13  ;;  %vm5936_vm4 = vmmov %vm5934_vm6  ;;  %2749 = vmatprep.subr.msk.bf16.mxu1 %vm5938_vm9, %v2748_v62  ;;  %2726 = vmatpush1.bf16.msk.msra.mxu0 %vm5804_vm14, %v5939_v29  ;;  %vm5943_vm14 = vnez %v5583_v59  ;;  %v5944_v15 = vunpack.i.h.bf16 %v4931_v14  ;;  %vm5945_vm3 = vcmask 1039360   ;;  %v5983_v29 = vld [vmem:[#allocation32_spill] sm:$0xff] }
 0x3fd   : > { %v1906_v42 = vsel %vm5936_vm4, %v3182_v13, %v5935_v39  ;;  %v2757_v57 = vpack.c.bf16 %v1946_v22, %v1905_v27  ;;  %2752 = vmatpush1.bf16.msk.msra.mxu1 %vm5940_vm0, %v2751_v7  ;;  %vm5942_vm10 = vmmov %vm5936_vm4  ;;  %2729 = vmatprep.subr.msk.bf16.mxu0 %vm5811_vm7, %v2728_v37  ;;  %v2734_v12 = vpack.c.bf16 %v1986_v46, %v4824_v32  ;;  %vm5947_vm12 = vcmask 785408   ;;  %v5971_v22 = vld [vmem:[#allocation31_spill] sm:$0xff]  ;;  %v5975_v46 = vld [vmem:[#allocation30_spill] sm:$0xff] }
 0x3fe   : > { %v2754_v16 = vpack.c.bf16 %v1947_v3, %v1906_v42  ;;  %v1903_v40 = vsel %vm5942_vm10, %v5941_v1, %v3152_v28  ;;  %v3197_v3 = vunpack.i.h.bf16 %v5024_v20  ;;  %v1985_v47 = vsel %vm5945_vm3, %v5944_v15, %v3191_v45  ;;  %vm5946_vm8 = vmmov %vm5945_vm3  ;;  %2357 = vmatprep.mubr.bf16.mxu1 %v5616_v0  ;;  %v5984_v1 = vld [vmem:[#allocation33_spill] sm:$0xff]  ;;  %v5986_v15 = vld [vmem:[#allocation34_spill] sm:$0xff] }
 0x3ff   : > { %v2731_v30 = vpack.c.bf16 %v1944_v2, %v1903_v40  ;;  %v1987_v33 = vsel %vm5946_vm8, %v3192_v26, %v5039_v63  ;;  %v2760_v58 = vpack.c.bf16 %v1997_v21, %v4801_v53  ;;  %v2068_v20 = vsel %vm5947_vm12, %v3201_v50, %v3202_v56  ;;  %v2062_v59 = vpop.permute.xlu1 %2061  ;;  %vm5952_vm0 = vmmov %vm5947_vm12 }
 0x400   : > { %2755 = vmatprep.subr.msk.bf16.mxu1 %vm5943_vm14, %v2754_v16  ;;  %vm5948_vm7 = vcmask 777216   ;;  %vm5949_vm6 = vnez %v5588_v5  ;;  %vm5951_vm9 = vcmask 793600   ;;  %v2079_v0 = vsel %vm5952_vm0, %v2062_v59, %v4874_v44  ;;  %vm5956_vm14 = vmmov %vm5952_vm0 }
 0x401   : > { %v2108_v11 = vsel %vm5948_vm7, %v4954_v36, %v3206_v61  ;;  %2732 = vmatpush1.bf16.msk.msra.mxu0 %vm5815_vm5, %v2731_v30  ;;  %2758 = vmatpush1.bf16.msk.msra.mxu1 %vm5949_vm6, %v2757_v57  ;;  %vm5950_vm4 = vmmov %vm5948_vm7  ;;  %v2038_v14 = vsel %vm5951_vm9, %v2021_v43, %v4876_v51  ;;  %vm5953_vm10 = vnez %v5612_v48  ;;  %v2737_v4 = vpack.c.bf16 %v1985_v47, %v4807_v31 }
 0x402   : > { %v2109_v32 = vsel %vm5950_vm4, %v3206_v61, %v3207_v54  ;;  %2735 = vmatprep.subr.msk.bf16.mxu0 %vm5817_vm13, %v2734_v12  ;;  %2761 = vmatprep.subr.msk.bf16.mxu1 %vm5953_vm10, %v2760_v58  ;;  %vm5954_vm5 = vmmov %vm5951_vm9  ;;  %v2763_v53 = vpack.c.bf16 %v1987_v33, %v4828_v38  ;;  %v2766_v36 = vpack.c.bf16 %v2079_v0, %v2038_v14  ;;  %v5955_v63 = vunpack.i.h.bf16 %v5013_v8 }
 0x403   : > { %v2027_v5 = vsel %vm5954_vm5, %v3196_v55, %v3197_v3  ;;  %vm5957_vm3 = vmmov %vm5952_vm0  ;;  %v2126_v48 = vsel %vm4188_vm15, %v2109_v32, 0.0  ;;  %v2103_v31 = vpop.permute.xlu1 %2102  ;;  %v2125_v38 = vsel %vm4268_vm2, %v2108_v11, 0.0  ;;  %v5963_v35 = vunpack.i.l.bf16 %v5962_v25 }
 0x404   : > { %v2067_v51 = vsel %vm5956_vm14, %v5955_v63, %v3201_v50  ;;  %v2740_v26 = vpack.c.bf16 %v2068_v20, %v2027_v5  ;;  %v2069_v44 = vsel %vm5957_vm3, %v3202_v56, %v2062_v59  ;;  %vm5959_vm13 = vmmov %vm5954_vm5  ;;  %vm5966_vm15 = vnez %v5965_v34  ;;  %v5987_v5 = vld [vmem:[#allocation36_spill] sm:$0xff] }
 0x405   : > { %v2026_v45 = vsel %vm5959_vm13, %v5958_v6, %v3196_v55  ;;  %2738 = vmatpush1.bf16.msk.msra.mxu0 %vm5827_vm1, %v2737_v4  ;;  %2764 = vmatpush1.bf16.msk.msra.mxu1 %vm5810_vm11, %v2763_v53  ;;  %vm5960_vm8 = vmmov %vm5954_vm5  ;;  %vm5968_vm1 = vnez %v5967_v49  ;;  %vm5970_vm11 = vnez %v5969_v60  ;;  %vm5972_vm2 = vnez %v5971_v22 }
 0x406   : > { %v2028_v8 = vsel %vm5960_vm8, %v3197_v3, %v2021_v43  ;;  %vm5961_vm12 = vmmov %vm5950_vm4  ;;  %2741 = vmatprep.subr.msk.bf16.mxu0 %vm5966_vm15, %v2740_v26  ;;  %2767 = vmatprep.subr.msk.bf16.mxu1 %vm5968_vm1, %v2766_v36  ;;  %v2743_v9 = vpack.c.bf16 %v2067_v51, %v2026_v45  ;;  %v2167_v13 = vpack.c.bf16 %v2126_v48, %v2126_v48  ;;  %vm5977_vm9 = vcmask 1043456   ;;  %v2173_v50 = vpop.permute.xlu0 %2172  ;;  %v5985_v3 = vld [vmem:[#allocation35_spill] sm:$0xff]  ;;  %v5988_v36 = vld [vmem:[#allocation37_spill] sm:$0xff] }
 0x407   : > { %v2110_v28 = vsel %vm5961_vm12, %v3207_v54, %v2103_v31  ;;  %vm5964_vm7 = vmmov %vm5950_vm4  ;;  %v2769_v7 = vpack.c.bf16 %v2069_v44, %v2028_v8  ;;  %v2166_v19 = vpack.c.bf16 %v2125_v38, %v2125_v38  ;;  %vm5974_vm6 = vnez %v5973_v23  ;;  %v5989_v44 = vld [vmem:[#allocation39_spill] sm:$0xff]  ;;  %v5990_v45 = vld [vmem:[#allocation38_spill] sm:$0xff] }
 0x408   : > { %v2120_v62 = vsel %vm5964_vm7, %v2103_v31, %v5963_v35  ;;  %v2127_v18 = vsel %vm5970_vm11, %v2110_v28, 0.0  ;;  %vm5976_vm4 = vnez %v5975_v46  ;;  %vm5978_vm0 = vmmov %vm5977_vm9  ;;  %vm5981_vm14 = vcmask 588800  }
 0x409   : > { %v2128_v10 = vsel %vm5972_vm2, %v2120_v62, 0.0  ;;  %v2168_v2 = vpack.c.bf16 %v2127_v18, %v2127_v18  ;;  %2744 = vmatpush1.bf16.msk.msra.mxu0 %vm5974_vm6, %v2743_v9  ;;  %2770 = vmatpush1.bf16.msk.msra.mxu1 %vm5976_vm4, %v2769_v7  ;;  %vm5979_vm10 = vmmov %vm5978_vm0 }
 0x40a   : > { %v2169_v24 = vpack.c.bf16 %v2128_v10, %v2128_v10  ;;  %2745 = vmatprep.subr.msk.bf16.mxu0 %vm5977_vm9, %v2167_v13  ;;  %vm5980_vm5 = vmmov %vm5978_vm0 }
 0x40b   : > { %v2197_v21 = vsel %vm5979_vm10, %v2168_v2, 0  ;;  %v2191_v56 = vsel %vm5980_vm5, %v2166_v19, 0  ;;  %vm5982_vm3 = vmmov %vm5981_vm14 }
 0x40c   : > { %2771 = vmatprep.subr.msk.bf16.mxu1 %vm5978_vm0, %v2169_v24 }
 0x40d   : > { %2293 = vmatpush1.bf16.msra.mxu0 %v2191_v56  ;;  %2334 = vmatpush1.bf16.msra.mxu1 %v2197_v21 }
 0x410   : > { %2746 = vmatmul.mubr.msk.bf16.vlgmr.msra.gmra.mrb[20].mxu0 %vm5981_vm14, %v5053_v41  ;;  %2772 = vmatmul.mubr.msk.bf16.vlgmr.msra.gmra.mrb[20].mxu1 %vm5982_vm3, %v5053_v41 }
 0x4cb   : > { %v2236_v17 = vpop.f32.mrb[16].mxu0 }
 0x4cc   : > { %v2237_v39 = vadd.f32 %v2236_v17, %v2173_v50  ;;  %v2238_v42 = vpop.f32.mrb[17].mxu0 }
 0x4cd   : > { %v2239_v37 = vadd.f32 %v2238_v42, %v2173_v50  ;;  %v2240_v16 = vpop.f32.mrb[18].mxu0 }
 0x4ce   : > { %v2277_v27 = vpop.f32.mrb[16].mxu1  ;;  %v2366_v43 = vadd.f32 %v2237_v39, %v5983_v29  ;;  %v2241_v54 = vpop.f32.mrb[19].mxu0 }
 0x4cf   : > { %v2278_v52 = vadd.f32 %v2277_v27, %v2173_v50  ;;  %v2279_v61 = vpop.f32.mrb[17].mxu1  ;;  %v2367_v55 = vadd.f32 %v2239_v37, %v5985_v3 }
 0x4d0   : > { %v2280_v57 = vadd.f32 %v2279_v61, %v2173_v50  ;;  %v2281_v41 = vpop.f32.mrb[18].mxu1  ;;  %2374 = vst [vmem:[%s5194_s21] sm:$0xff] %v2366_v43 }
 0x4d1   : > { %v2368_v40 = vadd.f32 %v2278_v52, %v5984_v1  ;;  %v2282_v30 = vpop.f32.mrb[19].mxu1  ;;  %2375 = vst [vmem:[%s5194_s21 + $0x8] sm:$0xff] %v2367_v55 }
 0x4d2   : > { %v2369_v47 = vadd.f32 %v2280_v57, %v5986_v15 }
 0x4d3   : > { %2376 = vst [vmem:[%s5194_s21 + $0x10] sm:$0xff] %v2368_v40 }
 0x4d4   : > { %2377 = vst [vmem:[%s5194_s21 + $0x18] sm:$0xff] %v2369_v47 }
 0x4e3   : > { %v2318_v12 = vpop.f32.mrb[20].mxu0  ;;  %v2359_v33 = vpop.f32.mrb[20].mxu1 }
 0x4e4   : > { %v2319_v58 = vadd.f32 %v2318_v12, %v2173_v50  ;;  %v2360_v20 = vadd.f32 %v2359_v33, %v2173_v50  ;;  %v2320_v11 = vpop.f32.mrb[21].mxu0  ;;  %v2361_v59 = vpop.f32.mrb[21].mxu1 }
 0x4e5   : > { %v2321_v32 = vadd.f32 %v2320_v11, %v2173_v50  ;;  %v2362_v14 = vadd.f32 %v2361_v59, %v2173_v50  ;;  %v2322_v0 = vpop.f32.mrb[22].mxu0  ;;  %v2363_v4 = vpop.f32.mrb[22].mxu1 }
 0x4e6   : > { %v2370_v53 = vadd.f32 %v2319_v58, %v5987_v5  ;;  %v2372_v63 = vadd.f32 %v2360_v20, %v5988_v36  ;;  %v2323_v51 = vpop.f32.mrb[23].mxu0  ;;  %v2364_v26 = vpop.f32.mrb[23].mxu1 }
 0x4e7   : > { %v2371_v6 = vadd.f32 %v2321_v32, %v5989_v44  ;;  %v2373_v48 = vadd.f32 %v2362_v14, %v5990_v45 }
 0x4e8   : > { %2378 = vst [vmem:[%s5194_s21 + $0x20] sm:$0xff] %v2370_v53  ;;  %2380 = vst [vmem:[%s5194_s21 + $0x30] sm:$0xff] %v2372_v63 }
 0x4e9   : > { %2379 = vst [vmem:[%s5194_s21 + $0x28] sm:$0xff] %v2371_v6  ;;  %2381 = vst [vmem:[%s5194_s21 + $0x38] sm:$0xff] %v2373_v48 }
 0x4ea PF: > { %s21_s11 = sadd.s32 1, %s3214_s11  }
 0x4eb   : > { %p18_p4 = scmp.ge.s32.totalorder %s21_s11, 4  }
 0x4ed   :  { %20 = sbr.rel (!%p18_p4) target bundleno = 3 (0x3), region = 89 }

</bundles_post_ra>
